<compile_context>
chip_gen: v7x
topology: tpu7x:2x2x1
jax: 0.10.0
libtpu: 0.0.40
codegen_flags: <defaults>
</compile_context>

<pallas_src>
import functools
import math

import jax
import jax.numpy as jnp
from jax.experimental import pallas as pl
from jax.experimental.pallas import tpu as pltpu


COMPUTE_DTYPE = jnp.bfloat16           # activations / weights fed to the MXU
_NEG_INF = -1e30                       # finite mask value (NaN-safe)


def _round_up(x, m):
    return ((x + m - 1) // m) * m


def _vmem_limit_bytes():
    # Per-generation scoped-VMEM budget: leave headroom on 64 MiB parts (v7x), allow bigger
    # working sets on 128 MiB parts (v5e/v6e).
    cap = 128 * 1024 * 1024
    try:
        cap = int(pltpu.get_tpu_info().vmem_capacity_bytes)
    except Exception:
        pass
    return (44 if cap <= 64 * 1024 * 1024 else 80) * 1024 * 1024


_VMEM_LIMIT = _vmem_limit_bytes()


# ----------------------------- tile selection -------------------------------

_K_CANDIDATES = (1024, 768, 512, 384, 256, 128)
_N_CANDIDATES = (1024, 768, 512, 384, 256, 128)


def _pick_k_tile(K):
    """Reduction-dim tile: full K when it fits, else a divisor (no padding for CLIP dims)."""
    if K <= 2048:
        return K, K
    for c in _K_CANDIDATES:
        if K % c == 0:
            return c, K
    return 512, _round_up(K, 512)      # fallback (never hit for CLIP widths)


def _pick_n_tile(N):
    """Output-dim tile: full N when small, else a 128-multiple divisor of N."""
    if N <= 512:
        return N, N
    for c in _N_CANDIDATES:
        if N % c == 0:
            return c, N
    return 512, _round_up(N, 512)      # fallback (never hit for CLIP widths)


# ----------------------------- Pallas kernels ------------------------------

def _matmul_epilogue(acc, b_ref, r_ref, o_ref, activation):
    y = acc + b_ref[...].astype(jnp.float32)
    if activation == "gelu":
        # exact GELU (erf), matching nn.GELU() default (approximate='none')
        y = 0.5 * y * (1.0 + jax.lax.erf(y * (1.0 / math.sqrt(2.0))))
    if r_ref is not None:
        y = y + r_ref[...].astype(jnp.float32)
    o_ref[...] = y.astype(o_ref.dtype)


def _matmul_kernel_single(x_ref, w_ref, b_ref, *rest, activation, has_residual):
    # Whole-K matmul: no accumulator scratch, epilogue fused directly.
    if has_residual:
        r_ref, o_ref = rest
    else:
        (o_ref,), r_ref = rest, None
    acc = jnp.dot(x_ref[...], w_ref[...], preferred_element_type=jnp.float32)
    _matmul_epilogue(acc, b_ref, r_ref, o_ref, activation)


def _matmul_kernel_multi(x_ref, w_ref, b_ref, *rest, activation, has_residual):
    if has_residual:
        r_ref, o_ref, acc_ref = rest
    else:
        (o_ref, acc_ref), r_ref = rest, None

    k = pl.program_id(2)

    @pl.when(k == 0)
    def _():
        acc_ref[...] = jnp.zeros_like(acc_ref)

    acc_ref[...] += jnp.dot(x_ref[...], w_ref[...],
                            preferred_element_type=jnp.float32)

    @pl.when(k == pl.num_programs(2) - 1)
    def _():
        _matmul_epilogue(acc_ref[...], b_ref, r_ref, o_ref, activation)


def matmul_bias(x, w, b=None, activation=None, residual=None, out_dtype=None):
    """y = act(x @ w + b) (+ residual).  x: (M, K), w: (K, N) pre-transposed, b: (N,) or None."""
    M, K = x.shape
    Kw, N = w.shape
    assert Kw == K
    out_dtype = out_dtype or COMPUTE_DTYPE

    TK, Kp = _pick_k_tile(K)
    TN, Np = _pick_n_tile(N)
    TM = _round_up(M, 8) if M <= 1024 else 512
    Mp = _round_up(M, TM)
    nk = Kp // TK

    xd = x.astype(COMPUTE_DTYPE)
    if (Mp, Kp) != (M, K):
        xd = jnp.pad(xd, ((0, Mp - M), (0, Kp - K)))
    wd = w.astype(COMPUTE_DTYPE)
    if (Kp, Np) != (K, N):
        # Fallback only; tile selection keeps Kp==K and Np==N for CLIP / test dims.
        wd = jnp.pad(wd, ((0, Kp - K), (0, Np - N)))
    if b is None:
        bd = jnp.zeros((1, Np), jnp.float32)
    else:
        bd = b.astype(jnp.float32).reshape(1, N)
        if Np != N:
            bd = jnp.pad(bd, ((0, 0), (0, Np - N)))

    inputs = [xd, wd, bd]
    in_specs = [
        pl.BlockSpec((TM, TK), lambda i, j, k: (i, k)),
        pl.BlockSpec((TK, TN), lambda i, j, k: (k, j)),
        pl.BlockSpec((1, TN), lambda i, j, k: (0, j)),
    ]
    has_residual = residual is not None
    if has_residual:
        rd = residual.astype(COMPUTE_DTYPE)
        if (Mp, Np) != (M, N):
            rd = jnp.pad(rd, ((0, Mp - M), (0, Np - N)))
        inputs.append(rd)
        in_specs.append(pl.BlockSpec((TM, TN), lambda i, j, k: (i, j)))

    kern = _matmul_kernel_single if nk == 1 else _matmul_kernel_multi
    scratch = [] if nk == 1 else [pltpu.VMEM((TM, TN), jnp.float32)]

    # Honest streamed-bytes estimate: x re-read per N tile, w re-read per M tile.
    bytes_accessed = int(2 * (Mp * Kp * (Np // TN) + Kp * Np * (Mp // TM))
                         + Mp * Np * jnp.dtype(out_dtype).itemsize
                         + (Mp * Np * 2 if has_residual else 0))

    out = pl.pallas_call(
        functools.partial(kern, activation=activation, has_residual=has_residual),
        grid=(Mp // TM, Np // TN, nk),
        in_specs=in_specs,
        out_specs=pl.BlockSpec((TM, TN), lambda i, j, k: (i, j)),
        out_shape=jax.ShapeDtypeStruct((Mp, Np), out_dtype),
        scratch_shapes=scratch,
        compiler_params=pltpu.CompilerParams(
            dimension_semantics=("parallel", "parallel", "arbitrary"),
            vmem_limit_bytes=_VMEM_LIMIT),
        cost_estimate=pl.CostEstimate(
            flops=int(2 * Mp * Np * Kp),
            transcendentals=int(Mp * Np) if activation == "gelu" else 0,
            bytes_accessed=bytes_accessed),
    )(*inputs)
    if (Mp, Np) != (M, N):
        out = out[:M, :N]
    return out


def _layernorm_kernel(x_ref, g_ref, b_ref, o_ref, *, eps):
    x = x_ref[...].astype(jnp.float32)
    mu = jnp.mean(x, axis=-1, keepdims=True)
    xc = x - mu
    var = jnp.mean(xc * xc, axis=-1, keepdims=True)
    y = xc * jax.lax.rsqrt(var + eps)
    o_ref[...] = (y * g_ref[...] + b_ref[...]).astype(o_ref.dtype)


def layernorm(x, g, b, eps=1e-5, out_dtype=None):
    shape = x.shape
    D = shape[-1]
    out_dtype = out_dtype or COMPUTE_DTYPE
    x2 = x.reshape(-1, D)
    M = x2.shape[0]
    TM = min(1024, _round_up(M, 8))
    Mp = _round_up(M, TM)
    if Mp != M:
        x2 = jnp.pad(x2, ((0, Mp - M), (0, 0)))
    out = pl.pallas_call(
        functools.partial(_layernorm_kernel, eps=eps),
        grid=(Mp // TM,),
        in_specs=[
            pl.BlockSpec((TM, D), lambda i: (i, 0)),
            pl.BlockSpec((1, D), lambda i: (0, 0)),
            pl.BlockSpec((1, D), lambda i: (0, 0)),
        ],
        out_specs=pl.BlockSpec((TM, D), lambda i: (i, 0)),
        out_shape=jax.ShapeDtypeStruct((Mp, D), out_dtype),
        compiler_params=pltpu.CompilerParams(
            dimension_semantics=("parallel",),
            vmem_limit_bytes=_VMEM_LIMIT),
    )(x2, g.reshape(1, D).astype(jnp.float32), b.reshape(1, D).astype(jnp.float32))
    if Mp != M:
        out = out[:M]
    return out.reshape(shape)


def _flash_attn_kernel(*args, has_bias):
    # q is pre-scaled by 1/sqrt(hd) (folded into the q projection weights).
    if has_bias:
        q_ref, k_ref, v_ref, bias_ref, o_ref, m_sc, l_sc, acc_sc = args
    else:
        q_ref, k_ref, v_ref, o_ref, m_sc, l_sc, acc_sc = args
        bias_ref = None

    ki = pl.program_id(2)

    @pl.when(ki == 0)
    def _():
        m_sc[...] = jnp.full_like(m_sc, _NEG_INF)
        l_sc[...] = jnp.zeros_like(l_sc)
        acc_sc[...] = jnp.zeros_like(acc_sc)

    s = jnp.einsum("bqd,bkd->bqk", q_ref[...], k_ref[...],
                   preferred_element_type=jnp.float32)
    if bias_ref is not None:
        # additive kv-padding bias: 0 for valid positions, -1e30 for padded ones
        s = s + bias_ref[...]

    m_prev = m_sc[...]
    m_new = jnp.maximum(m_prev, jnp.max(s, axis=-1, keepdims=True))
    alpha = jnp.exp(m_prev - m_new)
    p = jnp.exp(s - m_new)
    l_sc[...] = alpha * l_sc[...] + jnp.sum(p, axis=-1, keepdims=True)
    acc_sc[...] = alpha * acc_sc[...] + jnp.einsum(
        "bqk,bkd->bqd", p.astype(v_ref.dtype), v_ref[...],
        preferred_element_type=jnp.float32)
    m_sc[...] = m_new

    @pl.when(ki == pl.num_programs(2) - 1)
    def _():
        o_ref[...] = (acc_sc[...] *
                      pl.reciprocal(l_sc[...], approx=True)).astype(o_ref.dtype)


def attention_core(q, k, v):
    """Flash-style softmax attention.  q, k, v: (BH, L, hd) -> (BH, L, hd).
    q is expected pre-scaled by 1/sqrt(hd)."""
    BH, L, hd = q.shape
    blk = min(256, _round_up(L, 8))           # q / kv tile along the sequence axis
    Lp = _round_up(L, blk)
    bh_blk = min(8, BH)                        # head grouping for lane density
    BHp = _round_up(BH, bh_blk)

    def _pad(t):
        if (BHp, Lp) != (BH, L):
            return jnp.pad(t, ((0, BHp - BH), (0, Lp - L), (0, 0)))
        return t

    qp, kp, vp = _pad(q), _pad(k), _pad(v)
    needs_mask = Lp != L

    inputs = [qp, kp, vp]
    in_specs = [
        pl.BlockSpec((bh_blk, blk, hd), lambda b, qi, ki: (b, qi, 0)),
        pl.BlockSpec((bh_blk, blk, hd), lambda b, qi, ki: (b, ki, 0)),
        pl.BlockSpec((bh_blk, blk, hd), lambda b, qi, ki: (b, ki, 0)),
    ]
    if needs_mask:
        kv_bias = jnp.where(jnp.arange(Lp) < L, 0.0, _NEG_INF).astype(jnp.float32)
        inputs.append(kv_bias.reshape(1, 1, Lp))
        in_specs.append(pl.BlockSpec((1, 1, blk), lambda b, qi, ki: (0, 0, ki)))

    itemsize = jnp.dtype(q.dtype).itemsize
    n_q = Lp // blk
    out = pl.pallas_call(
        functools.partial(_flash_attn_kernel, has_bias=needs_mask),
        grid=(BHp // bh_blk, n_q, Lp // blk),
        in_specs=in_specs,
        out_specs=pl.BlockSpec((bh_blk, blk, hd), lambda b, qi, ki: (b, qi, 0)),
        out_shape=jax.ShapeDtypeStruct((BHp, Lp, hd), q.dtype),
        scratch_shapes=[
            pltpu.VMEM((bh_blk, blk, 1), jnp.float32),   # running max  m
            pltpu.VMEM((bh_blk, blk, 1), jnp.float32),   # running sum  l
            pltpu.VMEM((bh_blk, blk, hd), jnp.float32),  # accumulator
        ],
        compiler_params=pltpu.CompilerParams(
            dimension_semantics=("parallel", "parallel", "arbitrary"),
            vmem_limit_bytes=_VMEM_LIMIT),
        cost_estimate=pl.CostEstimate(
            flops=int(4 * BHp * Lp * Lp * hd),
            transcendentals=int(BHp * Lp * Lp),
            # q + out once, K/V streamed once per q tile
            bytes_accessed=int(itemsize * BHp * Lp * hd * (2 + 2 * n_q))),
    )(*inputs)
    if (BHp, Lp) != (BH, L):
        out = out[:BH, :L, :]
    return out


# --------------------------- Module-level wrappers --------------------------

def multihead_attention(x, p, heads, residual):
    """nn.MultiheadAttention(width, heads) self-attention, seq-first convention:
    x is (L, N, E), attention over L.  The residual is fused into the out-proj epilogue.
    The in_proj is pre-split into q/k/v matmuls (no fused-qkv slicing pass); the softmax
    scale is folded into the q weights at init time."""
    L, N, E = x.shape
    hd = E // heads
    x2 = x.reshape(L * N, E)
    q = matmul_bias(x2, p["q_w"], p["q_b"])
    k = matmul_bias(x2, p["k_w"], p["k_b"])
    v = matmul_bias(x2, p["v_w"], p["v_b"])

    # TODO(synk): the head-major transpose is kept as an XLA copy (the batch-middle einsum a
    # transpose-free kernel needs does not lower robustly in Mosaic at all shapes).
    def heads_first(t):
        return t.reshape(L, N * heads, hd).transpose(1, 0, 2)   # (N*H, L, hd)

    o = attention_core(heads_first(q), heads_first(k), heads_first(v))
    o = o.transpose(1, 0, 2).reshape(L * N, E)
    out = matmul_bias(o, p["out_proj_w"], p["out_proj_b"],
                      residual=residual.reshape(L * N, E))
    return out.reshape(L, N, E)


def transformer_layer(x, p, heads):
    B, S, W = x.shape
    h = layernorm(x, p["ln1_g"], p["ln1_b"])
    # The PyTorch module passes (batch, seq, width) straight into a seq-first MHA:
    # attention mixes over dim 0.  Residual add is fused into the out-proj kernel.
    x = multihead_attention(h, p["attn"], heads, residual=x)
    h = layernorm(x, p["ln2_g"], p["ln2_b"])
    h = matmul_bias(h.reshape(-1, W), p["fc1_w"], p["fc1_b"], activation="gelu")
    # Second residual add fused into the fc2 epilogue.
    h = matmul_bias(h, p["fc2_w"], p["fc2_b"], residual=x.reshape(-1, W))
    return h.reshape(B, S, W)


def transformer(x, p, heads, prompt_depth):
    for idx, lp in enumerate(p["layers"]):
        if idx < prompt_depth:
            prompt = p["prompt"][idx].astype(x.dtype)      # (prompt_length, W)
            prompt_b = jnp.broadcast_to(prompt[None], (x.shape[0],) + prompt.shape)
            x = jnp.concatenate([prompt_b, x], axis=1)
        x = transformer_layer(x, lp, heads)
    return x


def encode_image(params, image, cfg):
    B = image.shape[0]
    ps = cfg["vision_patch_size"]
    Vw = cfg["vision_width"]
    R = cfg["image_resolution"]
    Hp = R // ps
    # patchify NCHW -> (B*P, 3*ps*ps); matches Conv2d(stride=patch, no bias) as a matmul
    patches = image.reshape(B, 3, Hp, ps, Hp, ps).transpose(0, 2, 4, 1, 3, 5)
    patches = patches.reshape(B * Hp * Hp, 3 * ps * ps)
    x = matmul_bias(patches, params["conv1_w"]).reshape(B, Hp * Hp, Vw)

    cls = jnp.broadcast_to(params["class_embedding"][None, None, :],
                           (B, 1, Vw)).astype(x.dtype)
    x = jnp.concatenate([cls, x], axis=1)
    x = x + params["positional_embedding"][None].astype(x.dtype)
    x = layernorm(x, params["ln_pre_g"], params["ln_pre_b"])
    x = transformer(x, params["visual"], cfg["transformer_heads"], cfg["prompt_depth"])
    x = layernorm(x[:, 0, :], params["ln_post_g"], params["ln_post_b"])
    return matmul_bias(x, params["visual_proj"], out_dtype=jnp.float32)


def encode_text(params, text, cfg):
    # TODO(synk): embedding lookup (gather) stays in plain JAX; a DMA-gather Pallas
    # version is possible but not needed for correctness here.
    emb = jnp.take(params["token_embedding"], text, axis=0)  # (B, T, Tw)
    x = (emb + params["positional_embedding_text"][None]).astype(COMPUTE_DTYPE)
    x = transformer(x, params["text"], cfg["transformer_heads"], cfg["prompt_depth"])
    x = layernorm(x[:, 0, :], params["ln_final_g"], params["ln_final_b"])
    return matmul_bias(x, params["text_proj"], out_dtype=jnp.float32)


def clip_forward(params, image, text, cfg):
    return encode_image(params, image, cfg), encode_text(params, text, cfg)


# ------------------------------ Parameter init ------------------------------
# Linear / conv weights are stored pre-transposed in (K, N) layout and in bf16 so the
# steady-state forward never re-transposes, re-pads or re-casts multi-MiB weights per call.
# The MHA in_proj is stored pre-split into q/k/v and the 1/sqrt(head_dim) softmax scale is
# folded into the q weights and bias.

def init_params(key, cfg):
    keys = iter(jax.random.split(key, 512))

    def nrm(shape, scale=0.02, dtype=COMPUTE_DTYPE):
        return (scale * jax.random.normal(next(keys), shape, jnp.float32)).astype(dtype)

    def layer_params(W, heads):
        hd = W // heads
        q_scale = hd ** (-0.5)
        return {
            "attn": {
                # (K, N) = in_proj_weight[:W].T etc.; q pre-scaled by 1/sqrt(hd)
                "q_w": (nrm((W, W)).astype(jnp.float32) * q_scale).astype(COMPUTE_DTYPE),
                "q_b": jnp.zeros((W,), jnp.float32) * q_scale,
                "k_w": nrm((W, W)),
                "k_b": jnp.zeros((W,), jnp.float32),
                "v_w": nrm((W, W)),
                "v_b": jnp.zeros((W,), jnp.float32),
                "out_proj_w": nrm((W, W)),                    # out_proj.weight.T
                "out_proj_b": jnp.zeros((W,), jnp.float32),
            },
            "ln1_g": jnp.ones((W,), jnp.float32),
            "ln1_b": jnp.zeros((W,), jnp.float32),
            "fc1_w": nrm((W, 4 * W)),                         # Linear(W,4W).weight.T
            "fc1_b": jnp.zeros((4 * W,), jnp.float32),
            "fc2_w": nrm((4 * W, W)),                         # Linear(4W,W).weight.T
            "fc2_b": jnp.zeros((W,), jnp.float32),
            "ln2_g": jnp.ones((W,), jnp.float32),
            "ln2_b": jnp.zeros((W,), jnp.float32),
        }

    Vw = cfg["vision_width"]
    Tw = cfg["transformer_width"]
    ps = cfg["vision_patch_size"]
    R = cfg["image_resolution"]
    H = cfg["transformer_heads"]
    P = (R // ps) ** 2
    vscale = Vw ** (-0.5)

    params = {
        # (3*ps*ps, Vw) = conv1.weight.reshape(Vw, -1).T, rows in (c, ph, pw) order
        "conv1_w": nrm((3 * ps * ps, Vw)),
        "class_embedding": vscale * jax.random.normal(next(keys), (Vw,), jnp.float32),
        "positional_embedding": vscale * jax.random.normal(next(keys), (P + 1, Vw), jnp.float32),
        "ln_pre_g": jnp.ones((Vw,), jnp.float32),
        "ln_pre_b": jnp.zeros((Vw,), jnp.float32),
        "visual": {
            "layers": [layer_params(Vw, H) for _ in range(cfg["vision_layers"])],
            "prompt": jax.random.normal(
                next(keys), (cfg["prompt_depth"], cfg["prompt_length"], Vw), jnp.float32),
        },
        "ln_post_g": jnp.ones((Vw,), jnp.float32),
        "ln_post_b": jnp.zeros((Vw,), jnp.float32),
        "visual_proj": vscale * jax.random.normal(next(keys), (Vw, cfg["embed_dim"]), jnp.float32),
        "token_embedding": 0.02 * jax.random.normal(next(keys), (cfg["vocab_size"], Tw), jnp.float32),
        "positional_embedding_text": vscale * jax.random.normal(
            next(keys), (cfg["context_length"], Tw), jnp.float32),
        "text": {
            "layers": [layer_params(Tw, H) for _ in range(cfg["transformer_layers"])],
            "prompt": jax.random.normal(
                next(keys), (cfg["prompt_depth"], cfg["prompt_length"], Tw), jnp.float32),
        },
        "ln_final_g": jnp.ones((Tw,), jnp.float32),
        "ln_final_b": jnp.zeros((Tw,), jnp.float32),
        "text_proj": vscale * jax.random.normal(next(keys), (Tw, cfg["embed_dim"]), jnp.float32),
    }
    return params


# ---------------------------------- Driver ----------------------------------

if __name__ == "__main__":
    cfg = dict(
        embed_dim=16,
        image_resolution=16,
        vision_layers=2,
        vision_width=32,
        vision_patch_size=4,
        context_length=8,
        vocab_size=64,
        transformer_width=32,
        transformer_heads=4,
        transformer_layers=2,
        prompt_length=2,
        prompt_depth=1,
    )
    B = 2

    root = jax.random.PRNGKey(0)
    k_param, k_img, k_txt = jax.random.split(root, 3)
    params = init_params(k_param, cfg)

    image = jax.random.normal(k_img, (B, 3, cfg["image_resolution"], cfg["image_resolution"]),
                              jnp.float32)
    text = jax.random.randint(k_txt, (B, cfg["context_length"]), 0, cfg["vocab_size"],
                              dtype=jnp.int32)

    fwd = jax.jit(functools.partial(clip_forward, cfg=cfg))
    image_features, text_features = fwd(params, image, text)
    jax.block_until_ready((image_features, text_features))

    assert image_features.shape == (B, cfg["embed_dim"])
    assert text_features.shape == (B, cfg["embed_dim"])
    assert bool(jnp.all(jnp.isfinite(image_features))) and bool(jnp.all(jnp.isfinite(text_features)))
    print("KERNEL_OK")
</pallas_src>

<mosaic_0001>
module attributes {stable_mosaic.version = 11 : i64} {
  func.func @_matmul_kernel_single(%arg0: i32, %arg1: i32, %arg2: i32, %arg3: memref<32x48xbf16, #tpu.memory_space<vmem>>, %arg4: memref<48x32xbf16, #tpu.memory_space<vmem>>, %arg5: memref<1x32xf32, #tpu.memory_space<vmem>>, %arg6: memref<32x32xbf16, #tpu.memory_space<vmem>>) attributes {dimension_semantics = [#tpu.dimension_semantics<parallel>, #tpu.dimension_semantics<parallel>, #tpu.dimension_semantics<arbitrary>], iteration_bounds = array<i64: 1, 1, 1>, scalar_prefetch = 0 : i64, scratch_operands = 0 : i64, tpu.core_type = #tpu.core_type<tc>, window_params = [{transform_indices = @transform_0, window_bounds = array<i64: 32, 48>}, {transform_indices = @transform_1, window_bounds = array<i64: 48, 32>}, {transform_indices = @transform_2, window_bounds = array<i64: 1, 32>}, {transform_indices = @transform_3, window_bounds = array<i64: 32, 32>}]} {
    %c0 = arith.constant 0 : index
    %c0_0 = arith.constant 0 : index
    %0 = vector.load %arg3[%c0, %c0_0] : memref<32x48xbf16, #tpu.memory_space<vmem>>, vector<32x48xbf16>
    %c0_1 = arith.constant 0 : index
    %c0_2 = arith.constant 0 : index
    %1 = vector.load %arg4[%c0_1, %c0_2] : memref<48x32xbf16, #tpu.memory_space<vmem>>, vector<48x32xbf16>
    %cst = arith.constant dense<0.000000e+00> : vector<32x32xf32>
    %2 = tpu.matmul %0, %1, %cst {dimension_numbers = #tpu.dot_dimension_numbers<[1], [0], [0], [1], [0, 0, 1, 1], [], []>} : vector<32x48xbf16>, vector<48x32xbf16>, vector<32x32xf32> -> vector<32x32xf32>
    %c0_3 = arith.constant 0 : index
    %c0_4 = arith.constant 0 : index
    %3 = vector.load %arg5[%c0_3, %c0_4] : memref<1x32xf32, #tpu.memory_space<vmem>>, vector<1x32xf32>
    %4 = vector.broadcast %3 : vector<1x32xf32> to vector<32x32xf32>
    %5 = arith.addf %2, %4 : vector<32x32xf32>
    %6 = arith.truncf %5 : vector<32x32xf32> to vector<32x32xbf16>
    %c0_5 = arith.constant 0 : index
    %c0_6 = arith.constant 0 : index
    %7 = vector.load %arg6[%c0_5, %c0_6] : memref<32x32xbf16, #tpu.memory_space<vmem>>, vector<32x32xbf16>
    tpu.vector_store %arg6[%c0_5, %c0_6], %6 {strides = array<i32>} : memref<32x32xbf16, #tpu.memory_space<vmem>>, vector<32x32xbf16>,
    return
  }
  func.func @transform_0(%arg0: i32, %arg1: i32, %arg2: i32) -> (i32, i32) {
    %c0_i32 = arith.constant 0 : i32
    return %arg0, %arg2 : i32, i32
  }
  func.func @transform_1(%arg0: i32, %arg1: i32, %arg2: i32) -> (i32, i32) {
    %c0_i32 = arith.constant 0 : i32
    return %arg2, %arg1 : i32, i32
  }
  func.func @transform_2(%arg0: i32, %arg1: i32, %arg2: i32) -> (i32, i32) {
    %c0_i32 = arith.constant 0 : i32
    %c0_i32_0 = arith.constant 0 : i32
    return %c0_i32, %arg1 : i32, i32
  }
  func.func @transform_3(%arg0: i32, %arg1: i32, %arg2: i32) -> (i32, i32) {
    %c0_i32 = arith.constant 0 : i32
    return %arg0, %arg1 : i32, i32
  }
}

module attributes {stable_mosaic.version = 11 : i64} {
  func.func @_layernorm_kernel(%arg0: i32, %arg1: memref<40x32xbf16, #tpu.memory_space<vmem>>, %arg2: memref<1x32xf32, #tpu.memory_space<vmem>>, %arg3: memref<1x32xf32, #tpu.memory_space<vmem>>, %arg4: memref<40x32xbf16, #tpu.memory_space<vmem>>) attributes {dimension_semantics = [#tpu.dimension_semantics<parallel>], iteration_bounds = array<i64: 1>, scalar_prefetch = 0 : i64, scratch_operands = 0 : i64, tpu.core_type = #tpu.core_type<tc>, window_params = [{transform_indices = @transform_0, window_bounds = array<i64: 40, 32>}, {pipeline_mode = #tpu.pipeline_mode<synchronous>, transform_indices = @transform_1, window_bounds = array<i64: 1, 32>}, {pipeline_mode = #tpu.pipeline_mode<synchronous>, transform_indices = @transform_2, window_bounds = array<i64: 1, 32>}, {transform_indices = @transform_3, window_bounds = array<i64: 40, 32>}]} {
    %c0 = arith.constant 0 : index
    %c0_0 = arith.constant 0 : index
    %0 = vector.load %arg1[%c0, %c0_0] : memref<40x32xbf16, #tpu.memory_space<vmem>>, vector<40x32xbf16>
    %1 = arith.extf %0 : vector<40x32xbf16> to vector<40x32xf32>
    %cst = arith.constant dense<0.000000e+00> : vector<40xf32>
    %2 = vector.multi_reduction <add>, %1, %cst [1] : vector<40x32xf32> to vector<40xf32>
    %3 = vector.shape_cast %2 : vector<40xf32> to vector<40x1xf32>
    %cst_1 = arith.constant 3.200000e+01 : f32
    %4 = vector.broadcast %cst_1 : f32 to vector<40x1xf32>
    %5 = arith.divf %3, %4 : vector<40x1xf32>
    %6 = vector.broadcast %5 : vector<40x1xf32> to vector<40x32xf32>
    %7 = arith.subf %1, %6 : vector<40x32xf32>
    %8 = arith.mulf %7, %7 : vector<40x32xf32>
    %cst_2 = arith.constant dense<0.000000e+00> : vector<40xf32>
    %9 = vector.multi_reduction <add>, %8, %cst_2 [1] : vector<40x32xf32> to vector<40xf32>
    %10 = vector.shape_cast %9 : vector<40xf32> to vector<40x1xf32>
    %cst_3 = arith.constant 3.200000e+01 : f32
    %11 = vector.broadcast %cst_3 : f32 to vector<40x1xf32>
    %12 = arith.divf %10, %11 : vector<40x1xf32>
    %cst_4 = arith.constant 9.99999974E-6 : f32
    %13 = vector.broadcast %cst_4 : f32 to vector<40x1xf32>
    %14 = arith.addf %12, %13 : vector<40x1xf32>
    %15 = math.rsqrt %14 : vector<40x1xf32>
    %16 = vector.broadcast %15 : vector<40x1xf32> to vector<40x32xf32>
    %17 = arith.mulf %7, %16 : vector<40x32xf32>
    %c0_5 = arith.constant 0 : index
    %c0_6 = arith.constant 0 : index
    %18 = vector.load %arg2[%c0_5, %c0_6] : memref<1x32xf32, #tpu.memory_space<vmem>>, vector<1x32xf32>
    %19 = vector.broadcast %18 : vector<1x32xf32> to vector<40x32xf32>
    %20 = arith.mulf %17, %19 : vector<40x32xf32>
    %c0_7 = arith.constant 0 : index
    %c0_8 = arith.constant 0 : index
    %21 = vector.load %arg3[%c0_7, %c0_8] : memref<1x32xf32, #tpu.memory_space<vmem>>, vector<1x32xf32>
    %22 = vector.broadcast %21 : vector<1x32xf32> to vector<40x32xf32>
    %23 = arith.addf %20, %22 : vector<40x32xf32>
    %24 = arith.truncf %23 : vector<40x32xf32> to vector<40x32xbf16>
    %c0_9 = arith.constant 0 : index
    %c0_10 = arith.constant 0 : index
    %25 = vector.load %arg4[%c0_9, %c0_10] : memref<40x32xbf16, #tpu.memory_space<vmem>>, vector<40x32xbf16>
    tpu.vector_store %arg4[%c0_9, %c0_10], %24 {strides = array<i32>} : memref<40x32xbf16, #tpu.memory_space<vmem>>, vector<40x32xbf16>,
    return
  }
  func.func @transform_0(%arg0: i32) -> (i32, i32) {
    %c0_i32 = arith.constant 0 : i32
    %c0_i32_0 = arith.constant 0 : i32
    return %arg0, %c0_i32 : i32, i32
  }
  func.func @transform_1(%arg0: i32) -> (i32, i32) {
    %c0_i32 = arith.constant 0 : i32
    %c0_i32_0 = arith.constant 0 : i32
    %c0_i32_1 = arith.constant 0 : i32
    return %c0_i32, %c0_i32_0 : i32, i32
  }
  func.func @transform_2(%arg0: i32) -> (i32, i32) {
    %c0_i32 = arith.constant 0 : i32
    %c0_i32_0 = arith.constant 0 : i32
    %c0_i32_1 = arith.constant 0 : i32
    return %c0_i32, %c0_i32_0 : i32, i32
  }
  func.func @transform_3(%arg0: i32) -> (i32, i32) {
    %c0_i32 = arith.constant 0 : i32
    %c0_i32_0 = arith.constant 0 : i32
    return %arg0, %c0_i32 : i32, i32
  }
}

module attributes {stable_mosaic.version = 11 : i64} {
  func.func @_matmul_kernel_single(%arg0: i32, %arg1: i32, %arg2: i32, %arg3: memref<40x32xbf16, #tpu.memory_space<vmem>>, %arg4: memref<32x32xbf16, #tpu.memory_space<vmem>>, %arg5: memref<1x32xf32, #tpu.memory_space<vmem>>, %arg6: memref<40x32xbf16, #tpu.memory_space<vmem>>) attributes {dimension_semantics = [#tpu.dimension_semantics<parallel>, #tpu.dimension_semantics<parallel>, #tpu.dimension_semantics<arbitrary>], iteration_bounds = array<i64: 1, 1, 1>, scalar_prefetch = 0 : i64, scratch_operands = 0 : i64, tpu.core_type = #tpu.core_type<tc>, window_params = [{transform_indices = @transform_0, window_bounds = array<i64: 40, 32>}, {transform_indices = @transform_1, window_bounds = array<i64: 32, 32>}, {transform_indices = @transform_2, window_bounds = array<i64: 1, 32>}, {transform_indices = @transform_3, window_bounds = array<i64: 40, 32>}]} {
    %c0 = arith.constant 0 : index
    %c0_0 = arith.constant 0 : index
    %0 = vector.load %arg3[%c0, %c0_0] : memref<40x32xbf16, #tpu.memory_space<vmem>>, vector<40x32xbf16>
    %c0_1 = arith.constant 0 : index
    %c0_2 = arith.constant 0 : index
    %1 = vector.load %arg4[%c0_1, %c0_2] : memref<32x32xbf16, #tpu.memory_space<vmem>>, vector<32x32xbf16>
    %cst = arith.constant dense<0.000000e+00> : vector<40x32xf32>
    %2 = tpu.matmul %0, %1, %cst {dimension_numbers = #tpu.dot_dimension_numbers<[1], [0], [0], [1], [0, 0, 1, 1], [], []>} : vector<40x32xbf16>, vector<32x32xbf16>, vector<40x32xf32> -> vector<40x32xf32>
    %c0_3 = arith.constant 0 : index
    %c0_4 = arith.constant 0 : index
    %3 = vector.load %arg5[%c0_3, %c0_4] : memref<1x32xf32, #tpu.memory_space<vmem>>, vector<1x32xf32>
    %4 = vector.broadcast %3 : vector<1x32xf32> to vector<40x32xf32>
    %5 = arith.addf %2, %4 : vector<40x32xf32>
    %6 = arith.truncf %5 : vector<40x32xf32> to vector<40x32xbf16>
    %c0_5 = arith.constant 0 : index
    %c0_6 = arith.constant 0 : index
    %7 = vector.load %arg6[%c0_5, %c0_6] : memref<40x32xbf16, #tpu.memory_space<vmem>>, vector<40x32xbf16>
    tpu.vector_store %arg6[%c0_5, %c0_6], %6 {strides = array<i32>} : memref<40x32xbf16, #tpu.memory_space<vmem>>, vector<40x32xbf16>,
    return
  }
  func.func @transform_0(%arg0: i32, %arg1: i32, %arg2: i32) -> (i32, i32) {
    %c0_i32 = arith.constant 0 : i32
    return %arg0, %arg2 : i32, i32
  }
  func.func @transform_1(%arg0: i32, %arg1: i32, %arg2: i32) -> (i32, i32) {
    %c0_i32 = arith.constant 0 : i32
    return %arg2, %arg1 : i32, i32
  }
  func.func @transform_2(%arg0: i32, %arg1: i32, %arg2: i32) -> (i32, i32) {
    %c0_i32 = arith.constant 0 : i32
    %c0_i32_0 = arith.constant 0 : i32
    return %c0_i32, %arg1 : i32, i32
  }
  func.func @transform_3(%arg0: i32, %arg1: i32, %arg2: i32) -> (i32, i32) {
    %c0_i32 = arith.constant 0 : i32
    return %arg0, %arg1 : i32, i32
  }
}

module attributes {stable_mosaic.version = 11 : i64} {
  func.func @_flash_attn_kernel(%arg0: i32, %arg1: i32, %arg2: i32, %arg3: memref<8x8x8xbf16, #tpu.memory_space<vmem>>, %arg4: memref<8x8x8xbf16, #tpu.memory_space<vmem>>, %arg5: memref<8x8x8xbf16, #tpu.memory_space<vmem>>, %arg6: memref<1x1x8xf32, #tpu.memory_space<vmem>>, %arg7: memref<8x8x8xbf16, #tpu.memory_space<vmem>>, %arg8: memref<8x8x1xf32, #tpu.memory_space<vmem>>, %arg9: memref<8x8x1xf32, #tpu.memory_space<vmem>>, %arg10: memref<8x8x8xf32, #tpu.memory_space<vmem>>) attributes {dimension_semantics = [#tpu.dimension_semantics<parallel>, #tpu.dimension_semantics<parallel>, #tpu.dimension_semantics<arbitrary>], iteration_bounds = array<i64: 10, 1, 1>, scalar_prefetch = 0 : i64, scratch_operands = 3 : i64, tpu.core_type = #tpu.core_type<tc>, window_params = [{transform_indices = @transform_0, window_bounds = array<i64: 8, 8, 8>}, {transform_indices = @transform_1, window_bounds = array<i64: 8, 8, 8>}, {transform_indices = @transform_2, window_bounds = array<i64: 8, 8, 8>}, {transform_indices = @transform_3, window_bounds = array<i64: 1, 1, 8>}, {transform_indices = @transform_4, window_bounds = array<i64: 8, 8, 8>}]} {
    %c0_i32 = arith.constant 0 : i32
    %0 = arith.cmpi eq, %arg2, %c0_i32 : i32
    %1 = arith.extui %0 : i1 to i32
    %c0_i32_0 = arith.constant 0 : i32
    %2 = arith.cmpi ne, %1, %c0_i32_0 : i32
    scf.if %2 {
      %cst_35 = arith.constant -1.000000e+30 : f32
      %36 = vector.broadcast %cst_35 : f32 to vector<8x8x1xf32>
      %c0_36 = arith.constant 0 : index
      %c0_37 = arith.constant 0 : index
      %c0_38 = arith.constant 0 : index
      %37 = vector.load %arg8[%c0_36, %c0_37, %c0_38] : memref<8x8x1xf32, #tpu.memory_space<vmem>>, vector<8x8x1xf32>
      tpu.vector_store %arg8[%c0_36, %c0_37, %c0_38], %36 {strides = array<i32>} : memref<8x8x1xf32, #tpu.memory_space<vmem>>, vector<8x8x1xf32>,
      %cst_39 = arith.constant 0.000000e+00 : f32
      %38 = vector.broadcast %cst_39 : f32 to vector<8x8x1xf32>
      %c0_40 = arith.constant 0 : index
      %c0_41 = arith.constant 0 : index
      %c0_42 = arith.constant 0 : index
      %39 = vector.load %arg9[%c0_40, %c0_41, %c0_42] : memref<8x8x1xf32, #tpu.memory_space<vmem>>, vector<8x8x1xf32>
      tpu.vector_store %arg9[%c0_40, %c0_41, %c0_42], %38 {strides = array<i32>} : memref<8x8x1xf32, #tpu.memory_space<vmem>>, vector<8x8x1xf32>,
      %cst_43 = arith.constant 0.000000e+00 : f32
      %40 = vector.broadcast %cst_43 : f32 to vector<8x8x8xf32>
      %c0_44 = arith.constant 0 : index
      %c0_45 = arith.constant 0 : index
      %c0_46 = arith.constant 0 : index
      %41 = vector.load %arg10[%c0_44, %c0_45, %c0_46] : memref<8x8x8xf32, #tpu.memory_space<vmem>>, vector<8x8x8xf32>
      tpu.vector_store %arg10[%c0_44, %c0_45, %c0_46], %40 {strides = array<i32>} : memref<8x8x8xf32, #tpu.memory_space<vmem>>, vector<8x8x8xf32>,
    } else {
    }
    %c0 = arith.constant 0 : index
    %c0_1 = arith.constant 0 : index
    %c0_2 = arith.constant 0 : index
    %3 = vector.load %arg3[%c0, %c0_1, %c0_2] : memref<8x8x8xbf16, #tpu.memory_space<vmem>>, vector<8x8x8xbf16>
    %c0_3 = arith.constant 0 : index
    %c0_4 = arith.constant 0 : index
    %c0_5 = arith.constant 0 : index
    %4 = vector.load %arg4[%c0_3, %c0_4, %c0_5] : memref<8x8x8xbf16, #tpu.memory_space<vmem>>, vector<8x8x8xbf16>
    "tpu.trace_start"() <{level = 10 : i32, message = "bqd,bkd->bqk"}> : () -> ()
    %cst = arith.constant dense<0.000000e+00> : vector<8x8x8xf32>
    %5 = tpu.matmul %3, %4, %cst {dimension_numbers = #tpu.dot_dimension_numbers<[2], [2], [1], [1], [0, 0, 0, 1, 1, 1], [0], [0]>} : vector<8x8x8xbf16>, vector<8x8x8xbf16>, vector<8x8x8xf32> -> vector<8x8x8xf32>
    "tpu.trace_stop"() : () -> ()
    %c0_6 = arith.constant 0 : index
    %c0_7 = arith.constant 0 : index
    %c0_8 = arith.constant 0 : index
    %6 = vector.load %arg6[%c0_6, %c0_7, %c0_8] : memref<1x1x8xf32, #tpu.memory_space<vmem>>, vector<1x1x8xf32>
    %7 = vector.broadcast %6 : vector<1x1x8xf32> to vector<8x8x8xf32>
    %8 = arith.addf %5, %7 : vector<8x8x8xf32>
    %c0_9 = arith.constant 0 : index
    %c0_10 = arith.constant 0 : index
    %c0_11 = arith.constant 0 : index
    %9 = vector.load %arg8[%c0_9, %c0_10, %c0_11] : memref<8x8x1xf32, #tpu.memory_space<vmem>>, vector<8x8x1xf32>
    %cst_12 = arith.constant dense<0xFF800000> : vector<8x8xf32>
    %10 = vector.multi_reduction <maximumf>, %8, %cst_12 [2] : vector<8x8x8xf32> to vector<8x8xf32>
    %11 = vector.shape_cast %10 : vector<8x8xf32> to vector<8x8x1xf32>
    %12 = arith.maximumf %9, %11 : vector<8x8x1xf32>
    %13 = arith.subf %9, %12 : vector<8x8x1xf32>
    %14 = math.exp %13 : vector<8x8x1xf32>
    %15 = vector.broadcast %12 : vector<8x8x1xf32> to vector<8x8x8xf32>
    %16 = arith.subf %8, %15 : vector<8x8x8xf32>
    %17 = math.exp %16 : vector<8x8x8xf32>
    %c0_13 = arith.constant 0 : index
    %c0_14 = arith.constant 0 : index
    %c0_15 = arith.constant 0 : index
    %18 = vector.load %arg9[%c0_13, %c0_14, %c0_15] : memref<8x8x1xf32, #tpu.memory_space<vmem>>, vector<8x8x1xf32>
    %19 = arith.mulf %14, %18 : vector<8x8x1xf32>
    %cst_16 = arith.constant dense<0.000000e+00> : vector<8x8xf32>
    %20 = vector.multi_reduction <add>, %17, %cst_16 [2] : vector<8x8x8xf32> to vector<8x8xf32>
    %21 = vector.shape_cast %20 : vector<8x8xf32> to vector<8x8x1xf32>
    %22 = arith.addf %19, %21 : vector<8x8x1xf32>
    %c0_17 = arith.constant 0 : index
    %c0_18 = arith.constant 0 : index
    %c0_19 = arith.constant 0 : index
    %23 = vector.load %arg9[%c0_17, %c0_18, %c0_19] : memref<8x8x1xf32, #tpu.memory_space<vmem>>, vector<8x8x1xf32>
    tpu.vector_store %arg9[%c0_17, %c0_18, %c0_19], %22 {strides = array<i32>} : memref<8x8x1xf32, #tpu.memory_space<vmem>>, vector<8x8x1xf32>,
    %c0_20 = arith.constant 0 : index
    %c0_21 = arith.constant 0 : index
    %c0_22 = arith.constant 0 : index
    %24 = vector.load %arg10[%c0_20, %c0_21, %c0_22] : memref<8x8x8xf32, #tpu.memory_space<vmem>>, vector<8x8x8xf32>
    %25 = vector.broadcast %14 : vector<8x8x1xf32> to vector<8x8x8xf32>
    %26 = arith.mulf %25, %24 : vector<8x8x8xf32>
    %27 = arith.truncf %17 : vector<8x8x8xf32> to vector<8x8x8xbf16>
    %c0_23 = arith.constant 0 : index
    %c0_24 = arith.constant 0 : index
    %c0_25 = arith.constant 0 : index
    %28 = vector.load %arg5[%c0_23, %c0_24, %c0_25] : memref<8x8x8xbf16, #tpu.memory_space<vmem>>, vector<8x8x8xbf16>
    "tpu.trace_start"() <{level = 10 : i32, message = "bqk,bkd->bqd"}> : () -> ()
    %cst_26 = arith.constant dense<0.000000e+00> : vector<8x8x8xf32>
    %29 = tpu.matmul %27, %28, %cst_26 {dimension_numbers = #tpu.dot_dimension_numbers<[2], [1], [1], [2], [0, 0, 0, 1, 1, 2], [0], [0]>} : vector<8x8x8xbf16>, vector<8x8x8xbf16>, vector<8x8x8xf32> -> vector<8x8x8xf32>
    "tpu.trace_stop"() : () -> ()
    %30 = arith.addf %26, %29 : vector<8x8x8xf32>
    %c0_27 = arith.constant 0 : index
    %c0_28 = arith.constant 0 : index
    %c0_29 = arith.constant 0 : index
    %31 = vector.load %arg10[%c0_27, %c0_28, %c0_29] : memref<8x8x8xf32, #tpu.memory_space<vmem>>, vector<8x8x8xf32>
    tpu.vector_store %arg10[%c0_27, %c0_28, %c0_29], %30 {strides = array<i32>} : memref<8x8x8xf32, #tpu.memory_space<vmem>>, vector<8x8x8xf32>,
    %c0_30 = arith.constant 0 : index
    %c0_31 = arith.constant 0 : index
    %c0_32 = arith.constant 0 : index
    %32 = vector.load %arg8[%c0_30, %c0_31, %c0_32] : memref<8x8x1xf32, #tpu.memory_space<vmem>>, vector<8x8x1xf32>
    tpu.vector_store %arg8[%c0_30, %c0_31, %c0_32], %12 {strides = array<i32>} : memref<8x8x1xf32, #tpu.memory_space<vmem>>, vector<8x8x1xf32>,
    %c0_i32_33 = arith.constant 0 : i32
    %33 = arith.cmpi eq, %arg2, %c0_i32_33 : i32
    %34 = arith.extui %33 : i1 to i32
    %c0_i32_34 = arith.constant 0 : i32
    %35 = arith.cmpi ne, %34, %c0_i32_34 : i32
    scf.if %35 {
      %c0_35 = arith.constant 0 : index
      %c0_36 = arith.constant 0 : index
      %c0_37 = arith.constant 0 : index
      %36 = vector.load %arg10[%c0_35, %c0_36, %c0_37] : memref<8x8x8xf32, #tpu.memory_space<vmem>>, vector<8x8x8xf32>
      %c0_38 = arith.constant 0 : index
      %c0_39 = arith.constant 0 : index
      %c0_40 = arith.constant 0 : index
      %37 = vector.load %arg9[%c0_38, %c0_39, %c0_40] : memref<8x8x1xf32, #tpu.memory_space<vmem>>, vector<8x8x1xf32>
      %38 = tpu.reciprocal %37 {approx = true} : vector<8x8x1xf32> -> vector<8x8x1xf32>
      %39 = vector.broadcast %38 : vector<8x8x1xf32> to vector<8x8x8xf32>
      %40 = arith.mulf %36, %39 : vector<8x8x8xf32>
      %41 = arith.truncf %40 : vector<8x8x8xf32> to vector<8x8x8xbf16>
      %c0_41 = arith.constant 0 : index
      %c0_42 = arith.constant 0 : index
      %c0_43 = arith.constant 0 : index
      %42 = vector.load %arg7[%c0_41, %c0_42, %c0_43] : memref<8x8x8xbf16, #tpu.memory_space<vmem>>, vector<8x8x8xbf16>
      tpu.vector_store %arg7[%c0_41, %c0_42, %c0_43], %41 {strides = array<i32>} : memref<8x8x8xbf16, #tpu.memory_space<vmem>>, vector<8x8x8xbf16>,
    } else {
    }
    return
  }
  func.func @transform_0(%arg0: i32, %arg1: i32, %arg2: i32) -> (i32, i32, i32) {
    %c0_i32 = arith.constant 0 : i32
    %c0_i32_0 = arith.constant 0 : i32
    return %arg0, %arg1, %c0_i32 : i32, i32, i32
  }
  func.func @transform_1(%arg0: i32, %arg1: i32, %arg2: i32) -> (i32, i32, i32) {
    %c0_i32 = arith.constant 0 : i32
    %c0_i32_0 = arith.constant 0 : i32
    return %arg0, %arg2, %c0_i32 : i32, i32, i32
  }
  func.func @transform_2(%arg0: i32, %arg1: i32, %arg2: i32) -> (i32, i32, i32) {
    %c0_i32 = arith.constant 0 : i32
    %c0_i32_0 = arith.constant 0 : i32
    return %arg0, %arg2, %c0_i32 : i32, i32, i32
  }
  func.func @transform_3(%arg0: i32, %arg1: i32, %arg2: i32) -> (i32, i32, i32) {
    %c0_i32 = arith.constant 0 : i32
    %c0_i32_0 = arith.constant 0 : i32
    %c0_i32_1 = arith.constant 0 : i32
    return %c0_i32, %c0_i32_0, %arg2 : i32, i32, i32
  }
  func.func @transform_4(%arg0: i32, %arg1: i32, %arg2: i32) -> (i32, i32, i32) {
    %c0_i32 = arith.constant 0 : i32
    %c0_i32_0 = arith.constant 0 : i32
    return %arg0, %arg1, %c0_i32 : i32, i32, i32
  }
}

module attributes {stable_mosaic.version = 11 : i64} {
  func.func @_matmul_kernel_single(%arg0: i32, %arg1: i32, %arg2: i32, %arg3: memref<40x32xbf16, #tpu.memory_space<vmem>>, %arg4: memref<32x32xbf16, #tpu.memory_space<vmem>>, %arg5: memref<1x32xf32, #tpu.memory_space<vmem>>, %arg6: memref<40x32xbf16, #tpu.memory_space<vmem>>, %arg7: memref<40x32xbf16, #tpu.memory_space<vmem>>) attributes {dimension_semantics = [#tpu.dimension_semantics<parallel>, #tpu.dimension_semantics<parallel>, #tpu.dimension_semantics<arbitrary>], iteration_bounds = array<i64: 1, 1, 1>, scalar_prefetch = 0 : i64, scratch_operands = 0 : i64, tpu.core_type = #tpu.core_type<tc>, window_params = [{transform_indices = @transform_0, window_bounds = array<i64: 40, 32>}, {transform_indices = @transform_1, window_bounds = array<i64: 32, 32>}, {transform_indices = @transform_2, window_bounds = array<i64: 1, 32>}, {transform_indices = @transform_3, window_bounds = array<i64: 40, 32>}, {transform_indices = @transform_4, window_bounds = array<i64: 40, 32>}]} {
    %c0 = arith.constant 0 : index
    %c0_0 = arith.constant 0 : index
    %0 = vector.load %arg3[%c0, %c0_0] : memref<40x32xbf16, #tpu.memory_space<vmem>>, vector<40x32xbf16>
    %c0_1 = arith.constant 0 : index
    %c0_2 = arith.constant 0 : index
    %1 = vector.load %arg4[%c0_1, %c0_2] : memref<32x32xbf16, #tpu.memory_space<vmem>>, vector<32x32xbf16>
    %cst = arith.constant dense<0.000000e+00> : vector<40x32xf32>
    %2 = tpu.matmul %0, %1, %cst {dimension_numbers = #tpu.dot_dimension_numbers<[1], [0], [0], [1], [0, 0, 1, 1], [], []>} : vector<40x32xbf16>, vector<32x32xbf16>, vector<40x32xf32> -> vector<40x32xf32>
    %c0_3 = arith.constant 0 : index
    %c0_4 = arith.constant 0 : index
    %3 = vector.load %arg5[%c0_3, %c0_4] : memref<1x32xf32, #tpu.memory_space<vmem>>, vector<1x32xf32>
    %4 = vector.broadcast %3 : vector<1x32xf32> to vector<40x32xf32>
    %5 = arith.addf %2, %4 : vector<40x32xf32>
    %c0_5 = arith.constant 0 : index
    %c0_6 = arith.constant 0 : index
    %6 = vector.load %arg6[%c0_5, %c0_6] : memref<40x32xbf16, #tpu.memory_space<vmem>>, vector<40x32xbf16>
    %7 = arith.extf %6 : vector<40x32xbf16> to vector<40x32xf32>
    %8 = arith.addf %5, %7 : vector<40x32xf32>
    %9 = arith.truncf %8 : vector<40x32xf32> to vector<40x32xbf16>
    %c0_7 = arith.constant 0 : index
    %c0_8 = arith.constant 0 : index
    %10 = vector.load %arg7[%c0_7, %c0_8] : memref<40x32xbf16, #tpu.memory_space<vmem>>, vector<40x32xbf16>
    tpu.vector_store %arg7[%c0_7, %c0_8], %9 {strides = array<i32>} : memref<40x32xbf16, #tpu.memory_space<vmem>>, vector<40x32xbf16>,
    return
  }
  func.func @transform_0(%arg0: i32, %arg1: i32, %arg2: i32) -> (i32, i32) {
    %c0_i32 = arith.constant 0 : i32
    return %arg0, %arg2 : i32, i32
  }
  func.func @transform_1(%arg0: i32, %arg1: i32, %arg2: i32) -> (i32, i32) {
    %c0_i32 = arith.constant 0 : i32
    return %arg2, %arg1 : i32, i32
  }
  func.func @transform_2(%arg0: i32, %arg1: i32, %arg2: i32) -> (i32, i32) {
    %c0_i32 = arith.constant 0 : i32
    %c0_i32_0 = arith.constant 0 : i32
    return %c0_i32, %arg1 : i32, i32
  }
  func.func @transform_3(%arg0: i32, %arg1: i32, %arg2: i32) -> (i32, i32) {
    %c0_i32 = arith.constant 0 : i32
    return %arg0, %arg1 : i32, i32
  }
  func.func @transform_4(%arg0: i32, %arg1: i32, %arg2: i32) -> (i32, i32) {
    %c0_i32 = arith.constant 0 : i32
    return %arg0, %arg1 : i32, i32
  }
}

module attributes {stable_mosaic.version = 11 : i64} {
  func.func @_matmul_kernel_single(%arg0: i32, %arg1: i32, %arg2: i32, %arg3: memref<40x32xbf16, #tpu.memory_space<vmem>>, %arg4: memref<32x128xbf16, #tpu.memory_space<vmem>>, %arg5: memref<1x128xf32, #tpu.memory_space<vmem>>, %arg6: memref<40x128xbf16, #tpu.memory_space<vmem>>) attributes {dimension_semantics = [#tpu.dimension_semantics<parallel>, #tpu.dimension_semantics<parallel>, #tpu.dimension_semantics<arbitrary>], iteration_bounds = array<i64: 1, 1, 1>, scalar_prefetch = 0 : i64, scratch_operands = 0 : i64, tpu.core_type = #tpu.core_type<tc>, window_params = [{transform_indices = @transform_0, window_bounds = array<i64: 40, 32>}, {transform_indices = @transform_1, window_bounds = array<i64: 32, 128>}, {transform_indices = @transform_2, window_bounds = array<i64: 1, 128>}, {transform_indices = @transform_3, window_bounds = array<i64: 40, 128>}]} {
    %c0 = arith.constant 0 : index
    %c0_0 = arith.constant 0 : index
    %0 = vector.load %arg3[%c0, %c0_0] : memref<40x32xbf16, #tpu.memory_space<vmem>>, vector<40x32xbf16>
    %c0_1 = arith.constant 0 : index
    %c0_2 = arith.constant 0 : index
    %1 = vector.load %arg4[%c0_1, %c0_2] : memref<32x128xbf16, #tpu.memory_space<vmem>>, vector<32x128xbf16>
    %cst = arith.constant dense<0.000000e+00> : vector<40x128xf32>
    %2 = tpu.matmul %0, %1, %cst {dimension_numbers = #tpu.dot_dimension_numbers<[1], [0], [0], [1], [0, 0, 1, 1], [], []>} : vector<40x32xbf16>, vector<32x128xbf16>, vector<40x128xf32> -> vector<40x128xf32>
    %c0_3 = arith.constant 0 : index
    %c0_4 = arith.constant 0 : index
    %3 = vector.load %arg5[%c0_3, %c0_4] : memref<1x128xf32, #tpu.memory_space<vmem>>, vector<1x128xf32>
    %4 = vector.broadcast %3 : vector<1x128xf32> to vector<40x128xf32>
    %5 = arith.addf %2, %4 : vector<40x128xf32>
    %cst_5 = arith.constant 5.000000e-01 : f32
    %6 = vector.broadcast %cst_5 : f32 to vector<40x128xf32>
    %7 = arith.mulf %6, %5 : vector<40x128xf32>
    %cst_6 = arith.constant 0.707106769 : f32
    %8 = vector.broadcast %cst_6 : f32 to vector<40x128xf32>
    %9 = arith.mulf %5, %8 : vector<40x128xf32>
    %10 = math.erf %9 : vector<40x128xf32>
    %cst_7 = arith.constant 1.000000e+00 : f32
    %11 = vector.broadcast %cst_7 : f32 to vector<40x128xf32>
    %12 = arith.addf %11, %10 : vector<40x128xf32>
    %13 = arith.mulf %7, %12 : vector<40x128xf32>
    %14 = arith.truncf %13 : vector<40x128xf32> to vector<40x128xbf16>
    %c0_8 = arith.constant 0 : index
    %c0_9 = arith.constant 0 : index
    %15 = vector.load %arg6[%c0_8, %c0_9] : memref<40x128xbf16, #tpu.memory_space<vmem>>, vector<40x128xbf16>
    tpu.vector_store %arg6[%c0_8, %c0_9], %14 {strides = array<i32>} : memref<40x128xbf16, #tpu.memory_space<vmem>>, vector<40x128xbf16>,
    return
  }
  func.func @transform_0(%arg0: i32, %arg1: i32, %arg2: i32) -> (i32, i32) {
    %c0_i32 = arith.constant 0 : i32
    return %arg0, %arg2 : i32, i32
  }
  func.func @transform_1(%arg0: i32, %arg1: i32, %arg2: i32) -> (i32, i32) {
    %c0_i32 = arith.constant 0 : i32
    return %arg2, %arg1 : i32, i32
  }
  func.func @transform_2(%arg0: i32, %arg1: i32, %arg2: i32) -> (i32, i32) {
    %c0_i32 = arith.constant 0 : i32
    %c0_i32_0 = arith.constant 0 : i32
    return %c0_i32, %arg1 : i32, i32
  }
  func.func @transform_3(%arg0: i32, %arg1: i32, %arg2: i32) -> (i32, i32) {
    %c0_i32 = arith.constant 0 : i32
    return %arg0, %arg1 : i32, i32
  }
}

module attributes {stable_mosaic.version = 11 : i64} {
  func.func @_matmul_kernel_single(%arg0: i32, %arg1: i32, %arg2: i32, %arg3: memref<40x128xbf16, #tpu.memory_space<vmem>>, %arg4: memref<128x32xbf16, #tpu.memory_space<vmem>>, %arg5: memref<1x32xf32, #tpu.memory_space<vmem>>, %arg6: memref<40x32xbf16, #tpu.memory_space<vmem>>, %arg7: memref<40x32xbf16, #tpu.memory_space<vmem>>) attributes {dimension_semantics = [#tpu.dimension_semantics<parallel>, #tpu.dimension_semantics<parallel>, #tpu.dimension_semantics<arbitrary>], iteration_bounds = array<i64: 1, 1, 1>, scalar_prefetch = 0 : i64, scratch_operands = 0 : i64, tpu.core_type = #tpu.core_type<tc>, window_params = [{transform_indices = @transform_0, window_bounds = array<i64: 40, 128>}, {transform_indices = @transform_1, window_bounds = array<i64: 128, 32>}, {transform_indices = @transform_2, window_bounds = array<i64: 1, 32>}, {transform_indices = @transform_3, window_bounds = array<i64: 40, 32>}, {transform_indices = @transform_4, window_bounds = array<i64: 40, 32>}]} {
    %c0 = arith.constant 0 : index
    %c0_0 = arith.constant 0 : index
    %0 = vector.load %arg3[%c0, %c0_0] : memref<40x128xbf16, #tpu.memory_space<vmem>>, vector<40x128xbf16>
    %c0_1 = arith.constant 0 : index
    %c0_2 = arith.constant 0 : index
    %1 = vector.load %arg4[%c0_1, %c0_2] : memref<128x32xbf16, #tpu.memory_space<vmem>>, vector<128x32xbf16>
    %cst = arith.constant dense<0.000000e+00> : vector<40x32xf32>
    %2 = tpu.matmul %0, %1, %cst {dimension_numbers = #tpu.dot_dimension_numbers<[1], [0], [0], [1], [0, 0, 1, 1], [], []>} : vector<40x128xbf16>, vector<128x32xbf16>, vector<40x32xf32> -> vector<40x32xf32>
    %c0_3 = arith.constant 0 : index
    %c0_4 = arith.constant 0 : index
    %3 = vector.load %arg5[%c0_3, %c0_4] : memref<1x32xf32, #tpu.memory_space<vmem>>, vector<1x32xf32>
    %4 = vector.broadcast %3 : vector<1x32xf32> to vector<40x32xf32>
    %5 = arith.addf %2, %4 : vector<40x32xf32>
    %c0_5 = arith.constant 0 : index
    %c0_6 = arith.constant 0 : index
    %6 = vector.load %arg6[%c0_5, %c0_6] : memref<40x32xbf16, #tpu.memory_space<vmem>>, vector<40x32xbf16>
    %7 = arith.extf %6 : vector<40x32xbf16> to vector<40x32xf32>
    %8 = arith.addf %5, %7 : vector<40x32xf32>
    %9 = arith.truncf %8 : vector<40x32xf32> to vector<40x32xbf16>
    %c0_7 = arith.constant 0 : index
    %c0_8 = arith.constant 0 : index
    %10 = vector.load %arg7[%c0_7, %c0_8] : memref<40x32xbf16, #tpu.memory_space<vmem>>, vector<40x32xbf16>
    tpu.vector_store %arg7[%c0_7, %c0_8], %9 {strides = array<i32>} : memref<40x32xbf16, #tpu.memory_space<vmem>>, vector<40x32xbf16>,
    return
  }
  func.func @transform_0(%arg0: i32, %arg1: i32, %arg2: i32) -> (i32, i32) {
    %c0_i32 = arith.constant 0 : i32
    return %arg0, %arg2 : i32, i32
  }
  func.func @transform_1(%arg0: i32, %arg1: i32, %arg2: i32) -> (i32, i32) {
    %c0_i32 = arith.constant 0 : i32
    return %arg2, %arg1 : i32, i32
  }
  func.func @transform_2(%arg0: i32, %arg1: i32, %arg2: i32) -> (i32, i32) {
    %c0_i32 = arith.constant 0 : i32
    %c0_i32_0 = arith.constant 0 : i32
    return %c0_i32, %arg1 : i32, i32
  }
  func.func @transform_3(%arg0: i32, %arg1: i32, %arg2: i32) -> (i32, i32) {
    %c0_i32 = arith.constant 0 : i32
    return %arg0, %arg1 : i32, i32
  }
  func.func @transform_4(%arg0: i32, %arg1: i32, %arg2: i32) -> (i32, i32) {
    %c0_i32 = arith.constant 0 : i32
    return %arg0, %arg1 : i32, i32
  }
}

module attributes {stable_mosaic.version = 11 : i64} {
  func.func @_layernorm_kernel(%arg0: i32, %arg1: memref<8x32xbf16, #tpu.memory_space<vmem>>, %arg2: memref<1x32xf32, #tpu.memory_space<vmem>>, %arg3: memref<1x32xf32, #tpu.memory_space<vmem>>, %arg4: memref<8x32xbf16, #tpu.memory_space<vmem>>) attributes {dimension_semantics = [#tpu.dimension_semantics<parallel>], iteration_bounds = array<i64: 1>, scalar_prefetch = 0 : i64, scratch_operands = 0 : i64, tpu.core_type = #tpu.core_type<tc>, window_params = [{transform_indices = @transform_0, window_bounds = array<i64: 8, 32>}, {pipeline_mode = #tpu.pipeline_mode<synchronous>, transform_indices = @transform_1, window_bounds = array<i64: 1, 32>}, {pipeline_mode = #tpu.pipeline_mode<synchronous>, transform_indices = @transform_2, window_bounds = array<i64: 1, 32>}, {transform_indices = @transform_3, window_bounds = array<i64: 8, 32>}]} {
    %c0 = arith.constant 0 : index
    %c0_0 = arith.constant 0 : index
    %0 = vector.load %arg1[%c0, %c0_0] : memref<8x32xbf16, #tpu.memory_space<vmem>>, vector<8x32xbf16>
    %1 = arith.extf %0 : vector<8x32xbf16> to vector<8x32xf32>
    %cst = arith.constant dense<0.000000e+00> : vector<8xf32>
    %2 = vector.multi_reduction <add>, %1, %cst [1] : vector<8x32xf32> to vector<8xf32>
    %3 = vector.shape_cast %2 : vector<8xf32> to vector<8x1xf32>
    %cst_1 = arith.constant 3.200000e+01 : f32
    %4 = vector.broadcast %cst_1 : f32 to vector<8x1xf32>
    %5 = arith.divf %3, %4 : vector<8x1xf32>
    %6 = vector.broadcast %5 : vector<8x1xf32> to vector<8x32xf32>
    %7 = arith.subf %1, %6 : vector<8x32xf32>
    %8 = arith.mulf %7, %7 : vector<8x32xf32>
    %cst_2 = arith.constant dense<0.000000e+00> : vector<8xf32>
    %9 = vector.multi_reduction <add>, %8, %cst_2 [1] : vector<8x32xf32> to vector<8xf32>
    %10 = vector.shape_cast %9 : vector<8xf32> to vector<8x1xf32>
    %cst_3 = arith.constant 3.200000e+01 : f32
    %11 = vector.broadcast %cst_3 : f32 to vector<8x1xf32>
    %12 = arith.divf %10, %11 : vector<8x1xf32>
    %cst_4 = arith.constant 9.99999974E-6 : f32
    %13 = vector.broadcast %cst_4 : f32 to vector<8x1xf32>
    %14 = arith.addf %12, %13 : vector<8x1xf32>
    %15 = math.rsqrt %14 : vector<8x1xf32>
    %16 = vector.broadcast %15 : vector<8x1xf32> to vector<8x32xf32>
    %17 = arith.mulf %7, %16 : vector<8x32xf32>
    %c0_5 = arith.constant 0 : index
    %c0_6 = arith.constant 0 : index
    %18 = vector.load %arg2[%c0_5, %c0_6] : memref<1x32xf32, #tpu.memory_space<vmem>>, vector<1x32xf32>
    %19 = vector.broadcast %18 : vector<1x32xf32> to vector<8x32xf32>
    %20 = arith.mulf %17, %19 : vector<8x32xf32>
    %c0_7 = arith.constant 0 : index
    %c0_8 = arith.constant 0 : index
    %21 = vector.load %arg3[%c0_7, %c0_8] : memref<1x32xf32, #tpu.memory_space<vmem>>, vector<1x32xf32>
    %22 = vector.broadcast %21 : vector<1x32xf32> to vector<8x32xf32>
    %23 = arith.addf %20, %22 : vector<8x32xf32>
    %24 = arith.truncf %23 : vector<8x32xf32> to vector<8x32xbf16>
    %c0_9 = arith.constant 0 : index
    %c0_10 = arith.constant 0 : index
    %25 = vector.load %arg4[%c0_9, %c0_10] : memref<8x32xbf16, #tpu.memory_space<vmem>>, vector<8x32xbf16>
    tpu.vector_store %arg4[%c0_9, %c0_10], %24 {strides = array<i32>} : memref<8x32xbf16, #tpu.memory_space<vmem>>, vector<8x32xbf16>,
    return
  }
  func.func @transform_0(%arg0: i32) -> (i32, i32) {
    %c0_i32 = arith.constant 0 : i32
    %c0_i32_0 = arith.constant 0 : i32
    return %arg0, %c0_i32 : i32, i32
  }
  func.func @transform_1(%arg0: i32) -> (i32, i32) {
    %c0_i32 = arith.constant 0 : i32
    %c0_i32_0 = arith.constant 0 : i32
    %c0_i32_1 = arith.constant 0 : i32
    return %c0_i32, %c0_i32_0 : i32, i32
  }
  func.func @transform_2(%arg0: i32) -> (i32, i32) {
    %c0_i32 = arith.constant 0 : i32
    %c0_i32_0 = arith.constant 0 : i32
    %c0_i32_1 = arith.constant 0 : i32
    return %c0_i32, %c0_i32_0 : i32, i32
  }
  func.func @transform_3(%arg0: i32) -> (i32, i32) {
    %c0_i32 = arith.constant 0 : i32
    %c0_i32_0 = arith.constant 0 : i32
    return %arg0, %c0_i32 : i32, i32
  }
}

module attributes {stable_mosaic.version = 11 : i64} {
  func.func @_layernorm_kernel(%arg0: i32, %arg1: memref<24x32xbf16, #tpu.memory_space<vmem>>, %arg2: memref<1x32xf32, #tpu.memory_space<vmem>>, %arg3: memref<1x32xf32, #tpu.memory_space<vmem>>, %arg4: memref<24x32xbf16, #tpu.memory_space<vmem>>) attributes {dimension_semantics = [#tpu.dimension_semantics<parallel>], iteration_bounds = array<i64: 1>, scalar_prefetch = 0 : i64, scratch_operands = 0 : i64, tpu.core_type = #tpu.core_type<tc>, window_params = [{transform_indices = @transform_0, window_bounds = array<i64: 24, 32>}, {pipeline_mode = #tpu.pipeline_mode<synchronous>, transform_indices = @transform_1, window_bounds = array<i64: 1, 32>}, {pipeline_mode = #tpu.pipeline_mode<synchronous>, transform_indices = @transform_2, window_bounds = array<i64: 1, 32>}, {transform_indices = @transform_3, window_bounds = array<i64: 24, 32>}]} {
    %c0 = arith.constant 0 : index
    %c0_0 = arith.constant 0 : index
    %0 = vector.load %arg1[%c0, %c0_0] : memref<24x32xbf16, #tpu.memory_space<vmem>>, vector<24x32xbf16>
    %1 = arith.extf %0 : vector<24x32xbf16> to vector<24x32xf32>
    %cst = arith.constant dense<0.000000e+00> : vector<24xf32>
    %2 = vector.multi_reduction <add>, %1, %cst [1] : vector<24x32xf32> to vector<24xf32>
    %3 = vector.shape_cast %2 : vector<24xf32> to vector<24x1xf32>
    %cst_1 = arith.constant 3.200000e+01 : f32
    %4 = vector.broadcast %cst_1 : f32 to vector<24x1xf32>
    %5 = arith.divf %3, %4 : vector<24x1xf32>
    %6 = vector.broadcast %5 : vector<24x1xf32> to vector<24x32xf32>
    %7 = arith.subf %1, %6 : vector<24x32xf32>
    %8 = arith.mulf %7, %7 : vector<24x32xf32>
    %cst_2 = arith.constant dense<0.000000e+00> : vector<24xf32>
    %9 = vector.multi_reduction <add>, %8, %cst_2 [1] : vector<24x32xf32> to vector<24xf32>
    %10 = vector.shape_cast %9 : vector<24xf32> to vector<24x1xf32>
    %cst_3 = arith.constant 3.200000e+01 : f32
    %11 = vector.broadcast %cst_3 : f32 to vector<24x1xf32>
    %12 = arith.divf %10, %11 : vector<24x1xf32>
    %cst_4 = arith.constant 9.99999974E-6 : f32
    %13 = vector.broadcast %cst_4 : f32 to vector<24x1xf32>
    %14 = arith.addf %12, %13 : vector<24x1xf32>
    %15 = math.rsqrt %14 : vector<24x1xf32>
    %16 = vector.broadcast %15 : vector<24x1xf32> to vector<24x32xf32>
    %17 = arith.mulf %7, %16 : vector<24x32xf32>
    %c0_5 = arith.constant 0 : index
    %c0_6 = arith.constant 0 : index
    %18 = vector.load %arg2[%c0_5, %c0_6] : memref<1x32xf32, #tpu.memory_space<vmem>>, vector<1x32xf32>
    %19 = vector.broadcast %18 : vector<1x32xf32> to vector<24x32xf32>
    %20 = arith.mulf %17, %19 : vector<24x32xf32>
    %c0_7 = arith.constant 0 : index
    %c0_8 = arith.constant 0 : index
    %21 = vector.load %arg3[%c0_7, %c0_8] : memref<1x32xf32, #tpu.memory_space<vmem>>, vector<1x32xf32>
    %22 = vector.broadcast %21 : vector<1x32xf32> to vector<24x32xf32>
    %23 = arith.addf %20, %22 : vector<24x32xf32>
    %24 = arith.truncf %23 : vector<24x32xf32> to vector<24x32xbf16>
    %c0_9 = arith.constant 0 : index
    %c0_10 = arith.constant 0 : index
    %25 = vector.load %arg4[%c0_9, %c0_10] : memref<24x32xbf16, #tpu.memory_space<vmem>>, vector<24x32xbf16>
    tpu.vector_store %arg4[%c0_9, %c0_10], %24 {strides = array<i32>} : memref<24x32xbf16, #tpu.memory_space<vmem>>, vector<24x32xbf16>,
    return
  }
  func.func @transform_0(%arg0: i32) -> (i32, i32) {
    %c0_i32 = arith.constant 0 : i32
    %c0_i32_0 = arith.constant 0 : i32
    return %arg0, %c0_i32 : i32, i32
  }
  func.func @transform_1(%arg0: i32) -> (i32, i32) {
    %c0_i32 = arith.constant 0 : i32
    %c0_i32_0 = arith.constant 0 : i32
    %c0_i32_1 = arith.constant 0 : i32
    return %c0_i32, %c0_i32_0 : i32, i32
  }
  func.func @transform_2(%arg0: i32) -> (i32, i32) {
    %c0_i32 = arith.constant 0 : i32
    %c0_i32_0 = arith.constant 0 : i32
    %c0_i32_1 = arith.constant 0 : i32
    return %c0_i32, %c0_i32_0 : i32, i32
  }
  func.func @transform_3(%arg0: i32) -> (i32, i32) {
    %c0_i32 = arith.constant 0 : i32
    %c0_i32_0 = arith.constant 0 : i32
    return %arg0, %c0_i32 : i32, i32
  }
}

module attributes {stable_mosaic.version = 11 : i64} {
  func.func @_matmul_kernel_single(%arg0: i32, %arg1: i32, %arg2: i32, %arg3: memref<24x32xbf16, #tpu.memory_space<vmem>>, %arg4: memref<32x32xbf16, #tpu.memory_space<vmem>>, %arg5: memref<1x32xf32, #tpu.memory_space<vmem>>, %arg6: memref<24x32xbf16, #tpu.memory_space<vmem>>) attributes {dimension_semantics = [#tpu.dimension_semantics<parallel>, #tpu.dimension_semantics<parallel>, #tpu.dimension_semantics<arbitrary>], iteration_bounds = array<i64: 1, 1, 1>, scalar_prefetch = 0 : i64, scratch_operands = 0 : i64, tpu.core_type = #tpu.core_type<tc>, window_params = [{transform_indices = @transform_0, window_bounds = array<i64: 24, 32>}, {transform_indices = @transform_1, window_bounds = array<i64: 32, 32>}, {transform_indices = @transform_2, window_bounds = array<i64: 1, 32>}, {transform_indices = @transform_3, window_bounds = array<i64: 24, 32>}]} {
    %c0 = arith.constant 0 : index
    %c0_0 = arith.constant 0 : index
    %0 = vector.load %arg3[%c0, %c0_0] : memref<24x32xbf16, #tpu.memory_space<vmem>>, vector<24x32xbf16>
    %c0_1 = arith.constant 0 : index
    %c0_2 = arith.constant 0 : index
    %1 = vector.load %arg4[%c0_1, %c0_2] : memref<32x32xbf16, #tpu.memory_space<vmem>>, vector<32x32xbf16>
    %cst = arith.constant dense<0.000000e+00> : vector<24x32xf32>
    %2 = tpu.matmul %0, %1, %cst {dimension_numbers = #tpu.dot_dimension_numbers<[1], [0], [0], [1], [0, 0, 1, 1], [], []>} : vector<24x32xbf16>, vector<32x32xbf16>, vector<24x32xf32> -> vector<24x32xf32>
    %c0_3 = arith.constant 0 : index
    %c0_4 = arith.constant 0 : index
    %3 = vector.load %arg5[%c0_3, %c0_4] : memref<1x32xf32, #tpu.memory_space<vmem>>, vector<1x32xf32>
    %4 = vector.broadcast %3 : vector<1x32xf32> to vector<24x32xf32>
    %5 = arith.addf %2, %4 : vector<24x32xf32>
    %6 = arith.truncf %5 : vector<24x32xf32> to vector<24x32xbf16>
    %c0_5 = arith.constant 0 : index
    %c0_6 = arith.constant 0 : index
    %7 = vector.load %arg6[%c0_5, %c0_6] : memref<24x32xbf16, #tpu.memory_space<vmem>>, vector<24x32xbf16>
    tpu.vector_store %arg6[%c0_5, %c0_6], %6 {strides = array<i32>} : memref<24x32xbf16, #tpu.memory_space<vmem>>, vector<24x32xbf16>,
    return
  }
  func.func @transform_0(%arg0: i32, %arg1: i32, %arg2: i32) -> (i32, i32) {
    %c0_i32 = arith.constant 0 : i32
    return %arg0, %arg2 : i32, i32
  }
  func.func @transform_1(%arg0: i32, %arg1: i32, %arg2: i32) -> (i32, i32) {
    %c0_i32 = arith.constant 0 : i32
    return %arg2, %arg1 : i32, i32
  }
  func.func @transform_2(%arg0: i32, %arg1: i32, %arg2: i32) -> (i32, i32) {
    %c0_i32 = arith.constant 0 : i32
    %c0_i32_0 = arith.constant 0 : i32
    return %c0_i32, %arg1 : i32, i32
  }
  func.func @transform_3(%arg0: i32, %arg1: i32, %arg2: i32) -> (i32, i32) {
    %c0_i32 = arith.constant 0 : i32
    return %arg0, %arg1 : i32, i32
  }
}

module attributes {stable_mosaic.version = 11 : i64} {
  func.func @_flash_attn_kernel(%arg0: i32, %arg1: i32, %arg2: i32, %arg3: memref<8x8x8xbf16, #tpu.memory_space<vmem>>, %arg4: memref<8x8x8xbf16, #tpu.memory_space<vmem>>, %arg5: memref<8x8x8xbf16, #tpu.memory_space<vmem>>, %arg6: memref<1x1x8xf32, #tpu.memory_space<vmem>>, %arg7: memref<8x8x8xbf16, #tpu.memory_space<vmem>>, %arg8: memref<8x8x1xf32, #tpu.memory_space<vmem>>, %arg9: memref<8x8x1xf32, #tpu.memory_space<vmem>>, %arg10: memref<8x8x8xf32, #tpu.memory_space<vmem>>) attributes {dimension_semantics = [#tpu.dimension_semantics<parallel>, #tpu.dimension_semantics<parallel>, #tpu.dimension_semantics<arbitrary>], iteration_bounds = array<i64: 5, 1, 1>, scalar_prefetch = 0 : i64, scratch_operands = 3 : i64, tpu.core_type = #tpu.core_type<tc>, window_params = [{transform_indices = @transform_0, window_bounds = array<i64: 8, 8, 8>}, {transform_indices = @transform_1, window_bounds = array<i64: 8, 8, 8>}, {transform_indices = @transform_2, window_bounds = array<i64: 8, 8, 8>}, {transform_indices = @transform_3, window_bounds = array<i64: 1, 1, 8>}, {transform_indices = @transform_4, window_bounds = array<i64: 8, 8, 8>}]} {
    %c0_i32 = arith.constant 0 : i32
    %0 = arith.cmpi eq, %arg2, %c0_i32 : i32
    %1 = arith.extui %0 : i1 to i32
    %c0_i32_0 = arith.constant 0 : i32
    %2 = arith.cmpi ne, %1, %c0_i32_0 : i32
    scf.if %2 {
      %cst_35 = arith.constant -1.000000e+30 : f32
      %36 = vector.broadcast %cst_35 : f32 to vector<8x8x1xf32>
      %c0_36 = arith.constant 0 : index
      %c0_37 = arith.constant 0 : index
      %c0_38 = arith.constant 0 : index
      %37 = vector.load %arg8[%c0_36, %c0_37, %c0_38] : memref<8x8x1xf32, #tpu.memory_space<vmem>>, vector<8x8x1xf32>
      tpu.vector_store %arg8[%c0_36, %c0_37, %c0_38], %36 {strides = array<i32>} : memref<8x8x1xf32, #tpu.memory_space<vmem>>, vector<8x8x1xf32>,
      %cst_39 = arith.constant 0.000000e+00 : f32
      %38 = vector.broadcast %cst_39 : f32 to vector<8x8x1xf32>
      %c0_40 = arith.constant 0 : index
      %c0_41 = arith.constant 0 : index
      %c0_42 = arith.constant 0 : index
      %39 = vector.load %arg9[%c0_40, %c0_41, %c0_42] : memref<8x8x1xf32, #tpu.memory_space<vmem>>, vector<8x8x1xf32>
      tpu.vector_store %arg9[%c0_40, %c0_41, %c0_42], %38 {strides = array<i32>} : memref<8x8x1xf32, #tpu.memory_space<vmem>>, vector<8x8x1xf32>,
      %cst_43 = arith.constant 0.000000e+00 : f32
      %40 = vector.broadcast %cst_43 : f32 to vector<8x8x8xf32>
      %c0_44 = arith.constant 0 : index
      %c0_45 = arith.constant 0 : index
      %c0_46 = arith.constant 0 : index
      %41 = vector.load %arg10[%c0_44, %c0_45, %c0_46] : memref<8x8x8xf32, #tpu.memory_space<vmem>>, vector<8x8x8xf32>
      tpu.vector_store %arg10[%c0_44, %c0_45, %c0_46], %40 {strides = array<i32>} : memref<8x8x8xf32, #tpu.memory_space<vmem>>, vector<8x8x8xf32>,
    } else {
    }
    %c0 = arith.constant 0 : index
    %c0_1 = arith.constant 0 : index
    %c0_2 = arith.constant 0 : index
    %3 = vector.load %arg3[%c0, %c0_1, %c0_2] : memref<8x8x8xbf16, #tpu.memory_space<vmem>>, vector<8x8x8xbf16>
    %c0_3 = arith.constant 0 : index
    %c0_4 = arith.constant 0 : index
    %c0_5 = arith.constant 0 : index
    %4 = vector.load %arg4[%c0_3, %c0_4, %c0_5] : memref<8x8x8xbf16, #tpu.memory_space<vmem>>, vector<8x8x8xbf16>
    "tpu.trace_start"() <{level = 10 : i32, message = "bqd,bkd->bqk"}> : () -> ()
    %cst = arith.constant dense<0.000000e+00> : vector<8x8x8xf32>
    %5 = tpu.matmul %3, %4, %cst {dimension_numbers = #tpu.dot_dimension_numbers<[2], [2], [1], [1], [0, 0, 0, 1, 1, 1], [0], [0]>} : vector<8x8x8xbf16>, vector<8x8x8xbf16>, vector<8x8x8xf32> -> vector<8x8x8xf32>
    "tpu.trace_stop"() : () -> ()
    %c0_6 = arith.constant 0 : index
    %c0_7 = arith.constant 0 : index
    %c0_8 = arith.constant 0 : index
    %6 = vector.load %arg6[%c0_6, %c0_7, %c0_8] : memref<1x1x8xf32, #tpu.memory_space<vmem>>, vector<1x1x8xf32>
    %7 = vector.broadcast %6 : vector<1x1x8xf32> to vector<8x8x8xf32>
    %8 = arith.addf %5, %7 : vector<8x8x8xf32>
    %c0_9 = arith.constant 0 : index
    %c0_10 = arith.constant 0 : index
    %c0_11 = arith.constant 0 : index
    %9 = vector.load %arg8[%c0_9, %c0_10, %c0_11] : memref<8x8x1xf32, #tpu.memory_space<vmem>>, vector<8x8x1xf32>
    %cst_12 = arith.constant dense<0xFF800000> : vector<8x8xf32>
    %10 = vector.multi_reduction <maximumf>, %8, %cst_12 [2] : vector<8x8x8xf32> to vector<8x8xf32>
    %11 = vector.shape_cast %10 : vector<8x8xf32> to vector<8x8x1xf32>
    %12 = arith.maximumf %9, %11 : vector<8x8x1xf32>
    %13 = arith.subf %9, %12 : vector<8x8x1xf32>
    %14 = math.exp %13 : vector<8x8x1xf32>
    %15 = vector.broadcast %12 : vector<8x8x1xf32> to vector<8x8x8xf32>
    %16 = arith.subf %8, %15 : vector<8x8x8xf32>
    %17 = math.exp %16 : vector<8x8x8xf32>
    %c0_13 = arith.constant 0 : index
    %c0_14 = arith.constant 0 : index
    %c0_15 = arith.constant 0 : index
    %18 = vector.load %arg9[%c0_13, %c0_14, %c0_15] : memref<8x8x1xf32, #tpu.memory_space<vmem>>, vector<8x8x1xf32>
    %19 = arith.mulf %14, %18 : vector<8x8x1xf32>
    %cst_16 = arith.constant dense<0.000000e+00> : vector<8x8xf32>
    %20 = vector.multi_reduction <add>, %17, %cst_16 [2] : vector<8x8x8xf32> to vector<8x8xf32>
    %21 = vector.shape_cast %20 : vector<8x8xf32> to vector<8x8x1xf32>
    %22 = arith.addf %19, %21 : vector<8x8x1xf32>
    %c0_17 = arith.constant 0 : index
    %c0_18 = arith.constant 0 : index
    %c0_19 = arith.constant 0 : index
    %23 = vector.load %arg9[%c0_17, %c0_18, %c0_19] : memref<8x8x1xf32, #tpu.memory_space<vmem>>, vector<8x8x1xf32>
    tpu.vector_store %arg9[%c0_17, %c0_18, %c0_19], %22 {strides = array<i32>} : memref<8x8x1xf32, #tpu.memory_space<vmem>>, vector<8x8x1xf32>,
    %c0_20 = arith.constant 0 : index
    %c0_21 = arith.constant 0 : index
    %c0_22 = arith.constant 0 : index
    %24 = vector.load %arg10[%c0_20, %c0_21, %c0_22] : memref<8x8x8xf32, #tpu.memory_space<vmem>>, vector<8x8x8xf32>
    %25 = vector.broadcast %14 : vector<8x8x1xf32> to vector<8x8x8xf32>
    %26 = arith.mulf %25, %24 : vector<8x8x8xf32>
    %27 = arith.truncf %17 : vector<8x8x8xf32> to vector<8x8x8xbf16>
    %c0_23 = arith.constant 0 : index
    %c0_24 = arith.constant 0 : index
    %c0_25 = arith.constant 0 : index
    %28 = vector.load %arg5[%c0_23, %c0_24, %c0_25] : memref<8x8x8xbf16, #tpu.memory_space<vmem>>, vector<8x8x8xbf16>
    "tpu.trace_start"() <{level = 10 : i32, message = "bqk,bkd->bqd"}> : () -> ()
    %cst_26 = arith.constant dense<0.000000e+00> : vector<8x8x8xf32>
    %29 = tpu.matmul %27, %28, %cst_26 {dimension_numbers = #tpu.dot_dimension_numbers<[2], [1], [1], [2], [0, 0, 0, 1, 1, 2], [0], [0]>} : vector<8x8x8xbf16>, vector<8x8x8xbf16>, vector<8x8x8xf32> -> vector<8x8x8xf32>
    "tpu.trace_stop"() : () -> ()
    %30 = arith.addf %26, %29 : vector<8x8x8xf32>
    %c0_27 = arith.constant 0 : index
    %c0_28 = arith.constant 0 : index
    %c0_29 = arith.constant 0 : index
    %31 = vector.load %arg10[%c0_27, %c0_28, %c0_29] : memref<8x8x8xf32, #tpu.memory_space<vmem>>, vector<8x8x8xf32>
    tpu.vector_store %arg10[%c0_27, %c0_28, %c0_29], %30 {strides = array<i32>} : memref<8x8x8xf32, #tpu.memory_space<vmem>>, vector<8x8x8xf32>,
    %c0_30 = arith.constant 0 : index
    %c0_31 = arith.constant 0 : index
    %c0_32 = arith.constant 0 : index
    %32 = vector.load %arg8[%c0_30, %c0_31, %c0_32] : memref<8x8x1xf32, #tpu.memory_space<vmem>>, vector<8x8x1xf32>
    tpu.vector_store %arg8[%c0_30, %c0_31, %c0_32], %12 {strides = array<i32>} : memref<8x8x1xf32, #tpu.memory_space<vmem>>, vector<8x8x1xf32>,
    %c0_i32_33 = arith.constant 0 : i32
    %33 = arith.cmpi eq, %arg2, %c0_i32_33 : i32
    %34 = arith.extui %33 : i1 to i32
    %c0_i32_34 = arith.constant 0 : i32
    %35 = arith.cmpi ne, %34, %c0_i32_34 : i32
    scf.if %35 {
      %c0_35 = arith.constant 0 : index
      %c0_36 = arith.constant 0 : index
      %c0_37 = arith.constant 0 : index
      %36 = vector.load %arg10[%c0_35, %c0_36, %c0_37] : memref<8x8x8xf32, #tpu.memory_space<vmem>>, vector<8x8x8xf32>
      %c0_38 = arith.constant 0 : index
      %c0_39 = arith.constant 0 : index
      %c0_40 = arith.constant 0 : index
      %37 = vector.load %arg9[%c0_38, %c0_39, %c0_40] : memref<8x8x1xf32, #tpu.memory_space<vmem>>, vector<8x8x1xf32>
      %38 = tpu.reciprocal %37 {approx = true} : vector<8x8x1xf32> -> vector<8x8x1xf32>
      %39 = vector.broadcast %38 : vector<8x8x1xf32> to vector<8x8x8xf32>
      %40 = arith.mulf %36, %39 : vector<8x8x8xf32>
      %41 = arith.truncf %40 : vector<8x8x8xf32> to vector<8x8x8xbf16>
      %c0_41 = arith.constant 0 : index
      %c0_42 = arith.constant 0 : index
      %c0_43 = arith.constant 0 : index
      %42 = vector.load %arg7[%c0_41, %c0_42, %c0_43] : memref<8x8x8xbf16, #tpu.memory_space<vmem>>, vector<8x8x8xbf16>
      tpu.vector_store %arg7[%c0_41, %c0_42, %c0_43], %41 {strides = array<i32>} : memref<8x8x8xbf16, #tpu.memory_space<vmem>>, vector<8x8x8xbf16>,
    } else {
    }
    return
  }
  func.func @transform_0(%arg0: i32, %arg1: i32, %arg2: i32) -> (i32, i32, i32) {
    %c0_i32 = arith.constant 0 : i32
    %c0_i32_0 = arith.constant 0 : i32
    return %arg0, %arg1, %c0_i32 : i32, i32, i32
  }
  func.func @transform_1(%arg0: i32, %arg1: i32, %arg2: i32) -> (i32, i32, i32) {
    %c0_i32 = arith.constant 0 : i32
    %c0_i32_0 = arith.constant 0 : i32
    return %arg0, %arg2, %c0_i32 : i32, i32, i32
  }
  func.func @transform_2(%arg0: i32, %arg1: i32, %arg2: i32) -> (i32, i32, i32) {
    %c0_i32 = arith.constant 0 : i32
    %c0_i32_0 = arith.constant 0 : i32
    return %arg0, %arg2, %c0_i32 : i32, i32, i32
  }
  func.func @transform_3(%arg0: i32, %arg1: i32, %arg2: i32) -> (i32, i32, i32) {
    %c0_i32 = arith.constant 0 : i32
    %c0_i32_0 = arith.constant 0 : i32
    %c0_i32_1 = arith.constant 0 : i32
    return %c0_i32, %c0_i32_0, %arg2 : i32, i32, i32
  }
  func.func @transform_4(%arg0: i32, %arg1: i32, %arg2: i32) -> (i32, i32, i32) {
    %c0_i32 = arith.constant 0 : i32
    %c0_i32_0 = arith.constant 0 : i32
    return %arg0, %arg1, %c0_i32 : i32, i32, i32
  }
}

module attributes {stable_mosaic.version = 11 : i64} {
  func.func @_matmul_kernel_single(%arg0: i32, %arg1: i32, %arg2: i32, %arg3: memref<24x32xbf16, #tpu.memory_space<vmem>>, %arg4: memref<32x32xbf16, #tpu.memory_space<vmem>>, %arg5: memref<1x32xf32, #tpu.memory_space<vmem>>, %arg6: memref<24x32xbf16, #tpu.memory_space<vmem>>, %arg7: memref<24x32xbf16, #tpu.memory_space<vmem>>) attributes {dimension_semantics = [#tpu.dimension_semantics<parallel>, #tpu.dimension_semantics<parallel>, #tpu.dimension_semantics<arbitrary>], iteration_bounds = array<i64: 1, 1, 1>, scalar_prefetch = 0 : i64, scratch_operands = 0 : i64, tpu.core_type = #tpu.core_type<tc>, window_params = [{transform_indices = @transform_0, window_bounds = array<i64: 24, 32>}, {transform_indices = @transform_1, window_bounds = array<i64: 32, 32>}, {transform_indices = @transform_2, window_bounds = array<i64: 1, 32>}, {transform_indices = @transform_3, window_bounds = array<i64: 24, 32>}, {transform_indices = @transform_4, window_bounds = array<i64: 24, 32>}]} {
    %c0 = arith.constant 0 : index
    %c0_0 = arith.constant 0 : index
    %0 = vector.load %arg3[%c0, %c0_0] : memref<24x32xbf16, #tpu.memory_space<vmem>>, vector<24x32xbf16>
    %c0_1 = arith.constant 0 : index
    %c0_2 = arith.constant 0 : index
    %1 = vector.load %arg4[%c0_1, %c0_2] : memref<32x32xbf16, #tpu.memory_space<vmem>>, vector<32x32xbf16>
    %cst = arith.constant dense<0.000000e+00> : vector<24x32xf32>
    %2 = tpu.matmul %0, %1, %cst {dimension_numbers = #tpu.dot_dimension_numbers<[1], [0], [0], [1], [0, 0, 1, 1], [], []>} : vector<24x32xbf16>, vector<32x32xbf16>, vector<24x32xf32> -> vector<24x32xf32>
    %c0_3 = arith.constant 0 : index
    %c0_4 = arith.constant 0 : index
    %3 = vector.load %arg5[%c0_3, %c0_4] : memref<1x32xf32, #tpu.memory_space<vmem>>, vector<1x32xf32>
    %4 = vector.broadcast %3 : vector<1x32xf32> to vector<24x32xf32>
    %5 = arith.addf %2, %4 : vector<24x32xf32>
    %c0_5 = arith.constant 0 : index
    %c0_6 = arith.constant 0 : index
    %6 = vector.load %arg6[%c0_5, %c0_6] : memref<24x32xbf16, #tpu.memory_space<vmem>>, vector<24x32xbf16>
    %7 = arith.extf %6 : vector<24x32xbf16> to vector<24x32xf32>
    %8 = arith.addf %5, %7 : vector<24x32xf32>
    %9 = arith.truncf %8 : vector<24x32xf32> to vector<24x32xbf16>
    %c0_7 = arith.constant 0 : index
    %c0_8 = arith.constant 0 : index
    %10 = vector.load %arg7[%c0_7, %c0_8] : memref<24x32xbf16, #tpu.memory_space<vmem>>, vector<24x32xbf16>
    tpu.vector_store %arg7[%c0_7, %c0_8], %9 {strides = array<i32>} : memref<24x32xbf16, #tpu.memory_space<vmem>>, vector<24x32xbf16>,
    return
  }
  func.func @transform_0(%arg0: i32, %arg1: i32, %arg2: i32) -> (i32, i32) {
    %c0_i32 = arith.constant 0 : i32
    return %arg0, %arg2 : i32, i32
  }
  func.func @transform_1(%arg0: i32, %arg1: i32, %arg2: i32) -> (i32, i32) {
    %c0_i32 = arith.constant 0 : i32
    return %arg2, %arg1 : i32, i32
  }
  func.func @transform_2(%arg0: i32, %arg1: i32, %arg2: i32) -> (i32, i32) {
    %c0_i32 = arith.constant 0 : i32
    %c0_i32_0 = arith.constant 0 : i32
    return %c0_i32, %arg1 : i32, i32
  }
  func.func @transform_3(%arg0: i32, %arg1: i32, %arg2: i32) -> (i32, i32) {
    %c0_i32 = arith.constant 0 : i32
    return %arg0, %arg1 : i32, i32
  }
  func.func @transform_4(%arg0: i32, %arg1: i32, %arg2: i32) -> (i32, i32) {
    %c0_i32 = arith.constant 0 : i32
    return %arg0, %arg1 : i32, i32
  }
}

module attributes {stable_mosaic.version = 11 : i64} {
  func.func @_matmul_kernel_single(%arg0: i32, %arg1: i32, %arg2: i32, %arg3: memref<24x32xbf16, #tpu.memory_space<vmem>>, %arg4: memref<32x128xbf16, #tpu.memory_space<vmem>>, %arg5: memref<1x128xf32, #tpu.memory_space<vmem>>, %arg6: memref<24x128xbf16, #tpu.memory_space<vmem>>) attributes {dimension_semantics = [#tpu.dimension_semantics<parallel>, #tpu.dimension_semantics<parallel>, #tpu.dimension_semantics<arbitrary>], iteration_bounds = array<i64: 1, 1, 1>, scalar_prefetch = 0 : i64, scratch_operands = 0 : i64, tpu.core_type = #tpu.core_type<tc>, window_params = [{transform_indices = @transform_0, window_bounds = array<i64: 24, 32>}, {transform_indices = @transform_1, window_bounds = array<i64: 32, 128>}, {transform_indices = @transform_2, window_bounds = array<i64: 1, 128>}, {transform_indices = @transform_3, window_bounds = array<i64: 24, 128>}]} {
    %c0 = arith.constant 0 : index
    %c0_0 = arith.constant 0 : index
    %0 = vector.load %arg3[%c0, %c0_0] : memref<24x32xbf16, #tpu.memory_space<vmem>>, vector<24x32xbf16>
    %c0_1 = arith.constant 0 : index
    %c0_2 = arith.constant 0 : index
    %1 = vector.load %arg4[%c0_1, %c0_2] : memref<32x128xbf16, #tpu.memory_space<vmem>>, vector<32x128xbf16>
    %cst = arith.constant dense<0.000000e+00> : vector<24x128xf32>
    %2 = tpu.matmul %0, %1, %cst {dimension_numbers = #tpu.dot_dimension_numbers<[1], [0], [0], [1], [0, 0, 1, 1], [], []>} : vector<24x32xbf16>, vector<32x128xbf16>, vector<24x128xf32> -> vector<24x128xf32>
    %c0_3 = arith.constant 0 : index
    %c0_4 = arith.constant 0 : index
    %3 = vector.load %arg5[%c0_3, %c0_4] : memref<1x128xf32, #tpu.memory_space<vmem>>, vector<1x128xf32>
    %4 = vector.broadcast %3 : vector<1x128xf32> to vector<24x128xf32>
    %5 = arith.addf %2, %4 : vector<24x128xf32>
    %cst_5 = arith.constant 5.000000e-01 : f32
    %6 = vector.broadcast %cst_5 : f32 to vector<24x128xf32>
    %7 = arith.mulf %6, %5 : vector<24x128xf32>
    %cst_6 = arith.constant 0.707106769 : f32
    %8 = vector.broadcast %cst_6 : f32 to vector<24x128xf32>
    %9 = arith.mulf %5, %8 : vector<24x128xf32>
    %10 = math.erf %9 : vector<24x128xf32>
    %cst_7 = arith.constant 1.000000e+00 : f32
    %11 = vector.broadcast %cst_7 : f32 to vector<24x128xf32>
    %12 = arith.addf %11, %10 : vector<24x128xf32>
    %13 = arith.mulf %7, %12 : vector<24x128xf32>
    %14 = arith.truncf %13 : vector<24x128xf32> to vector<24x128xbf16>
    %c0_8 = arith.constant 0 : index
    %c0_9 = arith.constant 0 : index
    %15 = vector.load %arg6[%c0_8, %c0_9] : memref<24x128xbf16, #tpu.memory_space<vmem>>, vector<24x128xbf16>
    tpu.vector_store %arg6[%c0_8, %c0_9], %14 {strides = array<i32>} : memref<24x128xbf16, #tpu.memory_space<vmem>>, vector<24x128xbf16>,
    return
  }
  func.func @transform_0(%arg0: i32, %arg1: i32, %arg2: i32) -> (i32, i32) {
    %c0_i32 = arith.constant 0 : i32
    return %arg0, %arg2 : i32, i32
  }
  func.func @transform_1(%arg0: i32, %arg1: i32, %arg2: i32) -> (i32, i32) {
    %c0_i32 = arith.constant 0 : i32
    return %arg2, %arg1 : i32, i32
  }
  func.func @transform_2(%arg0: i32, %arg1: i32, %arg2: i32) -> (i32, i32) {
    %c0_i32 = arith.constant 0 : i32
    %c0_i32_0 = arith.constant 0 : i32
    return %c0_i32, %arg1 : i32, i32
  }
  func.func @transform_3(%arg0: i32, %arg1: i32, %arg2: i32) -> (i32, i32) {
    %c0_i32 = arith.constant 0 : i32
    return %arg0, %arg1 : i32, i32
  }
}

module attributes {stable_mosaic.version = 11 : i64} {
  func.func @_matmul_kernel_single(%arg0: i32, %arg1: i32, %arg2: i32, %arg3: memref<24x128xbf16, #tpu.memory_space<vmem>>, %arg4: memref<128x32xbf16, #tpu.memory_space<vmem>>, %arg5: memref<1x32xf32, #tpu.memory_space<vmem>>, %arg6: memref<24x32xbf16, #tpu.memory_space<vmem>>, %arg7: memref<24x32xbf16, #tpu.memory_space<vmem>>) attributes {dimension_semantics = [#tpu.dimension_semantics<parallel>, #tpu.dimension_semantics<parallel>, #tpu.dimension_semantics<arbitrary>], iteration_bounds = array<i64: 1, 1, 1>, scalar_prefetch = 0 : i64, scratch_operands = 0 : i64, tpu.core_type = #tpu.core_type<tc>, window_params = [{transform_indices = @transform_0, window_bounds = array<i64: 24, 128>}, {transform_indices = @transform_1, window_bounds = array<i64: 128, 32>}, {transform_indices = @transform_2, window_bounds = array<i64: 1, 32>}, {transform_indices = @transform_3, window_bounds = array<i64: 24, 32>}, {transform_indices = @transform_4, window_bounds = array<i64: 24, 32>}]} {
    %c0 = arith.constant 0 : index
    %c0_0 = arith.constant 0 : index
    %0 = vector.load %arg3[%c0, %c0_0] : memref<24x128xbf16, #tpu.memory_space<vmem>>, vector<24x128xbf16>
    %c0_1 = arith.constant 0 : index
    %c0_2 = arith.constant 0 : index
    %1 = vector.load %arg4[%c0_1, %c0_2] : memref<128x32xbf16, #tpu.memory_space<vmem>>, vector<128x32xbf16>
    %cst = arith.constant dense<0.000000e+00> : vector<24x32xf32>
    %2 = tpu.matmul %0, %1, %cst {dimension_numbers = #tpu.dot_dimension_numbers<[1], [0], [0], [1], [0, 0, 1, 1], [], []>} : vector<24x128xbf16>, vector<128x32xbf16>, vector<24x32xf32> -> vector<24x32xf32>
    %c0_3 = arith.constant 0 : index
    %c0_4 = arith.constant 0 : index
    %3 = vector.load %arg5[%c0_3, %c0_4] : memref<1x32xf32, #tpu.memory_space<vmem>>, vector<1x32xf32>
    %4 = vector.broadcast %3 : vector<1x32xf32> to vector<24x32xf32>
    %5 = arith.addf %2, %4 : vector<24x32xf32>
    %c0_5 = arith.constant 0 : index
    %c0_6 = arith.constant 0 : index
    %6 = vector.load %arg6[%c0_5, %c0_6] : memref<24x32xbf16, #tpu.memory_space<vmem>>, vector<24x32xbf16>
    %7 = arith.extf %6 : vector<24x32xbf16> to vector<24x32xf32>
    %8 = arith.addf %5, %7 : vector<24x32xf32>
    %9 = arith.truncf %8 : vector<24x32xf32> to vector<24x32xbf16>
    %c0_7 = arith.constant 0 : index
    %c0_8 = arith.constant 0 : index
    %10 = vector.load %arg7[%c0_7, %c0_8] : memref<24x32xbf16, #tpu.memory_space<vmem>>, vector<24x32xbf16>
    tpu.vector_store %arg7[%c0_7, %c0_8], %9 {strides = array<i32>} : memref<24x32xbf16, #tpu.memory_space<vmem>>, vector<24x32xbf16>,
    return
  }
  func.func @transform_0(%arg0: i32, %arg1: i32, %arg2: i32) -> (i32, i32) {
    %c0_i32 = arith.constant 0 : i32
    return %arg0, %arg2 : i32, i32
  }
  func.func @transform_1(%arg0: i32, %arg1: i32, %arg2: i32) -> (i32, i32) {
    %c0_i32 = arith.constant 0 : i32
    return %arg2, %arg1 : i32, i32
  }
  func.func @transform_2(%arg0: i32, %arg1: i32, %arg2: i32) -> (i32, i32) {
    %c0_i32 = arith.constant 0 : i32
    %c0_i32_0 = arith.constant 0 : i32
    return %c0_i32, %arg1 : i32, i32
  }
  func.func @transform_3(%arg0: i32, %arg1: i32, %arg2: i32) -> (i32, i32) {
    %c0_i32 = arith.constant 0 : i32
    return %arg0, %arg1 : i32, i32
  }
  func.func @transform_4(%arg0: i32, %arg1: i32, %arg2: i32) -> (i32, i32) {
    %c0_i32 = arith.constant 0 : i32
    return %arg0, %arg1 : i32, i32
  }
}

module attributes {stable_mosaic.version = 11 : i64} {
  func.func @_matmul_kernel_single(%arg0: i32, %arg1: i32, %arg2: i32, %arg3: memref<8x32xbf16, #tpu.memory_space<vmem>>, %arg4: memref<32x16xbf16, #tpu.memory_space<vmem>>, %arg5: memref<1x16xf32, #tpu.memory_space<vmem>>, %arg6: memref<8x16xf32, #tpu.memory_space<vmem>>) attributes {dimension_semantics = [#tpu.dimension_semantics<parallel>, #tpu.dimension_semantics<parallel>, #tpu.dimension_semantics<arbitrary>], iteration_bounds = array<i64: 1, 1, 1>, scalar_prefetch = 0 : i64, scratch_operands = 0 : i64, tpu.core_type = #tpu.core_type<tc>, window_params = [{transform_indices = @transform_0, window_bounds = array<i64: 8, 32>}, {transform_indices = @transform_1, window_bounds = array<i64: 32, 16>}, {transform_indices = @transform_2, window_bounds = array<i64: 1, 16>}, {transform_indices = @transform_3, window_bounds = array<i64: 8, 16>}]} {
    %c0 = arith.constant 0 : index
    %c0_0 = arith.constant 0 : index
    %0 = vector.load %arg3[%c0, %c0_0] : memref<8x32xbf16, #tpu.memory_space<vmem>>, vector<8x32xbf16>
    %c0_1 = arith.constant 0 : index
    %c0_2 = arith.constant 0 : index
    %1 = vector.load %arg4[%c0_1, %c0_2] : memref<32x16xbf16, #tpu.memory_space<vmem>>, vector<32x16xbf16>
    %cst = arith.constant dense<0.000000e+00> : vector<8x16xf32>
    %2 = tpu.matmul %0, %1, %cst {dimension_numbers = #tpu.dot_dimension_numbers<[1], [0], [0], [1], [0, 0, 1, 1], [], []>} : vector<8x32xbf16>, vector<32x16xbf16>, vector<8x16xf32> -> vector<8x16xf32>
    %c0_3 = arith.constant 0 : index
    %c0_4 = arith.constant 0 : index
    %3 = vector.load %arg5[%c0_3, %c0_4] : memref<1x16xf32, #tpu.memory_space<vmem>>, vector<1x16xf32>
    %4 = vector.broadcast %3 : vector<1x16xf32> to vector<8x16xf32>
    %5 = arith.addf %2, %4 : vector<8x16xf32>
    %c0_5 = arith.constant 0 : index
    %c0_6 = arith.constant 0 : index
    %6 = vector.load %arg6[%c0_5, %c0_6] : memref<8x16xf32, #tpu.memory_space<vmem>>, vector<8x16xf32>
    tpu.vector_store %arg6[%c0_5, %c0_6], %5 {strides = array<i32>} : memref<8x16xf32, #tpu.memory_space<vmem>>, vector<8x16xf32>,
    return
  }
  func.func @transform_0(%arg0: i32, %arg1: i32, %arg2: i32) -> (i32, i32) {
    %c0_i32 = arith.constant 0 : i32
    return %arg0, %arg2 : i32, i32
  }
  func.func @transform_1(%arg0: i32, %arg1: i32, %arg2: i32) -> (i32, i32) {
    %c0_i32 = arith.constant 0 : i32
    return %arg2, %arg1 : i32, i32
  }
  func.func @transform_2(%arg0: i32, %arg1: i32, %arg2: i32) -> (i32, i32) {
    %c0_i32 = arith.constant 0 : i32
    %c0_i32_0 = arith.constant 0 : i32
    return %c0_i32, %arg1 : i32, i32
  }
  func.func @transform_3(%arg0: i32, %arg1: i32, %arg2: i32) -> (i32, i32) {
    %c0_i32 = arith.constant 0 : i32
    return %arg0, %arg1 : i32, i32
  }
}

</mosaic_0001>

<bundles_post_ra>
// kernel: clip_forward.43
= control target key start
LH: loop header
LB: loop body
LE: loop exit
PB: predicated region body
PF: predicated region fallthrough
CT: control target
= control target key end

     0   :  { %8 = vsyncpa [#allocation3], 0  ;;  %s431_s0 = inlined_call_operand.hbm [shape: bf16[40,32], index: 0, kind: input, shape index: {}]   ;;  %s432_s1 = inlined_call_operand.hbm [shape: f32[1,32], index: 1, kind: input, shape index: {}]   ;;  %s433_s2 = inlined_call_operand.hbm [shape: f32[1,32], index: 2, kind: input, shape index: {}]   ;;  %s434_s3 = inlined_call_operand.hbm [shape: bf16[40,32], index: 3, kind: output, shape index: {}]  }
   0x1   :  { %9 = vsyncpa [#allocation6], 0 }
   0x2   :  { %10 = vsyncpa [#allocation4], 0  ;;  %s329_s12 = smov [#allocation5]   ;;  %s330_s14 = smov [#allocation2]  }
   0x3   :  { %s29_s13 = sshll.u32 %s329_s12, 4  ;;  %s16_s15 = sshll.u32 %s330_s14, 4  ;;  %s30_s13 = int_to_ptr.vmem [resolvable:$true] %s29_s13  ;;  %s355_s15 = int_to_ptr.vmem [resolvable:$true] %s16_s15 }
   0x4   :  { %s235_s18 = scalar_lea.hbm %s432_s1, 16 }
   0x5   :  { %p236_p0 = scmp.ne.s32.totalorder %s432_s1, %s235_s18  ;;  %p239_p1 = scmp.lt.u32.totalorder %s235_s18, %s432_s1 }
   0x7   :  { %p241_p2 = pnand %p239_p1, %p236_p0 }
   0x9   :  { %244 = shalt.err (!%p241_p2)
}
   0xa   :  { %s245_s23 = scalar_lea.vmem %s30_s13, 16  ;;  %s249_s24 = scalar_lea.vmem %s30_s13, 32 }
   0xb   :  { %p246_p3 = scmp.ne.s32.totalorder %s30_s13, %s245_s23  ;;  %p250_p4 = scmp.lt.s32.totalorder %s30_s13, %s30_s13 }
   0xc   :  { %p251_p5 = scmp.lt.s32.totalorder %s249_s24, %s245_s23 }
   0xe   :  { %p252_p6 = por %p251_p5, %p250_p4 }
  0x10   :  { %p253_p7 = pnand %p252_p6, %p246_p3 }
  0x12   :  { %256 = shalt.err (!%p253_p7)
}
  0x13   :  { %32 = dma.hbm_to_vmem [thread:$0]  %s432_s1, 16, %s30_s13, [#allocation6]  }
  0x14   :  { %s257_s29 = scalar_lea.hbm %s431_s0, 320 }
  0x15   :  { %p258_p8 = scmp.ne.s32.totalorder %s431_s0, %s257_s29  ;;  %p261_p9 = scmp.lt.u32.totalorder %s257_s29, %s431_s0 }
  0x17   :  { %p263_p10 = pnand %p261_p9, %p258_p8 }
  0x19   :  { %266 = shalt.err (!%p263_p10)
}
  0x1a   :  { %s267_s7 = scalar_lea.vmem %s355_s15, 320  ;;  %p272_p12 = scmp.lt.s32.totalorder %s355_s15, %s355_s15 }
  0x1b   :  { %p268_p11 = scmp.ne.s32.totalorder %s355_s15, %s267_s7  ;;  %p273_p13 = scmp.lt.s32.totalorder %s267_s7, %s267_s7 }
  0x1d   :  { %p274_p0 = por %p273_p13, %p272_p12 }
  0x1f   :  { %p275_p1 = pnand %p274_p0, %p268_p11 }
  0x21   :  { %278 = shalt.err (!%p275_p1)
}
  0x22   :  { %s331_s1 = smov 64   ;;  %s332_s8 = smov 4  }
  0x23   :  { %22 = dma.hbm_to_vmem [thread:$0]  %s431_s0, 320, %s355_s15, [#allocation3], %s331_s1, %s331_s1, %s332_s8  }
  0x24   :  { %s333_s11 = smov [#allocation7]   ;;  %s279_s16 = scalar_lea.hbm %s433_s2, 16 }
  0x25   :  { %s39_s12 = sshll.u32 %s333_s11, 4  ;;  %p280_p2 = scmp.ne.s32.totalorder %s433_s2, %s279_s16  ;;  %s40_s12 = int_to_ptr.vmem [resolvable:$true] %s39_s12 }
  0x26   :  { %p283_p3 = scmp.lt.u32.totalorder %s279_s16, %s433_s2 }
  0x28   :  { %p285_p4 = pnand %p283_p3, %p280_p2 }
  0x2a   :  { %288 = shalt.err (!%p285_p4)
}
  0x2b   :  { %s289_s21 = scalar_lea.vmem %s40_s12, 16  ;;  %s293_s0 = scalar_lea.vmem %s40_s12, 32 }
  0x2c   :  { %p290_p5 = scmp.ne.s32.totalorder %s40_s12, %s289_s21  ;;  %p294_p6 = scmp.lt.s32.totalorder %s40_s12, %s40_s12 }
  0x2d   :  { %p295_p7 = scmp.lt.s32.totalorder %s293_s0, %s289_s21 }
  0x2f   :  { %p296_p8 = por %p295_p7, %p294_p6 }
  0x31   :  { %p297_p9 = pnand %p296_p8, %p290_p5 }
  0x33   :  { %300 = shalt.err (!%p297_p9)
}
  0x34   :  { %42 = dma.hbm_to_vmem [thread:$0]  %s433_s2, 16, %s40_s12, [#allocation6]  }
  0x35   :  { %323 = dma.done.wait [#allocation3], 320  }
  0x36   :  { %324 = vsyncadd [#allocation3], 4294966976 }
  0x37   :  { %325 = dma.done.wait [#allocation6], 32  }
  0x38   :  { %326 = vsyncadd [#allocation6], 4294967264  ;;  %v211_v0 = vld [vmem:[#allocation2] sm:$0xff]   ;;  %vm62_vm0 = vcmask 261120   ;;  %v218_v1 = vld [vmem:[#allocation2 + $0x8] sm:$0xff]   ;;  %vm174_vm1 = vcmask 257024  }
  0x39   :  { %v212_v2 = vunpack.c.l.bf16 %v211_v0  ;;  %v216_v3 = vunpack.c.l.bf16 %v218_v1  ;;  %v213_v4 = vunpack.c.h.bf16 %v211_v0  ;;  %v217_v5 = vunpack.c.h.bf16 %v218_v1  ;;  %v56_v6 = vld [vmem:[#allocation2 + $0x10] sm:$0xf]  ;;  %v198_v54 = vld [vmem:[#allocation5] ss:$0 sm:$0xff]  ;;  %v199_v56 = vld [vmem:[#allocation7] ss:$0 sm:$0xff] }
  0x3a   :  { %v61_v11 = vunpack.c.l.bf16 %v56_v6  ;;  %s334_s2 = smov [#allocation8]  }
  0x3b   :  { %v63_v7 = vsel %vm62_vm0, %v212_v2, 0.0  ;;  %v69_v8 = vsel %vm62_vm0, %v216_v3, 0.0  ;;  %v66_v9 = vsel %vm62_vm0, %v213_v4, 0.0  ;;  %v72_v10 = vsel %vm62_vm0, %v217_v5, 0.0  ;;  %s185_s23 = sshll.u32 %s334_s2, 4  ;;  %s186_s23 = int_to_ptr.vmem [resolvable:$true] %s185_s23 }
  0x3c   :  { %64 = vadd.xlane.f32.xlu0 %v63_v7  ;;  %70 = vadd.xlane.f32.xlu1 %v69_v8  ;;  %v75_v12 = vsel %vm62_vm0, %v61_v11, 0.0  ;;  %s301_s24 = scalar_lea.vmem %s186_s23, 320  ;;  %p306_p11 = scmp.lt.s32.totalorder %s186_s23, %s186_s23 }
  0x3d   :  { %p302_p10 = scmp.ne.s32.totalorder %s186_s23, %s301_s24  ;;  %p307_p12 = scmp.lt.s32.totalorder %s301_s24, %s301_s24 }
  0x3f   :  { %p308_p13 = por %p307_p12, %p306_p11 }
  0x40   :  { %67 = vadd.xlane.f32.xlu0 %v66_v9  ;;  %73 = vadd.xlane.f32.xlu1 %v72_v10 }
  0x41   :  { %p309_p0 = pnand %p308_p13, %p302_p10 }
  0x44   :  { %76 = vadd.xlane.f32.xlu0 %v75_v12 }
  0xc9   :  { %v65_v13 = vpop.xlane.xlu0 %64  ;;  %v71_v14 = vpop.xlane.xlu1 %70 }
  0xca   :  { %v79_v15 = vmul.f32 0.03125, %v65_v13  ;;  %v81_v16 = vmul.f32 0.03125, %v71_v14 }
  0xcc   :  { %v84_v17 = vsub.f32 %v212_v2, %v79_v15  ;;  %v86_v18 = vsub.f32 %v216_v3, %v81_v16 }
  0xcd   :  { %v68_v19 = vpop.xlane.xlu0 %67  ;;  %v74_v20 = vpop.xlane.xlu1 %73 }
  0xce   :  { %v80_v21 = vmul.f32 0.03125, %v68_v19  ;;  %v82_v22 = vmul.f32 0.03125, %v74_v20  ;;  %v89_v23 = vmul.f32 %v84_v17, %v84_v17  ;;  %v91_v24 = vmul.f32 %v86_v18, %v86_v18 }
  0xd0   :  { %v85_v25 = vsub.f32 %v213_v4, %v80_v21  ;;  %v87_v26 = vsub.f32 %v217_v5, %v82_v22  ;;  %v94_v27 = vsel %vm62_vm0, %v89_v23, 0.0  ;;  %v100_v30 = vsel %vm62_vm0, %v91_v24, 0.0 }
  0xd1   :  { %95 = vadd.xlane.f32.xlu1 %v94_v27  ;;  %v77_v28 = vpop.xlane.xlu0 %76 }
  0xd2   :  { %v83_v29 = vmul.f32 0.03125, %v77_v28  ;;  %v90_v31 = vmul.f32 %v85_v25, %v85_v25  ;;  %v92_v32 = vmul.f32 %v87_v26, %v87_v26 }
  0xd4   :  { %v88_v33 = vsub.f32 %v61_v11, %v83_v29  ;;  %v97_v34 = vsel %vm62_vm0, %v90_v31, 0.0  ;;  %v103_v35 = vsel %vm62_vm0, %v92_v32, 0.0 }
  0xd5   :  { %101 = vadd.xlane.f32.xlu1 %v100_v30  ;;  %98 = vadd.xlane.f32.xlu0 %v97_v34 }
  0xd6   :  { %v93_v36 = vmul.f32 %v88_v33, %v88_v33 }
  0xd8   :  { %v106_v37 = vsel %vm62_vm0, %v93_v36, 0.0 }
  0xd9   :  { %104 = vadd.xlane.f32.xlu0 %v103_v35  ;;  %107 = vadd.xlane.f32.xlu1 %v106_v37 }
 0x15e   :  { %v96_v38 = vpop.xlane.xlu1 %95 }
 0x15f   :  { %v109_v39 = vmul.f32 0.03125, %v96_v38 }
 0x161   :  { %v114_v40 = vadd.f32 1e-05, %v109_v39 }
 0x162   :  { %v102_v41 = vpop.xlane.xlu1 %101  ;;  %v99_v42 = vpop.xlane.xlu0 %98 }
 0x163   :  { %225 = vrsqrt.f32 %v114_v40  ;;  %v111_v43 = vmul.f32 0.03125, %v102_v41  ;;  %v110_v44 = vmul.f32 0.03125, %v99_v42 }
 0x165   :  { %v116_v45 = vadd.f32 1e-05, %v111_v43  ;;  %v115_v46 = vadd.f32 1e-05, %v110_v44 }
 0x166   :  { %v108_v47 = vpop.xlane.xlu1 %107  ;;  %v105_v48 = vpop.xlane.xlu0 %104 }
 0x167   :  { %227 = vrsqrt.f32 %v116_v45  ;;  %v113_v49 = vmul.f32 0.03125, %v108_v47  ;;  %v112_v50 = vmul.f32 0.03125, %v105_v48 }
 0x168   :  { %229 = vrsqrt.f32 %v115_v46 }
 0x169   :  { %v118_v51 = vadd.f32 1e-05, %v113_v49  ;;  %v117_v52 = vadd.f32 1e-05, %v112_v50 }
 0x16b   :  { %231 = vrsqrt.f32 %v118_v51 }
 0x16c   :  { %233 = vrsqrt.f32 %v117_v52 }
 0x16d   :  { %v226_v53 = vpop.eup %225 }
 0x16e   :  { %v124_v55 = vmul.f32 %v226_v53, %v84_v17 }
 0x170   :  { %v136_v57 = vmul.f32 %v198_v54, %v124_v55 }
 0x171   :  { %v228_v58 = vpop.eup %227 }
 0x172   :  { %v230_v59 = vpop.eup %229  ;;  %v148_v60 = vadd.f32 %v199_v56, %v136_v57  ;;  %v126_v61 = vmul.f32 %v228_v58, %v86_v18 }
 0x173   :  { %v125_v62 = vmul.f32 %v230_v59, %v85_v25 }
 0x174   :  { %v138_v63 = vmul.f32 %v198_v54, %v126_v61  ;;  %v205_v0 = vpack.c.bf16 %v148_v60, %v148_v60 }
 0x175   :  { %v232_v1 = vpop.eup %231  ;;  %v137_v2 = vmul.f32 %v198_v54, %v125_v62 }
 0x176   :  { %v234_v3 = vpop.eup %233  ;;  %v150_v4 = vadd.f32 %v199_v56, %v138_v63  ;;  %v128_v5 = vmul.f32 %v232_v1, %v88_v33  ;;  %175 = vst.msk [vmem:[#allocation8] sm:$0xf] %vm174_vm1, %v205_v0 }
 0x177   :  { %v149_v6 = vadd.f32 %v199_v56, %v137_v2  ;;  %v127_v7 = vmul.f32 %v234_v3, %v87_v26 }
 0x178   :  { %v140_v8 = vmul.f32 %v198_v54, %v128_v5  ;;  %v207_v9 = vpack.c.bf16 %v150_v4, %v150_v4 }
 0x179   :  { %v139_v10 = vmul.f32 %v198_v54, %v127_v7  ;;  %v206_v11 = vpack.c.bf16 %v149_v6, %v149_v6 }
 0x17a   :  { %v152_v12 = vadd.f32 %v199_v56, %v140_v8  ;;  %177 = vst.msk [vmem:[#allocation8 + $0x8] sm:$0xf] %vm174_vm1, %v207_v9 }
 0x17b   :  { %v151_v13 = vadd.f32 %v199_v56, %v139_v10  ;;  %176 = vst.msk [vmem:[#allocation8 + $0x4] sm:$0xf] %vm174_vm1, %v206_v11 }
 0x17c   :  { %v209_v14 = vpack.c.bf16 %v152_v12, %v152_v12 }
 0x17d   :  { %v208_v15 = vpack.c.bf16 %v151_v13, %v151_v13 }
 0x17e   :  { %179 = vst.msk [vmem:[#allocation8 + $0x10] sm:$0xf] %vm174_vm1, %v209_v14 }
 0x17f   :  { %178 = vst.msk [vmem:[#allocation8 + $0xc] sm:$0xf] %vm174_vm1, %v208_v15 }
 0x180   :  { %312 = shalt.err (!%p309_p0)
}
 0x181   :  { %s313_s27 = scalar_lea.hbm %s434_s3, 320 }
 0x182   :  { %p314_p1 = scmp.ne.s32.totalorder %s434_s3, %s313_s27  ;;  %p317_p2 = scmp.lt.u32.totalorder %s313_s27, %s434_s3 }
 0x184   :  { %p319_p3 = pnand %p317_p2, %p314_p1 }
 0x186   :  { %322 = shalt.err (!%p319_p3)
}
 0x187   :  { %191 = dma.vmem_to_hbm [thread:$0]  %s186_s23, 320, %s434_s3, [#allocation4], %s331_s1, %s331_s1, %s332_s8  }
 0x188   :  { %327 = dma.done.wait [#allocation4], 320  }
 0x189   :  { %328 = vsyncadd [#allocation4], 4294966976 }
 0x18a   :  { %195 = vsyncpa [#allocation3], 1 }
 0x18b   :  { %196 = vsyncpa [#allocation6], 1 }
 0x18c   :  { %197 = vsyncpa [#allocation4], 1 }

// kernel: clip_forward.46
= control target key start
LH: loop header
LB: loop body
LE: loop exit
PB: predicated region body
PF: predicated region fallthrough
CT: control target
= control target key end

     0   :  { %8 = vsyncpa [#allocation3], 0  ;;  %s458_s0 = inlined_call_operand.hbm [shape: bf16[40,32], index: 0, kind: input, shape index: {}]   ;;  %s459_s1 = inlined_call_operand.hbm [shape: bf16[32,32], index: 1, kind: input, shape index: {}]   ;;  %s460_s2 = inlined_call_operand.hbm [shape: f32[1,32], index: 2, kind: input, shape index: {}]   ;;  %s461_s3 = inlined_call_operand.hbm [shape: bf16[40,32], index: 3, kind: output, shape index: {}]  }
   0x1   :  { %9 = vsyncpa [#allocation6], 0 }
   0x2   :  { %10 = vsyncpa [#allocation4], 0  ;;  %s358_s12 = smov [#allocation5]   ;;  %s359_s14 = smov [#allocation2]  }
   0x3   :  { %s28_s13 = sshll.u32 %s358_s12, 4  ;;  %s16_s15 = sshll.u32 %s359_s14, 4  ;;  %s29_s13 = int_to_ptr.vmem [resolvable:$true] %s28_s13  ;;  %s386_s15 = int_to_ptr.vmem [resolvable:$true] %s16_s15 }
   0x4   :  { %s264_s18 = scalar_lea.hbm %s459_s1, 256 }
   0x5   :  { %p265_p0 = scmp.ne.s32.totalorder %s459_s1, %s264_s18  ;;  %p268_p1 = scmp.lt.u32.totalorder %s264_s18, %s459_s1 }
   0x7   :  { %p270_p2 = pnand %p268_p1, %p265_p0 }
   0x9   :  { %273 = shalt.err (!%p270_p2)
}
   0xa   :  { %s274_s23 = scalar_lea.vmem %s29_s13, 256  ;;  %p279_p4 = scmp.lt.s32.totalorder %s29_s13, %s29_s13 }
   0xb   :  { %p275_p3 = scmp.ne.s32.totalorder %s29_s13, %s274_s23  ;;  %p280_p5 = scmp.lt.s32.totalorder %s274_s23, %s274_s23 }
   0xd   :  { %p281_p6 = por %p280_p5, %p279_p4 }
   0xf   :  { %p282_p7 = pnand %p281_p6, %p275_p3 }
  0x11   :  { %285 = shalt.err (!%p282_p7)
}
  0x12   :  { %s360_s24 = smov 64   ;;  %s361_s25 = smov 4  }
  0x13   :  { %34 = dma.hbm_to_vmem [thread:$0]  %s459_s1, 256, %s29_s13, [#allocation6], %s360_s24, %s360_s24, %s361_s25  }
  0x14   :  { %s286_s30 = scalar_lea.hbm %s458_s0, 320 }
  0x15   :  { %p287_p8 = scmp.ne.s32.totalorder %s458_s0, %s286_s30  ;;  %p290_p9 = scmp.lt.u32.totalorder %s286_s30, %s458_s0 }
  0x17   :  { %p292_p10 = pnand %p290_p9, %p287_p8 }
  0x19   :  { %295 = shalt.err (!%p292_p10)
}
  0x1a   :  { %s296_s8 = scalar_lea.vmem %s386_s15, 320  ;;  %p301_p12 = scmp.lt.s32.totalorder %s386_s15, %s386_s15 }
  0x1b   :  { %p297_p11 = scmp.ne.s32.totalorder %s386_s15, %s296_s8  ;;  %p302_p13 = scmp.lt.s32.totalorder %s296_s8, %s296_s8 }
  0x1d   :  { %p303_p0 = por %p302_p13, %p301_p12 }
  0x1f   :  { %p304_p1 = pnand %p303_p0, %p297_p11 }
  0x21   :  { %307 = shalt.err (!%p304_p1)
}
  0x22   :  { %22 = dma.hbm_to_vmem [thread:$0]  %s458_s0, 320, %s386_s15, [#allocation3], %s360_s24, %s360_s24, %s361_s25  }
  0x23   :  { %s362_s10 = smov [#allocation7]   ;;  %s308_s14 = scalar_lea.hbm %s460_s2, 16 }
  0x24   :  { %s41_s11 = sshll.u32 %s362_s10, 4  ;;  %p309_p2 = scmp.ne.s32.totalorder %s460_s2, %s308_s14  ;;  %s42_s11 = int_to_ptr.vmem [resolvable:$true] %s41_s11 }
  0x25   :  { %p312_p3 = scmp.lt.u32.totalorder %s308_s14, %s460_s2 }
  0x27   :  { %p314_p4 = pnand %p312_p3, %p309_p2 }
  0x29   :  { %317 = shalt.err (!%p314_p4)
}
  0x2a   :  { %s318_s20 = scalar_lea.vmem %s42_s11, 16  ;;  %s322_s0 = scalar_lea.vmem %s42_s11, 32 }
  0x2b   :  { %p319_p5 = scmp.ne.s32.totalorder %s42_s11, %s318_s20  ;;  %p323_p6 = scmp.lt.s32.totalorder %s42_s11, %s42_s11 }
  0x2c   :  { %p324_p7 = scmp.lt.s32.totalorder %s322_s0, %s318_s20 }
  0x2e   :  { %p325_p8 = por %p324_p7, %p323_p6 }
  0x30   :  { %p326_p9 = pnand %p325_p8, %p319_p5 }
  0x32   :  { %329 = shalt.err (!%p326_p9)
}
  0x33   :  { %44 = dma.hbm_to_vmem [thread:$0]  %s460_s2, 16, %s42_s11, [#allocation6]  }
  0x34   :  { %352 = dma.done.wait [#allocation3], 320  }
  0x35   :  { %353 = vsyncadd [#allocation3], 4294966976 }
  0x36   :  { %354 = dma.done.wait [#allocation6], 272  }
  0x37   :  { %355 = vsyncadd [#allocation6], 4294967024  ;;  %v363_v0 = vmov 0.0   ;;  %vm364_vm0 = vmmov 0   ;;  %v259_v1 = vld [vmem:[#allocation5] sm:$0xff]   ;;  %v260_v2 = vld [vmem:[#allocation5 + $0x8] sm:$0xff]  }
  0x38   :  { %247 = vmatprep.subr.bf16.mxu1 %v363_v0  ;;  %231 = vmatprep.subr.bf16.mxu0 %v363_v0  ;;  %v261_v3 = vld [vmem:[#allocation2 + $0x8] sm:$0xff]   ;;  %v262_v4 = vld [vmem:[#allocation2] sm:$0xff]   ;;  %vm96_vm1 = vcmask 261120   ;;  %v263_v5 = vld [vmem:[#allocation2 + $0x10] ss:$0 sps:$4 sm:$0xff]   ;;  %vm183_vm2 = vcmask 257024  }
  0x39   :  { %239 = vmatprep.mubr.msk.bf16.mxu1 %vm364_vm0, %v363_v0  ;;  %235 = vmatprep.mubr.msk.bf16.mxu0 %vm364_vm0, %v363_v0  ;;  %v207_v6 = vld [vmem:[#allocation7] ss:$0 sm:$0xff]  ;;  %s365_s2 = smov [#allocation8]  }
  0x3a   :  { %249 = vmatpush3.bf16.msra.mxu1 %v259_v1  ;;  %232 = vmatpush3.bf16.msra.mxu0 %v259_v1  ;;  %s194_s22 = sshll.u32 %s365_s2, 4  ;;  %s195_s22 = int_to_ptr.vmem [resolvable:$true] %s194_s22 }
  0x3b   :  { %248 = vmatprep.subr.bf16.mxu1 %v363_v0  ;;  %233 = vmatprep.subr.bf16.mxu0 %v363_v0  ;;  %s330_s23 = scalar_lea.vmem %s195_s22, 320  ;;  %p335_p11 = scmp.lt.s32.totalorder %s195_s22, %s195_s22 }
  0x3c   :  { %p331_p10 = scmp.ne.s32.totalorder %s195_s22, %s330_s23  ;;  %p336_p12 = scmp.lt.s32.totalorder %s330_s23, %s330_s23 }
  0x3e   :  { %250 = vmatpush3.bf16.msra.mxu1 %v260_v2  ;;  %234 = vmatpush3.bf16.msra.mxu0 %v260_v2  ;;  %p337_p13 = por %p336_p12, %p335_p11 }
  0x40   :  { %p338_p0 = pnand %p337_p13, %p331_p10 }
  0x41   :  { %240 = vmatmul.mubr.msk.bf16.vlgmr.msra.gmra.mrb[0].mxu1 %vm96_vm1, %v261_v3  ;;  %236 = vmatmul.mubr.msk.bf16.vlgmr.msra.gmra.mrb[0].mxu0 %vm96_vm1, %v262_v4 }
  0x42   :  { %243 = vmatprep.mubr.msk.bf16.mxu1 %vm364_vm0, %v363_v0 }
  0x49   :  { %244 = vmatmul.mubr.msk.bf16.gmra.mrb[4].mxu1 %vm96_vm1, %v263_v5 }
 0x114   :  { %v148_v7 = vpop.f32.mrb[0].mxu1  ;;  %v140_v8 = vpop.f32.mrb[0].mxu0 }
 0x115   :  { %v149_v9 = vadd.f32 %v207_v6, %v148_v7  ;;  %v241_v10 = vpop.f32.mrb[1].mxu1  ;;  %v141_v11 = vadd.f32 %v207_v6, %v140_v8  ;;  %v237_v12 = vpop.f32.mrb[1].mxu0 }
 0x116   :  { %v151_v13 = vpop.f32.mrb[2].mxu1  ;;  %v143_v14 = vpop.f32.mrb[2].mxu0 }
 0x117   :  { %v223_v15 = vpack.c.bf16 %v149_v9, %v149_v9  ;;  %v152_v16 = vadd.f32 %v207_v6, %v151_v13  ;;  %v221_v17 = vpack.c.bf16 %v141_v11, %v141_v11  ;;  %v242_v18 = vpop.f32.mrb[3].mxu1  ;;  %v144_v19 = vadd.f32 %v207_v6, %v143_v14  ;;  %v238_v20 = vpop.f32.mrb[3].mxu0 }
 0x119   :  { %186 = vst.msk [vmem:[#allocation8 + $0x8] sm:$0xf] %vm183_vm2, %v223_v15  ;;  %v224_v21 = vpack.c.bf16 %v152_v16, %v152_v16  ;;  %184 = vst.msk [vmem:[#allocation8] sm:$0xf] %vm183_vm2, %v221_v17  ;;  %v222_v22 = vpack.c.bf16 %v144_v19, %v144_v19 }
 0x11b   :  { %187 = vst.msk [vmem:[#allocation8 + $0xc] sm:$0xf] %vm183_vm2, %v224_v21  ;;  %185 = vst.msk [vmem:[#allocation8 + $0x4] sm:$0xf] %vm183_vm2, %v222_v22 }
 0x11c   :  { %v156_v23 = vpop.f32.mrb[4].mxu1 }
 0x11d   :  { %v157_v24 = vadd.f32 %v207_v6, %v156_v23  ;;  %v245_v25 = vpop.f32.mrb[5].mxu1 }
 0x11e   :  { %v159_v26 = vpop.f32.mrb[6].mxu1 }
 0x11f   :  { %v225_v27 = vpack.c.bf16 %v157_v24, %v157_v24  ;;  %v246_v28 = vpop.f32.mrb[7].mxu1 }
 0x121   :  { %188 = vst.msk [vmem:[#allocation8 + $0x10] sm:$0xf] %vm183_vm2, %v225_v27 }
 0x122   :  { %341 = shalt.err (!%p338_p0)
}
 0x123   :  { %s342_s28 = scalar_lea.hbm %s461_s3, 320 }
 0x124   :  { %p343_p1 = scmp.ne.s32.totalorder %s461_s3, %s342_s28  ;;  %p346_p2 = scmp.lt.u32.totalorder %s342_s28, %s461_s3 }
 0x126   :  { %p348_p3 = pnand %p346_p2, %p343_p1 }
 0x128   :  { %351 = shalt.err (!%p348_p3)
}
 0x129   :  { %200 = dma.vmem_to_hbm [thread:$0]  %s195_s22, 320, %s461_s3, [#allocation4], %s360_s24, %s360_s24, %s361_s25  }
 0x12a   :  { %356 = dma.done.wait [#allocation4], 320  }
 0x12b   :  { %357 = vsyncadd [#allocation4], 4294966976 }
 0x12c   :  { %204 = vsyncpa [#allocation3], 1 }
 0x12d   :  { %205 = vsyncpa [#allocation6], 1 }
 0x12e   :  { %206 = vsyncpa [#allocation4], 1 }

// kernel: clip_forward.42
= control target key start
LH: loop header
LB: loop body
LE: loop exit
PB: predicated region body
PF: predicated region fallthrough
CT: control target
= control target key end

     0   :  { %8 = vsyncpa [#allocation3], 0  ;;  %s425_s0 = inlined_call_operand.hbm [shape: bf16[32,48], index: 0, kind: input, shape index: {}]   ;;  %s426_s1 = inlined_call_operand.hbm [shape: bf16[48,32], index: 1, kind: input, shape index: {}]   ;;  %s427_s2 = inlined_call_operand.hbm [shape: f32[1,32], index: 2, kind: input, shape index: {}]   ;;  %s428_s3 = inlined_call_operand.hbm [shape: bf16[32,32], index: 3, kind: output, shape index: {}]  }
   0x1   :  { %9 = vsyncpa [#allocation6], 0 }
   0x2   :  { %10 = vsyncpa [#allocation4], 0  ;;  %s331_s12 = smov [#allocation5]   ;;  %s332_s14 = smov [#allocation2]  }
   0x3   :  { %s28_s13 = sshll.u32 %s331_s12, 4  ;;  %s16_s15 = sshll.u32 %s332_s14, 4  ;;  %s29_s13 = int_to_ptr.vmem [resolvable:$true] %s28_s13  ;;  %s357_s15 = int_to_ptr.vmem [resolvable:$true] %s16_s15 }
   0x4   :  { %s237_s18 = scalar_lea.hbm %s426_s1, 384 }
   0x5   :  { %p238_p0 = scmp.ne.s32.totalorder %s426_s1, %s237_s18  ;;  %p241_p1 = scmp.lt.u32.totalorder %s237_s18, %s426_s1 }
   0x7   :  { %p243_p2 = pnand %p241_p1, %p238_p0 }
   0x9   :  { %246 = shalt.err (!%p243_p2)
}
   0xa   :  { %s247_s23 = scalar_lea.vmem %s29_s13, 384  ;;  %p252_p4 = scmp.lt.s32.totalorder %s29_s13, %s29_s13 }
   0xb   :  { %p248_p3 = scmp.ne.s32.totalorder %s29_s13, %s247_s23  ;;  %p253_p5 = scmp.lt.s32.totalorder %s247_s23, %s247_s23 }
   0xd   :  { %p254_p6 = por %p253_p5, %p252_p4 }
   0xf   :  { %p255_p7 = pnand %p254_p6, %p248_p3 }
  0x11   :  { %258 = shalt.err (!%p255_p7)
}
  0x12   :  { %s333_s24 = smov 64   ;;  %s334_s25 = smov 4  }
  0x13   :  { %34 = dma.hbm_to_vmem [thread:$0]  %s426_s1, 384, %s29_s13, [#allocation6], %s333_s24, %s333_s24, %s334_s25  }
  0x14   :  { %s259_s30 = scalar_lea.hbm %s425_s0, 256 }
  0x15   :  { %p260_p8 = scmp.ne.s32.totalorder %s425_s0, %s259_s30  ;;  %p263_p9 = scmp.lt.u32.totalorder %s259_s30, %s425_s0 }
  0x17   :  { %p265_p10 = pnand %p263_p9, %p260_p8 }
  0x19   :  { %268 = shalt.err (!%p265_p10)
}
  0x1a   :  { %s269_s8 = scalar_lea.vmem %s357_s15, 256  ;;  %p274_p12 = scmp.lt.s32.totalorder %s357_s15, %s357_s15 }
  0x1b   :  { %p270_p11 = scmp.ne.s32.totalorder %s357_s15, %s269_s8  ;;  %p275_p13 = scmp.lt.s32.totalorder %s269_s8, %s269_s8 }
  0x1d   :  { %p276_p0 = por %p275_p13, %p274_p12 }
  0x1f   :  { %p277_p1 = pnand %p276_p0, %p270_p11 }
  0x21   :  { %280 = shalt.err (!%p277_p1)
}
  0x22   :  { %22 = dma.hbm_to_vmem [thread:$0]  %s425_s0, 256, %s357_s15, [#allocation3], %s333_s24, %s333_s24, %s334_s25  }
  0x23   :  { %s335_s10 = smov [#allocation7]   ;;  %s281_s14 = scalar_lea.hbm %s427_s2, 16 }
  0x24   :  { %s41_s11 = sshll.u32 %s335_s10, 4  ;;  %p282_p2 = scmp.ne.s32.totalorder %s427_s2, %s281_s14  ;;  %s42_s11 = int_to_ptr.vmem [resolvable:$true] %s41_s11 }
  0x25   :  { %p285_p3 = scmp.lt.u32.totalorder %s281_s14, %s427_s2 }
  0x27   :  { %p287_p4 = pnand %p285_p3, %p282_p2 }
  0x29   :  { %290 = shalt.err (!%p287_p4)
}
  0x2a   :  { %s291_s20 = scalar_lea.vmem %s42_s11, 16  ;;  %s295_s0 = scalar_lea.vmem %s42_s11, 32 }
  0x2b   :  { %p292_p5 = scmp.ne.s32.totalorder %s42_s11, %s291_s20  ;;  %p296_p6 = scmp.lt.s32.totalorder %s42_s11, %s42_s11 }
  0x2c   :  { %p297_p7 = scmp.lt.s32.totalorder %s295_s0, %s291_s20 }
  0x2e   :  { %p298_p8 = por %p297_p7, %p296_p6 }
  0x30   :  { %p299_p9 = pnand %p298_p8, %p292_p5 }
  0x32   :  { %302 = shalt.err (!%p299_p9)
}
  0x33   :  { %44 = dma.hbm_to_vmem [thread:$0]  %s427_s2, 16, %s42_s11, [#allocation6]  }
  0x34   :  { %325 = dma.done.wait [#allocation3], 256  }
  0x35   :  { %326 = vsyncadd [#allocation3], 4294967040 }
  0x36   :  { %327 = dma.done.wait [#allocation6], 400  }
  0x37   :  { %328 = vsyncadd [#allocation6], 4294966896  ;;  %v232_v0 = vld [vmem:[#allocation5] sm:$0xff]   ;;  %v233_v1 = vld [vmem:[#allocation5 + $0x8] sm:$0xff]   ;;  %vm100_vm0 = vcmask 392192   ;;  %vm172_vm1 = vcmask 257024  }
  0x38   :  { %216 = vmatprep.subr.bf16.mxu0 %v232_v0  ;;  %v235_v2 = vld [vmem:[#allocation2] sm:$0xff]   ;;  %v236_v4 = vld [vmem:[#allocation2 + $0x8] sm:$0xff]   ;;  %s336_s2 = smov [#allocation8]  }
  0x39   :  { %217 = vmatpush3.bf16.msra.mxu0 %v232_v0  ;;  %v234_v3 = vld [vmem:[#allocation5 + $0x10] sm:$0xff]   ;;  %222 = vmatprep.mubr.msk.bf16.mxu0 %vm100_vm0, %v235_v2  ;;  %v195_v5 = vld [vmem:[#allocation7] ss:$0 sm:$0xff]  ;;  %s182_s22 = sshll.u32 %s336_s2, 4  ;;  %s183_s22 = int_to_ptr.vmem [resolvable:$true] %s182_s22 }
  0x3a   :  { %218 = vmatprep.subr.bf16.mxu0 %v233_v1  ;;  %s303_s23 = scalar_lea.vmem %s183_s22, 256  ;;  %p308_p11 = scmp.lt.s32.totalorder %s183_s22, %s183_s22 }
  0x3b   :  { %p304_p10 = scmp.ne.s32.totalorder %s183_s22, %s303_s23  ;;  %p309_p12 = scmp.lt.s32.totalorder %s303_s23, %s303_s23 }
  0x3d   :  { %219 = vmatpush3.bf16.msra.mxu0 %v233_v1  ;;  %p310_p13 = por %p309_p12, %p308_p11 }
  0x3e   :  { %220 = vmatprep.subr.bf16.mxu0 %v234_v3 }
  0x3f   :  { %p311_p0 = pnand %p310_p13, %p304_p10 }
  0x41   :  { %221 = vmatpush3.bf16.msra.mxu0 %v234_v3 }
  0x44   :  { %223 = vmatmul.mubr.msk.bf16.vlgmr.msra.gmra.mrb[0].mxu0 %vm100_vm0, %v236_v4 }
 0x117   :  { %v224_v6 = vpop.f32.mrb[0].mxu0 }
 0x118   :  { %v150_v7 = vadd.f32 %v224_v6, %v195_v5  ;;  %v141_v8 = vpop.f32.mrb[1].mxu0 }
 0x119   :  { %v142_v9 = vadd.f32 %v195_v5, %v141_v8  ;;  %v225_v10 = vpop.f32.mrb[2].mxu0 }
 0x11a   :  { %v209_v11 = vpack.c.bf16 %v150_v7, %v150_v7  ;;  %v153_v12 = vadd.f32 %v225_v10, %v195_v5  ;;  %v144_v13 = vpop.f32.mrb[3].mxu0 }
 0x11b   :  { %v207_v14 = vpack.c.bf16 %v142_v9, %v142_v9  ;;  %v145_v15 = vadd.f32 %v195_v5, %v144_v13 }
 0x11c   :  { %175 = vst.msk [vmem:[#allocation8 + $0x8] sm:$0xf] %vm172_vm1, %v209_v11  ;;  %v210_v16 = vpack.c.bf16 %v153_v12, %v153_v12 }
 0x11d   :  { %173 = vst.msk [vmem:[#allocation8] sm:$0xf] %vm172_vm1, %v207_v14  ;;  %v208_v17 = vpack.c.bf16 %v145_v15, %v145_v15 }
 0x11e   :  { %176 = vst.msk [vmem:[#allocation8 + $0xc] sm:$0xf] %vm172_vm1, %v210_v16 }
 0x11f   :  { %174 = vst.msk [vmem:[#allocation8 + $0x4] sm:$0xf] %vm172_vm1, %v208_v17 }
 0x120   :  { %314 = shalt.err (!%p311_p0)
}
 0x121   :  { %s315_s28 = scalar_lea.hbm %s428_s3, 256 }
 0x122   :  { %p316_p1 = scmp.ne.s32.totalorder %s428_s3, %s315_s28  ;;  %p319_p2 = scmp.lt.u32.totalorder %s315_s28, %s428_s3 }
 0x124   :  { %p321_p3 = pnand %p319_p2, %p316_p1 }
 0x126   :  { %324 = shalt.err (!%p321_p3)
}
 0x127   :  { %188 = dma.vmem_to_hbm [thread:$0]  %s183_s22, 256, %s428_s3, [#allocation4], %s333_s24, %s333_s24, %s334_s25  }
 0x128   :  { %329 = dma.done.wait [#allocation4], 256  }
 0x129   :  { %330 = vsyncadd [#allocation4], 4294967040 }
 0x12a   :  { %192 = vsyncpa [#allocation3], 1 }
 0x12b   :  { %193 = vsyncpa [#allocation6], 1 }
 0x12c   :  { %194 = vsyncpa [#allocation4], 1 }

// kernel: clip_forward.49
= control target key start
LH: loop header
LB: loop body
LE: loop exit
PB: predicated region body
PF: predicated region fallthrough
CT: control target
= control target key end

     0   :  { %9 = vsyncpa [#allocation3], 0  ;;  %s553_s0 = inlined_call_operand.hbm [shape: bf16[40,32], index: 0, kind: input, shape index: {}]   ;;  %s554_s1 = inlined_call_operand.hbm [shape: bf16[32,32], index: 1, kind: input, shape index: {}]   ;;  %s555_s2 = inlined_call_operand.hbm [shape: f32[1,32], index: 2, kind: input, shape index: {}]   ;;  %s556_s3 = inlined_call_operand.hbm [shape: bf16[40,32], index: 3, kind: input, shape index: {}]   ;;  %s557_s4 = inlined_call_operand.hbm [shape: bf16[40,32], index: 4, kind: output, shape index: {}]  }
   0x1   :  { %10 = vsyncpa [#allocation6], 0 }
   0x2   :  { %11 = vsyncpa [#allocation9], 0 }
   0x3   :  { %12 = vsyncpa [#allocation4], 0  ;;  %s425_s15 = smov [#allocation5]   ;;  %s426_s17 = smov [#allocation2]  }
   0x4   :  { %s30_s16 = sshll.u32 %s425_s15, 4  ;;  %s18_s18 = sshll.u32 %s426_s17, 4  ;;  %s31_s16 = int_to_ptr.vmem [resolvable:$true] %s30_s16  ;;  %s459_s18 = int_to_ptr.vmem [resolvable:$true] %s18_s18 }
   0x5   :  { %s307_s21 = scalar_lea.hbm %s554_s1, 256 }
   0x6   :  { %p308_p0 = scmp.ne.s32.totalorder %s554_s1, %s307_s21  ;;  %p311_p1 = scmp.lt.u32.totalorder %s307_s21, %s554_s1 }
   0x8   :  { %p313_p2 = pnand %p311_p1, %p308_p0 }
   0xa   :  { %316 = shalt.err (!%p313_p2)
}
   0xb   :  { %s317_s26 = scalar_lea.vmem %s31_s16, 256  ;;  %p322_p4 = scmp.lt.s32.totalorder %s31_s16, %s31_s16 }
   0xc   :  { %p318_p3 = scmp.ne.s32.totalorder %s31_s16, %s317_s26  ;;  %p323_p5 = scmp.lt.s32.totalorder %s317_s26, %s317_s26 }
   0xe   :  { %p324_p6 = por %p323_p5, %p322_p4 }
  0x10   :  { %p325_p7 = pnand %p324_p6, %p318_p3 }
  0x12   :  { %328 = shalt.err (!%p325_p7)
}
  0x13   :  { %s427_s27 = smov 64   ;;  %s428_s28 = smov 4  }
  0x14   :  { %36 = dma.hbm_to_vmem [thread:$0]  %s554_s1, 256, %s31_s16, [#allocation6], %s427_s27, %s427_s27, %s428_s28  }
  0x15   :  { %s329_s7 = scalar_lea.hbm %s553_s0, 320 }
  0x16   :  { %p330_p8 = scmp.ne.s32.totalorder %s553_s0, %s329_s7  ;;  %p333_p9 = scmp.lt.u32.totalorder %s329_s7, %s553_s0 }
  0x18   :  { %p335_p10 = pnand %p333_p9, %p330_p8 }
  0x1a   :  { %338 = shalt.err (!%p335_p10)
}
  0x1b   :  { %s339_s12 = scalar_lea.vmem %s459_s18, 320  ;;  %p344_p12 = scmp.lt.s32.totalorder %s459_s18, %s459_s18 }
  0x1c   :  { %p340_p11 = scmp.ne.s32.totalorder %s459_s18, %s339_s12  ;;  %p345_p13 = scmp.lt.s32.totalorder %s339_s12, %s339_s12 }
  0x1e   :  { %p346_p0 = por %p345_p13, %p344_p12 }
  0x20   :  { %p347_p1 = pnand %p346_p0, %p340_p11 }
  0x22   :  { %350 = shalt.err (!%p347_p1)
}
  0x23   :  { %24 = dma.hbm_to_vmem [thread:$0]  %s553_s0, 320, %s459_s18, [#allocation3], %s427_s27, %s427_s27, %s428_s28  }
  0x24   :  { %s429_s14 = smov [#allocation7]   ;;  %s430_s16 = smov [#allocation8]  }
  0x25   :  { %s43_s15 = sshll.u32 %s429_s14, 4  ;;  %s52_s17 = sshll.u32 %s430_s16, 4  ;;  %s44_s15 = int_to_ptr.vmem [resolvable:$true] %s43_s15  ;;  %s496_s17 = int_to_ptr.vmem [resolvable:$true] %s52_s17 }
  0x26   :  { %s351_s21 = scalar_lea.hbm %s555_s2, 16 }
  0x27   :  { %p352_p2 = scmp.ne.s32.totalorder %s555_s2, %s351_s21  ;;  %p355_p3 = scmp.lt.u32.totalorder %s351_s21, %s555_s2 }
  0x29   :  { %p357_p4 = pnand %p355_p3, %p352_p2 }
  0x2b   :  { %360 = shalt.err (!%p357_p4)
}
  0x2c   :  { %s361_s0 = scalar_lea.vmem %s44_s15, 16  ;;  %s365_s18 = scalar_lea.vmem %s44_s15, 32 }
  0x2d   :  { %p362_p5 = scmp.ne.s32.totalorder %s44_s15, %s361_s0  ;;  %p366_p6 = scmp.lt.s32.totalorder %s44_s15, %s44_s15 }
  0x2e   :  { %p367_p7 = scmp.lt.s32.totalorder %s365_s18, %s361_s0 }
  0x30   :  { %p368_p8 = por %p367_p7, %p366_p6 }
  0x32   :  { %p369_p9 = pnand %p368_p8, %p362_p5 }
  0x34   :  { %372 = shalt.err (!%p369_p9)
}
  0x35   :  { %46 = dma.hbm_to_vmem [thread:$0]  %s555_s2, 16, %s44_s15, [#allocation6]  }
  0x36   :  { %s373_s6 = scalar_lea.hbm %s556_s3, 320 }
  0x37   :  { %p374_p10 = scmp.ne.s32.totalorder %s556_s3, %s373_s6  ;;  %p377_p11 = scmp.lt.u32.totalorder %s373_s6, %s556_s3 }
  0x39   :  { %p379_p12 = pnand %p377_p11, %p374_p10 }
  0x3b   :  { %382 = shalt.err (!%p379_p12)
}
  0x3c   :  { %s383_s11 = scalar_lea.vmem %s496_s17, 320  ;;  %p388_p0 = scmp.lt.s32.totalorder %s496_s17, %s496_s17 }
  0x3d   :  { %p384_p13 = scmp.ne.s32.totalorder %s496_s17, %s383_s11  ;;  %p389_p1 = scmp.lt.s32.totalorder %s383_s11, %s383_s11 }
  0x3f   :  { %p390_p2 = por %p389_p1, %p388_p0 }
  0x41   :  { %p391_p3 = pnand %p390_p2, %p384_p13 }
  0x43   :  { %394 = shalt.err (!%p391_p3)
}
  0x44   :  { %58 = dma.hbm_to_vmem [thread:$0]  %s556_s3, 320, %s496_s17, [#allocation9], %s427_s27, %s427_s27, %s428_s28  }
  0x45   :  { %417 = dma.done.wait [#allocation3], 320  }
  0x46   :  { %418 = vsyncadd [#allocation3], 4294966976 }
  0x47   :  { %419 = dma.done.wait [#allocation6], 272  }
  0x48   :  { %420 = vsyncadd [#allocation6], 4294967024 }
  0x49   :  { %421 = dma.done.wait [#allocation9], 320  }
  0x4a   :  { %422 = vsyncadd [#allocation9], 4294966976  ;;  %v431_v0 = vmov 0.0   ;;  %vm432_vm0 = vmmov 0   ;;  %v302_v1 = vld [vmem:[#allocation5] sm:$0xff]   ;;  %v303_v2 = vld [vmem:[#allocation5 + $0x8] sm:$0xff]  }
  0x4b   :  { %289 = vmatprep.subr.bf16.mxu1 %v431_v0  ;;  %273 = vmatprep.subr.bf16.mxu0 %v431_v0  ;;  %v304_v3 = vld [vmem:[#allocation2 + $0x8] sm:$0xff]   ;;  %v305_v4 = vld [vmem:[#allocation2] sm:$0xff]   ;;  %vm113_vm1 = vcmask 261120   ;;  %v306_v5 = vld [vmem:[#allocation2 + $0x10] ss:$0 sps:$4 sm:$0xff]   ;;  %vm215_vm2 = vcmask 257024  }
  0x4c   :  { %281 = vmatprep.mubr.msk.bf16.mxu1 %vm432_vm0, %v431_v0  ;;  %277 = vmatprep.mubr.msk.bf16.mxu0 %vm432_vm0, %v431_v0  ;;  %v267_v6 = vld [vmem:[#allocation8 + $0x8] sm:$0xff]   ;;  %v260_v7 = vld [vmem:[#allocation8] sm:$0xff]   ;;  %v240_v8 = vld [vmem:[#allocation7] ss:$0 sm:$0xff]  ;;  %s433_s3 = smov [#allocation10]  }
  0x4d   :  { %291 = vmatpush3.bf16.msra.mxu1 %v302_v1  ;;  %274 = vmatpush3.bf16.msra.mxu0 %v302_v1  ;;  %v265_v9 = vunpack.c.l.bf16 %v267_v6  ;;  %v261_v10 = vunpack.c.l.bf16 %v260_v7  ;;  %v266_v15 = vunpack.c.h.bf16 %v267_v6  ;;  %v262_v18 = vunpack.c.h.bf16 %v260_v7  ;;  %v183_v27 = vld [vmem:[#allocation8 + $0x10] sm:$0xf]  ;;  %s226_s1 = sshll.u32 %s433_s3, 4  ;;  %s227_s1 = int_to_ptr.vmem [resolvable:$true] %s226_s1 }
  0x4e   :  { %290 = vmatprep.subr.bf16.mxu1 %v431_v0  ;;  %275 = vmatprep.subr.bf16.mxu0 %v431_v0  ;;  %v188_v34 = vunpack.c.l.bf16 %v183_v27  ;;  %s395_s13 = scalar_lea.vmem %s227_s1, 320  ;;  %p400_p5 = scmp.lt.s32.totalorder %s227_s1, %s227_s1 }
  0x4f   :  { %p396_p4 = scmp.ne.s32.totalorder %s227_s1, %s395_s13  ;;  %p401_p6 = scmp.lt.s32.totalorder %s395_s13, %s395_s13 }
  0x51   :  { %292 = vmatpush3.bf16.msra.mxu1 %v303_v2  ;;  %276 = vmatpush3.bf16.msra.mxu0 %v303_v2  ;;  %p402_p7 = por %p401_p6, %p400_p5 }
  0x53   :  { %p403_p8 = pnand %p402_p7, %p396_p4 }
  0x54   :  { %282 = vmatmul.mubr.msk.bf16.vlgmr.msra.gmra.mrb[0].mxu1 %vm113_vm1, %v304_v3  ;;  %278 = vmatmul.mubr.msk.bf16.vlgmr.msra.gmra.mrb[0].mxu0 %vm113_vm1, %v305_v4 }
  0x55   :  { %285 = vmatprep.mubr.msk.bf16.mxu1 %vm432_vm0, %v431_v0 }
  0x5c   :  { %286 = vmatmul.mubr.msk.bf16.gmra.mrb[4].mxu1 %vm113_vm1, %v306_v5 }
 0x127   :  { %v165_v11 = vpop.f32.mrb[0].mxu1  ;;  %v157_v12 = vpop.f32.mrb[0].mxu0 }
 0x128   :  { %v166_v13 = vadd.f32 %v240_v8, %v165_v11  ;;  %v283_v14 = vpop.f32.mrb[1].mxu1  ;;  %v158_v16 = vadd.f32 %v240_v8, %v157_v12  ;;  %v279_v17 = vpop.f32.mrb[1].mxu0 }
 0x129   :  { %v168_v19 = vpop.f32.mrb[2].mxu1  ;;  %v160_v20 = vpop.f32.mrb[2].mxu0 }
 0x12a   :  { %v191_v21 = vadd.f32 %v265_v9, %v166_v13  ;;  %v169_v22 = vadd.f32 %v240_v8, %v168_v19  ;;  %v189_v23 = vadd.f32 %v261_v10, %v158_v16  ;;  %v284_v24 = vpop.f32.mrb[3].mxu1  ;;  %v161_v25 = vadd.f32 %v240_v8, %v160_v20  ;;  %v280_v26 = vpop.f32.mrb[3].mxu0 }
 0x12c   :  { %v256_v28 = vpack.c.bf16 %v191_v21, %v191_v21  ;;  %v192_v29 = vadd.f32 %v266_v15, %v169_v22  ;;  %v254_v30 = vpack.c.bf16 %v189_v23, %v189_v23  ;;  %v190_v31 = vadd.f32 %v262_v18, %v161_v25 }
 0x12e   :  { %218 = vst.msk [vmem:[#allocation10 + $0x8] sm:$0xf] %vm215_vm2, %v256_v28  ;;  %v257_v32 = vpack.c.bf16 %v192_v29, %v192_v29  ;;  %216 = vst.msk [vmem:[#allocation10] sm:$0xf] %vm215_vm2, %v254_v30  ;;  %v255_v33 = vpack.c.bf16 %v190_v31, %v190_v31 }
 0x12f   :  { %v173_v35 = vpop.f32.mrb[4].mxu1 }
 0x130   :  { %219 = vst.msk [vmem:[#allocation10 + $0xc] sm:$0xf] %vm215_vm2, %v257_v32  ;;  %217 = vst.msk [vmem:[#allocation10 + $0x4] sm:$0xf] %vm215_vm2, %v255_v33  ;;  %v174_v36 = vadd.f32 %v240_v8, %v173_v35  ;;  %v287_v37 = vpop.f32.mrb[5].mxu1 }
 0x131   :  { %v176_v38 = vpop.f32.mrb[6].mxu1 }
 0x132   :  { %v193_v39 = vadd.f32 %v188_v34, %v174_v36  ;;  %v288_v40 = vpop.f32.mrb[7].mxu1 }
 0x134   :  { %v258_v41 = vpack.c.bf16 %v193_v39, %v193_v39 }
 0x136   :  { %220 = vst.msk [vmem:[#allocation10 + $0x10] sm:$0xf] %vm215_vm2, %v258_v41 }
 0x137   :  { %406 = shalt.err (!%p403_p8)
}
 0x138   :  { %s407_s16 = scalar_lea.hbm %s557_s4, 320 }
 0x139   :  { %p408_p9 = scmp.ne.s32.totalorder %s557_s4, %s407_s16  ;;  %p411_p10 = scmp.lt.u32.totalorder %s407_s16, %s557_s4 }
 0x13b   :  { %p413_p11 = pnand %p411_p10, %p408_p9 }
 0x13d   :  { %416 = shalt.err (!%p413_p11)
}
 0x13e   :  { %232 = dma.vmem_to_hbm [thread:$0]  %s227_s1, 320, %s557_s4, [#allocation4], %s427_s27, %s427_s27, %s428_s28  }
 0x13f   :  { %423 = dma.done.wait [#allocation4], 320  }
 0x140   :  { %424 = vsyncadd [#allocation4], 4294966976 }
 0x141   :  { %236 = vsyncpa [#allocation3], 1 }
 0x142   :  { %237 = vsyncpa [#allocation6], 1 }
 0x143   :  { %238 = vsyncpa [#allocation9], 1 }
 0x144   :  { %239 = vsyncpa [#allocation4], 1 }

// kernel: clip_forward.51
= control target key start
LH: loop header
LB: loop body
LE: loop exit
PB: predicated region body
PF: predicated region fallthrough
CT: control target
= control target key end

     0   :  { %8 = vsyncpa [#allocation3], 0  ;;  %s498_s0 = inlined_call_operand.hbm [shape: bf16[40,32], index: 0, kind: input, shape index: {}]   ;;  %s499_s1 = inlined_call_operand.hbm [shape: bf16[32,128], index: 1, kind: input, shape index: {}]   ;;  %s500_s2 = inlined_call_operand.hbm [shape: f32[1,128], index: 2, kind: input, shape index: {}]   ;;  %s501_s3 = inlined_call_operand.hbm [shape: bf16[40,128], index: 3, kind: output, shape index: {}]  }
   0x1   :  { %9 = vsyncpa [#allocation6], 0 }
   0x2   :  { %10 = vsyncpa [#allocation4], 0  ;;  %s403_s12 = smov [#allocation5]   ;;  %s404_s14 = smov [#allocation2]  }
   0x3   :  { %s28_s13 = sshll.u32 %s403_s12, 4  ;;  %s16_s15 = sshll.u32 %s404_s14, 4  ;;  %s29_s13 = int_to_ptr.vmem [resolvable:$true] %s28_s13  ;;  %s431_s15 = int_to_ptr.vmem [resolvable:$true] %s16_s15 }
   0x4   :  { %s309_s18 = scalar_lea.hbm %s499_s1, 256 }
   0x5   :  { %p310_p0 = scmp.ne.s32.totalorder %s499_s1, %s309_s18  ;;  %p313_p1 = scmp.lt.u32.totalorder %s309_s18, %s499_s1 }
   0x7   :  { %p315_p2 = pnand %p313_p1, %p310_p0 }
   0x9   :  { %318 = shalt.err (!%p315_p2)
}
   0xa   :  { %s319_s23 = scalar_lea.vmem %s29_s13, 256  ;;  %p324_p4 = scmp.lt.s32.totalorder %s29_s13, %s29_s13 }
   0xb   :  { %p320_p3 = scmp.ne.s32.totalorder %s29_s13, %s319_s23  ;;  %p325_p5 = scmp.lt.s32.totalorder %s319_s23, %s319_s23 }
   0xd   :  { %p326_p6 = por %p325_p5, %p324_p4 }
   0xf   :  { %p327_p7 = pnand %p326_p6, %p320_p3 }
  0x11   :  { %330 = shalt.err (!%p327_p7)
}
  0x12   :  { %s405_s24 = smov 64   ;;  %s406_s25 = smov 4  }
  0x13   :  { %34 = dma.hbm_to_vmem [thread:$0]  %s499_s1, 256, %s29_s13, [#allocation6], %s405_s24, %s405_s24, %s406_s25  }
  0x14   :  { %s331_s30 = scalar_lea.hbm %s498_s0, 320 }
  0x15   :  { %p332_p8 = scmp.ne.s32.totalorder %s498_s0, %s331_s30  ;;  %p335_p9 = scmp.lt.u32.totalorder %s331_s30, %s498_s0 }
  0x17   :  { %p337_p10 = pnand %p335_p9, %p332_p8 }
  0x19   :  { %340 = shalt.err (!%p337_p10)
}
  0x1a   :  { %s341_s8 = scalar_lea.vmem %s431_s15, 320  ;;  %p346_p12 = scmp.lt.s32.totalorder %s431_s15, %s431_s15 }
  0x1b   :  { %p342_p11 = scmp.ne.s32.totalorder %s431_s15, %s341_s8  ;;  %p347_p13 = scmp.lt.s32.totalorder %s341_s8, %s341_s8 }
  0x1d   :  { %p348_p0 = por %p347_p13, %p346_p12 }
  0x1f   :  { %p349_p1 = pnand %p348_p0, %p342_p11 }
  0x21   :  { %352 = shalt.err (!%p349_p1)
}
  0x22   :  { %22 = dma.hbm_to_vmem [thread:$0]  %s498_s0, 320, %s431_s15, [#allocation3], %s405_s24, %s405_s24, %s406_s25  }
  0x23   :  { %s407_s10 = smov [#allocation7]   ;;  %s353_s14 = scalar_lea.hbm %s500_s2, 16 }
  0x24   :  { %s41_s11 = sshll.u32 %s407_s10, 4  ;;  %p354_p2 = scmp.ne.s32.totalorder %s500_s2, %s353_s14  ;;  %s42_s11 = int_to_ptr.vmem [resolvable:$true] %s41_s11 }
  0x25   :  { %p357_p3 = scmp.lt.u32.totalorder %s353_s14, %s500_s2 }
  0x27   :  { %p359_p4 = pnand %p357_p3, %p354_p2 }
  0x29   :  { %362 = shalt.err (!%p359_p4)
}
  0x2a   :  { %s363_s20 = scalar_lea.vmem %s42_s11, 16  ;;  %s367_s0 = scalar_lea.vmem %s42_s11, 32 }
  0x2b   :  { %p364_p5 = scmp.ne.s32.totalorder %s42_s11, %s363_s20  ;;  %p368_p6 = scmp.lt.s32.totalorder %s42_s11, %s42_s11 }
  0x2c   :  { %p369_p7 = scmp.lt.s32.totalorder %s367_s0, %s363_s20 }
  0x2e   :  { %p370_p8 = por %p369_p7, %p368_p6 }
  0x30   :  { %p371_p9 = pnand %p370_p8, %p364_p5 }
  0x32   :  { %374 = shalt.err (!%p371_p9)
}
  0x33   :  { %44 = dma.hbm_to_vmem [thread:$0]  %s500_s2, 16, %s42_s11, [#allocation6]  }
  0x34   :  { %397 = dma.done.wait [#allocation3], 320  }
  0x35   :  { %398 = vsyncadd [#allocation3], 4294966976 }
  0x36   :  { %399 = dma.done.wait [#allocation6], 272  }
  0x37   :  { %400 = vsyncadd [#allocation6], 4294967024  ;;  %v408_v0 = vmov 0.0   ;;  %vm409_vm0 = vmmov 0   ;;  %v294_v1 = vld [vmem:[#allocation5] sm:$0xff]   ;;  %v295_v2 = vld [vmem:[#allocation5 + $0x8] sm:$0xff]  }
  0x38   :  { %266 = vmatprep.subr.bf16.mxu0 %v408_v0  ;;  %282 = vmatprep.subr.bf16.mxu1 %v408_v0  ;;  %v296_v3 = vld [vmem:[#allocation2] sm:$0xff]   ;;  %v297_v4 = vld [vmem:[#allocation2 + $0x8] sm:$0xff]   ;;  %vm96_vm1 = vcmask 261120   ;;  %v298_v5 = vld [vmem:[#allocation2 + $0x10] ss:$0 sps:$4 sm:$0xff]   ;;  %s410_s2 = smov [#allocation8]  }
  0x39   :  { %270 = vmatprep.mubr.msk.bf16.mxu0 %vm409_vm0, %v408_v0  ;;  %274 = vmatprep.mubr.msk.bf16.mxu1 %vm409_vm0, %v408_v0  ;;  %v231_v6 = vld [vmem:[#allocation7] ss:$0 sm:$0xff]  ;;  %s218_s22 = sshll.u32 %s410_s2, 4  ;;  %s219_s22 = int_to_ptr.vmem [resolvable:$true] %s218_s22 }
  0x3a   :  { %267 = vmatpush3.bf16.msra.mxu0 %v294_v1  ;;  %284 = vmatpush3.bf16.msra.mxu1 %v294_v1  ;;  %s375_s23 = scalar_lea.vmem %s219_s22, 320  ;;  %p380_p11 = scmp.lt.s32.totalorder %s219_s22, %s219_s22 }
  0x3b   :  { %268 = vmatprep.subr.bf16.mxu0 %v408_v0  ;;  %283 = vmatprep.subr.bf16.mxu1 %v408_v0  ;;  %p376_p10 = scmp.ne.s32.totalorder %s219_s22, %s375_s23  ;;  %p381_p12 = scmp.lt.s32.totalorder %s375_s23, %s375_s23 }
  0x3d   :  { %p382_p13 = por %p381_p12, %p380_p11 }
  0x3e   :  { %269 = vmatpush3.bf16.msra.mxu0 %v295_v2  ;;  %285 = vmatpush3.bf16.msra.mxu1 %v295_v2 }
  0x3f   :  { %p383_p0 = pnand %p382_p13, %p376_p10 }
  0x41   :  { %271 = vmatmul.mubr.msk.bf16.vlgmr.msra.gmra.mrb[0].mxu0 %vm96_vm1, %v296_v3  ;;  %275 = vmatmul.mubr.msk.bf16.vlgmr.msra.gmra.mrb[0].mxu1 %vm96_vm1, %v297_v4 }
  0x42   :  { %278 = vmatprep.mubr.msk.bf16.mxu1 %vm409_vm0, %v408_v0 }
  0x49   :  { %279 = vmatmul.mubr.msk.bf16.gmra.mrb[4].mxu1 %vm96_vm1, %v298_v5 }
 0x114   :  { %v140_v7 = vpop.f32.mrb[0].mxu0  ;;  %v148_v8 = vpop.f32.mrb[0].mxu1 }
 0x115   :  { %v141_v9 = vadd.f32 %v231_v6, %v140_v7  ;;  %v149_v10 = vadd.f32 %v231_v6, %v148_v8  ;;  %v272_v11 = vpop.f32.mrb[1].mxu0  ;;  %v276_v12 = vpop.f32.mrb[1].mxu1 }
 0x116   :  { %v143_v13 = vpop.f32.mrb[2].mxu0  ;;  %v151_v14 = vpop.f32.mrb[2].mxu1 }
 0x117   :  { %v167_v15 = vmul.f32 0.70710677, %v141_v9  ;;  %v169_v16 = vmul.f32 0.70710677, %v149_v10  ;;  %v144_v17 = vadd.f32 %v231_v6, %v143_v13  ;;  %v152_v18 = vadd.f32 %v231_v6, %v151_v14  ;;  %v277_v19 = vpop.f32.mrb[3].mxu1  ;;  %v273_v20 = vpop.f32.mrb[3].mxu0 }
 0x118   :  { %v162_v35 = vmul.f32 0.5, %v141_v9  ;;  %v164_v38 = vmul.f32 0.5, %v149_v10 }
 0x119   :  { %299 = verf.f32 %v167_v15  ;;  %v168_v21 = vmul.f32 0.70710677, %v144_v17  ;;  %v170_v22 = vmul.f32 0.70710677, %v152_v18  ;;  %v163_v36 = vmul.f32 0.5, %v144_v17 }
 0x11a   :  { %301 = verf.f32 %v169_v16  ;;  %v165_v39 = vmul.f32 0.5, %v152_v18 }
 0x11b   :  { %303 = verf.f32 %v168_v21 }
 0x11c   :  { %v156_v23 = vpop.f32.mrb[4].mxu1  ;;  %305 = verf.f32 %v170_v22 }
 0x11d   :  { %v157_v24 = vadd.f32 %v231_v6, %v156_v23  ;;  %v280_v25 = vpop.f32.mrb[5].mxu1 }
 0x11e   :  { %v159_v26 = vpop.f32.mrb[6].mxu1 }
 0x11f   :  { %v171_v27 = vmul.f32 0.70710677, %v157_v24  ;;  %v281_v28 = vpop.f32.mrb[7].mxu1  ;;  %v166_v48 = vmul.f32 0.5, %v157_v24 }
 0x121   :  { %307 = verf.f32 %v171_v27 }
 0x123   :  { %v300_v29 = vpop.eup %299 }
 0x124   :  { %v302_v30 = vpop.eup %301  ;;  %v177_v31 = vadd.f32 1.0, %v300_v29 }
 0x125   :  { %v304_v32 = vpop.eup %303  ;;  %v179_v33 = vadd.f32 1.0, %v302_v30 }
 0x126   :  { %v306_v34 = vpop.eup %305  ;;  %v178_v37 = vadd.f32 1.0, %v304_v32  ;;  %v182_v41 = vmul.f32 %v177_v31, %v162_v35 }
 0x127   :  { %v180_v40 = vadd.f32 1.0, %v306_v34  ;;  %v184_v43 = vmul.f32 %v179_v33, %v164_v38 }
 0x128   :  { %v183_v42 = vmul.f32 %v178_v37, %v163_v36 }
 0x129   :  { %v185_v44 = vmul.f32 %v180_v40, %v165_v39 }
 0x12a   :  { %v253_v46 = vpack.c.bf16 %v183_v42, %v182_v41 }
 0x12b   :  { %v308_v45 = vpop.eup %307  ;;  %v258_v47 = vpack.c.bf16 %v185_v44, %v184_v43 }
 0x12c   :  { %v181_v49 = vadd.f32 1.0, %v308_v45  ;;  %254 = vst [vmem:[#allocation8] sm:$0xff] %v253_v46  }
 0x12d   :  { %260 = vst [vmem:[#allocation8 + $0x8] sm:$0xff] %v258_v47  }
 0x12e   :  { %v186_v50 = vmul.f32 %v181_v49, %v166_v48 }
 0x130   :  { %v249_v51 = vpack.c.bf16 %v186_v50, %v186_v50 }
 0x132   :  { %212 = vst [vmem:[#allocation8 + $0x10] sm:$0xf] %v249_v51 }
 0x133   :  { %386 = shalt.err (!%p383_p0)
}
 0x134   :  { %s387_s28 = scalar_lea.hbm %s501_s3, 320 }
 0x135   :  { %p388_p1 = scmp.ne.s32.totalorder %s501_s3, %s387_s28  ;;  %p391_p2 = scmp.lt.u32.totalorder %s387_s28, %s501_s3 }
 0x137   :  { %p393_p3 = pnand %p391_p2, %p388_p1 }
 0x139   :  { %396 = shalt.err (!%p393_p3)
}
 0x13a   :  { %224 = dma.vmem_to_hbm [thread:$0]  %s219_s22, 320, %s501_s3, [#allocation4], %s405_s24, %s405_s24, %s406_s25  }
 0x13b   :  { %401 = dma.done.wait [#allocation4], 320  }
 0x13c   :  { %402 = vsyncadd [#allocation4], 4294966976 }
 0x13d   :  { %228 = vsyncpa [#allocation3], 1 }
 0x13e   :  { %229 = vsyncpa [#allocation6], 1 }
 0x13f   :  { %230 = vsyncpa [#allocation4], 1 }

// kernel: clip_forward.52
= control target key start
LH: loop header
LB: loop body
LE: loop exit
PB: predicated region body
PF: predicated region fallthrough
CT: control target
= control target key end

     0   :  { %9 = vsyncpa [#allocation3], 0  ;;  %s633_s0 = inlined_call_operand.hbm [shape: bf16[40,128], index: 0, kind: input, shape index: {}]   ;;  %s634_s1 = inlined_call_operand.hbm [shape: bf16[128,32], index: 1, kind: input, shape index: {}]   ;;  %s635_s2 = inlined_call_operand.hbm [shape: f32[1,32], index: 2, kind: input, shape index: {}]   ;;  %s636_s3 = inlined_call_operand.hbm [shape: bf16[40,32], index: 3, kind: input, shape index: {}]   ;;  %s637_s4 = inlined_call_operand.hbm [shape: bf16[40,32], index: 4, kind: output, shape index: {}]  }
   0x1   :  { %10 = vsyncpa [#allocation6], 0 }
   0x2   :  { %11 = vsyncpa [#allocation9], 0 }
   0x3   :  { %12 = vsyncpa [#allocation4], 0  ;;  %s505_s15 = smov [#allocation5]   ;;  %s506_s17 = smov [#allocation2]  }
   0x4   :  { %s30_s16 = sshll.u32 %s505_s15, 4  ;;  %s18_s18 = sshll.u32 %s506_s17, 4  ;;  %s31_s16 = int_to_ptr.vmem [resolvable:$true] %s30_s16  ;;  %s539_s18 = int_to_ptr.vmem [resolvable:$true] %s18_s18 }
   0x5   :  { %s387_s21 = scalar_lea.hbm %s634_s1, 1024 }
   0x6   :  { %p388_p0 = scmp.ne.s32.totalorder %s634_s1, %s387_s21  ;;  %p391_p1 = scmp.lt.u32.totalorder %s387_s21, %s634_s1 }
   0x8   :  { %p393_p2 = pnand %p391_p1, %p388_p0 }
   0xa   :  { %396 = shalt.err (!%p393_p2)
}
   0xb   :  { %s397_s26 = scalar_lea.vmem %s31_s16, 1024  ;;  %p402_p4 = scmp.lt.s32.totalorder %s31_s16, %s31_s16 }
   0xc   :  { %p398_p3 = scmp.ne.s32.totalorder %s31_s16, %s397_s26  ;;  %p403_p5 = scmp.lt.s32.totalorder %s397_s26, %s397_s26 }
   0xe   :  { %p404_p6 = por %p403_p5, %p402_p4 }
  0x10   :  { %p405_p7 = pnand %p404_p6, %p398_p3 }
  0x12   :  { %408 = shalt.err (!%p405_p7)
}
  0x13   :  { %s507_s27 = smov 64   ;;  %s508_s28 = smov 4  }
  0x14   :  { %36 = dma.hbm_to_vmem [thread:$0]  %s634_s1, 1024, %s31_s16, [#allocation6], %s507_s27, %s507_s27, %s508_s28  }
  0x15   :  { %s409_s7 = scalar_lea.hbm %s633_s0, 320 }
  0x16   :  { %p410_p8 = scmp.ne.s32.totalorder %s633_s0, %s409_s7  ;;  %p413_p9 = scmp.lt.u32.totalorder %s409_s7, %s633_s0 }
  0x18   :  { %p415_p10 = pnand %p413_p9, %p410_p8 }
  0x1a   :  { %418 = shalt.err (!%p415_p10)
}
  0x1b   :  { %s419_s12 = scalar_lea.vmem %s539_s18, 320  ;;  %p424_p12 = scmp.lt.s32.totalorder %s539_s18, %s539_s18 }
  0x1c   :  { %p420_p11 = scmp.ne.s32.totalorder %s539_s18, %s419_s12  ;;  %p425_p13 = scmp.lt.s32.totalorder %s419_s12, %s419_s12 }
  0x1e   :  { %p426_p0 = por %p425_p13, %p424_p12 }
  0x20   :  { %p427_p1 = pnand %p426_p0, %p420_p11 }
  0x22   :  { %430 = shalt.err (!%p427_p1)
}
  0x23   :  { %24 = dma.hbm_to_vmem [thread:$0]  %s633_s0, 320, %s539_s18, [#allocation3], %s507_s27, %s507_s27, %s508_s28  }
  0x24   :  { %s509_s14 = smov [#allocation7]   ;;  %s510_s16 = smov [#allocation8]  }
  0x25   :  { %s43_s15 = sshll.u32 %s509_s14, 4  ;;  %s52_s17 = sshll.u32 %s510_s16, 4  ;;  %s44_s15 = int_to_ptr.vmem [resolvable:$true] %s43_s15  ;;  %s576_s17 = int_to_ptr.vmem [resolvable:$true] %s52_s17 }
  0x26   :  { %s431_s21 = scalar_lea.hbm %s635_s2, 16 }
  0x27   :  { %p432_p2 = scmp.ne.s32.totalorder %s635_s2, %s431_s21  ;;  %p435_p3 = scmp.lt.u32.totalorder %s431_s21, %s635_s2 }
  0x29   :  { %p437_p4 = pnand %p435_p3, %p432_p2 }
  0x2b   :  { %440 = shalt.err (!%p437_p4)
}
  0x2c   :  { %s441_s0 = scalar_lea.vmem %s44_s15, 16  ;;  %s445_s18 = scalar_lea.vmem %s44_s15, 32 }
  0x2d   :  { %p442_p5 = scmp.ne.s32.totalorder %s44_s15, %s441_s0  ;;  %p446_p6 = scmp.lt.s32.totalorder %s44_s15, %s44_s15 }
  0x2e   :  { %p447_p7 = scmp.lt.s32.totalorder %s445_s18, %s441_s0 }
  0x30   :  { %p448_p8 = por %p447_p7, %p446_p6 }
  0x32   :  { %p449_p9 = pnand %p448_p8, %p442_p5 }
  0x34   :  { %452 = shalt.err (!%p449_p9)
}
  0x35   :  { %46 = dma.hbm_to_vmem [thread:$0]  %s635_s2, 16, %s44_s15, [#allocation6]  }
  0x36   :  { %s453_s6 = scalar_lea.hbm %s636_s3, 320 }
  0x37   :  { %p454_p10 = scmp.ne.s32.totalorder %s636_s3, %s453_s6  ;;  %p457_p11 = scmp.lt.u32.totalorder %s453_s6, %s636_s3 }
  0x39   :  { %p459_p12 = pnand %p457_p11, %p454_p10 }
  0x3b   :  { %462 = shalt.err (!%p459_p12)
}
  0x3c   :  { %s463_s11 = scalar_lea.vmem %s576_s17, 320  ;;  %p468_p0 = scmp.lt.s32.totalorder %s576_s17, %s576_s17 }
  0x3d   :  { %p464_p13 = scmp.ne.s32.totalorder %s576_s17, %s463_s11  ;;  %p469_p1 = scmp.lt.s32.totalorder %s463_s11, %s463_s11 }
  0x3f   :  { %p470_p2 = por %p469_p1, %p468_p0 }
  0x41   :  { %p471_p3 = pnand %p470_p2, %p464_p13 }
  0x43   :  { %474 = shalt.err (!%p471_p3)
}
  0x44   :  { %58 = dma.hbm_to_vmem [thread:$0]  %s636_s3, 320, %s576_s17, [#allocation9], %s507_s27, %s507_s27, %s508_s28  }
  0x45   :  { %497 = dma.done.wait [#allocation3], 320  }
  0x46   :  { %498 = vsyncadd [#allocation3], 4294966976 }
  0x47   :  { %499 = dma.done.wait [#allocation6], 1040  }
  0x48   :  { %500 = vsyncadd [#allocation6], 4294966256 }
  0x49   :  { %501 = dma.done.wait [#allocation9], 320  }
  0x4a   :  { %502 = vsyncadd [#allocation9], 4294966976  ;;  %v511_v0 = vmov 0.0   ;;  %vm512_vm0 = vmmov 0   ;;  %v376_v1 = vld [vmem:[#allocation5] sm:$0xff]   ;;  %v377_v2 = vld [vmem:[#allocation5 + $0x8] sm:$0xff]  }
  0x4b   :  { %351 = vmatprep.subr.bf16.mxu1 %v511_v0  ;;  %323 = vmatprep.subr.bf16.mxu0 %v511_v0  ;;  %v378_v3 = vld [vmem:[#allocation5 + $0x10] sm:$0xff]   ;;  %v379_v4 = vld [vmem:[#allocation5 + $0x18] sm:$0xff]   ;;  %v380_v5 = vld [vmem:[#allocation5 + $0x20] sm:$0xff]   ;;  %vm256_vm1 = vcmask 257024   ;;  %s513_s3 = smov [#allocation10]  }
  0x4c   :  { %343 = vmatprep.mubr.msk.bf16.mxu1 %vm512_vm0, %v511_v0  ;;  %339 = vmatprep.mubr.msk.bf16.mxu0 %vm512_vm0, %v511_v0  ;;  %v381_v6 = vld [vmem:[#allocation5 + $0x28] sm:$0xff]   ;;  %v382_v7 = vld [vmem:[#allocation5 + $0x30] sm:$0xff]   ;;  %v383_v8 = vld [vmem:[#allocation5 + $0x38] sm:$0xff]   ;;  %s267_s1 = sshll.u32 %s513_s3, 4  ;;  %s268_s1 = int_to_ptr.vmem [resolvable:$true] %s267_s1 }
  0x4d   :  { %359 = vmatpush3.bf16.msra.mxu1 %v376_v1  ;;  %324 = vmatpush3.bf16.msra.mxu0 %v376_v1  ;;  %v384_v9 = vld [vmem:[#allocation2 + $0x8] sm:$0xff]   ;;  %v385_v10 = vld [vmem:[#allocation2] sm:$0xff]   ;;  %v386_v11 = vld [vmem:[#allocation2 + $0x10] ss:$0 sps:$4 sm:$0xff]   ;;  %s475_s13 = scalar_lea.vmem %s268_s1, 320  ;;  %p480_p5 = scmp.lt.s32.totalorder %s268_s1, %s268_s1 }
  0x4e   :  { %352 = vmatprep.subr.bf16.mxu1 %v511_v0  ;;  %325 = vmatprep.subr.bf16.mxu0 %v511_v0  ;;  %v311_v12 = vld [vmem:[#allocation8 + $0x8] sm:$0xff]   ;;  %v304_v13 = vld [vmem:[#allocation8] sm:$0xff]   ;;  %v281_v14 = vld [vmem:[#allocation7] ss:$0 sm:$0xff]  ;;  %p476_p4 = scmp.ne.s32.totalorder %s268_s1, %s475_s13  ;;  %p481_p6 = scmp.lt.s32.totalorder %s475_s13, %s475_s13 }
  0x4f   :  { %v309_v15 = vunpack.c.l.bf16 %v311_v12  ;;  %v305_v16 = vunpack.c.l.bf16 %v304_v13  ;;  %v310_v21 = vunpack.c.h.bf16 %v311_v12  ;;  %v306_v24 = vunpack.c.h.bf16 %v304_v13  ;;  %v224_v33 = vld [vmem:[#allocation8 + $0x10] sm:$0xf] }
  0x50   :  { %v229_v40 = vunpack.c.l.bf16 %v224_v33  ;;  %p482_p7 = por %p481_p6, %p480_p5 }
  0x51   :  { %360 = vmatpush3.bf16.msra.mxu1 %v377_v2  ;;  %326 = vmatpush3.bf16.msra.mxu0 %v377_v2 }
  0x52   :  { %353 = vmatprep.subr.bf16.mxu1 %v511_v0  ;;  %327 = vmatprep.subr.bf16.mxu0 %v511_v0  ;;  %p483_p8 = pnand %p482_p7, %p476_p4 }
  0x55   :  { %361 = vmatpush3.bf16.msra.mxu1 %v378_v3  ;;  %328 = vmatpush3.bf16.msra.mxu0 %v378_v3 }
  0x56   :  { %354 = vmatprep.subr.bf16.mxu1 %v511_v0  ;;  %329 = vmatprep.subr.bf16.mxu0 %v511_v0 }
  0x59   :  { %362 = vmatpush3.bf16.msra.mxu1 %v379_v4  ;;  %330 = vmatpush3.bf16.msra.mxu0 %v379_v4 }
  0x5a   :  { %355 = vmatprep.subr.bf16.mxu1 %v511_v0  ;;  %331 = vmatprep.subr.bf16.mxu0 %v511_v0 }
  0x5d   :  { %363 = vmatpush3.bf16.msra.mxu1 %v380_v5  ;;  %332 = vmatpush3.bf16.msra.mxu0 %v380_v5 }
  0x5e   :  { %356 = vmatprep.subr.bf16.mxu1 %v511_v0  ;;  %333 = vmatprep.subr.bf16.mxu0 %v511_v0 }
  0x61   :  { %364 = vmatpush3.bf16.msra.mxu1 %v381_v6  ;;  %334 = vmatpush3.bf16.msra.mxu0 %v381_v6 }
  0x62   :  { %357 = vmatprep.subr.bf16.mxu1 %v511_v0  ;;  %335 = vmatprep.subr.bf16.mxu0 %v511_v0 }
  0x65   :  { %365 = vmatpush3.bf16.msra.mxu1 %v382_v7  ;;  %336 = vmatpush3.bf16.msra.mxu0 %v382_v7 }
  0x66   :  { %358 = vmatprep.subr.bf16.mxu1 %v511_v0  ;;  %337 = vmatprep.subr.bf16.mxu0 %v511_v0 }
  0x69   :  { %366 = vmatpush3.bf16.msra.mxu1 %v383_v8  ;;  %338 = vmatpush3.bf16.msra.mxu0 %v383_v8 }
  0x6c   :  { %344 = vmatmul.mubr.bf16.vlgmr.msra.gmra.mrb[0].mxu1 %v384_v9  ;;  %340 = vmatmul.mubr.bf16.vlgmr.msra.gmra.mrb[0].mxu0 %v385_v10 }
  0x6d   :  { %347 = vmatprep.mubr.msk.bf16.mxu1 %vm512_vm0, %v511_v0 }
  0x74   :  { %348 = vmatmul.mubr.bf16.gmra.mrb[4].mxu1 %v386_v11 }
 0x13f   :  { %v206_v17 = vpop.f32.mrb[0].mxu1  ;;  %v198_v18 = vpop.f32.mrb[0].mxu0 }
 0x140   :  { %v207_v19 = vadd.f32 %v281_v14, %v206_v17  ;;  %v345_v20 = vpop.f32.mrb[1].mxu1  ;;  %v199_v22 = vadd.f32 %v281_v14, %v198_v18  ;;  %v341_v23 = vpop.f32.mrb[1].mxu0 }
 0x141   :  { %v209_v25 = vpop.f32.mrb[2].mxu1  ;;  %v201_v26 = vpop.f32.mrb[2].mxu0 }
 0x142   :  { %v232_v27 = vadd.f32 %v309_v15, %v207_v19  ;;  %v210_v28 = vadd.f32 %v281_v14, %v209_v25  ;;  %v230_v29 = vadd.f32 %v305_v16, %v199_v22  ;;  %v346_v30 = vpop.f32.mrb[3].mxu1  ;;  %v202_v31 = vadd.f32 %v281_v14, %v201_v26  ;;  %v342_v32 = vpop.f32.mrb[3].mxu0 }
 0x144   :  { %v300_v34 = vpack.c.bf16 %v232_v27, %v232_v27  ;;  %v233_v35 = vadd.f32 %v310_v21, %v210_v28  ;;  %v298_v36 = vpack.c.bf16 %v230_v29, %v230_v29  ;;  %v231_v37 = vadd.f32 %v306_v24, %v202_v31 }
 0x146   :  { %259 = vst.msk [vmem:[#allocation10 + $0x8] sm:$0xf] %vm256_vm1, %v300_v34  ;;  %v301_v38 = vpack.c.bf16 %v233_v35, %v233_v35  ;;  %257 = vst.msk [vmem:[#allocation10] sm:$0xf] %vm256_vm1, %v298_v36  ;;  %v299_v39 = vpack.c.bf16 %v231_v37, %v231_v37 }
 0x147   :  { %v214_v41 = vpop.f32.mrb[4].mxu1 }
 0x148   :  { %260 = vst.msk [vmem:[#allocation10 + $0xc] sm:$0xf] %vm256_vm1, %v301_v38  ;;  %258 = vst.msk [vmem:[#allocation10 + $0x4] sm:$0xf] %vm256_vm1, %v299_v39  ;;  %v215_v42 = vadd.f32 %v281_v14, %v214_v41  ;;  %v349_v43 = vpop.f32.mrb[5].mxu1 }
 0x149   :  { %v217_v44 = vpop.f32.mrb[6].mxu1 }
 0x14a   :  { %v234_v45 = vadd.f32 %v229_v40, %v215_v42  ;;  %v350_v46 = vpop.f32.mrb[7].mxu1 }
 0x14c   :  { %v302_v47 = vpack.c.bf16 %v234_v45, %v234_v45 }
 0x14e   :  { %261 = vst.msk [vmem:[#allocation10 + $0x10] sm:$0xf] %vm256_vm1, %v302_v47 }
 0x14f   :  { %486 = shalt.err (!%p483_p8)
}
 0x150   :  { %s487_s16 = scalar_lea.hbm %s637_s4, 320 }
 0x151   :  { %p488_p9 = scmp.ne.s32.totalorder %s637_s4, %s487_s16  ;;  %p491_p10 = scmp.lt.u32.totalorder %s487_s16, %s637_s4 }
 0x153   :  { %p493_p11 = pnand %p491_p10, %p488_p9 }
 0x155   :  { %496 = shalt.err (!%p493_p11)
}
 0x156   :  { %273 = dma.vmem_to_hbm [thread:$0]  %s268_s1, 320, %s637_s4, [#allocation4], %s507_s27, %s507_s27, %s508_s28  }
 0x157   :  { %503 = dma.done.wait [#allocation4], 320  }
 0x158   :  { %504 = vsyncadd [#allocation4], 4294966976 }
 0x159   :  { %277 = vsyncpa [#allocation3], 1 }
 0x15a   :  { %278 = vsyncpa [#allocation6], 1 }
 0x15b   :  { %279 = vsyncpa [#allocation9], 1 }
 0x15c   :  { %280 = vsyncpa [#allocation4], 1 }

// kernel: clip_forward.48
= control target key start
LH: loop header
LB: loop body
LE: loop exit
PB: predicated region body
PF: predicated region fallthrough
CT: control target
= control target key end

     0   :  { %s2890_s0 = inlined_call_operand.hbm [shape: bf16[80,8,8], index: 0, kind: input, shape index: {}]   ;;  %s2891_s1 = inlined_call_operand.hbm [shape: bf16[80,8,8], index: 1, kind: input, shape index: {}]   ;;  %s2892_s2 = inlined_call_operand.hbm [shape: bf16[80,8,8], index: 2, kind: input, shape index: {}]   ;;  %s2893_s3 = inlined_call_operand.hbm [shape: f32[1,1,8], index: 3, kind: input, shape index: {}]   ;;  %s2894_s4 = inlined_call_operand.hbm [shape: bf16[80,8,8], index: 4, kind: output, shape index: {}]  }
   0x1   :  { %2909 = sst [smem:[#allocation22_spill]] %s2890_s0 }
   0x2   :  { %2910 = sst [smem:[#allocation23_spill]] %s2891_s1 }
   0x3   :  { %9 = vsyncpa [#allocation6], 0 }
   0x4   :  { %11 = vsyncpa [#allocation6 + $0x1], 0 }
   0x5   :  { %12 = vsyncpa [#allocation9], 0 }
   0x6   :  { %14 = vsyncpa [#allocation9 + $0x1], 0 }
   0x7   :  { %15 = vsyncpa [#allocation12], 0 }
   0x8   :  { %16 = vsyncpa [#allocation7], 0 }
   0x9   :  { %18 = vsyncpa [#allocation7 + $0x1], 0  ;;  %s2237_s15 = smov 0   ;;  %s2239_s16 = smov 0  }
   0xa   :  { %s2241_s17 = smov 0   ;;  %s2243_s18 = smov 0  }
   0xb   :  { %s2245_s19 = smov 0   ;;  %s2247_s20 = smov 0  }
   0xc LB: > { %2911 = sst [smem:[#allocation18_spill]] %s2185_s17  ;;  %s43_s21 = sadd.s32 1, %s2193_s19  ;;  %s2197_s20 = sphi %s2247_s20, %s24_s20   ;;  %s2193_s19 = sphi %s2245_s19, %s2938_s19   ;;  %s2189_s18 = sphi %s2243_s18, %s2937_s18   ;;  %s2185_s17 = sphi %s2241_s17, %s2936_s17   ;;  %s2181_s16 = sphi %s2239_s16, %s2940_s16   ;;  %s2177_s15 = sphi %s2237_s15, %s2939_s15  }
   0xd   : > { %2912 = sst [smem:[#allocation19_spill]] %s2193_s19  ;;  %s52_s22 = sadd.s32 1, %s2185_s17 }
   0xe   : > { %p45_p0 = scmp.ge.s32.totalorder %s43_s21, 10  ;;  %p2895_p1 = scmp.ne.s32.totalorder %s2185_s17, %s2181_s16 }
   0xf   : > { %p60_p2 = scmp.eq.s32.totalorder %s2197_s20, 0  ;;  %p1879_p4 = scmp.lt.s32.totalorder %s2197_s20, 10 }
  0x10   : > { %s2942_s21 = smov (%p45_p0, %s43_s21), 0  ;;  %s2900_s24 = sand.u32 1, %s2185_s17  }
  0x11   : > { %2913 = sst [smem:[#allocation20_spill]] %s2942_s21  ;;  %p61_p3 = por %p60_p2, %p2895_p1 }
  0x12   : > { %s47_s23 = ssub.s32 %s2193_s19, %s2942_s21  ;;  %s2283_s25 = sshll.u32 %s2900_s24, 5 }
  0x13   : > { %p50_p5 = scmp.eq.s32.totalorder %s47_s23, 0  ;;  %s2286_s26 = sshll.u32 %s2193_s19, 9 }
  0x14   : > { %p2288_p6 = pnand %p1879_p4, %p61_p3  ;;  %s234_s29 = sand.u32 1, %s2197_s20  }
  0x15   : > { %s2293_s28 = scalar_select %p50_p5, %s2185_s17, %s52_s22  }
  0x16   : > { %s2916_s1 = sld [smem:[#allocation23_spill]]  ;;  %s238_s7 = scalar_lea.vmem [#allocation8], %s2283_s25 }
  0x17   : > { %2915 = sst [smem:[#allocation21_spill]] %s2293_s28  ;;  %s246_s8 = sshll.u32 %s238_s7, 4  ;;  %s2303_s8 = int_to_ptr.vmem [resolvable:$true] %s246_s8 }
  0x18   : > { %s2305_s9 = scalar_lea.sflag [#allocation9], %s234_s29  ;;  %p2311_p8 = pneg %p2288_p6 }
  0x1c   : > { %s2300_s6 = scalar_lea.hbm %s2916_s1, %s2286_s26  ;;  %s1994_s14 = scalar_lea.hbm %s2916_s1, 5120 }
  0x1d   : > { %s1989_s10 = scalar_lea.hbm %s2300_s6, 512  ;;  %p1995_p11 = scmp.lt.u32.totalorder %s2300_s6, %s2916_s1 }
  0x1e   : > { %p1990_p7 = scmp.ne.s32.totalorder %s2300_s6, %s1989_s10  ;;  %p1996_p12 = scmp.lt.u32.totalorder %s1994_s14, %s1989_s10 }
  0x1f   : > { %p1998_p0 = scmp.lt.u32.totalorder %s1989_s10, %s2300_s6 }
  0x20   : > { %p1992_p9 = pnand %p2311_p8, %p1990_p7  ;;  %p1997_p13 = por %p1996_p12, %p1995_p11 }
  0x22   : > { %p1993_p10 = pneg %p1992_p9  ;;  %p1999_p2 = por %p1998_p0, %p1997_p13 }
  0x24   : > { %p2000_p3 = pnand %p1999_p2, %p1993_p10 }
  0x26   : > { %2003 = shalt.err (!%p2000_p3)
}
  0x27   : > { %s2004_s29 = scalar_lea.vmem %s2303_s8, 512  ;;  %s2199_s30 = smov [#allocation8]  }
  0x28   : > { %p2005_p4 = scmp.ne.s32.totalorder %s2303_s8, %s2004_s29  ;;  %s2009_s5 = sshll.u32 %s2199_s30, 4  ;;  %s2010_s5 = int_to_ptr.vmem [resolvable:$false] %s2009_s5 }
  0x29   : > { %s2011_s7 = scalar_lea.vmem %s2010_s5, 1024  ;;  %p2012_p9 = scmp.lt.s32.totalorder %s2303_s8, %s2010_s5 }
  0x2a   : > { %p2007_p5 = pnand %p2005_p4, %p2311_p8  ;;  %p2013_p1 = scmp.lt.s32.totalorder %s2011_s7, %s2004_s29 }
  0x2c   : > { %p2008_p7 = pneg %p2007_p5  ;;  %p2014_p11 = por %p2013_p1, %p2012_p9 }
  0x2e   : > { %p2015_p12 = pnand %p2014_p11, %p2008_p7 }
  0x30   : > { %2018 = shalt.err (!%p2015_p12)
}
  0x31   : > { %s2896_s10 = smov 64   ;;  %s2898_s12 = smov 4  }
  0x32   : > { %1870 = dma.hbm_to_vmem [thread:$0]  (!%p2288_p6), %s2300_s6, 512, %s2303_s8, %s2305_s9, %s2896_s10, %s2896_s10, %s2898_s12  }
  0x33   : > { %s2339_s13 = sadd.s32 4294967295, %s2197_s20   ;;  %s1675_s14 = sadd.s32 4294967294, %s2197_s20  }
  0x34   : > { %p65_p1 = scmp.ne.s32.totalorder %s2181_s16, %s2177_s15  ;;  %p2903_p10 = scmp.eq.s32.totalorder %s2339_s13, 0 }
  0x35   : > { %p173_p13 = scmp.eq.s32.totalorder %s2339_s13, 9  ;;  %p179_p0 = scmp.eq.s32.totalorder %s1675_s14, 9 }
  0x36   : > { %p1676_p2 = scmp.ge.s32.totalorder %s2197_s20, 1  ;;  %p2349_p3 = por %p2903_p10, %p65_p1 }
  0x37   : > { %p2919_p4 = scmp.ne.s32.totalorder %s2185_s17, %s2181_s16  ;;  %p2360_p7 = por %p179_p0, %p65_p1 }
  0x38   : > { %s2918_s22 = scalar_select %p2349_p3, 1, 0 }
  0x39   : > { %p2356_p5 = por %p173_p13, %p2919_p4  ;;  %p186_p9 = scmp.lt.s32.totalorder %s2197_s20, 11 }
  0x3a   : > { %s2921_s8 = scalar_select %p2360_p7, 1, 0 }
  0x3b   : > { %s2920_s6 = scalar_select %p2356_p5, 1, 0 }
  0x3c   : > { %p2365_p11 = pnand %p1676_p2, %p186_p9  ;;  %s2202_s29 = smov [#allocation11]  }
  0x3d   : > { %s201_s30 = sshll.u32 %s2202_s29, 4  ;;  %s2923_s0 = sld [smem:[#allocation22_spill]]  ;;  %s2369_s30 = int_to_ptr.vmem [resolvable:$true] %s201_s30 }
  0x3e   : > { %s2922_s23 = scalar_select %p2365_p11, 1, 0 }
  0x3f   : > { %p1860_p12 = pneg %p2365_p11  ;;  %s216_s10 = scalar_lea.vmem [#allocation5], %s2283_s25 }
  0x40   : > { %s224_s12 = sshll.u32 %s216_s10, 4  ;;  %s2925_s29 = sand.u32 1, %s2185_s17   ;;  %s2386_s12 = int_to_ptr.vmem [resolvable:$true] %s224_s12 }
  0x41   : > { %p2382_p1 = pnand %p1860_p12, %p2903_p10  ;;  %s2390_s1 = scalar_lea.sflag [#allocation6], %s2925_s29 }
  0x43   : > { %s2377_s14 = scalar_lea.hbm %s2923_s0, %s2286_s26  ;;  %s2024_s19 = scalar_lea.hbm %s2923_s0, 5120 }
  0x44   : > { %s2924_s24 = scalar_select %p2382_p1, 1, 0 }
  0x45   : > { %s2019_s21 = scalar_lea.hbm %s2377_s14, 512  ;;  %p2025_p4 = scmp.lt.u32.totalorder %s2377_s14, %s2923_s0 }
  0x46   : > { %p2020_p13 = scmp.ne.s32.totalorder %s2377_s14, %s2019_s21  ;;  %p2026_p9 = scmp.lt.u32.totalorder %s2024_s19, %s2019_s21 }
  0x47   : > { %p2028_p10 = scmp.lt.u32.totalorder %s2019_s21, %s2377_s14 }
  0x48   : > { %p2022_p0 = pnand %p2020_p13, %p2311_p8  ;;  %p2027_p12 = por %p2026_p9, %p2025_p4 }
  0x4a   : > { %p2023_p2 = pneg %p2022_p0  ;;  %p2029_p7 = por %p2028_p10, %p2027_p12 }
  0x4c   : > { %p2030_p5 = pnand %p2029_p7, %p2023_p2 }
  0x4e   : > { %2033 = shalt.err (!%p2030_p5)
}
  0x4f   : > { %s2034_s29 = scalar_lea.vmem %s2386_s12, 512  ;;  %s2203_s5 = smov [#allocation5]  }
  0x50   : > { %p2035_p13 = scmp.ne.s32.totalorder %s2386_s12, %s2034_s29  ;;  %s2039_s7 = sshll.u32 %s2203_s5, 4  ;;  %s2040_s7 = int_to_ptr.vmem [resolvable:$false] %s2039_s7 }
  0x51   : > { %s2041_s28 = scalar_lea.vmem %s2040_s7, 1024  ;;  %p2042_p11 = scmp.lt.s32.totalorder %s2386_s12, %s2040_s7 }
  0x52   : > { %p2037_p0 = pnand %p2035_p13, %p2311_p8  ;;  %p2043_p1 = scmp.lt.s32.totalorder %s2041_s28, %s2034_s29 }
  0x54   : > { %p2038_p3 = pneg %p2037_p0  ;;  %p2044_p4 = por %p2043_p1, %p2042_p11 }
  0x56   : > { %p2045_p9 = pnand %p2044_p4, %p2038_p3 }
  0x58   : > { %2048 = shalt.err (!%p2045_p9)
}
  0x59   : > { %s2926_s19 = smov 4   ;;  %s2927_s21 = smov 64  }
  0x5a   : > { %1867 = dma.hbm_to_vmem [thread:$0]  (!%p2288_p6), %s2377_s14, 512, %s2386_s12, %s2390_s1, %s2927_s21, %s2927_s21, %s2926_s19  }
  0x5b   : > { %s2049_s5 = scalar_lea.hbm %s2893_s3, 16  ;;  %p2928_p3 = scmp.ne.s32.totalorder %s2924_s24, 0 }
  0x5c   : > { %p2050_p10 = scmp.ne.s32.totalorder %s2893_s3, %s2049_s5  ;;  %p2056_p1 = scmp.lt.u32.totalorder %s2049_s5, %s2893_s3 }
  0x5d   : > { %p2051_p5 = pneg %p2928_p3 }
  0x5f   : > { %p2052_p7 = pnand %p2051_p5, %p2050_p10 }
  0x61   : > { %p2053_p11 = pneg %p2052_p7 }
  0x63   : > { %p2058_p2 = pnand %p2056_p1, %p2053_p11 }
  0x65   : > { %2061 = shalt.err (!%p2058_p2)
}
  0x66   : > { %s2062_s0 = scalar_lea.vmem %s2369_s30, 16  ;;  %s2069_s1 = scalar_lea.vmem %s2369_s30, 32 }
  0x67   : > { %p2063_p12 = scmp.ne.s32.totalorder %s2369_s30, %s2062_s0  ;;  %p2070_p4 = scmp.lt.s32.totalorder %s2369_s30, %s2369_s30 }
  0x68   : > { %p2071_p9 = scmp.lt.s32.totalorder %s2069_s1, %s2062_s0 }
  0x69   : > { %p2065_p13 = pnand %p2063_p12, %p2051_p5 }
  0x6a   : > { %p2072_p10 = por %p2071_p9, %p2070_p4 }
  0x6b   : > { %p2066_p0 = pneg %p2065_p13 }
  0x6d   : > { %p2073_p7 = pnand %p2072_p10, %p2066_p0 }
  0x6f   : > { %2076 = shalt.err (!%p2073_p7)
}
  0x70   : > { %1863 = dma.hbm_to_vmem [thread:$0]  (!%p2928_p3), %s2893_s3, 16, %s2369_s30, [#allocation12]  }
  0x71   : > { %s2443_s5 = scalar_lea.hbm %s2892_s2, %s2286_s26  ;;  %s260_s7 = scalar_lea.vmem [#allocation10], %s2283_s25 }
  0x72   : > { %s268_s29 = sshll.u32 %s260_s7, 4  ;;  %s2077_s24 = scalar_lea.hbm %s2443_s5, 512  ;;  %s2446_s29 = int_to_ptr.vmem [resolvable:$true] %s268_s29 }
  0x73   : > { %p2078_p5 = scmp.ne.s32.totalorder %s2443_s5, %s2077_s24  ;;  %s2082_s0 = scalar_lea.hbm %s2892_s2, 5120 }
  0x74   : > { %p2083_p3 = scmp.lt.u32.totalorder %s2443_s5, %s2892_s2  ;;  %p2084_p2 = scmp.lt.u32.totalorder %s2082_s0, %s2077_s24 }
  0x75   : > { %p2080_p11 = pnand %p2078_p5, %p2311_p8  ;;  %p2086_p13 = scmp.lt.u32.totalorder %s2077_s24, %s2443_s5 }
  0x76   : > { %p2085_p12 = por %p2084_p2, %p2083_p3 }
  0x77   : > { %p2081_p1 = pneg %p2080_p11 }
  0x78   : > { %p2087_p0 = por %p2086_p13, %p2085_p12 }
  0x7a   : > { %p2088_p4 = pnand %p2087_p0, %p2081_p1 }
  0x7c   : > { %2091 = shalt.err (!%p2088_p4)
}
  0x7d   : > { %s2092_s25 = scalar_lea.vmem %s2446_s29, 512  ;;  %s2204_s17 = smov [#allocation10]  }
  0x7e   : > { %p2093_p9 = scmp.ne.s32.totalorder %s2446_s29, %s2092_s25  ;;  %s2097_s12 = sshll.u32 %s2204_s17, 4  ;;  %s2098_s12 = int_to_ptr.vmem [resolvable:$false] %s2097_s12 }
  0x7f   : > { %s2099_s14 = scalar_lea.vmem %s2098_s12, 1024  ;;  %p2100_p5 = scmp.lt.s32.totalorder %s2446_s29, %s2098_s12 }
  0x80   : > { %p2095_p10 = pnand %p2093_p9, %p2311_p8  ;;  %p2101_p11 = scmp.lt.s32.totalorder %s2099_s14, %s2092_s25 }
  0x82   : > { %p2096_p7 = pneg %p2095_p10  ;;  %p2102_p3 = por %p2101_p11, %p2100_p5 }
  0x84   : > { %p2103_p2 = pnand %p2102_p3, %p2096_p7 }
  0x86   : > { %2106 = shalt.err (!%p2103_p2)
}
  0x87   : > { %1873 = dma.hbm_to_vmem [thread:$0]  (!%p2288_p6), %s2443_s5, 512, %s2446_s29, %s2305_s9, %s2927_s21, %s2927_s21, %s2926_s19  }
  0x88   : > { %p2929_p8 = scmp.ne.s32.totalorder %s2922_s23, 0 }
  0x89   : > { %s2476_s11 = sand.u32 (!%p2929_p8), 1, %s2181_s16   ;;  %p2930_p1 = scmp.ne.s32.totalorder (!%p2929_p8), %s2918_s22, 0 }
  0x8a   : > { %280 = sbr.rel (%p2929_p8) target bundleno = 1003 (0x3eb), region = 36  ;;  %s2479_s10 = sshll.u32 (!%p2929_p8), %s2476_s11, 5 }
  0x8b   : > { %s283_s27 = scalar_lea.sflag (!%p2929_p8), [#allocation6], %s2476_s11  ;;  %s2483_s7 = scalar_lea.vmem (!%p2929_p8), [#allocation5], %s2479_s10 }
  0x91   : > { %2160 = dma.done.wait (%p2930_p1), %s283_s27, 512  }
  0x92   : > { %2162 = vsyncadd (%p2930_p1), %s283_s27, 4294966784  ;;  %s291_s9 = sand.u32 1, %s2339_s13   ;;  %s2491_s19 = scalar_lea.vmem [#allocation8], %s2479_s10 }
  0x93   : > { %s292_s23 = scalar_lea.sflag [#allocation9], %s291_s9 }
  0x94   : > { %2164 = dma.done.wait (%p2930_p1), %s292_s23, 1024  }
  0x95   : > { %2166 = vsyncadd (%p2930_p1), %s292_s23, 4294966272  ;;  %s2498_s21 = scalar_lea.vmem [#allocation10], %s2479_s10  ;;  %p2931_p6 = scmp.eq.s32.totalorder %s2339_s13, 0 }
  0x97   : > { %2168 = dma.done.wait (%p2931_p6), [#allocation12], 16   ;;  %p2932_p12 = pmov %p2931_p6 }
  0x98   : > { %vm369_vm0 = vcmask 64512   ;;  %v2205_v0 = vmov 0.0   ;;  %vm2206_vm1 = vmmov 0   ;;  %v386_v1 = vld [vmem:[%s2491_s19] sm:$0xf]  ;;  %vm352_vm2 = vcmask 7168  }
  0x99   : > { %2170 = vsyncadd (%p2932_p12), [#allocation12], 4294967280  ;;  %1752 = vmatprep.subr.bf16.mxu0 %v2205_v0  ;;  %370 = vst.msk [vmem:[#allocation4] sm:$0xff] %vm369_vm0, %v2205_v0  ;;  %1758 = vmatprep.subr.bf16.mxu1 %v2205_v0  ;;  %v387_v2 = vld [vmem:[%s2491_s19 + $0x4] sm:$0xf]  ;;  %v406_v3 = vsel %vm369_vm0, %v386_v1, 0 }
  0x9a   : > { %371 = vst.msk [vmem:[#allocation4 + $0x8] sm:$0xff] %vm369_vm0, %v2205_v0  ;;  %372 = vst.msk [vmem:[#allocation4 + $0x10] sm:$0xff] %vm369_vm0, %v2205_v0  ;;  %1754 = vmatprep.mubr.msk.bf16.mxu0 %vm2206_vm1, %v2205_v0  ;;  %1760 = vmatprep.mubr.msk.bf16.mxu1 %vm2206_vm1, %v2205_v0  ;;  %v452_v4 = vsel %vm369_vm0, %v387_v2, 0  ;;  %v388_v5 = vld [vmem:[%s2491_s19 + $0x8] sm:$0xf]  ;;  %v2208_v63 = vmov 0  }
  0x9b   : > { %373 = vst.msk [vmem:[#allocation4 + $0x18] sm:$0xff] %vm369_vm0, %v2205_v0  ;;  %374 = vst.msk [vmem:[#allocation4 + $0x20] sm:$0xff] %vm369_vm0, %v2205_v0  ;;  %1753 = vmatpush3.bf16.xpose.msra.mxu0 %v406_v3  ;;  %1759 = vmatpush3.bf16.xpose.msra.mxu1 %v452_v4  ;;  %v389_v6 = vld [vmem:[%s2491_s19 + $0xc] sm:$0xf]  ;;  %v378_v7 = vld [vmem:[%s2483_s7] sm:$0xf] }
  0x9c   : > { %375 = vst.msk [vmem:[#allocation4 + $0x28] sm:$0xff] %vm369_vm0, %v2205_v0  ;;  %376 = vst.msk [vmem:[#allocation4 + $0x30] sm:$0xff] %vm369_vm0, %v2205_v0  ;;  %1764 = vmatprep.subr.bf16.mxu0 %v2205_v0  ;;  %1770 = vmatprep.subr.bf16.mxu1 %v2205_v0  ;;  %v379_v8 = vld [vmem:[%s2483_s7 + $0x4] sm:$0xf]  ;;  %v498_v9 = vsel %vm369_vm0, %v388_v5, 0  ;;  %v544_v10 = vsel %vm369_vm0, %v389_v6, 0 }
  0x9d   : > { %377 = vst.msk [vmem:[#allocation4 + $0x38] sm:$0xff] %vm369_vm0, %v2205_v0  ;;  %v390_v11 = vld [vmem:[%s2491_s19 + $0x10] sm:$0xf]  ;;  %v391_v12 = vld [vmem:[%s2491_s19 + $0x14] sm:$0xf]  ;;  %1939 = vset.pattern.permute.xlu0 %v2208_v63  ;;  %1940 = vset.pattern.permute.xlu1 %v2208_v63  ;;  %vm1030_vm3 = vcmask 1043456  }
  0x9e   : > { %v380_v13 = vld [vmem:[%s2483_s7 + $0x8] sm:$0xf]  ;;  %v381_v14 = vld [vmem:[%s2483_s7 + $0xc] sm:$0xf]  ;;  %v590_v15 = vsel %vm369_vm0, %v390_v11, 0  ;;  %v636_v16 = vsel %vm369_vm0, %v391_v12, 0 }
  0x9f   : > { %v392_v17 = vld [vmem:[%s2491_s19 + $0x18] sm:$0xf]  ;;  %v393_v18 = vld [vmem:[%s2491_s19 + $0x1c] sm:$0xf]  ;;  %v382_v19 = vld [vmem:[%s2483_s7 + $0x10] sm:$0xf] }
  0xa0   : > { %v383_v20 = vld [vmem:[%s2483_s7 + $0x14] sm:$0xf]  ;;  %v682_v21 = vsel %vm369_vm0, %v392_v17, 0  ;;  %v728_v22 = vsel %vm369_vm0, %v393_v18, 0  ;;  %v384_v23 = vld [vmem:[%s2483_s7 + $0x18] sm:$0xf] }
  0xa1   : > { %v385_v24 = vld [vmem:[%s2483_s7 + $0x1c] sm:$0xf]  ;;  %v2207_v25 = vmov -1e+30   ;;  %361 = vst.msk [vmem:[#allocation3] sm:$0xff] %vm352_vm2, %v2205_v0  ;;  %362 = vst.msk [vmem:[#allocation3 + $0x8] sm:$0xff] %vm352_vm2, %v2205_v0 }
  0xa2   : > { %1755 = vmatmul.mubr.msk.bf16.vlgmr.msra.gmra.mrb[0].mxu0 %vm369_vm0, %v378_v7  ;;  %1761 = vmatmul.mubr.msk.bf16.vlgmr.msra.gmra.mrb[0].mxu1 %vm369_vm0, %v379_v8  ;;  %353 = vst.msk [vmem:[#allocation2] sm:$0xff] %vm352_vm2, %v2207_v25  ;;  %354 = vst.msk [vmem:[#allocation2 + $0x8] sm:$0xff] %vm352_vm2, %v2207_v25  ;;  %v1694_v26 = vld [vmem:[#allocation11] ss:$0 sm:$0xff]  ;;  %vm1503_vm4 = vcmask 60416   ;;  %s2817_s13 = scalar_lea.vmem [#allocation13], %s2479_s10 }
  0xa3   : > { %1765 = vmatpush3.bf16.xpose.msra.mxu0 %v498_v9  ;;  %1771 = vmatpush3.bf16.xpose.msra.mxu1 %v544_v10  ;;  %355 = vst.msk [vmem:[#allocation2 + $0x10] sm:$0xff] %vm352_vm2, %v2207_v25  ;;  %356 = vst.msk [vmem:[#allocation2 + $0x18] sm:$0xff] %vm352_vm2, %v2207_v25  ;;  %s1719_s22 = sshll.u32 %s2189_s18, 9  ;;  %s1527_s5 = sshll.u32 %s2817_s13, 4  ;;  %s2840_s5 = int_to_ptr.vmem [resolvable:$true] %s1527_s5 }
  0xa4   : > { %1766 = vmatprep.mubr.msk.bf16.mxu0 %vm2206_vm1, %v2205_v0  ;;  %1776 = vmatprep.subr.bf16.mxu0 %v2205_v0  ;;  %357 = vst.msk [vmem:[#allocation2 + $0x20] sm:$0xff] %vm352_vm2, %v2207_v25  ;;  %358 = vst.msk [vmem:[#allocation2 + $0x28] sm:$0xff] %vm352_vm2, %v2207_v25  ;;  %s2838_s28 = scalar_lea.hbm %s2894_s4, %s1719_s22  ;;  %s1513_s18 = scalar_lea.sflag [#allocation7], %s2476_s11 }
  0xa5   : > { %1772 = vmatprep.mubr.msk.bf16.mxu1 %vm2206_vm1, %v2205_v0  ;;  %1782 = vmatprep.subr.bf16.mxu1 %v2205_v0  ;;  %359 = vst.msk [vmem:[#allocation2 + $0x30] sm:$0xff] %vm352_vm2, %v2207_v25  ;;  %360 = vst.msk [vmem:[#allocation2 + $0x38] sm:$0xff] %vm352_vm2, %v2207_v25  ;;  %s2107_s30 = scalar_lea.vmem %s2840_s5, 512  ;;  %p2933_p0 = scmp.ne.s32.totalorder %s2920_s6, 0 }
  0xa6   : > { %363 = vst.msk [vmem:[#allocation3 + $0x10] sm:$0xff] %vm352_vm2, %v2205_v0  ;;  %364 = vst.msk [vmem:[#allocation3 + $0x18] sm:$0xff] %vm352_vm2, %v2205_v0  ;;  %p2108_p13 = scmp.ne.s32.totalorder %s2840_s5, %s2107_s30  ;;  %s2209_s0 = smov [#allocation13]  }
  0xa7   : > { %365 = vst.msk [vmem:[#allocation3 + $0x20] sm:$0xff] %vm352_vm2, %v2205_v0  ;;  %366 = vst.msk [vmem:[#allocation3 + $0x28] sm:$0xff] %vm352_vm2, %v2205_v0  ;;  %s2111_s1 = sshll.u32 %s2209_s0, 4  ;;  %s2112_s1 = int_to_ptr.vmem [resolvable:$false] %s2111_s1 }
  0xa8   : > { %367 = vst.msk [vmem:[#allocation3 + $0x30] sm:$0xff] %vm352_vm2, %v2205_v0  ;;  %368 = vst.msk [vmem:[#allocation3 + $0x38] sm:$0xff] %vm352_vm2, %v2205_v0  ;;  %p2109_p4 = pnand %p2108_p13, %p2933_p0  ;;  %s2113_s26 = scalar_lea.vmem %s2112_s1, 1024 }
  0xa9   : > { %p2114_p10 = scmp.lt.s32.totalorder %s2840_s5, %s2112_s1  ;;  %p2115_p7 = scmp.lt.s32.totalorder %s2113_s26, %s2107_s30 }
  0xaa   : > { %1767 = vmatmul.mubr.msk.bf16.vlgmr.msra.gmra.mrb[4].mxu0 %vm369_vm0, %v380_v13  ;;  %1773 = vmatmul.mubr.msk.bf16.vlgmr.msra.gmra.mrb[4].mxu1 %vm369_vm0, %v381_v14  ;;  %v2638_v13 = vld [vmem:[#allocation2] sm:$0xff]  ;;  %p2110_p9 = pneg %p2109_p4 }
  0xab   : > { %1777 = vmatpush3.bf16.xpose.msra.mxu0 %v590_v15  ;;  %1783 = vmatpush3.bf16.xpose.msra.mxu1 %v636_v16  ;;  %v2643_v16 = vld [vmem:[#allocation2 + $0x8] sm:$0xff]  ;;  %p2116_p5 = por %p2115_p7, %p2114_p10 }
  0xac   : > { %1778 = vmatprep.mubr.msk.bf16.mxu0 %vm2206_vm1, %v2205_v0  ;;  %1788 = vmatprep.subr.bf16.mxu0 %v2205_v0 }
  0xad   : > { %1784 = vmatprep.mubr.msk.bf16.mxu1 %vm2206_vm1, %v2205_v0  ;;  %1794 = vmatprep.subr.bf16.mxu1 %v2205_v0  ;;  %p2117_p11 = pnand %p2116_p5, %p2110_p9 }
  0xb2   : > { %1779 = vmatmul.mubr.msk.bf16.vlgmr.msra.gmra.mrb[8].mxu0 %vm369_vm0, %v382_v19  ;;  %1785 = vmatmul.mubr.msk.bf16.vlgmr.msra.gmra.mrb[8].mxu1 %vm369_vm0, %v383_v20  ;;  %v2653_v20 = vld [vmem:[#allocation2 + $0x10] sm:$0xff] }
  0xb3   : > { %1789 = vmatpush3.bf16.xpose.msra.mxu0 %v682_v21  ;;  %1795 = vmatpush3.bf16.xpose.msra.mxu1 %v728_v22 }
  0xb4   : > { %1790 = vmatprep.mubr.msk.bf16.mxu0 %vm2206_vm1, %v2205_v0  ;;  %1796 = vmatprep.mubr.msk.bf16.mxu1 %vm2206_vm1, %v2205_v0 }
  0xb5   : > { %1800 = vmatprep.subr.bf16.mxu0 %v2205_v0  ;;  %1806 = vmatprep.subr.bf16.mxu1 %v2205_v0 }
  0xba   : > { %1791 = vmatmul.mubr.msk.bf16.vlgmr.msra.gmra.mrb[12].mxu0 %vm369_vm0, %v384_v23  ;;  %1797 = vmatmul.mubr.msk.bf16.vlgmr.msra.gmra.mrb[12].mxu1 %vm369_vm0, %v385_v24  ;;  %v2663_v24 = vld [vmem:[#allocation2 + $0x18] sm:$0xff] }
  0xbb   : > { %1802 = vmatprep.mubr.msk.bf16.mxu0 %vm2206_vm1, %v2205_v0  ;;  %1808 = vmatprep.mubr.msk.bf16.mxu1 %vm2206_vm1, %v2205_v0 }
 0x175   : > { %v442_v27 = vpop.f32.mrb[0].mxu0  ;;  %v488_v28 = vpop.f32.mrb[0].mxu1 }
 0x176   : > { %v2606_v29 = vadd.f32 %v1694_v26, %v442_v27  ;;  %v1756_v30 = vpop.f32.mrb[1].mxu0  ;;  %v2608_v31 = vadd.f32 %v1694_v26, %v488_v28  ;;  %v1762_v32 = vpop.f32.mrb[1].mxu1  ;;  %v2673_v28 = vld [vmem:[#allocation2 + $0x20] sm:$0xff] }
 0x177   : > { %v445_v33 = vpop.f32.mrb[2].mxu0  ;;  %v491_v34 = vpop.f32.mrb[2].mxu1  ;;  %v2675_v30 = vld [vmem:[#allocation2 + $0x28] sm:$0xff] }
 0x178   : > { %v1757_v35 = vpop.f32.mrb[3].mxu0  ;;  %v778_v36 = vsel %vm369_vm0, %v2606_v29, -inf  ;;  %v1763_v37 = vpop.f32.mrb[3].mxu1  ;;  %v781_v38 = vsel %vm369_vm0, %v2608_v31, -inf  ;;  %v1019_v33 = vld [vmem:[%s2498_s21] sm:$0xf] }
 0x179   : > { %779 = vmax.xlane.f32.xlu0 %v778_v36  ;;  %v1032_v36 = vsel %vm1030_vm3, %v1019_v33, 0 }
 0x17a   : > { %1801 = vmatpush3.bf16.msra.mxu0 %v1032_v36 }
 0x17b   : > { %1812 = vmatprep.subr.bf16.mxu0 %v2205_v0 }
 0x17d   : > { %782 = vmax.xlane.f32.xlu0 %v781_v38  ;;  %v534_v39 = vpop.f32.mrb[4].mxu0  ;;  %v580_v40 = vpop.f32.mrb[4].mxu1 }
 0x17e   : > { %v2614_v41 = vadd.f32 %v1694_v26, %v534_v39  ;;  %v1768_v42 = vpop.f32.mrb[5].mxu0  ;;  %v2616_v43 = vadd.f32 %v1694_v26, %v580_v40  ;;  %v1774_v44 = vpop.f32.mrb[5].mxu1 }
 0x17f   : > { %v537_v45 = vpop.f32.mrb[6].mxu0  ;;  %v583_v46 = vpop.f32.mrb[6].mxu1  ;;  %v1020_v42 = vld [vmem:[%s2498_s21 + $0x4] sm:$0xf] }
 0x180   : > { %v1769_v47 = vpop.f32.mrb[7].mxu0  ;;  %v784_v48 = vsel %vm369_vm0, %v2614_v41, -inf  ;;  %v1775_v49 = vpop.f32.mrb[7].mxu1  ;;  %v787_v50 = vsel %vm369_vm0, %v2616_v43, -inf  ;;  %v1078_v44 = vsel %vm1030_vm3, %v1020_v42, 0  ;;  %v2702_v45 = vld [vmem:[#allocation2 + $0x30] sm:$0xff] }
 0x181   : > { %785 = vmax.xlane.f32.xlu1 %v784_v48  ;;  %1807 = vmatpush3.bf16.msra.mxu1 %v1078_v44  ;;  %v2704_v46 = vld [vmem:[#allocation2 + $0x38] sm:$0xff] }
 0x182   : > { %1818 = vmatprep.subr.bf16.mxu1 %v2205_v0 }
 0x185   : > { %788 = vmax.xlane.f32.xlu1 %v787_v50  ;;  %v626_v51 = vpop.f32.mrb[8].mxu0  ;;  %v672_v52 = vpop.f32.mrb[8].mxu1 }
 0x186   : > { %v2622_v53 = vadd.f32 %v1694_v26, %v626_v51  ;;  %v1780_v54 = vpop.f32.mrb[9].mxu0  ;;  %v2624_v55 = vadd.f32 %v1694_v26, %v672_v52  ;;  %v1786_v56 = vpop.f32.mrb[9].mxu1 }
 0x187   : > { %v629_v57 = vpop.f32.mrb[10].mxu0  ;;  %v675_v58 = vpop.f32.mrb[10].mxu1 }
 0x188   : > { %v1781_v59 = vpop.f32.mrb[11].mxu0  ;;  %v790_v60 = vsel %vm369_vm0, %v2622_v53, -inf  ;;  %v1787_v61 = vpop.f32.mrb[11].mxu1  ;;  %v793_v62 = vsel %vm369_vm0, %v2624_v55, -inf }
 0x189   : > { %791 = vmax.xlane.f32.xlu0 %v790_v60  ;;  %794 = vmax.xlane.f32.xlu1 %v793_v62 }
 0x18d   : > { %v718_v1 = vpop.f32.mrb[12].mxu0  ;;  %v764_v2 = vpop.f32.mrb[12].mxu1 }
 0x18e   : > { %v2630_v3 = vadd.f32 %v1694_v26, %v718_v1  ;;  %v1792_v4 = vpop.f32.mrb[13].mxu0  ;;  %v2632_v5 = vadd.f32 %v1694_v26, %v764_v2  ;;  %v1798_v6 = vpop.f32.mrb[13].mxu1 }
 0x18f   : > { %v721_v7 = vpop.f32.mrb[14].mxu0  ;;  %v767_v8 = vpop.f32.mrb[14].mxu1  ;;  %v1021_v4 = vld [vmem:[%s2498_s21 + $0x8] sm:$0xf] }
 0x190   : > { %v1793_v9 = vpop.f32.mrb[15].mxu0  ;;  %v796_v10 = vsel %vm369_vm0, %v2630_v3, -inf  ;;  %v1799_v11 = vpop.f32.mrb[15].mxu1  ;;  %v799_v12 = vsel %vm369_vm0, %v2632_v5, -inf }
 0x191   : > { %797 = vmax.xlane.f32.xlu0 %v796_v10  ;;  %800 = vmax.xlane.f32.xlu1 %v799_v12 }
 0x206   : > { %v780_v14 = vpop.xlane.xlu0 %779 }
 0x207   : > { %v2641_v15 = vmax.f32 %v2638_v13, %v780_v14 }
 0x209   : > { %v810_v17 = vsub.f32 %v2638_v13, %v2641_v15  ;;  %1412 = vst.msk [vmem:[#allocation2] sm:$0xff] %vm352_vm2, %v2641_v15  ;;  %836 = vperm.xlu0 %1939, %v2641_v15  }
 0x20a   : > { %v783_v18 = vpop.xlane.xlu0 %782 }
 0x20b   : > { %v2651_v19 = vmax.f32 %v2643_v16, %v783_v18 }
 0x20d   : > { %v811_v21 = vsub.f32 %v2643_v16, %v2651_v19  ;;  %1413 = vst.msk [vmem:[#allocation2 + $0x8] sm:$0xff] %vm352_vm2, %v2651_v19  ;;  %841 = vperm.xlu1 %1940, %v2651_v19  }
 0x20e   : > { %v786_v22 = vpop.xlane.xlu1 %785 }
 0x20f   : > { %v2661_v23 = vmax.f32 %v2653_v20, %v786_v22 }
 0x211   : > { %v812_v25 = vsub.f32 %v2653_v20, %v2661_v23  ;;  %1414 = vst.msk [vmem:[#allocation2 + $0x10] sm:$0xff] %vm352_vm2, %v2661_v23  ;;  %846 = vperm.xlu1 %1940, %v2661_v23  }
 0x212   : > { %v789_v26 = vpop.xlane.xlu1 %788 }
 0x213   : > { %v2671_v27 = vmax.f32 %v2663_v24, %v789_v26  ;;  %v1023_v26 = vld [vmem:[%s2498_s21 + $0x10] sm:$0xf] }
 0x214   : > { %v1216_v44 = vsel %vm1030_vm3, %v1023_v26, 0 }
 0x215   : > { %v813_v32 = vsub.f32 %v2663_v24, %v2671_v27  ;;  %1415 = vst.msk [vmem:[#allocation2 + $0x18] sm:$0xff] %vm352_vm2, %v2671_v27  ;;  %851 = vperm.xlu1 %1940, %v2671_v27  }
 0x216   : > { %v792_v34 = vpop.xlane.xlu0 %791  ;;  %v795_v35 = vpop.xlane.xlu1 %794 }
 0x217   : > { %v2685_v37 = vmax.f32 %v2673_v28, %v792_v34  ;;  %v2688_v38 = vmax.f32 %v2675_v30, %v795_v35 }
 0x219   : > { %v814_v39 = vsub.f32 %v2673_v28, %v2685_v37  ;;  %1416 = vst.msk [vmem:[#allocation2 + $0x20] sm:$0xff] %vm352_vm2, %v2685_v37  ;;  %856 = vperm.xlu1 %1940, %v2685_v37   ;;  %v815_v40 = vsub.f32 %v2675_v30, %v2688_v38  ;;  %1417 = vst.msk [vmem:[#allocation2 + $0x28] sm:$0xff] %vm352_vm2, %v2688_v38  ;;  %v898_v30 = vld [vmem:[#allocation3] sm:$0xff] }
 0x21b   : > { %v826_v16 = vmul.f32 1.442695, %v814_v39  ;;  %v828_v13 = vmul.f32 1.442695, %v815_v40 }
 0x21d   : > { %861 = vperm.xlu1 %1940, %v2688_v38   ;;  %v899_v38 = vld [vmem:[#allocation3 + $0x8] sm:$0xff] }
 0x21e   : > { %v798_v47 = vpop.xlane.xlu0 %797  ;;  %v801_v48 = vpop.xlane.xlu1 %800 }
 0x21f   : > { %v2709_v49 = vmax.f32 %v2702_v45, %v798_v47  ;;  %v2712_v50 = vmax.f32 %v2704_v46, %v801_v48  ;;  %v1024_v47 = vld [vmem:[%s2498_s21 + $0x14] sm:$0xf] }
 0x221   : > { %v816_v51 = vsub.f32 %v2702_v45, %v2709_v49  ;;  %1418 = vst.msk [vmem:[#allocation2 + $0x30] sm:$0xff] %vm352_vm2, %v2709_v49  ;;  %866 = vperm.xlu1 %1940, %v2709_v49   ;;  %v817_v52 = vsub.f32 %v2704_v46, %v2712_v50  ;;  %1419 = vst.msk [vmem:[#allocation2 + $0x38] sm:$0xff] %vm352_vm2, %v2712_v50  ;;  %v900_v46 = vld [vmem:[#allocation3 + $0x10] sm:$0xff] }
 0x223   : > { %v830_v15 = vmul.f32 1.442695, %v816_v51 }
 0x225   : > { %871 = vperm.xlu1 %1940, %v2712_v50  }
 0x288   : > { %v837_v54 = vpop.permute.xlu0 %836 }
 0x289   : > { %v874_v56 = vsub.f32 %v2606_v29, %v837_v54 }
 0x28b   : > { %v882_v57 = vmul.f32 1.442695, %v874_v56 }
 0x28c   : > { %v842_v58 = vpop.permute.xlu1 %841 }
 0x28d   : > { %1941 = vpow2.f32 %v882_v57  ;;  %v875_v59 = vsub.f32 %v2608_v31, %v842_v58  ;;  %v1124_v31 = vsel %vm1030_vm3, %v1021_v4, 0 }
 0x28f   : > { %v884_v60 = vmul.f32 1.442695, %v875_v59  ;;  %v1262_v59 = vsel %vm1030_vm3, %v1024_v47, 0 }
 0x290   : > { %v847_v61 = vpop.permute.xlu1 %846 }
 0x291   : > { %1943 = vpow2.f32 %v884_v60  ;;  %v876_v62 = vsub.f32 %v2614_v41, %v847_v61  ;;  %v1022_v41 = vld [vmem:[%s2498_s21 + $0xc] sm:$0xf]  ;;  %v1025_v60 = vld [vmem:[%s2498_s21 + $0x18] sm:$0xf] }
 0x292   : > { %v1170_v22 = vsel %vm1030_vm3, %v1022_v41, 0 }
 0x293   : > { %v886_v63 = vmul.f32 1.442695, %v876_v62 }
 0x294   : > { %v852_v1 = vpop.permute.xlu1 %851 }
 0x295   : > { %1945 = vpow2.f32 %v886_v63  ;;  %v877_v2 = vsub.f32 %v2616_v43, %v852_v1 }
 0x297   : > { %v1942_v6 = vpop.eup %1941  ;;  %v888_v7 = vmul.f32 1.442695, %v877_v2  ;;  %v1308_v2 = vsel %vm1030_vm3, %v1025_v60, 0 }
 0x298   : > { %v857_v29 = vpop.permute.xlu1 %856  ;;  %v914_v8 = vsel %vm369_vm0, %v1942_v6, 0.0  ;;  %v1011_v9 = vpack.c.bf16 %v1942_v6, %v1942_v6 }
 0x299   : > { %1947 = vpow2.f32 %v888_v7  ;;  %v878_v10 = vsub.f32 %v2622_v53, %v857_v29  ;;  %915 = vadd.xlane.f32.xlu1 %v914_v8 }
 0x29a   : > { %1803 = vmatmul.mubr.msk.bf16.vlgmr.msra.gmra.mrb[16].mxu0 %vm369_vm0, %v1011_v9 }
 0x29b   : > { %v1944_v11 = vpop.eup %1943  ;;  %v890_v12 = vmul.f32 1.442695, %v878_v10  ;;  %1813 = vmatpush3.bf16.msra.mxu0 %v1124_v31  ;;  %1814 = vmatprep.mubr.msk.bf16.mxu0 %vm2206_vm1, %v2205_v0 }
 0x29c   : > { %v862_v43 = vpop.permute.xlu1 %861  ;;  %v917_v14 = vsel %vm369_vm0, %v1944_v11, 0.0  ;;  %v1012_v18 = vpack.c.bf16 %v1944_v11, %v1944_v11  ;;  %1824 = vmatprep.subr.bf16.mxu0 %v2205_v0 }
 0x29d   : > { %1949 = vpow2.f32 %v890_v12  ;;  %v879_v53 = vsub.f32 %v2624_v55, %v862_v43  ;;  %918 = vadd.xlane.f32.xlu0 %v917_v14  ;;  %v820_v12 = vmul.f32 1.442695, %v811_v21  ;;  %v822_v43 = vmul.f32 1.442695, %v812_v25 }
 0x29e   : > { %1809 = vmatmul.mubr.msk.bf16.vlgmr.msra.gmra.mrb[16].mxu1 %vm369_vm0, %v1012_v18  ;;  %v824_v14 = vmul.f32 1.442695, %v813_v32 }
 0x29f   : > { %v1946_v33 = vpop.eup %1945  ;;  %v892_v34 = vmul.f32 1.442695, %v879_v53  ;;  %1819 = vmatpush3.bf16.msra.mxu1 %v1170_v22  ;;  %1820 = vmatprep.mubr.msk.bf16.mxu1 %vm2206_vm1, %v2205_v0 }
 0x2a0   : > { %v867_v35 = vpop.permute.xlu1 %866  ;;  %v920_v36 = vsel %vm369_vm0, %v1946_v33, 0.0  ;;  %v1013_v42 = vpack.c.bf16 %v1946_v33, %v1946_v33  ;;  %1830 = vmatprep.subr.bf16.mxu1 %v2205_v0  ;;  %v902_v33 = vld [vmem:[#allocation3 + $0x20] sm:$0xff] }
 0x2a1   : > { %1951 = vpow2.f32 %v892_v34  ;;  %v880_v55 = vsub.f32 %v2630_v3, %v867_v35  ;;  %921 = vadd.xlane.f32.xlu0 %v920_v36 }
 0x2a2   : > { %1815 = vmatmul.mubr.msk.bf16.vlgmr.msra.gmra.mrb[20].mxu0 %vm369_vm0, %v1013_v42 }
 0x2a3   : > { %v1948_v48 = vpop.eup %1947  ;;  %v894_v54 = vmul.f32 1.442695, %v880_v55  ;;  %1825 = vmatpush3.bf16.msra.mxu0 %v1216_v44  ;;  %1826 = vmatprep.mubr.msk.bf16.mxu0 %vm2206_vm1, %v2205_v0  ;;  %v903_v44 = vld [vmem:[#allocation3 + $0x28] sm:$0xff] }
 0x2a4   : > { %v872_v56 = vpop.permute.xlu1 %871  ;;  %v923_v57 = vsel %vm369_vm0, %v1948_v48, 0.0  ;;  %v1014_v58 = vpack.c.bf16 %v1948_v48, %v1948_v48  ;;  %1836 = vmatprep.subr.bf16.mxu0 %v2205_v0 }
 0x2a5   : > { %1953 = vpow2.f32 %v894_v54  ;;  %v881_v3 = vsub.f32 %v2632_v5, %v872_v56  ;;  %924 = vadd.xlane.f32.xlu1 %v923_v57  ;;  %v1026_v5 = vld [vmem:[%s2498_s21 + $0x1c] sm:$0xf]  ;;  %v904_v56 = vld [vmem:[#allocation3 + $0x30] sm:$0xff] }
 0x2a6   : > { %1821 = vmatmul.mubr.msk.bf16.vlgmr.msra.gmra.mrb[20].mxu1 %vm369_vm0, %v1014_v58  ;;  %v1354_v29 = vsel %vm1030_vm3, %v1026_v5, 0 }
 0x2a7   : > { %v1950_v61 = vpop.eup %1949  ;;  %v896_v62 = vmul.f32 1.442695, %v881_v3  ;;  %1831 = vmatpush3.bf16.msra.mxu1 %v1262_v59  ;;  %1832 = vmatprep.mubr.msk.bf16.mxu1 %vm2206_vm1, %v2205_v0 }
 0x2a8   : > { %v926_v63 = vsel %vm369_vm0, %v1950_v61, 0.0  ;;  %v1015_v1 = vpack.c.bf16 %v1950_v61, %v1950_v61  ;;  %1842 = vmatprep.subr.bf16.mxu1 %v2205_v0  ;;  %v905_v61 = vld [vmem:[#allocation3 + $0x38] sm:$0xff] }
 0x2a9   : > { %1955 = vpow2.f32 %v896_v62  ;;  %927 = vadd.xlane.f32.xlu0 %v926_v63 }
 0x2aa   : > { %1827 = vmatmul.mubr.msk.bf16.vlgmr.msra.gmra.mrb[24].mxu0 %vm369_vm0, %v1015_v1  ;;  %1957 = vpow2.f32 %v820_v12  ;;  %v955_v12 = vld [vmem:[#allocation4] sm:$0xff] }
 0x2ab   : > { %v1952_v4 = vpop.eup %1951  ;;  %1837 = vmatpush3.bf16.msra.mxu0 %v1308_v2  ;;  %1838 = vmatprep.mubr.msk.bf16.mxu0 %vm2206_vm1, %v2205_v0 }
 0x2ac   : > { %v929_v6 = vsel %vm369_vm0, %v1952_v4, 0.0  ;;  %v1016_v7 = vpack.c.bf16 %v1952_v4, %v1952_v4 }
 0x2ad   : > { %930 = vadd.xlane.f32.xlu1 %v929_v6 }
 0x2ae   : > { %1833 = vmatmul.mubr.msk.bf16.vlgmr.msra.gmra.mrb[24].mxu1 %vm369_vm0, %v1016_v7 }
 0x2af   : > { %v1954_v8 = vpop.eup %1953  ;;  %1843 = vmatpush3.bf16.msra.mxu1 %v1354_v29  ;;  %1844 = vmatprep.mubr.msk.bf16.mxu1 %vm2206_vm1, %v2205_v0  ;;  %v818_v0 = vmul.f32 1.442695, %v810_v17  ;;  %v832_v17 = vmul.f32 1.442695, %v817_v52  ;;  %v901_v52 = vld [vmem:[#allocation3 + $0x18] sm:$0xff] }
 0x2b0   : > { %v932_v9 = vsel %vm369_vm0, %v1954_v8, 0.0  ;;  %v1017_v31 = vpack.c.bf16 %v1954_v8, %v1954_v8 }
 0x2b1   : > { %933 = vadd.xlane.f32.xlu0 %v932_v9  ;;  %1959 = vpow2.f32 %v818_v0 }
 0x2b2   : > { %1839 = vmatmul.mubr.msk.bf16.vlgmr.msra.gmra.mrb[28].mxu0 %vm369_vm0, %v1017_v31  ;;  %1961 = vpow2.f32 %v822_v43 }
 0x2b3   : > { %v1956_v10 = vpop.eup %1955  ;;  %1963 = vpow2.f32 %v824_v14 }
 0x2b4   : > { %v935_v41 = vsel %vm369_vm0, %v1956_v10, 0.0  ;;  %v1018_v11 = vpack.c.bf16 %v1956_v10, %v1956_v10  ;;  %1965 = vpow2.f32 %v826_v16  ;;  %v1958_v19 = vpop.eup %1957  ;;  %v956_v16 = vld [vmem:[#allocation4 + $0x8] sm:$0xff] }
 0x2b5   : > { %936 = vadd.xlane.f32.xlu1 %v935_v41  ;;  %1967 = vpow2.f32 %v828_v13  ;;  %v907_v40 = vmul.f32 %v1958_v19, %v899_v38  ;;  %v958_v38 = vld [vmem:[#allocation4 + $0x18] sm:$0xff] }
 0x2b6   : > { %1845 = vmatmul.mubr.msk.bf16.vlgmr.msra.gmra.mrb[28].mxu1 %vm369_vm0, %v1018_v11  ;;  %1969 = vpow2.f32 %v830_v15 }
 0x2b7   : > { %1971 = vpow2.f32 %v832_v17 }
 0x2bb   : > { %v1960_v20 = vpop.eup %1959 }
 0x2bc   : > { %v1962_v21 = vpop.eup %1961  ;;  %v906_v32 = vmul.f32 %v1960_v20, %v898_v30 }
 0x2bd   : > { %v1964_v23 = vpop.eup %1963  ;;  %v908_v50 = vmul.f32 %v1962_v21, %v900_v46 }
 0x2be   : > { %v1966_v24 = vpop.eup %1965  ;;  %v909_v53 = vmul.f32 %v1964_v23, %v901_v52  ;;  %v959_v52 = vld [vmem:[#allocation4 + $0x20] sm:$0xff] }
 0x2bf   : > { %v1968_v25 = vpop.eup %1967  ;;  %v910_v36 = vmul.f32 %v1966_v24, %v902_v33 }
 0x2c0   : > { %v1970_v27 = vpop.eup %1969  ;;  %v911_v48 = vmul.f32 %v1968_v25, %v903_v44 }
 0x2c1   : > { %v1972_v28 = vpop.eup %1971  ;;  %v912_v3 = vmul.f32 %v1970_v27, %v904_v56 }
 0x2c2   : > { %v913_v2 = vmul.f32 %v1972_v28, %v905_v61 }
 0x2c6   : > { %970 = vperm.xlu1 %1940, %v1958_v19  }
 0x2c7   : > { %965 = vperm.xlu0 %1939, %v1960_v20  }
 0x2ca   : > { %975 = vperm.xlu1 %1940, %v1962_v21  }
 0x2cb   : > { %980 = vperm.xlu0 %1939, %v1964_v23   ;;  %v957_v23 = vld [vmem:[#allocation4 + $0x10] sm:$0xff] }
 0x2ce   : > { %985 = vperm.xlu1 %1940, %v1966_v24  }
 0x2cf   : > { %990 = vperm.xlu0 %1939, %v1968_v25  }
 0x2d2   : > { %995 = vperm.xlu1 %1940, %v1970_v27  }
 0x2d3   : > { %1000 = vperm.xlu0 %1939, %v1972_v28  }
 0x326   : > { %v916_v37 = vpop.xlane.xlu1 %915 }
 0x327   : > { %v938_v39 = vadd.f32 %v916_v37, %v906_v32 }
 0x329   : > { %947 = vst.msk [vmem:[#allocation3] sm:$0xff] %vm352_vm2, %v938_v39 }
 0x32a   : > { %v919_v45 = vpop.xlane.xlu0 %918 }
 0x32b   : > { %v939_v49 = vadd.f32 %v919_v45, %v907_v40 }
 0x32d   : > { %948 = vst.msk [vmem:[#allocation3 + $0x8] sm:$0xff] %vm352_vm2, %v939_v49 }
 0x32e   : > { %v922_v51 = vpop.xlane.xlu0 %921 }
 0x32f   : > { %v940_v18 = vadd.f32 %v922_v51, %v908_v50 }
 0x330   : > { %v1431_v22 = vld [vmem:[#allocation3] sm:$0xff] }
 0x331   : > { %949 = vst.msk [vmem:[#allocation3 + $0x10] sm:$0xff] %vm352_vm2, %v940_v18  ;;  %1973 = vrcp.f32 %v1431_v22 }
 0x332   : > { %v925_v26 = vpop.xlane.xlu1 %924 }
 0x333   : > { %v941_v34 = vadd.f32 %v925_v26, %v909_v53 }
 0x334   : > { %v1432_v35 = vld [vmem:[#allocation3 + $0x8] sm:$0xff] }
 0x335   : > { %950 = vst.msk [vmem:[#allocation3 + $0x18] sm:$0xff] %vm352_vm2, %v941_v34  ;;  %1975 = vrcp.f32 %v1432_v35 }
 0x336   : > { %v928_v42 = vpop.xlane.xlu0 %927 }
 0x337   : > { %v942_v55 = vadd.f32 %v928_v42, %v910_v36  ;;  %v960_v36 = vld [vmem:[#allocation4 + $0x28] sm:$0xff] }
 0x338   : > { %v1433_v47 = vld [vmem:[#allocation3 + $0x10] sm:$0xff] }
 0x339   : > { %951 = vst.msk [vmem:[#allocation3 + $0x20] sm:$0xff] %vm352_vm2, %v942_v55  ;;  %1977 = vrcp.f32 %v1433_v47 }
 0x33a   : > { %v931_v54 = vpop.xlane.xlu1 %930 }
 0x33b   : > { %v1974_v57 = vpop.eup %1973  ;;  %v943_v58 = vadd.f32 %v931_v54, %v911_v48 }
 0x33c   : > { %1449 = vperm.xlu1 %1940, %v1974_v57   ;;  %v1434_v59 = vld [vmem:[#allocation3 + $0x18] sm:$0xff]  ;;  %v961_v57 = vld [vmem:[#allocation4 + $0x30] sm:$0xff] }
 0x33d   : > { %952 = vst.msk [vmem:[#allocation3 + $0x28] sm:$0xff] %vm352_vm2, %v943_v58  ;;  %1979 = vrcp.f32 %v1434_v59 }
 0x33e   : > { %v934_v60 = vpop.xlane.xlu0 %933 }
 0x33f   : > { %v1976_v62 = vpop.eup %1975  ;;  %v944_v63 = vadd.f32 %v934_v60, %v912_v3 }
 0x340   : > { %1454 = vperm.xlu0 %1939, %v1976_v62   ;;  %v1435_v1 = vld [vmem:[#allocation3 + $0x20] sm:$0xff] }
 0x341   : > { %953 = vst.msk [vmem:[#allocation3 + $0x30] sm:$0xff] %vm352_vm2, %v944_v63  ;;  %1981 = vrcp.f32 %v1435_v1  ;;  %v962_v1 = vld [vmem:[#allocation4 + $0x38] sm:$0xff] }
 0x342   : > { %v937_v5 = vpop.xlane.xlu1 %936 }
 0x343   : > { %v1978_v4 = vpop.eup %1977  ;;  %v945_v6 = vadd.f32 %v937_v5, %v913_v2 }
 0x344   : > { %1459 = vperm.xlu1 %1940, %v1978_v4   ;;  %v1436_v7 = vld [vmem:[#allocation3 + $0x28] sm:$0xff] }
 0x345   : > { %954 = vst.msk [vmem:[#allocation3 + $0x38] sm:$0xff] %vm352_vm2, %v945_v6  ;;  %1983 = vrcp.f32 %v1436_v7 }
 0x346   : > { %v966_v0 = vpop.permute.xlu0 %965  ;;  %v971_v43 = vpop.permute.xlu1 %970 }
 0x347   : > { %v1980_v29 = vpop.eup %1979  ;;  %v1003_v14 = vmul.f32 %v966_v0, %v955_v12  ;;  %v1004_v20 = vmul.f32 %v971_v43, %v956_v16 }
 0x348   : > { %1464 = vperm.xlu0 %1939, %v1980_v29   ;;  %v1437_v8 = vld [vmem:[#allocation3 + $0x30] sm:$0xff] }
 0x349   : > { %1985 = vrcp.f32 %v1437_v8 }
 0x34a   : > { %v976_v24 = vpop.permute.xlu1 %975  ;;  %v981_v39 = vpop.permute.xlu0 %980 }
 0x34b   : > { %v1982_v9 = vpop.eup %1981  ;;  %v1005_v32 = vmul.f32 %v976_v24, %v957_v23  ;;  %v1006_v50 = vmul.f32 %v981_v39, %v958_v38 }
 0x34c   : > { %1469 = vperm.xlu1 %1940, %v1982_v9   ;;  %v1438_v31 = vld [vmem:[#allocation3 + $0x38] sm:$0xff] }
 0x34d   : > { %1987 = vrcp.f32 %v1438_v31 }
 0x34e   : > { %v986_v18 = vpop.permute.xlu1 %985  ;;  %v991_v42 = vpop.permute.xlu0 %990 }
 0x34f   : > { %v1984_v10 = vpop.eup %1983  ;;  %v1007_v34 = vmul.f32 %v986_v18, %v959_v52  ;;  %v1008_v54 = vmul.f32 %v991_v42, %v960_v36 }
 0x350   : > { %1474 = vperm.xlu0 %1939, %v1984_v10  }
 0x352   : > { %v996_v58 = vpop.permute.xlu1 %995  ;;  %v1001_v2 = vpop.permute.xlu0 %1000 }
 0x353   : > { %v1986_v41 = vpop.eup %1985  ;;  %v1009_v62 = vmul.f32 %v996_v58, %v961_v57  ;;  %v1010_v29 = vmul.f32 %v1001_v2, %v962_v1 }
 0x354   : > { %1479 = vperm.xlu1 %1940, %v1986_v41  }
 0x357   : > { %v1988_v11 = vpop.eup %1987 }
 0x358   : > { %1484 = vperm.xlu0 %1939, %v1988_v11  }
 0x36d   : > { %v1068_v13 = vpop.f32.mrb[16].mxu0 }
 0x36e   : > { %v1396_v15 = vadd.f32 %v1068_v13, %v1003_v14  ;;  %v1804_v17 = vpop.f32.mrb[17].mxu0 }
 0x36f   : > { %v1071_v19 = vpop.f32.mrb[18].mxu0 }
 0x370   : > { %1404 = vst.msk [vmem:[#allocation4] sm:$0xff] %vm369_vm0, %v1396_v15  ;;  %v1805_v21 = vpop.f32.mrb[19].mxu0 }
 0x371   : > { %v1114_v25 = vpop.f32.mrb[16].mxu1 }
 0x372   : > { %v1397_v27 = vadd.f32 %v1114_v25, %v1004_v20  ;;  %v1810_v28 = vpop.f32.mrb[17].mxu1 }
 0x373   : > { %v1117_v30 = vpop.f32.mrb[18].mxu1 }
 0x374   : > { %1405 = vst.msk [vmem:[#allocation4 + $0x8] sm:$0xff] %vm369_vm0, %v1397_v27  ;;  %v1811_v37 = vpop.f32.mrb[19].mxu1 }
 0x375   : > { %v1160_v40 = vpop.f32.mrb[20].mxu0 }
 0x376   : > { %v1398_v45 = vadd.f32 %v1160_v40, %v1005_v32  ;;  %v1816_v46 = vpop.f32.mrb[21].mxu0 }
 0x377   : > { %v1163_v49 = vpop.f32.mrb[22].mxu0  ;;  %v1423_v12 = vld [vmem:[#allocation4] sm:$0xff] }
 0x378   : > { %1406 = vst.msk [vmem:[#allocation4 + $0x10] sm:$0xff] %vm369_vm0, %v1398_v45  ;;  %v1817_v51 = vpop.f32.mrb[23].mxu0 }
 0x379   : > { %v1206_v22 = vpop.f32.mrb[20].mxu1 }
 0x37a   : > { %v1399_v53 = vadd.f32 %v1206_v22, %v1006_v50  ;;  %v1822_v26 = vpop.f32.mrb[21].mxu1 }
 0x37b   : > { %v1209_v33 = vpop.f32.mrb[22].mxu1  ;;  %v1424_v16 = vld [vmem:[#allocation4 + $0x8] sm:$0xff] }
 0x37c   : > { %1407 = vst.msk [vmem:[#allocation4 + $0x18] sm:$0xff] %vm369_vm0, %v1399_v53  ;;  %v1823_v35 = vpop.f32.mrb[23].mxu1 }
 0x37d   : > { %v1252_v44 = vpop.f32.mrb[24].mxu0 }
 0x37e   : > { %v1400_v55 = vadd.f32 %v1252_v44, %v1007_v34  ;;  %v1828_v47 = vpop.f32.mrb[25].mxu0 }
 0x37f   : > { %v1255_v48 = vpop.f32.mrb[26].mxu0  ;;  %v1425_v19 = vld [vmem:[#allocation4 + $0x10] sm:$0xff] }
 0x380   : > { %1408 = vst.msk [vmem:[#allocation4 + $0x20] sm:$0xff] %vm369_vm0, %v1400_v55  ;;  %v1829_v56 = vpop.f32.mrb[27].mxu0 }
 0x381   : > { %v1298_v59 = vpop.f32.mrb[24].mxu1 }
 0x382   : > { %v1401_v3 = vadd.f32 %v1298_v59, %v1008_v54  ;;  %v1834_v60 = vpop.f32.mrb[25].mxu1 }
 0x383   : > { %v1301_v61 = vpop.f32.mrb[26].mxu1  ;;  %v1426_v24 = vld [vmem:[#allocation4 + $0x18] sm:$0xff] }
 0x384   : > { %1409 = vst.msk [vmem:[#allocation4 + $0x28] sm:$0xff] %vm369_vm0, %v1401_v3  ;;  %v1835_v63 = vpop.f32.mrb[27].mxu1 }
 0x385   : > { %v1344_v5 = vpop.f32.mrb[28].mxu0 }
 0x386   : > { %v1402_v4 = vadd.f32 %v1344_v5, %v1009_v62  ;;  %v1840_v6 = vpop.f32.mrb[29].mxu0 }
 0x387   : > { %v1347_v7 = vpop.f32.mrb[30].mxu0  ;;  %v1427_v30 = vld [vmem:[#allocation4 + $0x20] sm:$0xff] }
 0x388   : > { %1410 = vst.msk [vmem:[#allocation4 + $0x30] sm:$0xff] %vm369_vm0, %v1402_v4  ;;  %v1841_v8 = vpop.f32.mrb[31].mxu0 }
 0x389   : > { %v1390_v9 = vpop.f32.mrb[28].mxu1 }
 0x38a   : > { %v1403_v31 = vadd.f32 %v1390_v9, %v1010_v29  ;;  %v1846_v10 = vpop.f32.mrb[29].mxu1 }
 0x38b   : > { %v1393_v41 = vpop.f32.mrb[30].mxu1  ;;  %v1428_v39 = vld [vmem:[#allocation4 + $0x28] sm:$0xff] }
 0x38c   : > { %1411 = vst.msk [vmem:[#allocation4 + $0x38] sm:$0xff] %vm369_vm0, %v1403_v31  ;;  %v1847_v11 = vpop.f32.mrb[31].mxu1 }
 0x38f   : > { %v1429_v49 = vld [vmem:[#allocation4 + $0x30] sm:$0xff] }
 0x393   : > { %v1430_v18 = vld [vmem:[#allocation4 + $0x38] sm:$0xff] }
 0x3bb   : > { %v1450_v0 = vpop.permute.xlu1 %1449 }
 0x3bc   : > { %v1487_v43 = vmul.f32 %v1450_v0, %v1423_v12 }
 0x3be   : > { %v1495_v14 = vpack.c.bf16 %v1487_v43, %v1487_v43 }
 0x3bf   : > { %v1455_v13 = vpop.permute.xlu0 %1454 }
 0x3c0   : > { %1504 = vst.msk [vmem:[%s2817_s13] sm:$0xf] %vm1503_vm4, %v1495_v14  ;;  %v1488_v15 = vmul.f32 %v1455_v13, %v1424_v16 }
 0x3c2   : > { %v1496_v17 = vpack.c.bf16 %v1488_v15, %v1488_v15 }
 0x3c3   : > { %v1460_v20 = vpop.permute.xlu1 %1459 }
 0x3c4   : > { %1505 = vst.msk [vmem:[%s2817_s13 + $0x4] sm:$0xf] %vm1503_vm4, %v1496_v17  ;;  %v1489_v21 = vmul.f32 %v1460_v20, %v1425_v19 }
 0x3c6   : > { %v1497_v23 = vpack.c.bf16 %v1489_v21, %v1489_v21 }
 0x3c7   : > { %v1465_v25 = vpop.permute.xlu0 %1464 }
 0x3c8   : > { %1506 = vst.msk [vmem:[%s2817_s13 + $0x8] sm:$0xf] %vm1503_vm4, %v1497_v23  ;;  %v1490_v27 = vmul.f32 %v1465_v25, %v1426_v24 }
 0x3ca   : > { %v1498_v28 = vpack.c.bf16 %v1490_v27, %v1490_v27 }
 0x3cb   : > { %v1470_v32 = vpop.permute.xlu1 %1469 }
 0x3cc   : > { %1507 = vst.msk [vmem:[%s2817_s13 + $0xc] sm:$0xf] %vm1503_vm4, %v1498_v28  ;;  %v1491_v37 = vmul.f32 %v1470_v32, %v1427_v30 }
 0x3ce   : > { %v1499_v38 = vpack.c.bf16 %v1491_v37, %v1491_v37 }
 0x3cf   : > { %v1475_v40 = vpop.permute.xlu0 %1474 }
 0x3d0   : > { %1508 = vst.msk [vmem:[%s2817_s13 + $0x10] sm:$0xf] %vm1503_vm4, %v1499_v38  ;;  %v1492_v45 = vmul.f32 %v1475_v40, %v1428_v39 }
 0x3d2   : > { %v1500_v46 = vpack.c.bf16 %v1492_v45, %v1492_v45 }
 0x3d3   : > { %v1480_v50 = vpop.permute.xlu1 %1479 }
 0x3d4   : > { %1509 = vst.msk [vmem:[%s2817_s13 + $0x14] sm:$0xf] %vm1503_vm4, %v1500_v46  ;;  %v1493_v51 = vmul.f32 %v1480_v50, %v1429_v49 }
 0x3d6   : > { %v1501_v52 = vpack.c.bf16 %v1493_v51, %v1493_v51 }
 0x3d7   : > { %v1485_v22 = vpop.permute.xlu0 %1484 }
 0x3d8   : > { %1510 = vst.msk [vmem:[%s2817_s13 + $0x18] sm:$0xf] %vm1503_vm4, %v1501_v52  ;;  %v1494_v53 = vmul.f32 %v1485_v22, %v1430_v18 }
 0x3da   : > { %v1502_v26 = vpack.c.bf16 %v1494_v53, %v1494_v53 }
 0x3dc   : > { %1511 = vst.msk [vmem:[%s2817_s13 + $0x1c] sm:$0xf] %vm1503_vm4, %v1502_v26 }
 0x3dd   : > { %2120 = shalt.err (!%p2117_p11)
}
 0x3de   : > { %s2121_s25 = scalar_lea.hbm %s2838_s28, 512  ;;  %s2125_s14 = scalar_lea.hbm %s2894_s4, 5120 }
 0x3df   : > { %p2122_p3 = scmp.ne.s32.totalorder %s2838_s28, %s2121_s25  ;;  %p2126_p1 = scmp.lt.u32.totalorder %s2838_s28, %s2894_s4 }
 0x3e0   : > { %p2127_p6 = scmp.lt.u32.totalorder %s2125_s14, %s2121_s25  ;;  %p2129_p13 = scmp.lt.u32.totalorder %s2121_s25, %s2838_s28 }
 0x3e1   : > { %p2123_p2 = pnand %p2122_p3, %p2933_p0 }
 0x3e2   : > { %p2128_p12 = por %p2127_p6, %p2126_p1 }
 0x3e3   : > { %p2124_p8 = pneg %p2123_p2 }
 0x3e4   : > { %p2130_p4 = por %p2129_p13, %p2128_p12 }
 0x3e6   : > { %p2131_p9 = pnand %p2130_p4, %p2124_p8 }
 0x3e8   : > { %2134 = shalt.err (!%p2131_p9)
}
 0x3e9   : > { %s2210_s7 = smov 64   ;;  %s2211_s9 = smov 4  }
 0x3ea   : > { %1858 = dma.vmem_to_hbm [thread:$0]  (%p2933_p0), %s2840_s5, 512, %s2838_s28, %s1513_s18, %s2210_s7, %s2210_s7, %s2211_s9  }
 0x3eb PF: > { %p1881_p10 = scmp.ge.s32.totalorder %s2197_s20, 2  ;;  %s1542_s23 = sand.u32 1, %s2177_s15  }
 0x3ec   : > { %p2934_p7 = scmp.ne.s32.totalorder %s2921_s8, 0  ;;  %s1543_s19 = scalar_lea.sflag [#allocation7], %s1542_s23 }
 0x3ee   : > { %p1875_p5 = pnand %p1881_p10, %p2934_p7 }
 0x3f0   : > { %2172 = dma.done.wait (!%p1875_p5), %s1543_s19, 512  }
 0x3f1   : > { %2174 = vsyncadd (!%p1875_p5), %s1543_s19, 4294966784  ;;  %s24_s20 = sadd.s32 1, %s2197_s20   ;;  %s2935_s21 = sld [smem:[#allocation18_spill]] }
 0x3f2   : > { %p21_p11 = scmp.ge.s32.totalorder %s24_s20, 12   ;;  %s2936_s17 = sld [smem:[#allocation21_spill]] }
 0x3f3   : > { %s2937_s18 = sld [smem:[#allocation19_spill]]  ;;  %s2938_s19 = sld [smem:[#allocation20_spill]] }
 0x3f4   : > { %s2939_s15 = smov %s2181_s16  ;;  %23 = sbr.rel (!%p21_p11) target bundleno = 12 (0xc), region = 118 }
 0x3f7   : > { %s2940_s16 = smov %s2935_s21 }
 0x3fb   :  { %1548 = vsyncpa [#allocation6], 1 }
 0x3fc   :  { %1550 = vsyncpa [#allocation6 + $0x1], 1 }
 0x3fd   :  { %1551 = vsyncpa [#allocation9], 1 }
 0x3fe   :  { %1553 = vsyncpa [#allocation9 + $0x1], 1 }
 0x3ff   :  { %1554 = vsyncpa [#allocation12], 1 }
 0x400   :  { %1555 = vsyncpa [#allocation7], 1 }
 0x401   :  { %1557 = vsyncpa [#allocation7 + $0x1], 1 }

// kernel: clip_forward.62
= control target key start
LH: loop header
LB: loop body
LE: loop exit
PB: predicated region body
PF: predicated region fallthrough
CT: control target
= control target key end

     0   :  { %8 = vsyncpa [#allocation3], 0  ;;  %s276_s0 = inlined_call_operand.hbm [shape: bf16[8,32], index: 0, kind: input, shape index: {}]   ;;  %s277_s1 = inlined_call_operand.hbm [shape: f32[1,32], index: 1, kind: input, shape index: {}]   ;;  %s278_s2 = inlined_call_operand.hbm [shape: f32[1,32], index: 2, kind: input, shape index: {}]   ;;  %s279_s3 = inlined_call_operand.hbm [shape: bf16[8,32], index: 3, kind: output, shape index: {}]  }
   0x1   :  { %9 = vsyncpa [#allocation6], 0 }
   0x2   :  { %10 = vsyncpa [#allocation4], 0  ;;  %s204_s12 = smov [#allocation5]   ;;  %s205_s14 = smov [#allocation2]  }
   0x3   :  { %s27_s13 = sshll.u32 %s204_s12, 4  ;;  %s17_s15 = sshll.u32 %s205_s14, 4  ;;  %s28_s13 = int_to_ptr.vmem [resolvable:$true] %s27_s13  ;;  %s18_s15 = int_to_ptr.vmem [resolvable:$true] %s17_s15 }
   0x4   :  { %s110_s18 = scalar_lea.hbm %s277_s1, 16 }
   0x5   :  { %p111_p0 = scmp.ne.s32.totalorder %s277_s1, %s110_s18  ;;  %p114_p1 = scmp.lt.u32.totalorder %s110_s18, %s277_s1 }
   0x7   :  { %p116_p2 = pnand %p114_p1, %p111_p0 }
   0x9   :  { %119 = shalt.err (!%p116_p2)
}
   0xa   :  { %s120_s23 = scalar_lea.vmem %s28_s13, 16  ;;  %s124_s24 = scalar_lea.vmem %s28_s13, 32 }
   0xb   :  { %p121_p3 = scmp.ne.s32.totalorder %s28_s13, %s120_s23  ;;  %p125_p4 = scmp.lt.s32.totalorder %s28_s13, %s28_s13 }
   0xc   :  { %p126_p5 = scmp.lt.s32.totalorder %s124_s24, %s120_s23 }
   0xe   :  { %p127_p6 = por %p126_p5, %p125_p4 }
  0x10   :  { %p128_p7 = pnand %p127_p6, %p121_p3 }
  0x12   :  { %131 = shalt.err (!%p128_p7)
}
  0x13   :  { %30 = dma.hbm_to_vmem [thread:$0]  %s277_s1, 16, %s28_s13, [#allocation6]  }
  0x14   :  { %s132_s29 = scalar_lea.hbm %s276_s0, 64 }
  0x15   :  { %p133_p8 = scmp.ne.s32.totalorder %s276_s0, %s132_s29  ;;  %p136_p9 = scmp.lt.u32.totalorder %s132_s29, %s276_s0 }
  0x17   :  { %p138_p10 = pnand %p136_p9, %p133_p8 }
  0x19   :  { %141 = shalt.err (!%p138_p10)
}
  0x1a   :  { %s142_s7 = scalar_lea.vmem %s18_s15, 64  ;;  %p147_p12 = scmp.lt.s32.totalorder %s18_s15, %s18_s15 }
  0x1b   :  { %p143_p11 = scmp.ne.s32.totalorder %s18_s15, %s142_s7  ;;  %p148_p13 = scmp.lt.s32.totalorder %s142_s7, %s142_s7 }
  0x1d   :  { %p149_p0 = por %p148_p13, %p147_p12 }
  0x1f   :  { %p150_p1 = pnand %p149_p0, %p143_p11 }
  0x21   :  { %153 = shalt.err (!%p150_p1)
}
  0x22   :  { %20 = dma.hbm_to_vmem [thread:$0]  %s276_s0, 64, %s18_s15, [#allocation3]  }
  0x23   :  { %s206_s9 = smov [#allocation7]   ;;  %s154_s13 = scalar_lea.hbm %s278_s2, 16 }
  0x24   :  { %s37_s10 = sshll.u32 %s206_s9, 4  ;;  %p155_p2 = scmp.ne.s32.totalorder %s278_s2, %s154_s13  ;;  %s38_s10 = int_to_ptr.vmem [resolvable:$true] %s37_s10 }
  0x25   :  { %p158_p3 = scmp.lt.u32.totalorder %s154_s13, %s278_s2 }
  0x27   :  { %p160_p4 = pnand %p158_p3, %p155_p2 }
  0x29   :  { %163 = shalt.err (!%p160_p4)
}
  0x2a   :  { %s164_s19 = scalar_lea.vmem %s38_s10, 16  ;;  %s168_s0 = scalar_lea.vmem %s38_s10, 32 }
  0x2b   :  { %p165_p5 = scmp.ne.s32.totalorder %s38_s10, %s164_s19  ;;  %p169_p6 = scmp.lt.s32.totalorder %s38_s10, %s38_s10 }
  0x2c   :  { %p170_p7 = scmp.lt.s32.totalorder %s168_s0, %s164_s19 }
  0x2e   :  { %p171_p8 = por %p170_p7, %p169_p6 }
  0x30   :  { %p172_p9 = pnand %p171_p8, %p165_p5 }
  0x32   :  { %175 = shalt.err (!%p172_p9)
}
  0x33   :  { %40 = dma.hbm_to_vmem [thread:$0]  %s278_s2, 16, %s38_s10, [#allocation6]  }
  0x34   :  { %198 = dma.done.wait [#allocation3], 64  }
  0x35   :  { %199 = vsyncadd [#allocation3], 4294967232 }
  0x36   :  { %200 = dma.done.wait [#allocation6], 32  }
  0x37   :  { %201 = vsyncadd [#allocation6], 4294967264  ;;  %v50_v0 = vld [vmem:[#allocation2] sm:$0xf]  ;;  %vm52_vm0 = vcmask 261120   ;;  %s207_s2 = smov [#allocation8]  }
  0x38   :  { %v51_v1 = vunpack.c.l.bf16 %v50_v0  ;;  %v102_v12 = vld [vmem:[#allocation5] ss:$0 sm:$0xff]  ;;  %v103_v14 = vld [vmem:[#allocation7] ss:$0 sm:$0xff]  ;;  %s92_s21 = sshll.u32 %s207_s2, 4  ;;  %vm84_vm1 = vcmask 257024   ;;  %s93_s21 = int_to_ptr.vmem [resolvable:$true] %s92_s21 }
  0x39   :  { %s176_s22 = scalar_lea.vmem %s93_s21, 64  ;;  %p181_p11 = scmp.lt.s32.totalorder %s93_s21, %s93_s21 }
  0x3a   :  { %v53_v2 = vsel %vm52_vm0, %v51_v1, 0.0  ;;  %p177_p10 = scmp.ne.s32.totalorder %s93_s21, %s176_s22  ;;  %p182_p12 = scmp.lt.s32.totalorder %s176_s22, %s176_s22 }
  0x3b   :  { %54 = vadd.xlane.f32.xlu0 %v53_v2 }
  0x3c   :  { %p183_p13 = por %p182_p12, %p181_p11 }
  0x3e   :  { %p184_p0 = pnand %p183_p13, %p177_p10 }
  0xc8   :  { %v55_v3 = vpop.xlane.xlu0 %54 }
  0xc9   :  { %v57_v4 = vmul.f32 0.03125, %v55_v3 }
  0xcb   :  { %v58_v5 = vsub.f32 %v51_v1, %v57_v4 }
  0xcd   :  { %v59_v6 = vmul.f32 %v58_v5, %v58_v5 }
  0xcf   :  { %v60_v7 = vsel %vm52_vm0, %v59_v6, 0.0 }
  0xd0   :  { %61 = vadd.xlane.f32.xlu0 %v60_v7 }
 0x15d   :  { %v62_v8 = vpop.xlane.xlu0 %61 }
 0x15e   :  { %v63_v9 = vmul.f32 0.03125, %v62_v8 }
 0x160   :  { %v64_v10 = vadd.f32 1e-05, %v63_v9 }
 0x162   :  { %108 = vrsqrt.f32 %v64_v10 }
 0x16c   :  { %v109_v11 = vpop.eup %108 }
 0x16d   :  { %v66_v13 = vmul.f32 %v109_v11, %v58_v5 }
 0x16f   :  { %v74_v15 = vmul.f32 %v102_v12, %v66_v13 }
 0x171   :  { %v82_v16 = vadd.f32 %v103_v14, %v74_v15 }
 0x173   :  { %v83_v17 = vpack.c.bf16 %v82_v16, %v82_v16 }
 0x175   :  { %85 = vst.msk [vmem:[#allocation8] sm:$0xf] %vm84_vm1, %v83_v17 }
 0x176   :  { %187 = shalt.err (!%p184_p0)
}
 0x177   :  { %s188_s25 = scalar_lea.hbm %s279_s3, 64 }
 0x178   :  { %p189_p1 = scmp.ne.s32.totalorder %s279_s3, %s188_s25  ;;  %p192_p2 = scmp.lt.u32.totalorder %s188_s25, %s279_s3 }
 0x17a   :  { %p194_p3 = pnand %p192_p2, %p189_p1 }
 0x17c   :  { %197 = shalt.err (!%p194_p3)
}
 0x17d   :  { %95 = dma.vmem_to_hbm [thread:$0]  %s93_s21, 64, %s279_s3, [#allocation4]  }
 0x17e   :  { %202 = dma.done.wait [#allocation4], 64  }
 0x17f   :  { %203 = vsyncadd [#allocation4], 4294967232 }
 0x180   :  { %99 = vsyncpa [#allocation3], 1 }
 0x181   :  { %100 = vsyncpa [#allocation6], 1 }
 0x182   :  { %101 = vsyncpa [#allocation4], 1 }

// kernel: clip_forward.64
= control target key start
LH: loop header
LB: loop body
LE: loop exit
PB: predicated region body
PF: predicated region fallthrough
CT: control target
= control target key end

     0   :  { %8 = vsyncpa [#allocation3], 0  ;;  %s365_s0 = inlined_call_operand.hbm [shape: bf16[24,32], index: 0, kind: input, shape index: {}]   ;;  %s366_s1 = inlined_call_operand.hbm [shape: f32[1,32], index: 1, kind: input, shape index: {}]   ;;  %s367_s2 = inlined_call_operand.hbm [shape: f32[1,32], index: 2, kind: input, shape index: {}]   ;;  %s368_s3 = inlined_call_operand.hbm [shape: bf16[24,32], index: 3, kind: output, shape index: {}]  }
   0x1   :  { %9 = vsyncpa [#allocation6], 0 }
   0x2   :  { %10 = vsyncpa [#allocation4], 0  ;;  %s272_s12 = smov [#allocation5]   ;;  %s273_s14 = smov [#allocation2]  }
   0x3   :  { %s29_s13 = sshll.u32 %s272_s12, 4  ;;  %s16_s15 = sshll.u32 %s273_s14, 4  ;;  %s30_s13 = int_to_ptr.vmem [resolvable:$true] %s29_s13  ;;  %s298_s15 = int_to_ptr.vmem [resolvable:$true] %s16_s15 }
   0x4   :  { %s178_s18 = scalar_lea.hbm %s366_s1, 16 }
   0x5   :  { %p179_p0 = scmp.ne.s32.totalorder %s366_s1, %s178_s18  ;;  %p182_p1 = scmp.lt.u32.totalorder %s178_s18, %s366_s1 }
   0x7   :  { %p184_p2 = pnand %p182_p1, %p179_p0 }
   0x9   :  { %187 = shalt.err (!%p184_p2)
}
   0xa   :  { %s188_s23 = scalar_lea.vmem %s30_s13, 16  ;;  %s192_s24 = scalar_lea.vmem %s30_s13, 32 }
   0xb   :  { %p189_p3 = scmp.ne.s32.totalorder %s30_s13, %s188_s23  ;;  %p193_p4 = scmp.lt.s32.totalorder %s30_s13, %s30_s13 }
   0xc   :  { %p194_p5 = scmp.lt.s32.totalorder %s192_s24, %s188_s23 }
   0xe   :  { %p195_p6 = por %p194_p5, %p193_p4 }
  0x10   :  { %p196_p7 = pnand %p195_p6, %p189_p3 }
  0x12   :  { %199 = shalt.err (!%p196_p7)
}
  0x13   :  { %32 = dma.hbm_to_vmem [thread:$0]  %s366_s1, 16, %s30_s13, [#allocation6]  }
  0x14   :  { %s200_s29 = scalar_lea.hbm %s365_s0, 192 }
  0x15   :  { %p201_p8 = scmp.ne.s32.totalorder %s365_s0, %s200_s29  ;;  %p204_p9 = scmp.lt.u32.totalorder %s200_s29, %s365_s0 }
  0x17   :  { %p206_p10 = pnand %p204_p9, %p201_p8 }
  0x19   :  { %209 = shalt.err (!%p206_p10)
}
  0x1a   :  { %s210_s7 = scalar_lea.vmem %s298_s15, 192  ;;  %p215_p12 = scmp.lt.s32.totalorder %s298_s15, %s298_s15 }
  0x1b   :  { %p211_p11 = scmp.ne.s32.totalorder %s298_s15, %s210_s7  ;;  %p216_p13 = scmp.lt.s32.totalorder %s210_s7, %s210_s7 }
  0x1d   :  { %p217_p0 = por %p216_p13, %p215_p12 }
  0x1f   :  { %p218_p1 = pnand %p217_p0, %p211_p11 }
  0x21   :  { %221 = shalt.err (!%p218_p1)
}
  0x22   :  { %s274_s1 = smov 64   ;;  %s275_s8 = smov 4  }
  0x23   :  { %22 = dma.hbm_to_vmem [thread:$0]  %s365_s0, 192, %s298_s15, [#allocation3], %s274_s1, %s274_s1, %s275_s8  }
  0x24   :  { %s276_s11 = smov [#allocation7]   ;;  %s222_s16 = scalar_lea.hbm %s367_s2, 16 }
  0x25   :  { %s39_s12 = sshll.u32 %s276_s11, 4  ;;  %p223_p2 = scmp.ne.s32.totalorder %s367_s2, %s222_s16  ;;  %s40_s12 = int_to_ptr.vmem [resolvable:$true] %s39_s12 }
  0x26   :  { %p226_p3 = scmp.lt.u32.totalorder %s222_s16, %s367_s2 }
  0x28   :  { %p228_p4 = pnand %p226_p3, %p223_p2 }
  0x2a   :  { %231 = shalt.err (!%p228_p4)
}
  0x2b   :  { %s232_s21 = scalar_lea.vmem %s40_s12, 16  ;;  %s236_s0 = scalar_lea.vmem %s40_s12, 32 }
  0x2c   :  { %p233_p5 = scmp.ne.s32.totalorder %s40_s12, %s232_s21  ;;  %p237_p6 = scmp.lt.s32.totalorder %s40_s12, %s40_s12 }
  0x2d   :  { %p238_p7 = scmp.lt.s32.totalorder %s236_s0, %s232_s21 }
  0x2f   :  { %p239_p8 = por %p238_p7, %p237_p6 }
  0x31   :  { %p240_p9 = pnand %p239_p8, %p233_p5 }
  0x33   :  { %243 = shalt.err (!%p240_p9)
}
  0x34   :  { %42 = dma.hbm_to_vmem [thread:$0]  %s367_s2, 16, %s40_s12, [#allocation6]  }
  0x35   :  { %266 = dma.done.wait [#allocation3], 192  }
  0x36   :  { %267 = vsyncadd [#allocation3], 4294967104 }
  0x37   :  { %268 = dma.done.wait [#allocation6], 32  }
  0x38   :  { %269 = vsyncadd [#allocation6], 4294967264  ;;  %v163_v0 = vld [vmem:[#allocation2] sm:$0xff]   ;;  %vm58_vm0 = vcmask 261120   ;;  %v54_v1 = vld [vmem:[#allocation2 + $0x8] sm:$0xf] }
  0x39   :  { %v164_v2 = vunpack.c.l.bf16 %v163_v0  ;;  %v57_v3 = vunpack.c.l.bf16 %v54_v1  ;;  %v165_v4 = vunpack.c.h.bf16 %v163_v0  ;;  %v154_v33 = vld [vmem:[#allocation5] ss:$0 sm:$0xff]  ;;  %v155_v35 = vld [vmem:[#allocation7] ss:$0 sm:$0xff]  ;;  %vm132_vm1 = vcmask 257024   ;;  %s277_s2 = smov [#allocation8]  }
  0x3a   :  { %s141_s23 = sshll.u32 %s277_s2, 4  ;;  %s142_s23 = int_to_ptr.vmem [resolvable:$true] %s141_s23 }
  0x3b   :  { %v59_v5 = vsel %vm58_vm0, %v164_v2, 0.0  ;;  %v65_v6 = vsel %vm58_vm0, %v57_v3, 0.0  ;;  %v62_v7 = vsel %vm58_vm0, %v165_v4, 0.0  ;;  %s244_s24 = scalar_lea.vmem %s142_s23, 192  ;;  %p249_p11 = scmp.lt.s32.totalorder %s142_s23, %s142_s23 }
  0x3c   :  { %60 = vadd.xlane.f32.xlu0 %v59_v5  ;;  %66 = vadd.xlane.f32.xlu1 %v65_v6  ;;  %p245_p10 = scmp.ne.s32.totalorder %s142_s23, %s244_s24  ;;  %p250_p12 = scmp.lt.s32.totalorder %s244_s24, %s244_s24 }
  0x3e   :  { %p251_p13 = por %p250_p12, %p249_p11 }
  0x40   :  { %63 = vadd.xlane.f32.xlu0 %v62_v7  ;;  %p252_p0 = pnand %p251_p13, %p245_p10 }
  0xc9   :  { %v61_v8 = vpop.xlane.xlu0 %60  ;;  %v67_v9 = vpop.xlane.xlu1 %66 }
  0xca   :  { %v69_v10 = vmul.f32 0.03125, %v61_v8  ;;  %v71_v11 = vmul.f32 0.03125, %v67_v9 }
  0xcc   :  { %v72_v12 = vsub.f32 %v164_v2, %v69_v10  ;;  %v74_v13 = vsub.f32 %v57_v3, %v71_v11 }
  0xcd   :  { %v64_v14 = vpop.xlane.xlu0 %63 }
  0xce   :  { %v70_v15 = vmul.f32 0.03125, %v64_v14  ;;  %v75_v16 = vmul.f32 %v72_v12, %v72_v12  ;;  %v77_v17 = vmul.f32 %v74_v13, %v74_v13 }
  0xd0   :  { %v73_v18 = vsub.f32 %v165_v4, %v70_v15  ;;  %v78_v19 = vsel %vm58_vm0, %v75_v16, 0.0  ;;  %v84_v20 = vsel %vm58_vm0, %v77_v17, 0.0 }
  0xd1   :  { %79 = vadd.xlane.f32.xlu1 %v78_v19 }
  0xd2   :  { %v76_v21 = vmul.f32 %v73_v18, %v73_v18 }
  0xd4   :  { %v81_v22 = vsel %vm58_vm0, %v76_v21, 0.0 }
  0xd5   :  { %85 = vadd.xlane.f32.xlu1 %v84_v20  ;;  %82 = vadd.xlane.f32.xlu0 %v81_v22 }
 0x15e   :  { %v80_v23 = vpop.xlane.xlu1 %79 }
 0x15f   :  { %v87_v24 = vmul.f32 0.03125, %v80_v23 }
 0x161   :  { %v90_v25 = vadd.f32 1e-05, %v87_v24 }
 0x162   :  { %v86_v26 = vpop.xlane.xlu1 %85  ;;  %v83_v27 = vpop.xlane.xlu0 %82 }
 0x163   :  { %172 = vrsqrt.f32 %v90_v25  ;;  %v89_v28 = vmul.f32 0.03125, %v86_v26  ;;  %v88_v29 = vmul.f32 0.03125, %v83_v27 }
 0x165   :  { %v92_v30 = vadd.f32 1e-05, %v89_v28  ;;  %v91_v31 = vadd.f32 1e-05, %v88_v29 }
 0x167   :  { %174 = vrsqrt.f32 %v92_v30 }
 0x168   :  { %176 = vrsqrt.f32 %v91_v31 }
 0x16d   :  { %v173_v32 = vpop.eup %172 }
 0x16e   :  { %v96_v34 = vmul.f32 %v173_v32, %v72_v12 }
 0x170   :  { %v106_v36 = vmul.f32 %v154_v33, %v96_v34 }
 0x171   :  { %v175_v37 = vpop.eup %174 }
 0x172   :  { %v177_v38 = vpop.eup %176  ;;  %v98_v39 = vmul.f32 %v175_v37, %v74_v13  ;;  %v116_v40 = vadd.f32 %v155_v35, %v106_v36 }
 0x173   :  { %v97_v41 = vmul.f32 %v177_v38, %v73_v18 }
 0x174   :  { %v108_v42 = vmul.f32 %v154_v33, %v98_v39  ;;  %v159_v43 = vpack.c.bf16 %v116_v40, %v116_v40 }
 0x175   :  { %v107_v44 = vmul.f32 %v154_v33, %v97_v41 }
 0x176   :  { %v118_v45 = vadd.f32 %v155_v35, %v108_v42  ;;  %133 = vst.msk [vmem:[#allocation8] sm:$0xf] %vm132_vm1, %v159_v43 }
 0x177   :  { %v117_v46 = vadd.f32 %v155_v35, %v107_v44 }
 0x178   :  { %v161_v47 = vpack.c.bf16 %v118_v45, %v118_v45 }
 0x179   :  { %v160_v48 = vpack.c.bf16 %v117_v46, %v117_v46 }
 0x17a   :  { %135 = vst.msk [vmem:[#allocation8 + $0x8] sm:$0xf] %vm132_vm1, %v161_v47 }
 0x17b   :  { %134 = vst.msk [vmem:[#allocation8 + $0x4] sm:$0xf] %vm132_vm1, %v160_v48 }
 0x17c   :  { %255 = shalt.err (!%p252_p0)
}
 0x17d   :  { %s256_s27 = scalar_lea.hbm %s368_s3, 192 }
 0x17e   :  { %p257_p1 = scmp.ne.s32.totalorder %s368_s3, %s256_s27  ;;  %p260_p2 = scmp.lt.u32.totalorder %s256_s27, %s368_s3 }
 0x180   :  { %p262_p3 = pnand %p260_p2, %p257_p1 }
 0x182   :  { %265 = shalt.err (!%p262_p3)
}
 0x183   :  { %147 = dma.vmem_to_hbm [thread:$0]  %s142_s23, 192, %s368_s3, [#allocation4], %s274_s1, %s274_s1, %s275_s8  }
 0x184   :  { %270 = dma.done.wait [#allocation4], 192  }
 0x185   :  { %271 = vsyncadd [#allocation4], 4294967104 }
 0x186   :  { %151 = vsyncpa [#allocation3], 1 }
 0x187   :  { %152 = vsyncpa [#allocation6], 1 }
 0x188   :  { %153 = vsyncpa [#allocation4], 1 }

// kernel: clip_forward.65
= control target key start
LH: loop header
LB: loop body
LE: loop exit
PB: predicated region body
PF: predicated region fallthrough
CT: control target
= control target key end

     0   :  { %8 = vsyncpa [#allocation3], 0  ;;  %s398_s0 = inlined_call_operand.hbm [shape: bf16[24,32], index: 0, kind: input, shape index: {}]   ;;  %s399_s1 = inlined_call_operand.hbm [shape: bf16[32,32], index: 1, kind: input, shape index: {}]   ;;  %s400_s2 = inlined_call_operand.hbm [shape: f32[1,32], index: 2, kind: input, shape index: {}]   ;;  %s401_s3 = inlined_call_operand.hbm [shape: bf16[24,32], index: 3, kind: output, shape index: {}]  }
   0x1   :  { %9 = vsyncpa [#allocation6], 0 }
   0x2   :  { %10 = vsyncpa [#allocation4], 0  ;;  %s308_s12 = smov [#allocation5]   ;;  %s309_s14 = smov [#allocation2]  }
   0x3   :  { %s28_s13 = sshll.u32 %s308_s12, 4  ;;  %s16_s15 = sshll.u32 %s309_s14, 4  ;;  %s29_s13 = int_to_ptr.vmem [resolvable:$true] %s28_s13  ;;  %s334_s15 = int_to_ptr.vmem [resolvable:$true] %s16_s15 }
   0x4   :  { %s214_s18 = scalar_lea.hbm %s399_s1, 256 }
   0x5   :  { %p215_p0 = scmp.ne.s32.totalorder %s399_s1, %s214_s18  ;;  %p218_p1 = scmp.lt.u32.totalorder %s214_s18, %s399_s1 }
   0x7   :  { %p220_p2 = pnand %p218_p1, %p215_p0 }
   0x9   :  { %223 = shalt.err (!%p220_p2)
}
   0xa   :  { %s224_s23 = scalar_lea.vmem %s29_s13, 256  ;;  %p229_p4 = scmp.lt.s32.totalorder %s29_s13, %s29_s13 }
   0xb   :  { %p225_p3 = scmp.ne.s32.totalorder %s29_s13, %s224_s23  ;;  %p230_p5 = scmp.lt.s32.totalorder %s224_s23, %s224_s23 }
   0xd   :  { %p231_p6 = por %p230_p5, %p229_p4 }
   0xf   :  { %p232_p7 = pnand %p231_p6, %p225_p3 }
  0x11   :  { %235 = shalt.err (!%p232_p7)
}
  0x12   :  { %s310_s24 = smov 64   ;;  %s311_s25 = smov 4  }
  0x13   :  { %34 = dma.hbm_to_vmem [thread:$0]  %s399_s1, 256, %s29_s13, [#allocation6], %s310_s24, %s310_s24, %s311_s25  }
  0x14   :  { %s236_s30 = scalar_lea.hbm %s398_s0, 192 }
  0x15   :  { %p237_p8 = scmp.ne.s32.totalorder %s398_s0, %s236_s30  ;;  %p240_p9 = scmp.lt.u32.totalorder %s236_s30, %s398_s0 }
  0x17   :  { %p242_p10 = pnand %p240_p9, %p237_p8 }
  0x19   :  { %245 = shalt.err (!%p242_p10)
}
  0x1a   :  { %s246_s8 = scalar_lea.vmem %s334_s15, 192  ;;  %p251_p12 = scmp.lt.s32.totalorder %s334_s15, %s334_s15 }
  0x1b   :  { %p247_p11 = scmp.ne.s32.totalorder %s334_s15, %s246_s8  ;;  %p252_p13 = scmp.lt.s32.totalorder %s246_s8, %s246_s8 }
  0x1d   :  { %p253_p0 = por %p252_p13, %p251_p12 }
  0x1f   :  { %p254_p1 = pnand %p253_p0, %p247_p11 }
  0x21   :  { %257 = shalt.err (!%p254_p1)
}
  0x22   :  { %22 = dma.hbm_to_vmem [thread:$0]  %s398_s0, 192, %s334_s15, [#allocation3], %s310_s24, %s310_s24, %s311_s25  }
  0x23   :  { %s312_s10 = smov [#allocation7]   ;;  %s258_s14 = scalar_lea.hbm %s400_s2, 16 }
  0x24   :  { %s41_s11 = sshll.u32 %s312_s10, 4  ;;  %p259_p2 = scmp.ne.s32.totalorder %s400_s2, %s258_s14  ;;  %s42_s11 = int_to_ptr.vmem [resolvable:$true] %s41_s11 }
  0x25   :  { %p262_p3 = scmp.lt.u32.totalorder %s258_s14, %s400_s2 }
  0x27   :  { %p264_p4 = pnand %p262_p3, %p259_p2 }
  0x29   :  { %267 = shalt.err (!%p264_p4)
}
  0x2a   :  { %s268_s20 = scalar_lea.vmem %s42_s11, 16  ;;  %s272_s0 = scalar_lea.vmem %s42_s11, 32 }
  0x2b   :  { %p269_p5 = scmp.ne.s32.totalorder %s42_s11, %s268_s20  ;;  %p273_p6 = scmp.lt.s32.totalorder %s42_s11, %s42_s11 }
  0x2c   :  { %p274_p7 = scmp.lt.s32.totalorder %s272_s0, %s268_s20 }
  0x2e   :  { %p275_p8 = por %p274_p7, %p273_p6 }
  0x30   :  { %p276_p9 = pnand %p275_p8, %p269_p5 }
  0x32   :  { %279 = shalt.err (!%p276_p9)
}
  0x33   :  { %44 = dma.hbm_to_vmem [thread:$0]  %s400_s2, 16, %s42_s11, [#allocation6]  }
  0x34   :  { %302 = dma.done.wait [#allocation3], 192  }
  0x35   :  { %303 = vsyncadd [#allocation3], 4294967104 }
  0x36   :  { %304 = dma.done.wait [#allocation6], 272  }
  0x37   :  { %305 = vsyncadd [#allocation6], 4294967024  ;;  %v210_v0 = vld [vmem:[#allocation5] sm:$0xff]   ;;  %v211_v1 = vld [vmem:[#allocation5 + $0x8] sm:$0xff]   ;;  %vm89_vm0 = vcmask 261120   ;;  %vm157_vm1 = vcmask 257024  }
  0x38   :  { %196 = vmatprep.subr.bf16.mxu0 %v210_v0  ;;  %v212_v2 = vld [vmem:[#allocation2] sm:$0xff]   ;;  %v213_v3 = vld [vmem:[#allocation2 + $0x8] ss:$0 sps:$4 sm:$0xff]   ;;  %v179_v4 = vld [vmem:[#allocation7] ss:$0 sm:$0xff]  ;;  %s313_s2 = smov [#allocation8]  }
  0x39   :  { %197 = vmatpush3.bf16.msra.mxu0 %v210_v0  ;;  %200 = vmatprep.mubr.msk.bf16.mxu0 %vm89_vm0, %v212_v2  ;;  %s166_s22 = sshll.u32 %s313_s2, 4  ;;  %s167_s22 = int_to_ptr.vmem [resolvable:$true] %s166_s22 }
  0x3a   :  { %198 = vmatprep.subr.bf16.mxu0 %v211_v1  ;;  %s280_s23 = scalar_lea.vmem %s167_s22, 192  ;;  %p285_p11 = scmp.lt.s32.totalorder %s167_s22, %s167_s22 }
  0x3b   :  { %p281_p10 = scmp.ne.s32.totalorder %s167_s22, %s280_s23  ;;  %p286_p12 = scmp.lt.s32.totalorder %s280_s23, %s280_s23 }
  0x3d   :  { %199 = vmatpush3.bf16.msra.mxu0 %v211_v1  ;;  %p287_p13 = por %p286_p12, %p285_p11 }
  0x3f   :  { %p288_p0 = pnand %p287_p13, %p281_p10 }
  0x40   :  { %201 = vmatmul.mubr.msk.bf16.vlgmr.msra.gmra.mrb[0].mxu0 %vm89_vm0, %v213_v3 }
 0x113   :  { %v202_v5 = vpop.f32.mrb[0].mxu0 }
 0x114   :  { %v139_v6 = vadd.f32 %v202_v5, %v179_v4  ;;  %v130_v7 = vpop.f32.mrb[1].mxu0 }
 0x115   :  { %v131_v8 = vadd.f32 %v179_v4, %v130_v7  ;;  %v203_v9 = vpop.f32.mrb[2].mxu0 }
 0x116   :  { %v191_v10 = vpack.c.bf16 %v139_v6, %v139_v6  ;;  %v133_v11 = vpop.f32.mrb[3].mxu0 }
 0x117   :  { %v189_v12 = vpack.c.bf16 %v131_v8, %v131_v8  ;;  %v134_v13 = vadd.f32 %v179_v4, %v133_v11 }
 0x118   :  { %160 = vst.msk [vmem:[#allocation8 + $0x8] sm:$0xf] %vm157_vm1, %v191_v10 }
 0x119   :  { %158 = vst.msk [vmem:[#allocation8] sm:$0xf] %vm157_vm1, %v189_v12  ;;  %v190_v14 = vpack.c.bf16 %v134_v13, %v134_v13 }
 0x11b   :  { %159 = vst.msk [vmem:[#allocation8 + $0x4] sm:$0xf] %vm157_vm1, %v190_v14 }
 0x11c   :  { %291 = shalt.err (!%p288_p0)
}
 0x11d   :  { %s292_s28 = scalar_lea.hbm %s401_s3, 192 }
 0x11e   :  { %p293_p1 = scmp.ne.s32.totalorder %s401_s3, %s292_s28  ;;  %p296_p2 = scmp.lt.u32.totalorder %s292_s28, %s401_s3 }
 0x120   :  { %p298_p3 = pnand %p296_p2, %p293_p1 }
 0x122   :  { %301 = shalt.err (!%p298_p3)
}
 0x123   :  { %172 = dma.vmem_to_hbm [thread:$0]  %s167_s22, 192, %s401_s3, [#allocation4], %s310_s24, %s310_s24, %s311_s25  }
 0x124   :  { %306 = dma.done.wait [#allocation4], 192  }
 0x125   :  { %307 = vsyncadd [#allocation4], 4294967104 }
 0x126   :  { %176 = vsyncpa [#allocation3], 1 }
 0x127   :  { %177 = vsyncpa [#allocation6], 1 }
 0x128   :  { %178 = vsyncpa [#allocation4], 1 }

// kernel: clip_forward.69
= control target key start
LH: loop header
LB: loop body
LE: loop exit
PB: predicated region body
PF: predicated region fallthrough
CT: control target
= control target key end

     0   :  { %9 = vsyncpa [#allocation3], 0  ;;  %s482_s0 = inlined_call_operand.hbm [shape: bf16[24,32], index: 0, kind: input, shape index: {}]   ;;  %s483_s1 = inlined_call_operand.hbm [shape: bf16[32,32], index: 1, kind: input, shape index: {}]   ;;  %s484_s2 = inlined_call_operand.hbm [shape: f32[1,32], index: 2, kind: input, shape index: {}]   ;;  %s485_s3 = inlined_call_operand.hbm [shape: bf16[24,32], index: 3, kind: input, shape index: {}]   ;;  %s486_s4 = inlined_call_operand.hbm [shape: bf16[24,32], index: 4, kind: output, shape index: {}]  }
   0x1   :  { %10 = vsyncpa [#allocation6], 0 }
   0x2   :  { %11 = vsyncpa [#allocation9], 0 }
   0x3   :  { %12 = vsyncpa [#allocation4], 0  ;;  %s364_s15 = smov [#allocation5]   ;;  %s365_s17 = smov [#allocation2]  }
   0x4   :  { %s30_s16 = sshll.u32 %s364_s15, 4  ;;  %s18_s18 = sshll.u32 %s365_s17, 4  ;;  %s31_s16 = int_to_ptr.vmem [resolvable:$true] %s30_s16  ;;  %s396_s18 = int_to_ptr.vmem [resolvable:$true] %s18_s18 }
   0x5   :  { %s246_s21 = scalar_lea.hbm %s483_s1, 256 }
   0x6   :  { %p247_p0 = scmp.ne.s32.totalorder %s483_s1, %s246_s21  ;;  %p250_p1 = scmp.lt.u32.totalorder %s246_s21, %s483_s1 }
   0x8   :  { %p252_p2 = pnand %p250_p1, %p247_p0 }
   0xa   :  { %255 = shalt.err (!%p252_p2)
}
   0xb   :  { %s256_s26 = scalar_lea.vmem %s31_s16, 256  ;;  %p261_p4 = scmp.lt.s32.totalorder %s31_s16, %s31_s16 }
   0xc   :  { %p257_p3 = scmp.ne.s32.totalorder %s31_s16, %s256_s26  ;;  %p262_p5 = scmp.lt.s32.totalorder %s256_s26, %s256_s26 }
   0xe   :  { %p263_p6 = por %p262_p5, %p261_p4 }
  0x10   :  { %p264_p7 = pnand %p263_p6, %p257_p3 }
  0x12   :  { %267 = shalt.err (!%p264_p7)
}
  0x13   :  { %s366_s27 = smov 64   ;;  %s367_s28 = smov 4  }
  0x14   :  { %36 = dma.hbm_to_vmem [thread:$0]  %s483_s1, 256, %s31_s16, [#allocation6], %s366_s27, %s366_s27, %s367_s28  }
  0x15   :  { %s268_s7 = scalar_lea.hbm %s482_s0, 192 }
  0x16   :  { %p269_p8 = scmp.ne.s32.totalorder %s482_s0, %s268_s7  ;;  %p272_p9 = scmp.lt.u32.totalorder %s268_s7, %s482_s0 }
  0x18   :  { %p274_p10 = pnand %p272_p9, %p269_p8 }
  0x1a   :  { %277 = shalt.err (!%p274_p10)
}
  0x1b   :  { %s278_s12 = scalar_lea.vmem %s396_s18, 192  ;;  %p283_p12 = scmp.lt.s32.totalorder %s396_s18, %s396_s18 }
  0x1c   :  { %p279_p11 = scmp.ne.s32.totalorder %s396_s18, %s278_s12  ;;  %p284_p13 = scmp.lt.s32.totalorder %s278_s12, %s278_s12 }
  0x1e   :  { %p285_p0 = por %p284_p13, %p283_p12 }
  0x20   :  { %p286_p1 = pnand %p285_p0, %p279_p11 }
  0x22   :  { %289 = shalt.err (!%p286_p1)
}
  0x23   :  { %24 = dma.hbm_to_vmem [thread:$0]  %s482_s0, 192, %s396_s18, [#allocation3], %s366_s27, %s366_s27, %s367_s28  }
  0x24   :  { %s368_s14 = smov [#allocation7]   ;;  %s369_s16 = smov [#allocation8]  }
  0x25   :  { %s43_s15 = sshll.u32 %s368_s14, 4  ;;  %s52_s17 = sshll.u32 %s369_s16, 4  ;;  %s44_s15 = int_to_ptr.vmem [resolvable:$true] %s43_s15  ;;  %s433_s17 = int_to_ptr.vmem [resolvable:$true] %s52_s17 }
  0x26   :  { %s290_s21 = scalar_lea.hbm %s484_s2, 16 }
  0x27   :  { %p291_p2 = scmp.ne.s32.totalorder %s484_s2, %s290_s21  ;;  %p294_p3 = scmp.lt.u32.totalorder %s290_s21, %s484_s2 }
  0x29   :  { %p296_p4 = pnand %p294_p3, %p291_p2 }
  0x2b   :  { %299 = shalt.err (!%p296_p4)
}
  0x2c   :  { %s300_s0 = scalar_lea.vmem %s44_s15, 16  ;;  %s304_s18 = scalar_lea.vmem %s44_s15, 32 }
  0x2d   :  { %p301_p5 = scmp.ne.s32.totalorder %s44_s15, %s300_s0  ;;  %p305_p6 = scmp.lt.s32.totalorder %s44_s15, %s44_s15 }
  0x2e   :  { %p306_p7 = scmp.lt.s32.totalorder %s304_s18, %s300_s0 }
  0x30   :  { %p307_p8 = por %p306_p7, %p305_p6 }
  0x32   :  { %p308_p9 = pnand %p307_p8, %p301_p5 }
  0x34   :  { %311 = shalt.err (!%p308_p9)
}
  0x35   :  { %46 = dma.hbm_to_vmem [thread:$0]  %s484_s2, 16, %s44_s15, [#allocation6]  }
  0x36   :  { %s312_s6 = scalar_lea.hbm %s485_s3, 192 }
  0x37   :  { %p313_p10 = scmp.ne.s32.totalorder %s485_s3, %s312_s6  ;;  %p316_p11 = scmp.lt.u32.totalorder %s312_s6, %s485_s3 }
  0x39   :  { %p318_p12 = pnand %p316_p11, %p313_p10 }
  0x3b   :  { %321 = shalt.err (!%p318_p12)
}
  0x3c   :  { %s322_s11 = scalar_lea.vmem %s433_s17, 192  ;;  %p327_p0 = scmp.lt.s32.totalorder %s433_s17, %s433_s17 }
  0x3d   :  { %p323_p13 = scmp.ne.s32.totalorder %s433_s17, %s322_s11  ;;  %p328_p1 = scmp.lt.s32.totalorder %s322_s11, %s322_s11 }
  0x3f   :  { %p329_p2 = por %p328_p1, %p327_p0 }
  0x41   :  { %p330_p3 = pnand %p329_p2, %p323_p13 }
  0x43   :  { %333 = shalt.err (!%p330_p3)
}
  0x44   :  { %58 = dma.hbm_to_vmem [thread:$0]  %s485_s3, 192, %s433_s17, [#allocation9], %s366_s27, %s366_s27, %s367_s28  }
  0x45   :  { %356 = dma.done.wait [#allocation3], 192  }
  0x46   :  { %357 = vsyncadd [#allocation3], 4294967104 }
  0x47   :  { %358 = dma.done.wait [#allocation6], 272  }
  0x48   :  { %359 = vsyncadd [#allocation6], 4294967024 }
  0x49   :  { %360 = dma.done.wait [#allocation9], 192  }
  0x4a   :  { %361 = vsyncadd [#allocation9], 4294967104  ;;  %v242_v0 = vld [vmem:[#allocation5] sm:$0xff]   ;;  %v243_v1 = vld [vmem:[#allocation5 + $0x8] sm:$0xff]   ;;  %vm106_vm0 = vcmask 261120   ;;  %vm183_vm1 = vcmask 257024  }
  0x4b   :  { %227 = vmatprep.subr.bf16.mxu0 %v242_v0  ;;  %v244_v2 = vld [vmem:[#allocation2] sm:$0xff]   ;;  %v245_v3 = vld [vmem:[#allocation2 + $0x8] ss:$0 sps:$4 sm:$0xff]   ;;  %v206_v6 = vld [vmem:[#allocation7] ss:$0 sm:$0xff]  ;;  %s370_s3 = smov [#allocation10]  }
  0x4c   :  { %228 = vmatpush3.bf16.msra.mxu0 %v242_v0  ;;  %231 = vmatprep.mubr.msk.bf16.mxu0 %vm106_vm0, %v244_v2  ;;  %v163_v4 = vld [vmem:[#allocation8 + $0x8] sm:$0xf]  ;;  %v220_v5 = vld [vmem:[#allocation8] sm:$0xff]   ;;  %s192_s1 = sshll.u32 %s370_s3, 4  ;;  %s193_s1 = int_to_ptr.vmem [resolvable:$true] %s192_s1 }
  0x4d   :  { %229 = vmatprep.subr.bf16.mxu0 %v243_v1  ;;  %v166_v7 = vunpack.c.l.bf16 %v163_v4  ;;  %v221_v9 = vunpack.c.l.bf16 %v220_v5  ;;  %v222_v14 = vunpack.c.h.bf16 %v220_v5  ;;  %s334_s13 = scalar_lea.vmem %s193_s1, 192  ;;  %p339_p5 = scmp.lt.s32.totalorder %s193_s1, %s193_s1 }
  0x4e   :  { %p335_p4 = scmp.ne.s32.totalorder %s193_s1, %s334_s13  ;;  %p340_p6 = scmp.lt.s32.totalorder %s334_s13, %s334_s13 }
  0x50   :  { %230 = vmatpush3.bf16.msra.mxu0 %v243_v1  ;;  %p341_p7 = por %p340_p6, %p339_p5 }
  0x52   :  { %p342_p8 = pnand %p341_p7, %p335_p4 }
  0x53   :  { %232 = vmatmul.mubr.msk.bf16.vlgmr.msra.gmra.mrb[0].mxu0 %vm106_vm0, %v245_v3 }
 0x126   :  { %v233_v8 = vpop.f32.mrb[0].mxu0 }
 0x127   :  { %v156_v10 = vadd.f32 %v233_v8, %v206_v6  ;;  %v147_v11 = vpop.f32.mrb[1].mxu0 }
 0x128   :  { %v148_v12 = vadd.f32 %v206_v6, %v147_v11  ;;  %v234_v13 = vpop.f32.mrb[2].mxu0 }
 0x129   :  { %v169_v15 = vadd.f32 %v166_v7, %v156_v10  ;;  %v150_v16 = vpop.f32.mrb[3].mxu0 }
 0x12a   :  { %v167_v17 = vadd.f32 %v221_v9, %v148_v12  ;;  %v151_v18 = vadd.f32 %v206_v6, %v150_v16 }
 0x12b   :  { %v218_v19 = vpack.c.bf16 %v169_v15, %v169_v15 }
 0x12c   :  { %v216_v20 = vpack.c.bf16 %v167_v17, %v167_v17  ;;  %v168_v21 = vadd.f32 %v222_v14, %v151_v18 }
 0x12d   :  { %186 = vst.msk [vmem:[#allocation10 + $0x8] sm:$0xf] %vm183_vm1, %v218_v19 }
 0x12e   :  { %v217_v22 = vpack.c.bf16 %v168_v21, %v168_v21  ;;  %184 = vst.msk [vmem:[#allocation10] sm:$0xf] %vm183_vm1, %v216_v20 }
 0x130   :  { %185 = vst.msk [vmem:[#allocation10 + $0x4] sm:$0xf] %vm183_vm1, %v217_v22 }
 0x131   :  { %345 = shalt.err (!%p342_p8)
}
 0x132   :  { %s346_s16 = scalar_lea.hbm %s486_s4, 192 }
 0x133   :  { %p347_p9 = scmp.ne.s32.totalorder %s486_s4, %s346_s16  ;;  %p350_p10 = scmp.lt.u32.totalorder %s346_s16, %s486_s4 }
 0x135   :  { %p352_p11 = pnand %p350_p10, %p347_p9 }
 0x137   :  { %355 = shalt.err (!%p352_p11)
}
 0x138   :  { %198 = dma.vmem_to_hbm [thread:$0]  %s193_s1, 192, %s486_s4, [#allocation4], %s366_s27, %s366_s27, %s367_s28  }
 0x139   :  { %362 = dma.done.wait [#allocation4], 192  }
 0x13a   :  { %363 = vsyncadd [#allocation4], 4294967104 }
 0x13b   :  { %202 = vsyncpa [#allocation3], 1 }
 0x13c   :  { %203 = vsyncpa [#allocation6], 1 }
 0x13d   :  { %204 = vsyncpa [#allocation9], 1 }
 0x13e   :  { %205 = vsyncpa [#allocation4], 1 }

// kernel: clip_forward.71
= control target key start
LH: loop header
LB: loop body
LE: loop exit
PB: predicated region body
PF: predicated region fallthrough
CT: control target
= control target key end

     0   :  { %8 = vsyncpa [#allocation3], 0  ;;  %s423_s0 = inlined_call_operand.hbm [shape: bf16[24,32], index: 0, kind: input, shape index: {}]   ;;  %s424_s1 = inlined_call_operand.hbm [shape: bf16[32,128], index: 1, kind: input, shape index: {}]   ;;  %s425_s2 = inlined_call_operand.hbm [shape: f32[1,128], index: 2, kind: input, shape index: {}]   ;;  %s426_s3 = inlined_call_operand.hbm [shape: bf16[24,128], index: 3, kind: output, shape index: {}]  }
   0x1   :  { %9 = vsyncpa [#allocation6], 0 }
   0x2   :  { %10 = vsyncpa [#allocation4], 0  ;;  %s333_s12 = smov [#allocation5]   ;;  %s334_s14 = smov [#allocation2]  }
   0x3   :  { %s28_s13 = sshll.u32 %s333_s12, 4  ;;  %s16_s15 = sshll.u32 %s334_s14, 4  ;;  %s29_s13 = int_to_ptr.vmem [resolvable:$true] %s28_s13  ;;  %s359_s15 = int_to_ptr.vmem [resolvable:$true] %s16_s15 }
   0x4   :  { %s239_s18 = scalar_lea.hbm %s424_s1, 256 }
   0x5   :  { %p240_p0 = scmp.ne.s32.totalorder %s424_s1, %s239_s18  ;;  %p243_p1 = scmp.lt.u32.totalorder %s239_s18, %s424_s1 }
   0x7   :  { %p245_p2 = pnand %p243_p1, %p240_p0 }
   0x9   :  { %248 = shalt.err (!%p245_p2)
}
   0xa   :  { %s249_s23 = scalar_lea.vmem %s29_s13, 256  ;;  %p254_p4 = scmp.lt.s32.totalorder %s29_s13, %s29_s13 }
   0xb   :  { %p250_p3 = scmp.ne.s32.totalorder %s29_s13, %s249_s23  ;;  %p255_p5 = scmp.lt.s32.totalorder %s249_s23, %s249_s23 }
   0xd   :  { %p256_p6 = por %p255_p5, %p254_p4 }
   0xf   :  { %p257_p7 = pnand %p256_p6, %p250_p3 }
  0x11   :  { %260 = shalt.err (!%p257_p7)
}
  0x12   :  { %s335_s24 = smov 64   ;;  %s336_s25 = smov 4  }
  0x13   :  { %34 = dma.hbm_to_vmem [thread:$0]  %s424_s1, 256, %s29_s13, [#allocation6], %s335_s24, %s335_s24, %s336_s25  }
  0x14   :  { %s261_s30 = scalar_lea.hbm %s423_s0, 192 }
  0x15   :  { %p262_p8 = scmp.ne.s32.totalorder %s423_s0, %s261_s30  ;;  %p265_p9 = scmp.lt.u32.totalorder %s261_s30, %s423_s0 }
  0x17   :  { %p267_p10 = pnand %p265_p9, %p262_p8 }
  0x19   :  { %270 = shalt.err (!%p267_p10)
}
  0x1a   :  { %s271_s8 = scalar_lea.vmem %s359_s15, 192  ;;  %p276_p12 = scmp.lt.s32.totalorder %s359_s15, %s359_s15 }
  0x1b   :  { %p272_p11 = scmp.ne.s32.totalorder %s359_s15, %s271_s8  ;;  %p277_p13 = scmp.lt.s32.totalorder %s271_s8, %s271_s8 }
  0x1d   :  { %p278_p0 = por %p277_p13, %p276_p12 }
  0x1f   :  { %p279_p1 = pnand %p278_p0, %p272_p11 }
  0x21   :  { %282 = shalt.err (!%p279_p1)
}
  0x22   :  { %22 = dma.hbm_to_vmem [thread:$0]  %s423_s0, 192, %s359_s15, [#allocation3], %s335_s24, %s335_s24, %s336_s25  }
  0x23   :  { %s337_s10 = smov [#allocation7]   ;;  %s283_s14 = scalar_lea.hbm %s425_s2, 16 }
  0x24   :  { %s41_s11 = sshll.u32 %s337_s10, 4  ;;  %p284_p2 = scmp.ne.s32.totalorder %s425_s2, %s283_s14  ;;  %s42_s11 = int_to_ptr.vmem [resolvable:$true] %s41_s11 }
  0x25   :  { %p287_p3 = scmp.lt.u32.totalorder %s283_s14, %s425_s2 }
  0x27   :  { %p289_p4 = pnand %p287_p3, %p284_p2 }
  0x29   :  { %292 = shalt.err (!%p289_p4)
}
  0x2a   :  { %s293_s20 = scalar_lea.vmem %s42_s11, 16  ;;  %s297_s0 = scalar_lea.vmem %s42_s11, 32 }
  0x2b   :  { %p294_p5 = scmp.ne.s32.totalorder %s42_s11, %s293_s20  ;;  %p298_p6 = scmp.lt.s32.totalorder %s42_s11, %s42_s11 }
  0x2c   :  { %p299_p7 = scmp.lt.s32.totalorder %s297_s0, %s293_s20 }
  0x2e   :  { %p300_p8 = por %p299_p7, %p298_p6 }
  0x30   :  { %p301_p9 = pnand %p300_p8, %p294_p5 }
  0x32   :  { %304 = shalt.err (!%p301_p9)
}
  0x33   :  { %44 = dma.hbm_to_vmem [thread:$0]  %s425_s2, 16, %s42_s11, [#allocation6]  }
  0x34   :  { %327 = dma.done.wait [#allocation3], 192  }
  0x35   :  { %328 = vsyncadd [#allocation3], 4294967104 }
  0x36   :  { %329 = dma.done.wait [#allocation6], 272  }
  0x37   :  { %330 = vsyncadd [#allocation6], 4294967024  ;;  %v229_v0 = vld [vmem:[#allocation5] sm:$0xff]   ;;  %v230_v1 = vld [vmem:[#allocation5 + $0x8] sm:$0xff]   ;;  %vm89_vm0 = vcmask 261120   ;;  %s338_s2 = smov [#allocation8]  }
  0x38   :  { %215 = vmatprep.subr.bf16.mxu0 %v229_v0  ;;  %v231_v2 = vld [vmem:[#allocation2] sm:$0xff]   ;;  %v232_v3 = vld [vmem:[#allocation2 + $0x8] ss:$0 sps:$4 sm:$0xff]   ;;  %v193_v4 = vld [vmem:[#allocation7] ss:$0 sm:$0xff]  ;;  %s180_s22 = sshll.u32 %s338_s2, 4  ;;  %s181_s22 = int_to_ptr.vmem [resolvable:$true] %s180_s22 }
  0x39   :  { %216 = vmatpush3.bf16.msra.mxu0 %v229_v0  ;;  %219 = vmatprep.mubr.msk.bf16.mxu0 %vm89_vm0, %v231_v2  ;;  %s305_s23 = scalar_lea.vmem %s181_s22, 192  ;;  %p310_p11 = scmp.lt.s32.totalorder %s181_s22, %s181_s22 }
  0x3a   :  { %217 = vmatprep.subr.bf16.mxu0 %v230_v1  ;;  %p306_p10 = scmp.ne.s32.totalorder %s181_s22, %s305_s23  ;;  %p311_p12 = scmp.lt.s32.totalorder %s305_s23, %s305_s23 }
  0x3c   :  { %p312_p13 = por %p311_p12, %p310_p11 }
  0x3d   :  { %218 = vmatpush3.bf16.msra.mxu0 %v230_v1 }
  0x3e   :  { %p313_p0 = pnand %p312_p13, %p306_p10 }
  0x40   :  { %220 = vmatmul.mubr.msk.bf16.vlgmr.msra.gmra.mrb[0].mxu0 %vm89_vm0, %v232_v3 }
 0x113   :  { %v221_v5 = vpop.f32.mrb[0].mxu0 }
 0x114   :  { %v139_v6 = vadd.f32 %v221_v5, %v193_v4  ;;  %v130_v7 = vpop.f32.mrb[1].mxu0 }
 0x115   :  { %v131_v8 = vadd.f32 %v193_v4, %v130_v7  ;;  %v222_v9 = vpop.f32.mrb[2].mxu0 }
 0x116   :  { %v149_v10 = vmul.f32 0.70710677, %v139_v6  ;;  %v133_v11 = vpop.f32.mrb[3].mxu0  ;;  %v146_v17 = vmul.f32 0.5, %v139_v6 }
 0x117   :  { %v147_v12 = vmul.f32 0.70710677, %v131_v8  ;;  %v134_v13 = vadd.f32 %v193_v4, %v133_v11  ;;  %v144_v22 = vmul.f32 0.5, %v131_v8 }
 0x118   :  { %233 = verf.f32 %v149_v10 }
 0x119   :  { %235 = verf.f32 %v147_v12  ;;  %v148_v14 = vmul.f32 0.70710677, %v134_v13  ;;  %v145_v23 = vmul.f32 0.5, %v134_v13 }
 0x11b   :  { %237 = verf.f32 %v148_v14 }
 0x122   :  { %v234_v15 = vpop.eup %233 }
 0x123   :  { %v236_v16 = vpop.eup %235  ;;  %v155_v18 = vadd.f32 1.0, %v234_v15 }
 0x124   :  { %v153_v19 = vadd.f32 1.0, %v236_v16 }
 0x125   :  { %v238_v20 = vpop.eup %237  ;;  %v158_v21 = vmul.f32 %v155_v18, %v146_v17 }
 0x126   :  { %v154_v24 = vadd.f32 1.0, %v238_v20  ;;  %v156_v26 = vmul.f32 %v153_v19, %v144_v22 }
 0x127   :  { %v205_v25 = vpack.c.bf16 %v158_v21, %v158_v21 }
 0x128   :  { %v157_v27 = vmul.f32 %v154_v24, %v145_v23 }
 0x129   :  { %174 = vst [vmem:[#allocation8 + $0x8] sm:$0xf] %v205_v25 }
 0x12a   :  { %v209_v28 = vpack.c.bf16 %v157_v27, %v156_v26 }
 0x12c   :  { %210 = vst [vmem:[#allocation8] sm:$0xff] %v209_v28  }
 0x12d   :  { %316 = shalt.err (!%p313_p0)
}
 0x12e   :  { %s317_s28 = scalar_lea.hbm %s426_s3, 192 }
 0x12f   :  { %p318_p1 = scmp.ne.s32.totalorder %s426_s3, %s317_s28  ;;  %p321_p2 = scmp.lt.u32.totalorder %s317_s28, %s426_s3 }
 0x131   :  { %p323_p3 = pnand %p321_p2, %p318_p1 }
 0x133   :  { %326 = shalt.err (!%p323_p3)
}
 0x134   :  { %186 = dma.vmem_to_hbm [thread:$0]  %s181_s22, 192, %s426_s3, [#allocation4], %s335_s24, %s335_s24, %s336_s25  }
 0x135   :  { %331 = dma.done.wait [#allocation4], 192  }
 0x136   :  { %332 = vsyncadd [#allocation4], 4294967104 }
 0x137   :  { %190 = vsyncpa [#allocation3], 1 }
 0x138   :  { %191 = vsyncpa [#allocation6], 1 }
 0x139   :  { %192 = vsyncpa [#allocation4], 1 }

// kernel: clip_forward.72
= control target key start
LH: loop header
LB: loop body
LE: loop exit
PB: predicated region body
PF: predicated region fallthrough
CT: control target
= control target key end

     0   :  { %9 = vsyncpa [#allocation3], 0  ;;  %s553_s0 = inlined_call_operand.hbm [shape: bf16[24,128], index: 0, kind: input, shape index: {}]   ;;  %s554_s1 = inlined_call_operand.hbm [shape: bf16[128,32], index: 1, kind: input, shape index: {}]   ;;  %s555_s2 = inlined_call_operand.hbm [shape: f32[1,32], index: 2, kind: input, shape index: {}]   ;;  %s556_s3 = inlined_call_operand.hbm [shape: bf16[24,32], index: 3, kind: input, shape index: {}]   ;;  %s557_s4 = inlined_call_operand.hbm [shape: bf16[24,32], index: 4, kind: output, shape index: {}]  }
   0x1   :  { %10 = vsyncpa [#allocation6], 0 }
   0x2   :  { %11 = vsyncpa [#allocation9], 0 }
   0x3   :  { %12 = vsyncpa [#allocation4], 0  ;;  %s435_s15 = smov [#allocation5]   ;;  %s436_s17 = smov [#allocation2]  }
   0x4   :  { %s30_s16 = sshll.u32 %s435_s15, 4  ;;  %s18_s18 = sshll.u32 %s436_s17, 4  ;;  %s31_s16 = int_to_ptr.vmem [resolvable:$true] %s30_s16  ;;  %s467_s18 = int_to_ptr.vmem [resolvable:$true] %s18_s18 }
   0x5   :  { %s317_s21 = scalar_lea.hbm %s554_s1, 1024 }
   0x6   :  { %p318_p0 = scmp.ne.s32.totalorder %s554_s1, %s317_s21  ;;  %p321_p1 = scmp.lt.u32.totalorder %s317_s21, %s554_s1 }
   0x8   :  { %p323_p2 = pnand %p321_p1, %p318_p0 }
   0xa   :  { %326 = shalt.err (!%p323_p2)
}
   0xb   :  { %s327_s26 = scalar_lea.vmem %s31_s16, 1024  ;;  %p332_p4 = scmp.lt.s32.totalorder %s31_s16, %s31_s16 }
   0xc   :  { %p328_p3 = scmp.ne.s32.totalorder %s31_s16, %s327_s26  ;;  %p333_p5 = scmp.lt.s32.totalorder %s327_s26, %s327_s26 }
   0xe   :  { %p334_p6 = por %p333_p5, %p332_p4 }
  0x10   :  { %p335_p7 = pnand %p334_p6, %p328_p3 }
  0x12   :  { %338 = shalt.err (!%p335_p7)
}
  0x13   :  { %s437_s27 = smov 64   ;;  %s438_s28 = smov 4  }
  0x14   :  { %36 = dma.hbm_to_vmem [thread:$0]  %s554_s1, 1024, %s31_s16, [#allocation6], %s437_s27, %s437_s27, %s438_s28  }
  0x15   :  { %s339_s7 = scalar_lea.hbm %s553_s0, 192 }
  0x16   :  { %p340_p8 = scmp.ne.s32.totalorder %s553_s0, %s339_s7  ;;  %p343_p9 = scmp.lt.u32.totalorder %s339_s7, %s553_s0 }
  0x18   :  { %p345_p10 = pnand %p343_p9, %p340_p8 }
  0x1a   :  { %348 = shalt.err (!%p345_p10)
}
  0x1b   :  { %s349_s12 = scalar_lea.vmem %s467_s18, 192  ;;  %p354_p12 = scmp.lt.s32.totalorder %s467_s18, %s467_s18 }
  0x1c   :  { %p350_p11 = scmp.ne.s32.totalorder %s467_s18, %s349_s12  ;;  %p355_p13 = scmp.lt.s32.totalorder %s349_s12, %s349_s12 }
  0x1e   :  { %p356_p0 = por %p355_p13, %p354_p12 }
  0x20   :  { %p357_p1 = pnand %p356_p0, %p350_p11 }
  0x22   :  { %360 = shalt.err (!%p357_p1)
}
  0x23   :  { %24 = dma.hbm_to_vmem [thread:$0]  %s553_s0, 192, %s467_s18, [#allocation3], %s437_s27, %s437_s27, %s438_s28  }
  0x24   :  { %s439_s14 = smov [#allocation7]   ;;  %s440_s16 = smov [#allocation8]  }
  0x25   :  { %s43_s15 = sshll.u32 %s439_s14, 4  ;;  %s52_s17 = sshll.u32 %s440_s16, 4  ;;  %s44_s15 = int_to_ptr.vmem [resolvable:$true] %s43_s15  ;;  %s504_s17 = int_to_ptr.vmem [resolvable:$true] %s52_s17 }
  0x26   :  { %s361_s21 = scalar_lea.hbm %s555_s2, 16 }
  0x27   :  { %p362_p2 = scmp.ne.s32.totalorder %s555_s2, %s361_s21  ;;  %p365_p3 = scmp.lt.u32.totalorder %s361_s21, %s555_s2 }
  0x29   :  { %p367_p4 = pnand %p365_p3, %p362_p2 }
  0x2b   :  { %370 = shalt.err (!%p367_p4)
}
  0x2c   :  { %s371_s0 = scalar_lea.vmem %s44_s15, 16  ;;  %s375_s18 = scalar_lea.vmem %s44_s15, 32 }
  0x2d   :  { %p372_p5 = scmp.ne.s32.totalorder %s44_s15, %s371_s0  ;;  %p376_p6 = scmp.lt.s32.totalorder %s44_s15, %s44_s15 }
  0x2e   :  { %p377_p7 = scmp.lt.s32.totalorder %s375_s18, %s371_s0 }
  0x30   :  { %p378_p8 = por %p377_p7, %p376_p6 }
  0x32   :  { %p379_p9 = pnand %p378_p8, %p372_p5 }
  0x34   :  { %382 = shalt.err (!%p379_p9)
}
  0x35   :  { %46 = dma.hbm_to_vmem [thread:$0]  %s555_s2, 16, %s44_s15, [#allocation6]  }
  0x36   :  { %s383_s6 = scalar_lea.hbm %s556_s3, 192 }
  0x37   :  { %p384_p10 = scmp.ne.s32.totalorder %s556_s3, %s383_s6  ;;  %p387_p11 = scmp.lt.u32.totalorder %s383_s6, %s556_s3 }
  0x39   :  { %p389_p12 = pnand %p387_p11, %p384_p10 }
  0x3b   :  { %392 = shalt.err (!%p389_p12)
}
  0x3c   :  { %s393_s11 = scalar_lea.vmem %s504_s17, 192  ;;  %p398_p0 = scmp.lt.s32.totalorder %s504_s17, %s504_s17 }
  0x3d   :  { %p394_p13 = scmp.ne.s32.totalorder %s504_s17, %s393_s11  ;;  %p399_p1 = scmp.lt.s32.totalorder %s393_s11, %s393_s11 }
  0x3f   :  { %p400_p2 = por %p399_p1, %p398_p0 }
  0x41   :  { %p401_p3 = pnand %p400_p2, %p394_p13 }
  0x43   :  { %404 = shalt.err (!%p401_p3)
}
  0x44   :  { %58 = dma.hbm_to_vmem [thread:$0]  %s556_s3, 192, %s504_s17, [#allocation9], %s437_s27, %s437_s27, %s438_s28  }
  0x45   :  { %427 = dma.done.wait [#allocation3], 192  }
  0x46   :  { %428 = vsyncadd [#allocation3], 4294967104 }
  0x47   :  { %429 = dma.done.wait [#allocation6], 1040  }
  0x48   :  { %430 = vsyncadd [#allocation6], 4294966256 }
  0x49   :  { %431 = dma.done.wait [#allocation9], 192  }
  0x4a   :  { %432 = vsyncadd [#allocation9], 4294967104  ;;  %v307_v0 = vld [vmem:[#allocation5] sm:$0xff]   ;;  %v308_v1 = vld [vmem:[#allocation5 + $0x8] sm:$0xff]   ;;  %vm226_vm0 = vcmask 257024   ;;  %s441_s3 = smov [#allocation10]  }
  0x4b   :  { %280 = vmatprep.subr.bf16.mxu0 %v307_v0  ;;  %v309_v2 = vld [vmem:[#allocation5 + $0x10] sm:$0xff]   ;;  %v310_v3 = vld [vmem:[#allocation5 + $0x18] sm:$0xff]   ;;  %v311_v5 = vld [vmem:[#allocation5 + $0x20] sm:$0xff]   ;;  %s235_s1 = sshll.u32 %s441_s3, 4  ;;  %s236_s1 = int_to_ptr.vmem [resolvable:$true] %s235_s1 }
  0x4c   :  { %281 = vmatpush3.bf16.msra.mxu0 %v307_v0  ;;  %v315_v4 = vld [vmem:[#allocation2] sm:$0xff]   ;;  %v312_v6 = vld [vmem:[#allocation5 + $0x28] sm:$0xff]   ;;  %v316_v9 = vld [vmem:[#allocation2 + $0x8] ss:$0 sps:$4 sm:$0xff]   ;;  %s405_s13 = scalar_lea.vmem %s236_s1, 192  ;;  %p410_p5 = scmp.lt.s32.totalorder %s236_s1, %s236_s1 }
  0x4d   :  { %282 = vmatprep.subr.bf16.mxu0 %v308_v1  ;;  %296 = vmatprep.mubr.bf16.mxu0 %v315_v4  ;;  %v313_v7 = vld [vmem:[#allocation5 + $0x30] sm:$0xff]   ;;  %v314_v8 = vld [vmem:[#allocation5 + $0x38] sm:$0xff]   ;;  %v206_v10 = vld [vmem:[#allocation8 + $0x8] sm:$0xf]  ;;  %p406_p4 = scmp.ne.s32.totalorder %s236_s1, %s405_s13  ;;  %p411_p6 = scmp.lt.s32.totalorder %s405_s13, %s405_s13 }
  0x4e   :  { %v267_v11 = vld [vmem:[#allocation8] sm:$0xff]   ;;  %v249_v12 = vld [vmem:[#allocation7] ss:$0 sm:$0xff]  ;;  %v209_v13 = vunpack.c.l.bf16 %v206_v10 }
  0x4f   :  { %v268_v15 = vunpack.c.l.bf16 %v267_v11  ;;  %v269_v20 = vunpack.c.h.bf16 %v267_v11  ;;  %p412_p7 = por %p411_p6, %p410_p5 }
  0x50   :  { %283 = vmatpush3.bf16.msra.mxu0 %v308_v1 }
  0x51   :  { %284 = vmatprep.subr.bf16.mxu0 %v309_v2  ;;  %p413_p8 = pnand %p412_p7, %p406_p4 }
  0x54   :  { %285 = vmatpush3.bf16.msra.mxu0 %v309_v2 }
  0x55   :  { %286 = vmatprep.subr.bf16.mxu0 %v310_v3 }
  0x58   :  { %287 = vmatpush3.bf16.msra.mxu0 %v310_v3 }
  0x59   :  { %288 = vmatprep.subr.bf16.mxu0 %v311_v5 }
  0x5c   :  { %289 = vmatpush3.bf16.msra.mxu0 %v311_v5 }
  0x5d   :  { %290 = vmatprep.subr.bf16.mxu0 %v312_v6 }
  0x60   :  { %291 = vmatpush3.bf16.msra.mxu0 %v312_v6 }
  0x61   :  { %292 = vmatprep.subr.bf16.mxu0 %v313_v7 }
  0x64   :  { %293 = vmatpush3.bf16.msra.mxu0 %v313_v7 }
  0x65   :  { %294 = vmatprep.subr.bf16.mxu0 %v314_v8 }
  0x68   :  { %295 = vmatpush3.bf16.msra.mxu0 %v314_v8 }
  0x6b   :  { %297 = vmatmul.mubr.bf16.vlgmr.msra.gmra.mrb[0].mxu0 %v316_v9 }
 0x13e   :  { %v298_v14 = vpop.f32.mrb[0].mxu0 }
 0x13f   :  { %v199_v16 = vadd.f32 %v298_v14, %v249_v12  ;;  %v190_v17 = vpop.f32.mrb[1].mxu0 }
 0x140   :  { %v191_v18 = vadd.f32 %v249_v12, %v190_v17  ;;  %v299_v19 = vpop.f32.mrb[2].mxu0 }
 0x141   :  { %v212_v21 = vadd.f32 %v209_v13, %v199_v16  ;;  %v193_v22 = vpop.f32.mrb[3].mxu0 }
 0x142   :  { %v210_v23 = vadd.f32 %v268_v15, %v191_v18  ;;  %v194_v24 = vadd.f32 %v249_v12, %v193_v22 }
 0x143   :  { %v265_v25 = vpack.c.bf16 %v212_v21, %v212_v21 }
 0x144   :  { %v263_v26 = vpack.c.bf16 %v210_v23, %v210_v23  ;;  %v211_v27 = vadd.f32 %v269_v20, %v194_v24 }
 0x145   :  { %229 = vst.msk [vmem:[#allocation10 + $0x8] sm:$0xf] %vm226_vm0, %v265_v25 }
 0x146   :  { %v264_v28 = vpack.c.bf16 %v211_v27, %v211_v27  ;;  %227 = vst.msk [vmem:[#allocation10] sm:$0xf] %vm226_vm0, %v263_v26 }
 0x148   :  { %228 = vst.msk [vmem:[#allocation10 + $0x4] sm:$0xf] %vm226_vm0, %v264_v28 }
 0x149   :  { %416 = shalt.err (!%p413_p8)
}
 0x14a   :  { %s417_s16 = scalar_lea.hbm %s557_s4, 192 }
 0x14b   :  { %p418_p9 = scmp.ne.s32.totalorder %s557_s4, %s417_s16  ;;  %p421_p10 = scmp.lt.u32.totalorder %s417_s16, %s557_s4 }
 0x14d   :  { %p423_p11 = pnand %p421_p10, %p418_p9 }
 0x14f   :  { %426 = shalt.err (!%p423_p11)
}
 0x150   :  { %241 = dma.vmem_to_hbm [thread:$0]  %s236_s1, 192, %s557_s4, [#allocation4], %s437_s27, %s437_s27, %s438_s28  }
 0x151   :  { %433 = dma.done.wait [#allocation4], 192  }
 0x152   :  { %434 = vsyncadd [#allocation4], 4294967104 }
 0x153   :  { %245 = vsyncpa [#allocation3], 1 }
 0x154   :  { %246 = vsyncpa [#allocation6], 1 }
 0x155   :  { %247 = vsyncpa [#allocation9], 1 }
 0x156   :  { %248 = vsyncpa [#allocation4], 1 }

// kernel: clip_forward.68
= control target key start
LH: loop header
LB: loop body
LE: loop exit
PB: predicated region body
PF: predicated region fallthrough
CT: control target
= control target key end

     0   :  { %s2890_s0 = inlined_call_operand.hbm [shape: bf16[40,8,8], index: 0, kind: input, shape index: {}]   ;;  %s2891_s1 = inlined_call_operand.hbm [shape: bf16[40,8,8], index: 1, kind: input, shape index: {}]   ;;  %s2892_s2 = inlined_call_operand.hbm [shape: bf16[40,8,8], index: 2, kind: input, shape index: {}]   ;;  %s2893_s3 = inlined_call_operand.hbm [shape: f32[1,1,8], index: 3, kind: input, shape index: {}]   ;;  %s2894_s4 = inlined_call_operand.hbm [shape: bf16[40,8,8], index: 4, kind: output, shape index: {}]  }
   0x1   :  { %2909 = sst [smem:[#allocation22_spill]] %s2890_s0 }
   0x2   :  { %2910 = sst [smem:[#allocation23_spill]] %s2891_s1 }
   0x3   :  { %9 = vsyncpa [#allocation6], 0 }
   0x4   :  { %11 = vsyncpa [#allocation6 + $0x1], 0 }
   0x5   :  { %12 = vsyncpa [#allocation9], 0 }
   0x6   :  { %14 = vsyncpa [#allocation9 + $0x1], 0 }
   0x7   :  { %15 = vsyncpa [#allocation12], 0 }
   0x8   :  { %16 = vsyncpa [#allocation7], 0 }
   0x9   :  { %18 = vsyncpa [#allocation7 + $0x1], 0  ;;  %s2237_s15 = smov 0   ;;  %s2239_s16 = smov 0  }
   0xa   :  { %s2241_s17 = smov 0   ;;  %s2243_s18 = smov 0  }
   0xb   :  { %s2245_s19 = smov 0   ;;  %s2247_s20 = smov 0  }
   0xc LB: > { %2911 = sst [smem:[#allocation18_spill]] %s2185_s17  ;;  %s43_s21 = sadd.s32 1, %s2193_s19  ;;  %s2197_s20 = sphi %s2247_s20, %s24_s20   ;;  %s2193_s19 = sphi %s2245_s19, %s2938_s19   ;;  %s2189_s18 = sphi %s2243_s18, %s2937_s18   ;;  %s2185_s17 = sphi %s2241_s17, %s2936_s17   ;;  %s2181_s16 = sphi %s2239_s16, %s2940_s16   ;;  %s2177_s15 = sphi %s2237_s15, %s2939_s15  }
   0xd   : > { %2912 = sst [smem:[#allocation19_spill]] %s2193_s19  ;;  %s52_s22 = sadd.s32 1, %s2185_s17 }
   0xe   : > { %p45_p0 = scmp.ge.s32.totalorder %s43_s21, 5  ;;  %p2895_p1 = scmp.ne.s32.totalorder %s2185_s17, %s2181_s16 }
   0xf   : > { %p60_p2 = scmp.eq.s32.totalorder %s2197_s20, 0  ;;  %p1879_p4 = scmp.lt.s32.totalorder %s2197_s20, 5 }
  0x10   : > { %s2942_s21 = smov (%p45_p0, %s43_s21), 0  ;;  %s2900_s24 = sand.u32 1, %s2185_s17  }
  0x11   : > { %2913 = sst [smem:[#allocation20_spill]] %s2942_s21  ;;  %p61_p3 = por %p60_p2, %p2895_p1 }
  0x12   : > { %s47_s23 = ssub.s32 %s2193_s19, %s2942_s21  ;;  %s2283_s25 = sshll.u32 %s2900_s24, 5 }
  0x13   : > { %p50_p5 = scmp.eq.s32.totalorder %s47_s23, 0  ;;  %s2286_s26 = sshll.u32 %s2193_s19, 9 }
  0x14   : > { %p2288_p6 = pnand %p1879_p4, %p61_p3  ;;  %s234_s29 = sand.u32 1, %s2197_s20  }
  0x15   : > { %s2293_s28 = scalar_select %p50_p5, %s2185_s17, %s52_s22  }
  0x16   : > { %s2916_s1 = sld [smem:[#allocation23_spill]]  ;;  %s238_s7 = scalar_lea.vmem [#allocation8], %s2283_s25 }
  0x17   : > { %2915 = sst [smem:[#allocation21_spill]] %s2293_s28  ;;  %s246_s8 = sshll.u32 %s238_s7, 4  ;;  %s2303_s8 = int_to_ptr.vmem [resolvable:$true] %s246_s8 }
  0x18   : > { %s2305_s9 = scalar_lea.sflag [#allocation9], %s234_s29  ;;  %p2311_p8 = pneg %p2288_p6 }
  0x1c   : > { %s2300_s6 = scalar_lea.hbm %s2916_s1, %s2286_s26  ;;  %s1994_s14 = scalar_lea.hbm %s2916_s1, 2560 }
  0x1d   : > { %s1989_s10 = scalar_lea.hbm %s2300_s6, 512  ;;  %p1995_p11 = scmp.lt.u32.totalorder %s2300_s6, %s2916_s1 }
  0x1e   : > { %p1990_p7 = scmp.ne.s32.totalorder %s2300_s6, %s1989_s10  ;;  %p1996_p12 = scmp.lt.u32.totalorder %s1994_s14, %s1989_s10 }
  0x1f   : > { %p1998_p0 = scmp.lt.u32.totalorder %s1989_s10, %s2300_s6 }
  0x20   : > { %p1992_p9 = pnand %p2311_p8, %p1990_p7  ;;  %p1997_p13 = por %p1996_p12, %p1995_p11 }
  0x22   : > { %p1993_p10 = pneg %p1992_p9  ;;  %p1999_p2 = por %p1998_p0, %p1997_p13 }
  0x24   : > { %p2000_p3 = pnand %p1999_p2, %p1993_p10 }
  0x26   : > { %2003 = shalt.err (!%p2000_p3)
}
  0x27   : > { %s2004_s29 = scalar_lea.vmem %s2303_s8, 512  ;;  %s2199_s30 = smov [#allocation8]  }
  0x28   : > { %p2005_p4 = scmp.ne.s32.totalorder %s2303_s8, %s2004_s29  ;;  %s2009_s5 = sshll.u32 %s2199_s30, 4  ;;  %s2010_s5 = int_to_ptr.vmem [resolvable:$false] %s2009_s5 }
  0x29   : > { %s2011_s7 = scalar_lea.vmem %s2010_s5, 1024  ;;  %p2012_p9 = scmp.lt.s32.totalorder %s2303_s8, %s2010_s5 }
  0x2a   : > { %p2007_p5 = pnand %p2005_p4, %p2311_p8  ;;  %p2013_p1 = scmp.lt.s32.totalorder %s2011_s7, %s2004_s29 }
  0x2c   : > { %p2008_p7 = pneg %p2007_p5  ;;  %p2014_p11 = por %p2013_p1, %p2012_p9 }
  0x2e   : > { %p2015_p12 = pnand %p2014_p11, %p2008_p7 }
  0x30   : > { %2018 = shalt.err (!%p2015_p12)
}
  0x31   : > { %s2896_s10 = smov 64   ;;  %s2898_s12 = smov 4  }
  0x32   : > { %1870 = dma.hbm_to_vmem [thread:$0]  (!%p2288_p6), %s2300_s6, 512, %s2303_s8, %s2305_s9, %s2896_s10, %s2896_s10, %s2898_s12  }
  0x33   : > { %s2339_s13 = sadd.s32 4294967295, %s2197_s20   ;;  %s1675_s14 = sadd.s32 4294967294, %s2197_s20  }
  0x34   : > { %p65_p1 = scmp.ne.s32.totalorder %s2181_s16, %s2177_s15  ;;  %p2903_p10 = scmp.eq.s32.totalorder %s2339_s13, 0 }
  0x35   : > { %p173_p13 = scmp.eq.s32.totalorder %s2339_s13, 4  ;;  %p179_p0 = scmp.eq.s32.totalorder %s1675_s14, 4 }
  0x36   : > { %p1676_p2 = scmp.ge.s32.totalorder %s2197_s20, 1  ;;  %p2349_p3 = por %p2903_p10, %p65_p1 }
  0x37   : > { %p2919_p4 = scmp.ne.s32.totalorder %s2185_s17, %s2181_s16  ;;  %p2360_p7 = por %p179_p0, %p65_p1 }
  0x38   : > { %s2918_s22 = scalar_select %p2349_p3, 1, 0 }
  0x39   : > { %p2356_p5 = por %p173_p13, %p2919_p4  ;;  %p186_p9 = scmp.lt.s32.totalorder %s2197_s20, 6 }
  0x3a   : > { %s2921_s8 = scalar_select %p2360_p7, 1, 0 }
  0x3b   : > { %s2920_s6 = scalar_select %p2356_p5, 1, 0 }
  0x3c   : > { %p2365_p11 = pnand %p1676_p2, %p186_p9  ;;  %s2202_s29 = smov [#allocation11]  }
  0x3d   : > { %s201_s30 = sshll.u32 %s2202_s29, 4  ;;  %s2923_s0 = sld [smem:[#allocation22_spill]]  ;;  %s2369_s30 = int_to_ptr.vmem [resolvable:$true] %s201_s30 }
  0x3e   : > { %s2922_s23 = scalar_select %p2365_p11, 1, 0 }
  0x3f   : > { %p1860_p12 = pneg %p2365_p11  ;;  %s216_s10 = scalar_lea.vmem [#allocation5], %s2283_s25 }
  0x40   : > { %s224_s12 = sshll.u32 %s216_s10, 4  ;;  %s2925_s29 = sand.u32 1, %s2185_s17   ;;  %s2386_s12 = int_to_ptr.vmem [resolvable:$true] %s224_s12 }
  0x41   : > { %p2382_p1 = pnand %p1860_p12, %p2903_p10  ;;  %s2390_s1 = scalar_lea.sflag [#allocation6], %s2925_s29 }
  0x43   : > { %s2377_s14 = scalar_lea.hbm %s2923_s0, %s2286_s26  ;;  %s2024_s19 = scalar_lea.hbm %s2923_s0, 2560 }
  0x44   : > { %s2924_s24 = scalar_select %p2382_p1, 1, 0 }
  0x45   : > { %s2019_s21 = scalar_lea.hbm %s2377_s14, 512  ;;  %p2025_p4 = scmp.lt.u32.totalorder %s2377_s14, %s2923_s0 }
  0x46   : > { %p2020_p13 = scmp.ne.s32.totalorder %s2377_s14, %s2019_s21  ;;  %p2026_p9 = scmp.lt.u32.totalorder %s2024_s19, %s2019_s21 }
  0x47   : > { %p2028_p10 = scmp.lt.u32.totalorder %s2019_s21, %s2377_s14 }
  0x48   : > { %p2022_p0 = pnand %p2020_p13, %p2311_p8  ;;  %p2027_p12 = por %p2026_p9, %p2025_p4 }
  0x4a   : > { %p2023_p2 = pneg %p2022_p0  ;;  %p2029_p7 = por %p2028_p10, %p2027_p12 }
  0x4c   : > { %p2030_p5 = pnand %p2029_p7, %p2023_p2 }
  0x4e   : > { %2033 = shalt.err (!%p2030_p5)
}
  0x4f   : > { %s2034_s29 = scalar_lea.vmem %s2386_s12, 512  ;;  %s2203_s5 = smov [#allocation5]  }
  0x50   : > { %p2035_p13 = scmp.ne.s32.totalorder %s2386_s12, %s2034_s29  ;;  %s2039_s7 = sshll.u32 %s2203_s5, 4  ;;  %s2040_s7 = int_to_ptr.vmem [resolvable:$false] %s2039_s7 }
  0x51   : > { %s2041_s28 = scalar_lea.vmem %s2040_s7, 1024  ;;  %p2042_p11 = scmp.lt.s32.totalorder %s2386_s12, %s2040_s7 }
  0x52   : > { %p2037_p0 = pnand %p2035_p13, %p2311_p8  ;;  %p2043_p1 = scmp.lt.s32.totalorder %s2041_s28, %s2034_s29 }
  0x54   : > { %p2038_p3 = pneg %p2037_p0  ;;  %p2044_p4 = por %p2043_p1, %p2042_p11 }
  0x56   : > { %p2045_p9 = pnand %p2044_p4, %p2038_p3 }
  0x58   : > { %2048 = shalt.err (!%p2045_p9)
}
  0x59   : > { %s2926_s19 = smov 4   ;;  %s2927_s21 = smov 64  }
  0x5a   : > { %1867 = dma.hbm_to_vmem [thread:$0]  (!%p2288_p6), %s2377_s14, 512, %s2386_s12, %s2390_s1, %s2927_s21, %s2927_s21, %s2926_s19  }
  0x5b   : > { %s2049_s5 = scalar_lea.hbm %s2893_s3, 16  ;;  %p2928_p3 = scmp.ne.s32.totalorder %s2924_s24, 0 }
  0x5c   : > { %p2050_p10 = scmp.ne.s32.totalorder %s2893_s3, %s2049_s5  ;;  %p2056_p1 = scmp.lt.u32.totalorder %s2049_s5, %s2893_s3 }
  0x5d   : > { %p2051_p5 = pneg %p2928_p3 }
  0x5f   : > { %p2052_p7 = pnand %p2051_p5, %p2050_p10 }
  0x61   : > { %p2053_p11 = pneg %p2052_p7 }
  0x63   : > { %p2058_p2 = pnand %p2056_p1, %p2053_p11 }
  0x65   : > { %2061 = shalt.err (!%p2058_p2)
}
  0x66   : > { %s2062_s0 = scalar_lea.vmem %s2369_s30, 16  ;;  %s2069_s1 = scalar_lea.vmem %s2369_s30, 32 }
  0x67   : > { %p2063_p12 = scmp.ne.s32.totalorder %s2369_s30, %s2062_s0  ;;  %p2070_p4 = scmp.lt.s32.totalorder %s2369_s30, %s2369_s30 }
  0x68   : > { %p2071_p9 = scmp.lt.s32.totalorder %s2069_s1, %s2062_s0 }
  0x69   : > { %p2065_p13 = pnand %p2063_p12, %p2051_p5 }
  0x6a   : > { %p2072_p10 = por %p2071_p9, %p2070_p4 }
  0x6b   : > { %p2066_p0 = pneg %p2065_p13 }
  0x6d   : > { %p2073_p7 = pnand %p2072_p10, %p2066_p0 }
  0x6f   : > { %2076 = shalt.err (!%p2073_p7)
}
  0x70   : > { %1863 = dma.hbm_to_vmem [thread:$0]  (!%p2928_p3), %s2893_s3, 16, %s2369_s30, [#allocation12]  }
  0x71   : > { %s2443_s5 = scalar_lea.hbm %s2892_s2, %s2286_s26  ;;  %s260_s7 = scalar_lea.vmem [#allocation10], %s2283_s25 }
  0x72   : > { %s268_s29 = sshll.u32 %s260_s7, 4  ;;  %s2077_s24 = scalar_lea.hbm %s2443_s5, 512  ;;  %s2446_s29 = int_to_ptr.vmem [resolvable:$true] %s268_s29 }
  0x73   : > { %p2078_p5 = scmp.ne.s32.totalorder %s2443_s5, %s2077_s24  ;;  %s2082_s0 = scalar_lea.hbm %s2892_s2, 2560 }
  0x74   : > { %p2083_p3 = scmp.lt.u32.totalorder %s2443_s5, %s2892_s2  ;;  %p2084_p2 = scmp.lt.u32.totalorder %s2082_s0, %s2077_s24 }
  0x75   : > { %p2080_p11 = pnand %p2078_p5, %p2311_p8  ;;  %p2086_p13 = scmp.lt.u32.totalorder %s2077_s24, %s2443_s5 }
  0x76   : > { %p2085_p12 = por %p2084_p2, %p2083_p3 }
  0x77   : > { %p2081_p1 = pneg %p2080_p11 }
  0x78   : > { %p2087_p0 = por %p2086_p13, %p2085_p12 }
  0x7a   : > { %p2088_p4 = pnand %p2087_p0, %p2081_p1 }
  0x7c   : > { %2091 = shalt.err (!%p2088_p4)
}
  0x7d   : > { %s2092_s25 = scalar_lea.vmem %s2446_s29, 512  ;;  %s2204_s17 = smov [#allocation10]  }
  0x7e   : > { %p2093_p9 = scmp.ne.s32.totalorder %s2446_s29, %s2092_s25  ;;  %s2097_s12 = sshll.u32 %s2204_s17, 4  ;;  %s2098_s12 = int_to_ptr.vmem [resolvable:$false] %s2097_s12 }
  0x7f   : > { %s2099_s14 = scalar_lea.vmem %s2098_s12, 1024  ;;  %p2100_p5 = scmp.lt.s32.totalorder %s2446_s29, %s2098_s12 }
  0x80   : > { %p2095_p10 = pnand %p2093_p9, %p2311_p8  ;;  %p2101_p11 = scmp.lt.s32.totalorder %s2099_s14, %s2092_s25 }
  0x82   : > { %p2096_p7 = pneg %p2095_p10  ;;  %p2102_p3 = por %p2101_p11, %p2100_p5 }
  0x84   : > { %p2103_p2 = pnand %p2102_p3, %p2096_p7 }
  0x86   : > { %2106 = shalt.err (!%p2103_p2)
}
  0x87   : > { %1873 = dma.hbm_to_vmem [thread:$0]  (!%p2288_p6), %s2443_s5, 512, %s2446_s29, %s2305_s9, %s2927_s21, %s2927_s21, %s2926_s19  }
  0x88   : > { %p2929_p8 = scmp.ne.s32.totalorder %s2922_s23, 0 }
  0x89   : > { %s2476_s11 = sand.u32 (!%p2929_p8), 1, %s2181_s16   ;;  %p2930_p1 = scmp.ne.s32.totalorder (!%p2929_p8), %s2918_s22, 0 }
  0x8a   : > { %280 = sbr.rel (%p2929_p8) target bundleno = 1003 (0x3eb), region = 36  ;;  %s2479_s10 = sshll.u32 (!%p2929_p8), %s2476_s11, 5 }
  0x8b   : > { %s283_s27 = scalar_lea.sflag (!%p2929_p8), [#allocation6], %s2476_s11  ;;  %s2483_s7 = scalar_lea.vmem (!%p2929_p8), [#allocation5], %s2479_s10 }
  0x91   : > { %2160 = dma.done.wait (%p2930_p1), %s283_s27, 512  }
  0x92   : > { %2162 = vsyncadd (%p2930_p1), %s283_s27, 4294966784  ;;  %s291_s9 = sand.u32 1, %s2339_s13   ;;  %s2491_s19 = scalar_lea.vmem [#allocation8], %s2479_s10 }
  0x93   : > { %s292_s23 = scalar_lea.sflag [#allocation9], %s291_s9 }
  0x94   : > { %2164 = dma.done.wait (%p2930_p1), %s292_s23, 1024  }
  0x95   : > { %2166 = vsyncadd (%p2930_p1), %s292_s23, 4294966272  ;;  %s2498_s21 = scalar_lea.vmem [#allocation10], %s2479_s10  ;;  %p2931_p6 = scmp.eq.s32.totalorder %s2339_s13, 0 }
  0x97   : > { %2168 = dma.done.wait (%p2931_p6), [#allocation12], 16   ;;  %p2932_p12 = pmov %p2931_p6 }
  0x98   : > { %vm369_vm0 = vcmask 64512   ;;  %v2205_v0 = vmov 0.0   ;;  %vm2206_vm1 = vmmov 0   ;;  %v386_v1 = vld [vmem:[%s2491_s19] sm:$0xf]  ;;  %vm352_vm2 = vcmask 7168  }
  0x99   : > { %2170 = vsyncadd (%p2932_p12), [#allocation12], 4294967280  ;;  %1752 = vmatprep.subr.bf16.mxu0 %v2205_v0  ;;  %370 = vst.msk [vmem:[#allocation4] sm:$0xff] %vm369_vm0, %v2205_v0  ;;  %1758 = vmatprep.subr.bf16.mxu1 %v2205_v0  ;;  %v387_v2 = vld [vmem:[%s2491_s19 + $0x4] sm:$0xf]  ;;  %v406_v3 = vsel %vm369_vm0, %v386_v1, 0 }
  0x9a   : > { %371 = vst.msk [vmem:[#allocation4 + $0x8] sm:$0xff] %vm369_vm0, %v2205_v0  ;;  %372 = vst.msk [vmem:[#allocation4 + $0x10] sm:$0xff] %vm369_vm0, %v2205_v0  ;;  %1754 = vmatprep.mubr.msk.bf16.mxu0 %vm2206_vm1, %v2205_v0  ;;  %1760 = vmatprep.mubr.msk.bf16.mxu1 %vm2206_vm1, %v2205_v0  ;;  %v452_v4 = vsel %vm369_vm0, %v387_v2, 0  ;;  %v388_v5 = vld [vmem:[%s2491_s19 + $0x8] sm:$0xf]  ;;  %v2208_v63 = vmov 0  }
  0x9b   : > { %373 = vst.msk [vmem:[#allocation4 + $0x18] sm:$0xff] %vm369_vm0, %v2205_v0  ;;  %374 = vst.msk [vmem:[#allocation4 + $0x20] sm:$0xff] %vm369_vm0, %v2205_v0  ;;  %1753 = vmatpush3.bf16.xpose.msra.mxu0 %v406_v3  ;;  %1759 = vmatpush3.bf16.xpose.msra.mxu1 %v452_v4  ;;  %v389_v6 = vld [vmem:[%s2491_s19 + $0xc] sm:$0xf]  ;;  %v378_v7 = vld [vmem:[%s2483_s7] sm:$0xf] }
  0x9c   : > { %375 = vst.msk [vmem:[#allocation4 + $0x28] sm:$0xff] %vm369_vm0, %v2205_v0  ;;  %376 = vst.msk [vmem:[#allocation4 + $0x30] sm:$0xff] %vm369_vm0, %v2205_v0  ;;  %1764 = vmatprep.subr.bf16.mxu0 %v2205_v0  ;;  %1770 = vmatprep.subr.bf16.mxu1 %v2205_v0  ;;  %v379_v8 = vld [vmem:[%s2483_s7 + $0x4] sm:$0xf]  ;;  %v498_v9 = vsel %vm369_vm0, %v388_v5, 0  ;;  %v544_v10 = vsel %vm369_vm0, %v389_v6, 0 }
  0x9d   : > { %377 = vst.msk [vmem:[#allocation4 + $0x38] sm:$0xff] %vm369_vm0, %v2205_v0  ;;  %v390_v11 = vld [vmem:[%s2491_s19 + $0x10] sm:$0xf]  ;;  %v391_v12 = vld [vmem:[%s2491_s19 + $0x14] sm:$0xf]  ;;  %1939 = vset.pattern.permute.xlu0 %v2208_v63  ;;  %1940 = vset.pattern.permute.xlu1 %v2208_v63  ;;  %vm1030_vm3 = vcmask 1043456  }
  0x9e   : > { %v380_v13 = vld [vmem:[%s2483_s7 + $0x8] sm:$0xf]  ;;  %v381_v14 = vld [vmem:[%s2483_s7 + $0xc] sm:$0xf]  ;;  %v590_v15 = vsel %vm369_vm0, %v390_v11, 0  ;;  %v636_v16 = vsel %vm369_vm0, %v391_v12, 0 }
  0x9f   : > { %v392_v17 = vld [vmem:[%s2491_s19 + $0x18] sm:$0xf]  ;;  %v393_v18 = vld [vmem:[%s2491_s19 + $0x1c] sm:$0xf]  ;;  %v382_v19 = vld [vmem:[%s2483_s7 + $0x10] sm:$0xf] }
  0xa0   : > { %v383_v20 = vld [vmem:[%s2483_s7 + $0x14] sm:$0xf]  ;;  %v682_v21 = vsel %vm369_vm0, %v392_v17, 0  ;;  %v728_v22 = vsel %vm369_vm0, %v393_v18, 0  ;;  %v384_v23 = vld [vmem:[%s2483_s7 + $0x18] sm:$0xf] }
  0xa1   : > { %v385_v24 = vld [vmem:[%s2483_s7 + $0x1c] sm:$0xf]  ;;  %v2207_v25 = vmov -1e+30   ;;  %361 = vst.msk [vmem:[#allocation3] sm:$0xff] %vm352_vm2, %v2205_v0  ;;  %362 = vst.msk [vmem:[#allocation3 + $0x8] sm:$0xff] %vm352_vm2, %v2205_v0 }
  0xa2   : > { %1755 = vmatmul.mubr.msk.bf16.vlgmr.msra.gmra.mrb[0].mxu0 %vm369_vm0, %v378_v7  ;;  %1761 = vmatmul.mubr.msk.bf16.vlgmr.msra.gmra.mrb[0].mxu1 %vm369_vm0, %v379_v8  ;;  %353 = vst.msk [vmem:[#allocation2] sm:$0xff] %vm352_vm2, %v2207_v25  ;;  %354 = vst.msk [vmem:[#allocation2 + $0x8] sm:$0xff] %vm352_vm2, %v2207_v25  ;;  %v1694_v26 = vld [vmem:[#allocation11] ss:$0 sm:$0xff]  ;;  %vm1503_vm4 = vcmask 60416   ;;  %s2817_s13 = scalar_lea.vmem [#allocation13], %s2479_s10 }
  0xa3   : > { %1765 = vmatpush3.bf16.xpose.msra.mxu0 %v498_v9  ;;  %1771 = vmatpush3.bf16.xpose.msra.mxu1 %v544_v10  ;;  %355 = vst.msk [vmem:[#allocation2 + $0x10] sm:$0xff] %vm352_vm2, %v2207_v25  ;;  %356 = vst.msk [vmem:[#allocation2 + $0x18] sm:$0xff] %vm352_vm2, %v2207_v25  ;;  %s1719_s22 = sshll.u32 %s2189_s18, 9  ;;  %s1527_s5 = sshll.u32 %s2817_s13, 4  ;;  %s2840_s5 = int_to_ptr.vmem [resolvable:$true] %s1527_s5 }
  0xa4   : > { %1766 = vmatprep.mubr.msk.bf16.mxu0 %vm2206_vm1, %v2205_v0  ;;  %1776 = vmatprep.subr.bf16.mxu0 %v2205_v0  ;;  %357 = vst.msk [vmem:[#allocation2 + $0x20] sm:$0xff] %vm352_vm2, %v2207_v25  ;;  %358 = vst.msk [vmem:[#allocation2 + $0x28] sm:$0xff] %vm352_vm2, %v2207_v25  ;;  %s2838_s28 = scalar_lea.hbm %s2894_s4, %s1719_s22  ;;  %s1513_s18 = scalar_lea.sflag [#allocation7], %s2476_s11 }
  0xa5   : > { %1772 = vmatprep.mubr.msk.bf16.mxu1 %vm2206_vm1, %v2205_v0  ;;  %1782 = vmatprep.subr.bf16.mxu1 %v2205_v0  ;;  %359 = vst.msk [vmem:[#allocation2 + $0x30] sm:$0xff] %vm352_vm2, %v2207_v25  ;;  %360 = vst.msk [vmem:[#allocation2 + $0x38] sm:$0xff] %vm352_vm2, %v2207_v25  ;;  %s2107_s30 = scalar_lea.vmem %s2840_s5, 512  ;;  %p2933_p0 = scmp.ne.s32.totalorder %s2920_s6, 0 }
  0xa6   : > { %363 = vst.msk [vmem:[#allocation3 + $0x10] sm:$0xff] %vm352_vm2, %v2205_v0  ;;  %364 = vst.msk [vmem:[#allocation3 + $0x18] sm:$0xff] %vm352_vm2, %v2205_v0  ;;  %p2108_p13 = scmp.ne.s32.totalorder %s2840_s5, %s2107_s30  ;;  %s2209_s0 = smov [#allocation13]  }
  0xa7   : > { %365 = vst.msk [vmem:[#allocation3 + $0x20] sm:$0xff] %vm352_vm2, %v2205_v0  ;;  %366 = vst.msk [vmem:[#allocation3 + $0x28] sm:$0xff] %vm352_vm2, %v2205_v0  ;;  %s2111_s1 = sshll.u32 %s2209_s0, 4  ;;  %s2112_s1 = int_to_ptr.vmem [resolvable:$false] %s2111_s1 }
  0xa8   : > { %367 = vst.msk [vmem:[#allocation3 + $0x30] sm:$0xff] %vm352_vm2, %v2205_v0  ;;  %368 = vst.msk [vmem:[#allocation3 + $0x38] sm:$0xff] %vm352_vm2, %v2205_v0  ;;  %p2109_p4 = pnand %p2108_p13, %p2933_p0  ;;  %s2113_s26 = scalar_lea.vmem %s2112_s1, 1024 }
  0xa9   : > { %p2114_p10 = scmp.lt.s32.totalorder %s2840_s5, %s2112_s1  ;;  %p2115_p7 = scmp.lt.s32.totalorder %s2113_s26, %s2107_s30 }
  0xaa   : > { %1767 = vmatmul.mubr.msk.bf16.vlgmr.msra.gmra.mrb[4].mxu0 %vm369_vm0, %v380_v13  ;;  %1773 = vmatmul.mubr.msk.bf16.vlgmr.msra.gmra.mrb[4].mxu1 %vm369_vm0, %v381_v14  ;;  %v2638_v13 = vld [vmem:[#allocation2] sm:$0xff]  ;;  %p2110_p9 = pneg %p2109_p4 }
  0xab   : > { %1777 = vmatpush3.bf16.xpose.msra.mxu0 %v590_v15  ;;  %1783 = vmatpush3.bf16.xpose.msra.mxu1 %v636_v16  ;;  %v2643_v16 = vld [vmem:[#allocation2 + $0x8] sm:$0xff]  ;;  %p2116_p5 = por %p2115_p7, %p2114_p10 }
  0xac   : > { %1778 = vmatprep.mubr.msk.bf16.mxu0 %vm2206_vm1, %v2205_v0  ;;  %1788 = vmatprep.subr.bf16.mxu0 %v2205_v0 }
  0xad   : > { %1784 = vmatprep.mubr.msk.bf16.mxu1 %vm2206_vm1, %v2205_v0  ;;  %1794 = vmatprep.subr.bf16.mxu1 %v2205_v0  ;;  %p2117_p11 = pnand %p2116_p5, %p2110_p9 }
  0xb2   : > { %1779 = vmatmul.mubr.msk.bf16.vlgmr.msra.gmra.mrb[8].mxu0 %vm369_vm0, %v382_v19  ;;  %1785 = vmatmul.mubr.msk.bf16.vlgmr.msra.gmra.mrb[8].mxu1 %vm369_vm0, %v383_v20  ;;  %v2653_v20 = vld [vmem:[#allocation2 + $0x10] sm:$0xff] }
  0xb3   : > { %1789 = vmatpush3.bf16.xpose.msra.mxu0 %v682_v21  ;;  %1795 = vmatpush3.bf16.xpose.msra.mxu1 %v728_v22 }
  0xb4   : > { %1790 = vmatprep.mubr.msk.bf16.mxu0 %vm2206_vm1, %v2205_v0  ;;  %1796 = vmatprep.mubr.msk.bf16.mxu1 %vm2206_vm1, %v2205_v0 }
  0xb5   : > { %1800 = vmatprep.subr.bf16.mxu0 %v2205_v0  ;;  %1806 = vmatprep.subr.bf16.mxu1 %v2205_v0 }
  0xba   : > { %1791 = vmatmul.mubr.msk.bf16.vlgmr.msra.gmra.mrb[12].mxu0 %vm369_vm0, %v384_v23  ;;  %1797 = vmatmul.mubr.msk.bf16.vlgmr.msra.gmra.mrb[12].mxu1 %vm369_vm0, %v385_v24  ;;  %v2663_v24 = vld [vmem:[#allocation2 + $0x18] sm:$0xff] }
  0xbb   : > { %1802 = vmatprep.mubr.msk.bf16.mxu0 %vm2206_vm1, %v2205_v0  ;;  %1808 = vmatprep.mubr.msk.bf16.mxu1 %vm2206_vm1, %v2205_v0 }
 0x175   : > { %v442_v27 = vpop.f32.mrb[0].mxu0  ;;  %v488_v28 = vpop.f32.mrb[0].mxu1 }
 0x176   : > { %v2606_v29 = vadd.f32 %v1694_v26, %v442_v27  ;;  %v1756_v30 = vpop.f32.mrb[1].mxu0  ;;  %v2608_v31 = vadd.f32 %v1694_v26, %v488_v28  ;;  %v1762_v32 = vpop.f32.mrb[1].mxu1  ;;  %v2673_v28 = vld [vmem:[#allocation2 + $0x20] sm:$0xff] }
 0x177   : > { %v445_v33 = vpop.f32.mrb[2].mxu0  ;;  %v491_v34 = vpop.f32.mrb[2].mxu1  ;;  %v2675_v30 = vld [vmem:[#allocation2 + $0x28] sm:$0xff] }
 0x178   : > { %v1757_v35 = vpop.f32.mrb[3].mxu0  ;;  %v778_v36 = vsel %vm369_vm0, %v2606_v29, -inf  ;;  %v1763_v37 = vpop.f32.mrb[3].mxu1  ;;  %v781_v38 = vsel %vm369_vm0, %v2608_v31, -inf  ;;  %v1019_v33 = vld [vmem:[%s2498_s21] sm:$0xf] }
 0x179   : > { %779 = vmax.xlane.f32.xlu0 %v778_v36  ;;  %v1032_v36 = vsel %vm1030_vm3, %v1019_v33, 0 }
 0x17a   : > { %1801 = vmatpush3.bf16.msra.mxu0 %v1032_v36 }
 0x17b   : > { %1812 = vmatprep.subr.bf16.mxu0 %v2205_v0 }
 0x17d   : > { %782 = vmax.xlane.f32.xlu0 %v781_v38  ;;  %v534_v39 = vpop.f32.mrb[4].mxu0  ;;  %v580_v40 = vpop.f32.mrb[4].mxu1 }
 0x17e   : > { %v2614_v41 = vadd.f32 %v1694_v26, %v534_v39  ;;  %v1768_v42 = vpop.f32.mrb[5].mxu0  ;;  %v2616_v43 = vadd.f32 %v1694_v26, %v580_v40  ;;  %v1774_v44 = vpop.f32.mrb[5].mxu1 }
 0x17f   : > { %v537_v45 = vpop.f32.mrb[6].mxu0  ;;  %v583_v46 = vpop.f32.mrb[6].mxu1  ;;  %v1020_v42 = vld [vmem:[%s2498_s21 + $0x4] sm:$0xf] }
 0x180   : > { %v1769_v47 = vpop.f32.mrb[7].mxu0  ;;  %v784_v48 = vsel %vm369_vm0, %v2614_v41, -inf  ;;  %v1775_v49 = vpop.f32.mrb[7].mxu1  ;;  %v787_v50 = vsel %vm369_vm0, %v2616_v43, -inf  ;;  %v1078_v44 = vsel %vm1030_vm3, %v1020_v42, 0  ;;  %v2702_v45 = vld [vmem:[#allocation2 + $0x30] sm:$0xff] }
 0x181   : > { %785 = vmax.xlane.f32.xlu1 %v784_v48  ;;  %1807 = vmatpush3.bf16.msra.mxu1 %v1078_v44  ;;  %v2704_v46 = vld [vmem:[#allocation2 + $0x38] sm:$0xff] }
 0x182   : > { %1818 = vmatprep.subr.bf16.mxu1 %v2205_v0 }
 0x185   : > { %788 = vmax.xlane.f32.xlu1 %v787_v50  ;;  %v626_v51 = vpop.f32.mrb[8].mxu0  ;;  %v672_v52 = vpop.f32.mrb[8].mxu1 }
 0x186   : > { %v2622_v53 = vadd.f32 %v1694_v26, %v626_v51  ;;  %v1780_v54 = vpop.f32.mrb[9].mxu0  ;;  %v2624_v55 = vadd.f32 %v1694_v26, %v672_v52  ;;  %v1786_v56 = vpop.f32.mrb[9].mxu1 }
 0x187   : > { %v629_v57 = vpop.f32.mrb[10].mxu0  ;;  %v675_v58 = vpop.f32.mrb[10].mxu1 }
 0x188   : > { %v1781_v59 = vpop.f32.mrb[11].mxu0  ;;  %v790_v60 = vsel %vm369_vm0, %v2622_v53, -inf  ;;  %v1787_v61 = vpop.f32.mrb[11].mxu1  ;;  %v793_v62 = vsel %vm369_vm0, %v2624_v55, -inf }
 0x189   : > { %791 = vmax.xlane.f32.xlu0 %v790_v60  ;;  %794 = vmax.xlane.f32.xlu1 %v793_v62 }
 0x18d   : > { %v718_v1 = vpop.f32.mrb[12].mxu0  ;;  %v764_v2 = vpop.f32.mrb[12].mxu1 }
 0x18e   : > { %v2630_v3 = vadd.f32 %v1694_v26, %v718_v1  ;;  %v1792_v4 = vpop.f32.mrb[13].mxu0  ;;  %v2632_v5 = vadd.f32 %v1694_v26, %v764_v2  ;;  %v1798_v6 = vpop.f32.mrb[13].mxu1 }
 0x18f   : > { %v721_v7 = vpop.f32.mrb[14].mxu0  ;;  %v767_v8 = vpop.f32.mrb[14].mxu1  ;;  %v1021_v4 = vld [vmem:[%s2498_s21 + $0x8] sm:$0xf] }
 0x190   : > { %v1793_v9 = vpop.f32.mrb[15].mxu0  ;;  %v796_v10 = vsel %vm369_vm0, %v2630_v3, -inf  ;;  %v1799_v11 = vpop.f32.mrb[15].mxu1  ;;  %v799_v12 = vsel %vm369_vm0, %v2632_v5, -inf }
 0x191   : > { %797 = vmax.xlane.f32.xlu0 %v796_v10  ;;  %800 = vmax.xlane.f32.xlu1 %v799_v12 }
 0x206   : > { %v780_v14 = vpop.xlane.xlu0 %779 }
 0x207   : > { %v2641_v15 = vmax.f32 %v2638_v13, %v780_v14 }
 0x209   : > { %v810_v17 = vsub.f32 %v2638_v13, %v2641_v15  ;;  %1412 = vst.msk [vmem:[#allocation2] sm:$0xff] %vm352_vm2, %v2641_v15  ;;  %836 = vperm.xlu0 %1939, %v2641_v15  }
 0x20a   : > { %v783_v18 = vpop.xlane.xlu0 %782 }
 0x20b   : > { %v2651_v19 = vmax.f32 %v2643_v16, %v783_v18 }
 0x20d   : > { %v811_v21 = vsub.f32 %v2643_v16, %v2651_v19  ;;  %1413 = vst.msk [vmem:[#allocation2 + $0x8] sm:$0xff] %vm352_vm2, %v2651_v19  ;;  %841 = vperm.xlu1 %1940, %v2651_v19  }
 0x20e   : > { %v786_v22 = vpop.xlane.xlu1 %785 }
 0x20f   : > { %v2661_v23 = vmax.f32 %v2653_v20, %v786_v22 }
 0x211   : > { %v812_v25 = vsub.f32 %v2653_v20, %v2661_v23  ;;  %1414 = vst.msk [vmem:[#allocation2 + $0x10] sm:$0xff] %vm352_vm2, %v2661_v23  ;;  %846 = vperm.xlu1 %1940, %v2661_v23  }
 0x212   : > { %v789_v26 = vpop.xlane.xlu1 %788 }
 0x213   : > { %v2671_v27 = vmax.f32 %v2663_v24, %v789_v26  ;;  %v1023_v26 = vld [vmem:[%s2498_s21 + $0x10] sm:$0xf] }
 0x214   : > { %v1216_v44 = vsel %vm1030_vm3, %v1023_v26, 0 }
 0x215   : > { %v813_v32 = vsub.f32 %v2663_v24, %v2671_v27  ;;  %1415 = vst.msk [vmem:[#allocation2 + $0x18] sm:$0xff] %vm352_vm2, %v2671_v27  ;;  %851 = vperm.xlu1 %1940, %v2671_v27  }
 0x216   : > { %v792_v34 = vpop.xlane.xlu0 %791  ;;  %v795_v35 = vpop.xlane.xlu1 %794 }
 0x217   : > { %v2685_v37 = vmax.f32 %v2673_v28, %v792_v34  ;;  %v2688_v38 = vmax.f32 %v2675_v30, %v795_v35 }
 0x219   : > { %v814_v39 = vsub.f32 %v2673_v28, %v2685_v37  ;;  %1416 = vst.msk [vmem:[#allocation2 + $0x20] sm:$0xff] %vm352_vm2, %v2685_v37  ;;  %856 = vperm.xlu1 %1940, %v2685_v37   ;;  %v815_v40 = vsub.f32 %v2675_v30, %v2688_v38  ;;  %1417 = vst.msk [vmem:[#allocation2 + $0x28] sm:$0xff] %vm352_vm2, %v2688_v38  ;;  %v898_v30 = vld [vmem:[#allocation3] sm:$0xff] }
 0x21b   : > { %v826_v16 = vmul.f32 1.442695, %v814_v39  ;;  %v828_v13 = vmul.f32 1.442695, %v815_v40 }
 0x21d   : > { %861 = vperm.xlu1 %1940, %v2688_v38   ;;  %v899_v38 = vld [vmem:[#allocation3 + $0x8] sm:$0xff] }
 0x21e   : > { %v798_v47 = vpop.xlane.xlu0 %797  ;;  %v801_v48 = vpop.xlane.xlu1 %800 }
 0x21f   : > { %v2709_v49 = vmax.f32 %v2702_v45, %v798_v47  ;;  %v2712_v50 = vmax.f32 %v2704_v46, %v801_v48  ;;  %v1024_v47 = vld [vmem:[%s2498_s21 + $0x14] sm:$0xf] }
 0x221   : > { %v816_v51 = vsub.f32 %v2702_v45, %v2709_v49  ;;  %1418 = vst.msk [vmem:[#allocation2 + $0x30] sm:$0xff] %vm352_vm2, %v2709_v49  ;;  %866 = vperm.xlu1 %1940, %v2709_v49   ;;  %v817_v52 = vsub.f32 %v2704_v46, %v2712_v50  ;;  %1419 = vst.msk [vmem:[#allocation2 + $0x38] sm:$0xff] %vm352_vm2, %v2712_v50  ;;  %v900_v46 = vld [vmem:[#allocation3 + $0x10] sm:$0xff] }
 0x223   : > { %v830_v15 = vmul.f32 1.442695, %v816_v51 }
 0x225   : > { %871 = vperm.xlu1 %1940, %v2712_v50  }
 0x288   : > { %v837_v54 = vpop.permute.xlu0 %836 }
 0x289   : > { %v874_v56 = vsub.f32 %v2606_v29, %v837_v54 }
 0x28b   : > { %v882_v57 = vmul.f32 1.442695, %v874_v56 }
 0x28c   : > { %v842_v58 = vpop.permute.xlu1 %841 }
 0x28d   : > { %1941 = vpow2.f32 %v882_v57  ;;  %v875_v59 = vsub.f32 %v2608_v31, %v842_v58  ;;  %v1124_v31 = vsel %vm1030_vm3, %v1021_v4, 0 }
 0x28f   : > { %v884_v60 = vmul.f32 1.442695, %v875_v59  ;;  %v1262_v59 = vsel %vm1030_vm3, %v1024_v47, 0 }
 0x290   : > { %v847_v61 = vpop.permute.xlu1 %846 }
 0x291   : > { %1943 = vpow2.f32 %v884_v60  ;;  %v876_v62 = vsub.f32 %v2614_v41, %v847_v61  ;;  %v1022_v41 = vld [vmem:[%s2498_s21 + $0xc] sm:$0xf]  ;;  %v1025_v60 = vld [vmem:[%s2498_s21 + $0x18] sm:$0xf] }
 0x292   : > { %v1170_v22 = vsel %vm1030_vm3, %v1022_v41, 0 }
 0x293   : > { %v886_v63 = vmul.f32 1.442695, %v876_v62 }
 0x294   : > { %v852_v1 = vpop.permute.xlu1 %851 }
 0x295   : > { %1945 = vpow2.f32 %v886_v63  ;;  %v877_v2 = vsub.f32 %v2616_v43, %v852_v1 }
 0x297   : > { %v1942_v6 = vpop.eup %1941  ;;  %v888_v7 = vmul.f32 1.442695, %v877_v2  ;;  %v1308_v2 = vsel %vm1030_vm3, %v1025_v60, 0 }
 0x298   : > { %v857_v29 = vpop.permute.xlu1 %856  ;;  %v914_v8 = vsel %vm369_vm0, %v1942_v6, 0.0  ;;  %v1011_v9 = vpack.c.bf16 %v1942_v6, %v1942_v6 }
 0x299   : > { %1947 = vpow2.f32 %v888_v7  ;;  %v878_v10 = vsub.f32 %v2622_v53, %v857_v29  ;;  %915 = vadd.xlane.f32.xlu1 %v914_v8 }
 0x29a   : > { %1803 = vmatmul.mubr.msk.bf16.vlgmr.msra.gmra.mrb[16].mxu0 %vm369_vm0, %v1011_v9 }
 0x29b   : > { %v1944_v11 = vpop.eup %1943  ;;  %v890_v12 = vmul.f32 1.442695, %v878_v10  ;;  %1813 = vmatpush3.bf16.msra.mxu0 %v1124_v31  ;;  %1814 = vmatprep.mubr.msk.bf16.mxu0 %vm2206_vm1, %v2205_v0 }
 0x29c   : > { %v862_v43 = vpop.permute.xlu1 %861  ;;  %v917_v14 = vsel %vm369_vm0, %v1944_v11, 0.0  ;;  %v1012_v18 = vpack.c.bf16 %v1944_v11, %v1944_v11  ;;  %1824 = vmatprep.subr.bf16.mxu0 %v2205_v0 }
 0x29d   : > { %1949 = vpow2.f32 %v890_v12  ;;  %v879_v53 = vsub.f32 %v2624_v55, %v862_v43  ;;  %918 = vadd.xlane.f32.xlu0 %v917_v14  ;;  %v820_v12 = vmul.f32 1.442695, %v811_v21  ;;  %v822_v43 = vmul.f32 1.442695, %v812_v25 }
 0x29e   : > { %1809 = vmatmul.mubr.msk.bf16.vlgmr.msra.gmra.mrb[16].mxu1 %vm369_vm0, %v1012_v18  ;;  %v824_v14 = vmul.f32 1.442695, %v813_v32 }
 0x29f   : > { %v1946_v33 = vpop.eup %1945  ;;  %v892_v34 = vmul.f32 1.442695, %v879_v53  ;;  %1819 = vmatpush3.bf16.msra.mxu1 %v1170_v22  ;;  %1820 = vmatprep.mubr.msk.bf16.mxu1 %vm2206_vm1, %v2205_v0 }
 0x2a0   : > { %v867_v35 = vpop.permute.xlu1 %866  ;;  %v920_v36 = vsel %vm369_vm0, %v1946_v33, 0.0  ;;  %v1013_v42 = vpack.c.bf16 %v1946_v33, %v1946_v33  ;;  %1830 = vmatprep.subr.bf16.mxu1 %v2205_v0  ;;  %v902_v33 = vld [vmem:[#allocation3 + $0x20] sm:$0xff] }
 0x2a1   : > { %1951 = vpow2.f32 %v892_v34  ;;  %v880_v55 = vsub.f32 %v2630_v3, %v867_v35  ;;  %921 = vadd.xlane.f32.xlu0 %v920_v36 }
 0x2a2   : > { %1815 = vmatmul.mubr.msk.bf16.vlgmr.msra.gmra.mrb[20].mxu0 %vm369_vm0, %v1013_v42 }
 0x2a3   : > { %v1948_v48 = vpop.eup %1947  ;;  %v894_v54 = vmul.f32 1.442695, %v880_v55  ;;  %1825 = vmatpush3.bf16.msra.mxu0 %v1216_v44  ;;  %1826 = vmatprep.mubr.msk.bf16.mxu0 %vm2206_vm1, %v2205_v0  ;;  %v903_v44 = vld [vmem:[#allocation3 + $0x28] sm:$0xff] }
 0x2a4   : > { %v872_v56 = vpop.permute.xlu1 %871  ;;  %v923_v57 = vsel %vm369_vm0, %v1948_v48, 0.0  ;;  %v1014_v58 = vpack.c.bf16 %v1948_v48, %v1948_v48  ;;  %1836 = vmatprep.subr.bf16.mxu0 %v2205_v0 }
 0x2a5   : > { %1953 = vpow2.f32 %v894_v54  ;;  %v881_v3 = vsub.f32 %v2632_v5, %v872_v56  ;;  %924 = vadd.xlane.f32.xlu1 %v923_v57  ;;  %v1026_v5 = vld [vmem:[%s2498_s21 + $0x1c] sm:$0xf]  ;;  %v904_v56 = vld [vmem:[#allocation3 + $0x30] sm:$0xff] }
 0x2a6   : > { %1821 = vmatmul.mubr.msk.bf16.vlgmr.msra.gmra.mrb[20].mxu1 %vm369_vm0, %v1014_v58  ;;  %v1354_v29 = vsel %vm1030_vm3, %v1026_v5, 0 }
 0x2a7   : > { %v1950_v61 = vpop.eup %1949  ;;  %v896_v62 = vmul.f32 1.442695, %v881_v3  ;;  %1831 = vmatpush3.bf16.msra.mxu1 %v1262_v59  ;;  %1832 = vmatprep.mubr.msk.bf16.mxu1 %vm2206_vm1, %v2205_v0 }
 0x2a8   : > { %v926_v63 = vsel %vm369_vm0, %v1950_v61, 0.0  ;;  %v1015_v1 = vpack.c.bf16 %v1950_v61, %v1950_v61  ;;  %1842 = vmatprep.subr.bf16.mxu1 %v2205_v0  ;;  %v905_v61 = vld [vmem:[#allocation3 + $0x38] sm:$0xff] }
 0x2a9   : > { %1955 = vpow2.f32 %v896_v62  ;;  %927 = vadd.xlane.f32.xlu0 %v926_v63 }
 0x2aa   : > { %1827 = vmatmul.mubr.msk.bf16.vlgmr.msra.gmra.mrb[24].mxu0 %vm369_vm0, %v1015_v1  ;;  %1957 = vpow2.f32 %v820_v12  ;;  %v955_v12 = vld [vmem:[#allocation4] sm:$0xff] }
 0x2ab   : > { %v1952_v4 = vpop.eup %1951  ;;  %1837 = vmatpush3.bf16.msra.mxu0 %v1308_v2  ;;  %1838 = vmatprep.mubr.msk.bf16.mxu0 %vm2206_vm1, %v2205_v0 }
 0x2ac   : > { %v929_v6 = vsel %vm369_vm0, %v1952_v4, 0.0  ;;  %v1016_v7 = vpack.c.bf16 %v1952_v4, %v1952_v4 }
 0x2ad   : > { %930 = vadd.xlane.f32.xlu1 %v929_v6 }
 0x2ae   : > { %1833 = vmatmul.mubr.msk.bf16.vlgmr.msra.gmra.mrb[24].mxu1 %vm369_vm0, %v1016_v7 }
 0x2af   : > { %v1954_v8 = vpop.eup %1953  ;;  %1843 = vmatpush3.bf16.msra.mxu1 %v1354_v29  ;;  %1844 = vmatprep.mubr.msk.bf16.mxu1 %vm2206_vm1, %v2205_v0  ;;  %v818_v0 = vmul.f32 1.442695, %v810_v17  ;;  %v832_v17 = vmul.f32 1.442695, %v817_v52  ;;  %v901_v52 = vld [vmem:[#allocation3 + $0x18] sm:$0xff] }
 0x2b0   : > { %v932_v9 = vsel %vm369_vm0, %v1954_v8, 0.0  ;;  %v1017_v31 = vpack.c.bf16 %v1954_v8, %v1954_v8 }
 0x2b1   : > { %933 = vadd.xlane.f32.xlu0 %v932_v9  ;;  %1959 = vpow2.f32 %v818_v0 }
 0x2b2   : > { %1839 = vmatmul.mubr.msk.bf16.vlgmr.msra.gmra.mrb[28].mxu0 %vm369_vm0, %v1017_v31  ;;  %1961 = vpow2.f32 %v822_v43 }
 0x2b3   : > { %v1956_v10 = vpop.eup %1955  ;;  %1963 = vpow2.f32 %v824_v14 }
 0x2b4   : > { %v935_v41 = vsel %vm369_vm0, %v1956_v10, 0.0  ;;  %v1018_v11 = vpack.c.bf16 %v1956_v10, %v1956_v10  ;;  %1965 = vpow2.f32 %v826_v16  ;;  %v1958_v19 = vpop.eup %1957  ;;  %v956_v16 = vld [vmem:[#allocation4 + $0x8] sm:$0xff] }
 0x2b5   : > { %936 = vadd.xlane.f32.xlu1 %v935_v41  ;;  %1967 = vpow2.f32 %v828_v13  ;;  %v907_v40 = vmul.f32 %v1958_v19, %v899_v38  ;;  %v958_v38 = vld [vmem:[#allocation4 + $0x18] sm:$0xff] }
 0x2b6   : > { %1845 = vmatmul.mubr.msk.bf16.vlgmr.msra.gmra.mrb[28].mxu1 %vm369_vm0, %v1018_v11  ;;  %1969 = vpow2.f32 %v830_v15 }
 0x2b7   : > { %1971 = vpow2.f32 %v832_v17 }
 0x2bb   : > { %v1960_v20 = vpop.eup %1959 }
 0x2bc   : > { %v1962_v21 = vpop.eup %1961  ;;  %v906_v32 = vmul.f32 %v1960_v20, %v898_v30 }
 0x2bd   : > { %v1964_v23 = vpop.eup %1963  ;;  %v908_v50 = vmul.f32 %v1962_v21, %v900_v46 }
 0x2be   : > { %v1966_v24 = vpop.eup %1965  ;;  %v909_v53 = vmul.f32 %v1964_v23, %v901_v52  ;;  %v959_v52 = vld [vmem:[#allocation4 + $0x20] sm:$0xff] }
 0x2bf   : > { %v1968_v25 = vpop.eup %1967  ;;  %v910_v36 = vmul.f32 %v1966_v24, %v902_v33 }
 0x2c0   : > { %v1970_v27 = vpop.eup %1969  ;;  %v911_v48 = vmul.f32 %v1968_v25, %v903_v44 }
 0x2c1   : > { %v1972_v28 = vpop.eup %1971  ;;  %v912_v3 = vmul.f32 %v1970_v27, %v904_v56 }
 0x2c2   : > { %v913_v2 = vmul.f32 %v1972_v28, %v905_v61 }
 0x2c6   : > { %970 = vperm.xlu1 %1940, %v1958_v19  }
 0x2c7   : > { %965 = vperm.xlu0 %1939, %v1960_v20  }
 0x2ca   : > { %975 = vperm.xlu1 %1940, %v1962_v21  }
 0x2cb   : > { %980 = vperm.xlu0 %1939, %v1964_v23   ;;  %v957_v23 = vld [vmem:[#allocation4 + $0x10] sm:$0xff] }
 0x2ce   : > { %985 = vperm.xlu1 %1940, %v1966_v24  }
 0x2cf   : > { %990 = vperm.xlu0 %1939, %v1968_v25  }
 0x2d2   : > { %995 = vperm.xlu1 %1940, %v1970_v27  }
 0x2d3   : > { %1000 = vperm.xlu0 %1939, %v1972_v28  }
 0x326   : > { %v916_v37 = vpop.xlane.xlu1 %915 }
 0x327   : > { %v938_v39 = vadd.f32 %v916_v37, %v906_v32 }
 0x329   : > { %947 = vst.msk [vmem:[#allocation3] sm:$0xff] %vm352_vm2, %v938_v39 }
 0x32a   : > { %v919_v45 = vpop.xlane.xlu0 %918 }
 0x32b   : > { %v939_v49 = vadd.f32 %v919_v45, %v907_v40 }
 0x32d   : > { %948 = vst.msk [vmem:[#allocation3 + $0x8] sm:$0xff] %vm352_vm2, %v939_v49 }
 0x32e   : > { %v922_v51 = vpop.xlane.xlu0 %921 }
 0x32f   : > { %v940_v18 = vadd.f32 %v922_v51, %v908_v50 }
 0x330   : > { %v1431_v22 = vld [vmem:[#allocation3] sm:$0xff] }
 0x331   : > { %949 = vst.msk [vmem:[#allocation3 + $0x10] sm:$0xff] %vm352_vm2, %v940_v18  ;;  %1973 = vrcp.f32 %v1431_v22 }
 0x332   : > { %v925_v26 = vpop.xlane.xlu1 %924 }
 0x333   : > { %v941_v34 = vadd.f32 %v925_v26, %v909_v53 }
 0x334   : > { %v1432_v35 = vld [vmem:[#allocation3 + $0x8] sm:$0xff] }
 0x335   : > { %950 = vst.msk [vmem:[#allocation3 + $0x18] sm:$0xff] %vm352_vm2, %v941_v34  ;;  %1975 = vrcp.f32 %v1432_v35 }
 0x336   : > { %v928_v42 = vpop.xlane.xlu0 %927 }
 0x337   : > { %v942_v55 = vadd.f32 %v928_v42, %v910_v36  ;;  %v960_v36 = vld [vmem:[#allocation4 + $0x28] sm:$0xff] }
 0x338   : > { %v1433_v47 = vld [vmem:[#allocation3 + $0x10] sm:$0xff] }
 0x339   : > { %951 = vst.msk [vmem:[#allocation3 + $0x20] sm:$0xff] %vm352_vm2, %v942_v55  ;;  %1977 = vrcp.f32 %v1433_v47 }
 0x33a   : > { %v931_v54 = vpop.xlane.xlu1 %930 }
 0x33b   : > { %v1974_v57 = vpop.eup %1973  ;;  %v943_v58 = vadd.f32 %v931_v54, %v911_v48 }
 0x33c   : > { %1449 = vperm.xlu1 %1940, %v1974_v57   ;;  %v1434_v59 = vld [vmem:[#allocation3 + $0x18] sm:$0xff]  ;;  %v961_v57 = vld [vmem:[#allocation4 + $0x30] sm:$0xff] }
 0x33d   : > { %952 = vst.msk [vmem:[#allocation3 + $0x28] sm:$0xff] %vm352_vm2, %v943_v58  ;;  %1979 = vrcp.f32 %v1434_v59 }
 0x33e   : > { %v934_v60 = vpop.xlane.xlu0 %933 }
 0x33f   : > { %v1976_v62 = vpop.eup %1975  ;;  %v944_v63 = vadd.f32 %v934_v60, %v912_v3 }
 0x340   : > { %1454 = vperm.xlu0 %1939, %v1976_v62   ;;  %v1435_v1 = vld [vmem:[#allocation3 + $0x20] sm:$0xff] }
 0x341   : > { %953 = vst.msk [vmem:[#allocation3 + $0x30] sm:$0xff] %vm352_vm2, %v944_v63  ;;  %1981 = vrcp.f32 %v1435_v1  ;;  %v962_v1 = vld [vmem:[#allocation4 + $0x38] sm:$0xff] }
 0x342   : > { %v937_v5 = vpop.xlane.xlu1 %936 }
 0x343   : > { %v1978_v4 = vpop.eup %1977  ;;  %v945_v6 = vadd.f32 %v937_v5, %v913_v2 }
 0x344   : > { %1459 = vperm.xlu1 %1940, %v1978_v4   ;;  %v1436_v7 = vld [vmem:[#allocation3 + $0x28] sm:$0xff] }
 0x345   : > { %954 = vst.msk [vmem:[#allocation3 + $0x38] sm:$0xff] %vm352_vm2, %v945_v6  ;;  %1983 = vrcp.f32 %v1436_v7 }
 0x346   : > { %v966_v0 = vpop.permute.xlu0 %965  ;;  %v971_v43 = vpop.permute.xlu1 %970 }
 0x347   : > { %v1980_v29 = vpop.eup %1979  ;;  %v1003_v14 = vmul.f32 %v966_v0, %v955_v12  ;;  %v1004_v20 = vmul.f32 %v971_v43, %v956_v16 }
 0x348   : > { %1464 = vperm.xlu0 %1939, %v1980_v29   ;;  %v1437_v8 = vld [vmem:[#allocation3 + $0x30] sm:$0xff] }
 0x349   : > { %1985 = vrcp.f32 %v1437_v8 }
 0x34a   : > { %v976_v24 = vpop.permute.xlu1 %975  ;;  %v981_v39 = vpop.permute.xlu0 %980 }
 0x34b   : > { %v1982_v9 = vpop.eup %1981  ;;  %v1005_v32 = vmul.f32 %v976_v24, %v957_v23  ;;  %v1006_v50 = vmul.f32 %v981_v39, %v958_v38 }
 0x34c   : > { %1469 = vperm.xlu1 %1940, %v1982_v9   ;;  %v1438_v31 = vld [vmem:[#allocation3 + $0x38] sm:$0xff] }
 0x34d   : > { %1987 = vrcp.f32 %v1438_v31 }
 0x34e   : > { %v986_v18 = vpop.permute.xlu1 %985  ;;  %v991_v42 = vpop.permute.xlu0 %990 }
 0x34f   : > { %v1984_v10 = vpop.eup %1983  ;;  %v1007_v34 = vmul.f32 %v986_v18, %v959_v52  ;;  %v1008_v54 = vmul.f32 %v991_v42, %v960_v36 }
 0x350   : > { %1474 = vperm.xlu0 %1939, %v1984_v10  }
 0x352   : > { %v996_v58 = vpop.permute.xlu1 %995  ;;  %v1001_v2 = vpop.permute.xlu0 %1000 }
 0x353   : > { %v1986_v41 = vpop.eup %1985  ;;  %v1009_v62 = vmul.f32 %v996_v58, %v961_v57  ;;  %v1010_v29 = vmul.f32 %v1001_v2, %v962_v1 }
 0x354   : > { %1479 = vperm.xlu1 %1940, %v1986_v41  }
 0x357   : > { %v1988_v11 = vpop.eup %1987 }
 0x358   : > { %1484 = vperm.xlu0 %1939, %v1988_v11  }
 0x36d   : > { %v1068_v13 = vpop.f32.mrb[16].mxu0 }
 0x36e   : > { %v1396_v15 = vadd.f32 %v1068_v13, %v1003_v14  ;;  %v1804_v17 = vpop.f32.mrb[17].mxu0 }
 0x36f   : > { %v1071_v19 = vpop.f32.mrb[18].mxu0 }
 0x370   : > { %1404 = vst.msk [vmem:[#allocation4] sm:$0xff] %vm369_vm0, %v1396_v15  ;;  %v1805_v21 = vpop.f32.mrb[19].mxu0 }
 0x371   : > { %v1114_v25 = vpop.f32.mrb[16].mxu1 }
 0x372   : > { %v1397_v27 = vadd.f32 %v1114_v25, %v1004_v20  ;;  %v1810_v28 = vpop.f32.mrb[17].mxu1 }
 0x373   : > { %v1117_v30 = vpop.f32.mrb[18].mxu1 }
 0x374   : > { %1405 = vst.msk [vmem:[#allocation4 + $0x8] sm:$0xff] %vm369_vm0, %v1397_v27  ;;  %v1811_v37 = vpop.f32.mrb[19].mxu1 }
 0x375   : > { %v1160_v40 = vpop.f32.mrb[20].mxu0 }
 0x376   : > { %v1398_v45 = vadd.f32 %v1160_v40, %v1005_v32  ;;  %v1816_v46 = vpop.f32.mrb[21].mxu0 }
 0x377   : > { %v1163_v49 = vpop.f32.mrb[22].mxu0  ;;  %v1423_v12 = vld [vmem:[#allocation4] sm:$0xff] }
 0x378   : > { %1406 = vst.msk [vmem:[#allocation4 + $0x10] sm:$0xff] %vm369_vm0, %v1398_v45  ;;  %v1817_v51 = vpop.f32.mrb[23].mxu0 }
 0x379   : > { %v1206_v22 = vpop.f32.mrb[20].mxu1 }
 0x37a   : > { %v1399_v53 = vadd.f32 %v1206_v22, %v1006_v50  ;;  %v1822_v26 = vpop.f32.mrb[21].mxu1 }
 0x37b   : > { %v1209_v33 = vpop.f32.mrb[22].mxu1  ;;  %v1424_v16 = vld [vmem:[#allocation4 + $0x8] sm:$0xff] }
 0x37c   : > { %1407 = vst.msk [vmem:[#allocation4 + $0x18] sm:$0xff] %vm369_vm0, %v1399_v53  ;;  %v1823_v35 = vpop.f32.mrb[23].mxu1 }
 0x37d   : > { %v1252_v44 = vpop.f32.mrb[24].mxu0 }
 0x37e   : > { %v1400_v55 = vadd.f32 %v1252_v44, %v1007_v34  ;;  %v1828_v47 = vpop.f32.mrb[25].mxu0 }
 0x37f   : > { %v1255_v48 = vpop.f32.mrb[26].mxu0  ;;  %v1425_v19 = vld [vmem:[#allocation4 + $0x10] sm:$0xff] }
 0x380   : > { %1408 = vst.msk [vmem:[#allocation4 + $0x20] sm:$0xff] %vm369_vm0, %v1400_v55  ;;  %v1829_v56 = vpop.f32.mrb[27].mxu0 }
 0x381   : > { %v1298_v59 = vpop.f32.mrb[24].mxu1 }
 0x382   : > { %v1401_v3 = vadd.f32 %v1298_v59, %v1008_v54  ;;  %v1834_v60 = vpop.f32.mrb[25].mxu1 }
 0x383   : > { %v1301_v61 = vpop.f32.mrb[26].mxu1  ;;  %v1426_v24 = vld [vmem:[#allocation4 + $0x18] sm:$0xff] }
 0x384   : > { %1409 = vst.msk [vmem:[#allocation4 + $0x28] sm:$0xff] %vm369_vm0, %v1401_v3  ;;  %v1835_v63 = vpop.f32.mrb[27].mxu1 }
 0x385   : > { %v1344_v5 = vpop.f32.mrb[28].mxu0 }
 0x386   : > { %v1402_v4 = vadd.f32 %v1344_v5, %v1009_v62  ;;  %v1840_v6 = vpop.f32.mrb[29].mxu0 }
 0x387   : > { %v1347_v7 = vpop.f32.mrb[30].mxu0  ;;  %v1427_v30 = vld [vmem:[#allocation4 + $0x20] sm:$0xff] }
 0x388   : > { %1410 = vst.msk [vmem:[#allocation4 + $0x30] sm:$0xff] %vm369_vm0, %v1402_v4  ;;  %v1841_v8 = vpop.f32.mrb[31].mxu0 }
 0x389   : > { %v1390_v9 = vpop.f32.mrb[28].mxu1 }
 0x38a   : > { %v1403_v31 = vadd.f32 %v1390_v9, %v1010_v29  ;;  %v1846_v10 = vpop.f32.mrb[29].mxu1 }
 0x38b   : > { %v1393_v41 = vpop.f32.mrb[30].mxu1  ;;  %v1428_v39 = vld [vmem:[#allocation4 + $0x28] sm:$0xff] }
 0x38c   : > { %1411 = vst.msk [vmem:[#allocation4 + $0x38] sm:$0xff] %vm369_vm0, %v1403_v31  ;;  %v1847_v11 = vpop.f32.mrb[31].mxu1 }
 0x38f   : > { %v1429_v49 = vld [vmem:[#allocation4 + $0x30] sm:$0xff] }
 0x393   : > { %v1430_v18 = vld [vmem:[#allocation4 + $0x38] sm:$0xff] }
 0x3bb   : > { %v1450_v0 = vpop.permute.xlu1 %1449 }
 0x3bc   : > { %v1487_v43 = vmul.f32 %v1450_v0, %v1423_v12 }
 0x3be   : > { %v1495_v14 = vpack.c.bf16 %v1487_v43, %v1487_v43 }
 0x3bf   : > { %v1455_v13 = vpop.permute.xlu0 %1454 }
 0x3c0   : > { %1504 = vst.msk [vmem:[%s2817_s13] sm:$0xf] %vm1503_vm4, %v1495_v14  ;;  %v1488_v15 = vmul.f32 %v1455_v13, %v1424_v16 }
 0x3c2   : > { %v1496_v17 = vpack.c.bf16 %v1488_v15, %v1488_v15 }
 0x3c3   : > { %v1460_v20 = vpop.permute.xlu1 %1459 }
 0x3c4   : > { %1505 = vst.msk [vmem:[%s2817_s13 + $0x4] sm:$0xf] %vm1503_vm4, %v1496_v17  ;;  %v1489_v21 = vmul.f32 %v1460_v20, %v1425_v19 }
 0x3c6   : > { %v1497_v23 = vpack.c.bf16 %v1489_v21, %v1489_v21 }
 0x3c7   : > { %v1465_v25 = vpop.permute.xlu0 %1464 }
 0x3c8   : > { %1506 = vst.msk [vmem:[%s2817_s13 + $0x8] sm:$0xf] %vm1503_vm4, %v1497_v23  ;;  %v1490_v27 = vmul.f32 %v1465_v25, %v1426_v24 }
 0x3ca   : > { %v1498_v28 = vpack.c.bf16 %v1490_v27, %v1490_v27 }
 0x3cb   : > { %v1470_v32 = vpop.permute.xlu1 %1469 }
 0x3cc   : > { %1507 = vst.msk [vmem:[%s2817_s13 + $0xc] sm:$0xf] %vm1503_vm4, %v1498_v28  ;;  %v1491_v37 = vmul.f32 %v1470_v32, %v1427_v30 }
 0x3ce   : > { %v1499_v38 = vpack.c.bf16 %v1491_v37, %v1491_v37 }
 0x3cf   : > { %v1475_v40 = vpop.permute.xlu0 %1474 }
 0x3d0   : > { %1508 = vst.msk [vmem:[%s2817_s13 + $0x10] sm:$0xf] %vm1503_vm4, %v1499_v38  ;;  %v1492_v45 = vmul.f32 %v1475_v40, %v1428_v39 }
 0x3d2   : > { %v1500_v46 = vpack.c.bf16 %v1492_v45, %v1492_v45 }
 0x3d3   : > { %v1480_v50 = vpop.permute.xlu1 %1479 }
 0x3d4   : > { %1509 = vst.msk [vmem:[%s2817_s13 + $0x14] sm:$0xf] %vm1503_vm4, %v1500_v46  ;;  %v1493_v51 = vmul.f32 %v1480_v50, %v1429_v49 }
 0x3d6   : > { %v1501_v52 = vpack.c.bf16 %v1493_v51, %v1493_v51 }
 0x3d7   : > { %v1485_v22 = vpop.permute.xlu0 %1484 }
 0x3d8   : > { %1510 = vst.msk [vmem:[%s2817_s13 + $0x18] sm:$0xf] %vm1503_vm4, %v1501_v52  ;;  %v1494_v53 = vmul.f32 %v1485_v22, %v1430_v18 }
 0x3da   : > { %v1502_v26 = vpack.c.bf16 %v1494_v53, %v1494_v53 }
 0x3dc   : > { %1511 = vst.msk [vmem:[%s2817_s13 + $0x1c] sm:$0xf] %vm1503_vm4, %v1502_v26 }
 0x3dd   : > { %2120 = shalt.err (!%p2117_p11)
}
 0x3de   : > { %s2121_s25 = scalar_lea.hbm %s2838_s28, 512  ;;  %s2125_s14 = scalar_lea.hbm %s2894_s4, 2560 }
 0x3df   : > { %p2122_p3 = scmp.ne.s32.totalorder %s2838_s28, %s2121_s25  ;;  %p2126_p1 = scmp.lt.u32.totalorder %s2838_s28, %s2894_s4 }
 0x3e0   : > { %p2127_p6 = scmp.lt.u32.totalorder %s2125_s14, %s2121_s25  ;;  %p2129_p13 = scmp.lt.u32.totalorder %s2121_s25, %s2838_s28 }
 0x3e1   : > { %p2123_p2 = pnand %p2122_p3, %p2933_p0 }
 0x3e2   : > { %p2128_p12 = por %p2127_p6, %p2126_p1 }
 0x3e3   : > { %p2124_p8 = pneg %p2123_p2 }
 0x3e4   : > { %p2130_p4 = por %p2129_p13, %p2128_p12 }
 0x3e6   : > { %p2131_p9 = pnand %p2130_p4, %p2124_p8 }
 0x3e8   : > { %2134 = shalt.err (!%p2131_p9)
}
 0x3e9   : > { %s2210_s7 = smov 64   ;;  %s2211_s9 = smov 4  }
 0x3ea   : > { %1858 = dma.vmem_to_hbm [thread:$0]  (%p2933_p0), %s2840_s5, 512, %s2838_s28, %s1513_s18, %s2210_s7, %s2210_s7, %s2211_s9  }
 0x3eb PF: > { %p1881_p10 = scmp.ge.s32.totalorder %s2197_s20, 2  ;;  %s1542_s23 = sand.u32 1, %s2177_s15  }
 0x3ec   : > { %p2934_p7 = scmp.ne.s32.totalorder %s2921_s8, 0  ;;  %s1543_s19 = scalar_lea.sflag [#allocation7], %s1542_s23 }
 0x3ee   : > { %p1875_p5 = pnand %p1881_p10, %p2934_p7 }
 0x3f0   : > { %2172 = dma.done.wait (!%p1875_p5), %s1543_s19, 512  }
 0x3f1   : > { %2174 = vsyncadd (!%p1875_p5), %s1543_s19, 4294966784  ;;  %s24_s20 = sadd.s32 1, %s2197_s20   ;;  %s2935_s21 = sld [smem:[#allocation18_spill]] }
 0x3f2   : > { %p21_p11 = scmp.ge.s32.totalorder %s24_s20, 7   ;;  %s2936_s17 = sld [smem:[#allocation21_spill]] }
 0x3f3   : > { %s2937_s18 = sld [smem:[#allocation19_spill]]  ;;  %s2938_s19 = sld [smem:[#allocation20_spill]] }
 0x3f4   : > { %s2939_s15 = smov %s2181_s16  ;;  %23 = sbr.rel (!%p21_p11) target bundleno = 12 (0xc), region = 118 }
 0x3f7   : > { %s2940_s16 = smov %s2935_s21 }
 0x3fb   :  { %1548 = vsyncpa [#allocation6], 1 }
 0x3fc   :  { %1550 = vsyncpa [#allocation6 + $0x1], 1 }
 0x3fd   :  { %1551 = vsyncpa [#allocation9], 1 }
 0x3fe   :  { %1553 = vsyncpa [#allocation9 + $0x1], 1 }
 0x3ff   :  { %1554 = vsyncpa [#allocation12], 1 }
 0x400   :  { %1555 = vsyncpa [#allocation7], 1 }
 0x401   :  { %1557 = vsyncpa [#allocation7 + $0x1], 1 }

// kernel: clip_forward.63
= control target key start
LH: loop header
LB: loop body
LE: loop exit
PB: predicated region body
PF: predicated region fallthrough
CT: control target
= control target key end

     0   :  { %8 = vsyncpa [#allocation3], 0  ;;  %s334_s0 = inlined_call_operand.hbm [shape: bf16[8,32], index: 0, kind: input, shape index: {}]   ;;  %s335_s1 = inlined_call_operand.hbm [shape: bf16[32,16], index: 1, kind: input, shape index: {}]   ;;  %s336_s2 = inlined_call_operand.hbm [shape: f32[1,16], index: 2, kind: input, shape index: {}]   ;;  %s337_s3 = inlined_call_operand.hbm [shape: f32[8,16], index: 3, kind: output, shape index: {}]  }
   0x1   :  { %9 = vsyncpa [#allocation6], 0 }
   0x2   :  { %10 = vsyncpa [#allocation4], 0  ;;  %s258_s12 = smov [#allocation5]   ;;  %s164_s16 = scalar_lea.hbm %s335_s1, 256 }
   0x3   :  { %s26_s13 = sshll.u32 %s258_s12, 4  ;;  %p165_p0 = scmp.ne.s32.totalorder %s335_s1, %s164_s16  ;;  %s27_s13 = int_to_ptr.vmem [resolvable:$true] %s26_s13 }
   0x4   :  { %p168_p1 = scmp.lt.u32.totalorder %s164_s16, %s335_s1 }
   0x6   :  { %p170_p2 = pnand %p168_p1, %p165_p0 }
   0x8   :  { %173 = shalt.err (!%p170_p2)
}
   0x9   :  { %s174_s21 = scalar_lea.vmem %s27_s13, 256  ;;  %p179_p4 = scmp.lt.s32.totalorder %s27_s13, %s27_s13 }
   0xa   :  { %p175_p3 = scmp.ne.s32.totalorder %s27_s13, %s174_s21  ;;  %p180_p5 = scmp.lt.s32.totalorder %s174_s21, %s174_s21 }
   0xc   :  { %p181_p6 = por %p180_p5, %p179_p4 }
   0xe   :  { %p182_p7 = pnand %p181_p6, %p175_p3 }
  0x10   :  { %185 = shalt.err (!%p182_p7)
}
  0x11   :  { %s259_s22 = smov 64   ;;  %s260_s23 = smov 4  }
  0x12   :  { %32 = dma.hbm_to_vmem [thread:$0]  %s335_s1, 256, %s27_s13, [#allocation6], %s259_s22, %s259_s22, %s260_s23  }
  0x13   :  { %s261_s26 = smov [#allocation2]   ;;  %s262_s28 = smov [#allocation7]  }
  0x14   :  { %s17_s27 = sshll.u32 %s261_s26, 4  ;;  %s39_s29 = sshll.u32 %s262_s28, 4  ;;  %s18_s27 = int_to_ptr.vmem [resolvable:$true] %s17_s27  ;;  %s40_s29 = int_to_ptr.vmem [resolvable:$true] %s39_s29 }
  0x15   :  { %s186_s5 = scalar_lea.hbm %s334_s0, 64 }
  0x16   :  { %p187_p8 = scmp.ne.s32.totalorder %s334_s0, %s186_s5  ;;  %p190_p9 = scmp.lt.u32.totalorder %s186_s5, %s334_s0 }
  0x18   :  { %p192_p10 = pnand %p190_p9, %p187_p8 }
  0x1a   :  { %195 = shalt.err (!%p192_p10)
}
  0x1b   :  { %s196_s1 = scalar_lea.vmem %s18_s27, 64  ;;  %p201_p12 = scmp.lt.s32.totalorder %s18_s27, %s18_s27 }
  0x1c   :  { %p197_p11 = scmp.ne.s32.totalorder %s18_s27, %s196_s1  ;;  %p202_p13 = scmp.lt.s32.totalorder %s196_s1, %s196_s1 }
  0x1e   :  { %p203_p0 = por %p202_p13, %p201_p12 }
  0x20   :  { %p204_p1 = pnand %p203_p0, %p197_p11 }
  0x22   :  { %207 = shalt.err (!%p204_p1)
}
  0x23   :  { %20 = dma.hbm_to_vmem [thread:$0]  %s334_s0, 64, %s18_s27, [#allocation3]  }
  0x24   :  { %s208_s14 = scalar_lea.hbm %s336_s2, 16 }
  0x25   :  { %p209_p2 = scmp.ne.s32.totalorder %s336_s2, %s208_s14  ;;  %p212_p3 = scmp.lt.u32.totalorder %s208_s14, %s336_s2 }
  0x27   :  { %p214_p4 = pnand %p212_p3, %p209_p2 }
  0x29   :  { %217 = shalt.err (!%p214_p4)
}
  0x2a   :  { %s218_s19 = scalar_lea.vmem %s40_s29, 16  ;;  %s222_s20 = scalar_lea.vmem %s40_s29, 32 }
  0x2b   :  { %p219_p5 = scmp.ne.s32.totalorder %s40_s29, %s218_s19  ;;  %p223_p6 = scmp.lt.s32.totalorder %s40_s29, %s40_s29 }
  0x2c   :  { %p224_p7 = scmp.lt.s32.totalorder %s222_s20, %s218_s19 }
  0x2e   :  { %p225_p8 = por %p224_p7, %p223_p6 }
  0x30   :  { %p226_p9 = pnand %p225_p8, %p219_p5 }
  0x32   :  { %229 = shalt.err (!%p226_p9)
}
  0x33   :  { %42 = dma.hbm_to_vmem [thread:$0]  %s336_s2, 16, %s40_s29, [#allocation6]  }
  0x34   :  { %252 = dma.done.wait [#allocation3], 64  }
  0x35   :  { %253 = vsyncadd [#allocation3], 4294967232 }
  0x36   :  { %254 = dma.done.wait [#allocation6], 272  }
  0x37   :  { %255 = vsyncadd [#allocation6], 4294967024  ;;  %v263_v0 = vmov 0.0   ;;  %vm264_vm0 = vmmov 0   ;;  %v162_v1 = vld [vmem:[#allocation5] sm:$0xff]   ;;  %v163_v2 = vld [vmem:[#allocation5 + $0x8] sm:$0xff]  }
  0x38   :  { %146 = vmatprep.subr.bf16.mxu0 %v263_v0  ;;  %150 = vmatprep.mubr.msk.bf16.mxu0 %vm264_vm0, %v263_v0  ;;  %v53_v3 = vld [vmem:[#allocation2] sm:$0xf]  ;;  %vm77_vm1 = vcmask 261120   ;;  %v139_v4 = vld [vmem:[#allocation7] ss:$0 sm:$0xff]  ;;  %s265_s22 = smov [#allocation8]  }
  0x39   :  { %147 = vmatpush3.bf16.msra.mxu0 %v162_v1  ;;  %s129_s23 = sshll.u32 %s265_s22, 4  ;;  %vm121_vm2 = vcmask 130048   ;;  %s130_s23 = int_to_ptr.vmem [resolvable:$true] %s129_s23 }
  0x3a   :  { %148 = vmatprep.subr.bf16.mxu0 %v263_v0  ;;  %s230_s2 = scalar_lea.vmem %s130_s23, 128  ;;  %p235_p11 = scmp.lt.s32.totalorder %s130_s23, %s130_s23 }
  0x3b   :  { %p231_p10 = scmp.ne.s32.totalorder %s130_s23, %s230_s2  ;;  %p236_p12 = scmp.lt.s32.totalorder %s230_s2, %s230_s2 }
  0x3d   :  { %149 = vmatpush3.bf16.msra.mxu0 %v163_v2  ;;  %p237_p13 = por %p236_p12, %p235_p11 }
  0x3f   :  { %p238_p0 = pnand %p237_p13, %p231_p10 }
  0x40   :  { %151 = vmatmul.mubr.msk.bf16.vlgmr.msra.gmra.mrb[0].mxu0 %vm77_vm1, %v53_v3 }
 0x113   :  { %v115_v5 = vpop.f32.mrb[0].mxu0 }
 0x114   :  { %v116_v6 = vadd.f32 %v139_v4, %v115_v5  ;;  %v152_v7 = vpop.f32.mrb[1].mxu0 }
 0x115   :  { %v118_v8 = vpop.f32.mrb[2].mxu0 }
 0x116   :  { %v153_v9 = vpop.f32.mrb[3].mxu0  ;;  %122 = vst.msk [vmem:[#allocation8] sm:$0xff] %vm121_vm2, %v116_v6 }
 0x117   :  { %241 = shalt.err (!%p238_p0)
}
 0x118   :  { %s242_s26 = scalar_lea.hbm %s337_s3, 128 }
 0x119   :  { %p243_p1 = scmp.ne.s32.totalorder %s337_s3, %s242_s26  ;;  %p246_p2 = scmp.lt.u32.totalorder %s242_s26, %s337_s3 }
 0x11b   :  { %p248_p3 = pnand %p246_p2, %p243_p1 }
 0x11d   :  { %251 = shalt.err (!%p248_p3)
}
 0x11e   :  { %132 = dma.vmem_to_hbm [thread:$0]  %s130_s23, 128, %s337_s3, [#allocation4]  }
 0x11f   :  { %256 = dma.done.wait [#allocation4], 128  }
 0x120   :  { %257 = vsyncadd [#allocation4], 4294967168 }
 0x121   :  { %136 = vsyncpa [#allocation3], 1 }
 0x122   :  { %137 = vsyncpa [#allocation6], 1 }
 0x123   :  { %138 = vsyncpa [#allocation4], 1 }

</bundles_post_ra>
